<compile_context>
chip_gen: v7x
topology: tpu7x:2x2x1
jax: 0.10.0
libtpu: 0.0.40
codegen_flags: <defaults>
</compile_context>

<pallas_src>
import jax
import jax.numpy as jnp
from jax.experimental import pallas as pl
from jax.experimental.pallas import tpu as pltpu

# Set to jnp.bfloat16 on v6e/v7x to feed the MXU bf16 inputs (accumulation and
# BN/ReLU epilogue stay f32).  Default f32 preserves exact float32 semantics.
MXU_DTYPE = jnp.float32


def _round_up(x, m):
    return (x + m - 1) // m * m


# ----------------------------------------------------------------------------
# Kernel 1: 2x2 / stride-2 transposed conv as ONE matmul.
# For stride == kernel == 2 every output pixel receives exactly one tap, so the
# op is a single (H*W, Cin) @ (Cin, 4*Cout) contraction; taps are packed along
# the lane dim in (ki, kj, c) order so the scatter outside is a cheap reshape.
# ----------------------------------------------------------------------------
def _convt2x2_kernel(x_ref, w_ref, b_ref, o_ref):
    # x_ref: (1, H, W, Cin)  w_ref: (Cin, 4*Cout)  b_ref: (1, 4*Cout)
    # o_ref: (1, H*W, 4*Cout)
    H, W, Cin = x_ref.shape[1], x_ref.shape[2], x_ref.shape[3]
    x2d = x_ref[0].reshape(H * W, Cin).astype(w_ref.dtype)
    y = jnp.dot(x2d, w_ref[...], preferred_element_type=jnp.float32)
    o_ref[0] = (y + b_ref[0][None, :]).astype(o_ref.dtype)


def conv_transpose2x2(x_nhwc, w, b):
    """x_nhwc: (N,H,W,Cin); w: torch ConvTranspose2d layout (Cin, Cout, 2, 2)."""
    N, H, W, Cin = x_nhwc.shape
    Cout = w.shape[1]
    # columns ordered (ki, kj, cout): wt[c, (ki,kj,o)] = w[c, o, ki, kj]
    wt = jnp.transpose(w, (0, 2, 3, 1)).reshape(Cin, 4 * Cout).astype(MXU_DTYPE)
    bt = jnp.tile(b, 4).reshape(1, 4 * Cout)
    y4 = pl.pallas_call(
        _convt2x2_kernel,
        out_shape=jax.ShapeDtypeStruct((N, H * W, 4 * Cout), jnp.float32),
        grid=(N,),
        in_specs=[
            pl.BlockSpec((1, H, W, Cin), lambda n: (n, 0, 0, 0)),
            pl.BlockSpec((Cin, 4 * Cout), lambda n: (0, 0)),
            pl.BlockSpec((1, 4 * Cout), lambda n: (0, 0)),
        ],
        out_specs=pl.BlockSpec((1, H * W, 4 * Cout), lambda n: (n, 0, 0)),
        compiler_params=pltpu.CompilerParams(
            dimension_semantics=("parallel",),
            vmem_limit_bytes=32 * 1024 * 1024),
    )(x_nhwc, wt, bt)
    # scatter taps to (2i+ki, 2j+kj): small reshape/transpose (8 KiB at test size).
    y = y4.reshape(N, H, W, 2, 2, Cout)
    y = jnp.transpose(y, (0, 1, 3, 2, 4, 5)).reshape(N, 2 * H, 2 * W, Cout)
    return y


# ----------------------------------------------------------------------------
# Kernel 2: fused  pad(x2) + cat([x2, x1_up]) + (Conv3x3 -> BN -> ReLU) * 2.
# The padded, concatenated input is materialized once per grid step as a 9-tap
# im2col scratch X9[p, q, (dy*3+dx)*Cin + c] = xpad[p+dy, q+dx, c] built from
# static rectangular block writes (halo / spatial-diff padding = the zeros that
# are simply never overwritten).  Each conv is then a single fat contraction.
# ----------------------------------------------------------------------------
def _fill_im2col(x9_ref, src, orow, ocol, ch_off, cin_total, Hh, Wq):
    """Place value `src` (sh, sw, sc) at canvas offset (orow, ocol) / channel
    offset ch_off inside the 9-tap im2col scratch.  All bounds are static; the
    clamping also handles negative offsets (torch's implicit cropping)."""
    sh, sw, sc = src.shape
    for dy in range(3):
        p0, p1 = max(0, orow - dy), min(Hh, sh + orow - dy)
        if p0 >= p1:
            continue
        for dx in range(3):
            q0, q1 = max(0, ocol - dx), min(Wq, sw + ocol - dx)
            if q0 >= q1:
                continue
            c0 = (dy * 3 + dx) * cin_total + ch_off
            x9_ref[p0:p1, q0:q1, c0:c0 + sc] = src[
                p0 + dy - orow:p1 + dy - orow,
                q0 + dx - ocol:q1 + dx - ocol, :].astype(x9_ref.dtype)


def _make_doubleconv_kernel(Hh, Ww, Wq, c1in, c1out, c2out, ch_split,
                            padT, padL, cdt):
    def kernel(x2_ref, x1u_ref, w1_ref, sb1_ref, w2_ref, sb2_ref, o_ref,
               x9a, x9b):
        # ---- concat([x2_pad, x1_up]) + conv halo, built directly as im2col ----
        x9a[...] = jnp.zeros((Hh, Wq, 9 * c1in), cdt)
        _fill_im2col(x9a, x2_ref[0], 1 + padT, 1 + padL, 0, c1in, Hh, Wq)
        _fill_im2col(x9a, x1u_ref[0], 1, 1, ch_split, c1in, Hh, Wq)

        # ---- conv1: single K = 9*c1in contraction, then folded BN + ReLU ----
        X1 = x9a[...].reshape(Hh * Wq, 9 * c1in)
        h = jnp.dot(X1, w1_ref[...], preferred_element_type=jnp.float32)
        h = jnp.maximum(h * sb1_ref[0][None, :] + sb1_ref[1][None, :], 0.0)
        h = h.reshape(Hh, Wq, c1out)[:, :Ww, :]          # crop scratch columns

        # ---- conv2 on the VMEM-resident intermediate ----
        x9b[...] = jnp.zeros((Hh, Wq, 9 * c1out), cdt)
        _fill_im2col(x9b, h, 1, 1, 0, c1out, Hh, Wq)
        X2 = x9b[...].reshape(Hh * Wq, 9 * c1out)
        y = jnp.dot(X2, w2_ref[...], preferred_element_type=jnp.float32)
        y = jnp.maximum(y * sb2_ref[0][None, :] + sb2_ref[1][None, :], 0.0)
        o_ref[0] = y.reshape(Hh, Wq, c2out)[:, :Ww, :].astype(o_ref.dtype)
    return kernel


def _fold_bn(w, b, gamma, beta, rmean, rvar, eps=1e-5):
    """Conv weight (Cout,Cin,3,3) -> (9*Cin, Cout) with K order (dy, dx, cin);
    conv bias + BatchNorm (running stats) folded into a (2, Cout) scale/bias."""
    cout, cin = w.shape[0], w.shape[1]
    wt = jnp.transpose(w, (2, 3, 1, 0)).reshape(9 * cin, cout).astype(MXU_DTYPE)
    scale = gamma / jnp.sqrt(rvar + eps)
    bias = (b - rmean) * scale + beta
    return wt, jnp.stack([scale, bias], axis=0).astype(jnp.float32)


def pad_concat_double_conv(x2, x1u, padT, padL, p):
    """Fused: F.pad(x2); cat([x2, x1u], channels); (conv3x3 -> BN -> ReLU) * 2."""
    N, Hh, Ww, ch_up = x1u.shape
    h2, w2, ch2 = x2.shape[1], x2.shape[2], x2.shape[3]
    c1in = ch2 + ch_up                               # == in_ch
    w1t, sb1 = _fold_bn(p["c1_w"], p["c1_b"], p["bn1_g"], p["bn1_b"],
                        p["bn1_rm"], p["bn1_rv"])
    w2t, sb2 = _fold_bn(p["c2_w"], p["c2_b"], p["bn2_g"], p["bn2_b"],
                        p["bn2_rm"], p["bn2_rv"])
    c1out, c2out = sb1.shape[1], sb2.shape[1]
    Wq = _round_up(Ww + 2, 8)                        # halo + sublane-aligned width
    kernel = _make_doubleconv_kernel(Hh, Ww, Wq, c1in, c1out, c2out,
                                     ch2, padT, padL, MXU_DTYPE)
    return pl.pallas_call(
        kernel,
        out_shape=jax.ShapeDtypeStruct((N, Hh, Ww, c2out), jnp.float32),
        grid=(N,),
        in_specs=[
            pl.BlockSpec((1, h2, w2, ch2), lambda n: (n, 0, 0, 0)),
            pl.BlockSpec((1, Hh, Ww, ch_up), lambda n: (n, 0, 0, 0)),
            pl.BlockSpec((9 * c1in, c1out), lambda n: (0, 0)),
            pl.BlockSpec((2, c1out), lambda n: (0, 0)),
            pl.BlockSpec((9 * c1out, c2out), lambda n: (0, 0)),
            pl.BlockSpec((2, c2out), lambda n: (0, 0)),
        ],
        out_specs=pl.BlockSpec((1, Hh, Ww, c2out), lambda n: (n, 0, 0, 0)),
        scratch_shapes=[
            pltpu.VMEM((Hh, Wq, 9 * c1in), MXU_DTYPE),
            pltpu.VMEM((Hh, Wq, 9 * c1out), MXU_DTYPE),
        ],
        compiler_params=pltpu.CompilerParams(
            dimension_semantics=("parallel",),
            vmem_limit_bytes=32 * 1024 * 1024),
    )(x2, x1u, w1t, sb1, w2t, sb2)


# ----------------------------------------------------------------------------
# Full `up` forward (NCHW in / NCHW out, like the PyTorch module).
# ----------------------------------------------------------------------------
def up_forward(x1_nchw, x2_nchw, p, drop_rate=0.0, key=None):
    x1 = jnp.transpose(x1_nchw, (0, 2, 3, 1))        # NCHW -> NHWC
    x2 = jnp.transpose(x2_nchw, (0, 2, 3, 1))

    # self.up = ConvTranspose2d(in_ch//2, in_ch//2, 2, stride=2)
    x1u = conv_transpose2x2(x1, p["up_w"], p["up_b"])

    # torch: diffX from dim 2 (H), diffY from dim 3 (W); F.pad pads (W, then H),
    # so W gets the diffX-based pad and H the diffY-based one (module quirk).
    # Only top/left offsets are needed: the canvas is x1u-sized, so the implicit
    # bottom/right pads equal torch's whenever torch's cat would have succeeded;
    # negative offsets (cropping) are handled by the clamped ranges in the kernel.
    diffX = x1u.shape[1] - x2.shape[1]
    diffY = x1u.shape[2] - x2.shape[2]
    padL = diffX // 2
    padT = diffY // 2

    if drop_rate > 0.0:
        # F.dropout after the concat == independent dropout on both halves.
        keep = 1.0 - drop_rate
        k1, k2 = jax.random.split(key)
        x2 = jnp.where(jax.random.bernoulli(k1, keep, x2.shape), x2 / keep, 0.0)
        x1u = jnp.where(jax.random.bernoulli(k2, keep, x1u.shape), x1u / keep, 0.0)

    x = pad_concat_double_conv(x2, x1u, padT, padL, p)
    return jnp.transpose(x, (0, 3, 1, 2))            # NHWC -> NCHW


def make_params(key, in_ch, out_ch):
    ks = jax.random.split(key, 8)
    c_half = in_ch // 2
    f = lambda k, s, scale=0.1: (scale * jax.random.normal(k, s)).astype(jnp.float32)
    return {
        # ConvTranspose2d(in_ch//2, in_ch//2, 2, 2): weight (Cin, Cout, 2, 2)
        "up_w": f(ks[0], (c_half, c_half, 2, 2)),
        "up_b": f(ks[1], (c_half,)),
        # Conv2d(in_ch, out_ch, 3): weight (Cout, Cin, 3, 3)
        "c1_w": f(ks[2], (out_ch, in_ch, 3, 3)),
        "c1_b": f(ks[3], (out_ch,)),
        "bn1_g": 1.0 + f(ks[4], (out_ch,)),
        "bn1_b": f(ks[5], (out_ch,)),
        "bn1_rm": jnp.zeros((out_ch,), jnp.float32),
        "bn1_rv": jnp.ones((out_ch,), jnp.float32),
        # Conv2d(out_ch, out_ch, 3)
        "c2_w": f(ks[6], (out_ch, out_ch, 3, 3)),
        "c2_b": f(ks[7], (out_ch,)),
        "bn2_g": jnp.ones((out_ch,), jnp.float32),
        "bn2_b": jnp.zeros((out_ch,), jnp.float32),
        "bn2_rm": jnp.zeros((out_ch,), jnp.float32),
        "bn2_rv": jnp.ones((out_ch,), jnp.float32),
    }


if __name__ == "__main__":
    key = jax.random.PRNGKey(0)
    k1, k2, kp = jax.random.split(key, 3)

    in_ch, out_ch = 8, 4
    N, H, W = 2, 8, 8                         # x1 is the coarse map (H, W)
    x1 = jax.random.normal(k1, (N, in_ch // 2, H, W), jnp.float32)        # NCHW
    x2 = jax.random.normal(k2, (N, in_ch // 2, 2 * H, 2 * W), jnp.float32)

    params = make_params(kp, in_ch, out_ch)

    fwd = jax.jit(lambda a, b: up_forward(a, b, params, drop_rate=0.0))
    out = fwd(x1, x2)
    jax.block_until_ready(out)

    assert out.shape == (N, out_ch, 2 * H, 2 * W), out.shape
    assert bool(jnp.all(jnp.isfinite(out)))
    print("KERNEL_OK")
</pallas_src>

<mosaic_0001>
module attributes {stable_mosaic.version = 11 : i64} {
  func.func @_convt2x2_kernel(%arg0: i32, %arg1: memref<1x8x8x4xf32, #tpu.memory_space<vmem>>, %arg2: memref<4x16xf32, #tpu.memory_space<vmem>>, %arg3: memref<1x16xf32, #tpu.memory_space<vmem>>, %arg4: memref<1x64x16xf32, #tpu.memory_space<vmem>>) attributes {dimension_semantics = [#tpu.dimension_semantics<parallel>], iteration_bounds = array<i64: 2>, scalar_prefetch = 0 : i64, scratch_operands = 0 : i64, tpu.core_type = #tpu.core_type<tc>, window_params = [{transform_indices = @transform_0, window_bounds = array<i64: 1, 8, 8, 4>}, {pipeline_mode = #tpu.pipeline_mode<synchronous>, transform_indices = @transform_1, window_bounds = array<i64: 4, 16>}, {pipeline_mode = #tpu.pipeline_mode<synchronous>, transform_indices = @transform_2, window_bounds = array<i64: 1, 16>}, {transform_indices = @transform_3, window_bounds = array<i64: 1, 64, 16>}]} {
    %c0 = arith.constant 0 : index
    %c0_0 = arith.constant 0 : index
    %c0_1 = arith.constant 0 : index
    %c0_2 = arith.constant 0 : index
    %0 = vector.load %arg1[%c0, %c0_0, %c0_1, %c0_2] : memref<1x8x8x4xf32, #tpu.memory_space<vmem>>, vector<1x8x8x4xf32>
    %1 = vector.shape_cast %0 : vector<1x8x8x4xf32> to vector<8x8x4xf32>
    %2 = vector.shape_cast %1 : vector<8x8x4xf32> to vector<64x4xf32>
    %c0_3 = arith.constant 0 : index
    %c0_4 = arith.constant 0 : index
    %3 = vector.load %arg2[%c0_3, %c0_4] : memref<4x16xf32, #tpu.memory_space<vmem>>, vector<4x16xf32>
    %cst = arith.constant dense<0.000000e+00> : vector<64x16xf32>
    %4 = tpu.matmul %2, %3, %cst {dimension_numbers = #tpu.dot_dimension_numbers<[1], [0], [0], [1], [0, 0, 1, 1], [], []>} : vector<64x4xf32>, vector<4x16xf32>, vector<64x16xf32> -> vector<64x16xf32>
    %c0_5 = arith.constant 0 : index
    %c0_6 = arith.constant 0 : index
    %5 = vector.load %arg3[%c0_5, %c0_6] : memref<1x16xf32, #tpu.memory_space<vmem>>, vector<1x16xf32>
    %6 = vector.shape_cast %5 : vector<1x16xf32> to vector<16xf32>
    %7 = vector.shape_cast %6 : vector<16xf32> to vector<1x16xf32>
    %8 = vector.broadcast %7 : vector<1x16xf32> to vector<64x16xf32>
    %9 = arith.addf %4, %8 : vector<64x16xf32>
    %c0_7 = arith.constant 0 : index
    %c0_8 = arith.constant 0 : index
    %c0_9 = arith.constant 0 : index
    %10 = vector.load %arg4[%c0_7, %c0_8, %c0_9] : memref<1x64x16xf32, #tpu.memory_space<vmem>>, vector<1x64x16xf32>
    %11 = vector.shape_cast %10 : vector<1x64x16xf32> to vector<64x16xf32>
    %12 = vector.shape_cast %9 : vector<64x16xf32> to vector<1x64x16xf32>
    tpu.vector_store %arg4[%c0_7, %c0_8, %c0_9], %12 {strides = array<i32>} : memref<1x64x16xf32, #tpu.memory_space<vmem>>, vector<1x64x16xf32>,
    return
  }
  func.func @transform_0(%arg0: i32) -> (i32, i32, i32, i32) {
    %c0_i32 = arith.constant 0 : i32
    %c0_i32_0 = arith.constant 0 : i32
    %c0_i32_1 = arith.constant 0 : i32
    %c0_i32_2 = arith.constant 0 : i32
    return %arg0, %c0_i32, %c0_i32_0, %c0_i32_1 : i32, i32, i32, i32
  }
  func.func @transform_1(%arg0: i32) -> (i32, i32) {
    %c0_i32 = arith.constant 0 : i32
    %c0_i32_0 = arith.constant 0 : i32
    %c0_i32_1 = arith.constant 0 : i32
    return %c0_i32, %c0_i32_0 : i32, i32
  }
  func.func @transform_2(%arg0: i32) -> (i32, i32) {
    %c0_i32 = arith.constant 0 : i32
    %c0_i32_0 = arith.constant 0 : i32
    %c0_i32_1 = arith.constant 0 : i32
    return %c0_i32, %c0_i32_0 : i32, i32
  }
  func.func @transform_3(%arg0: i32) -> (i32, i32, i32) {
    %c0_i32 = arith.constant 0 : i32
    %c0_i32_0 = arith.constant 0 : i32
    %c0_i32_1 = arith.constant 0 : i32
    return %arg0, %c0_i32, %c0_i32_0 : i32, i32, i32
  }
}

module attributes {stable_mosaic.version = 11 : i64} {
  func.func @kernel(%arg0: i32, %arg1: memref<1x16x16x4xf32, #tpu.memory_space<vmem>>, %arg2: memref<1x16x16x4xf32, #tpu.memory_space<vmem>>, %arg3: memref<72x4xf32, #tpu.memory_space<vmem>>, %arg4: memref<2x4xf32, #tpu.memory_space<vmem>>, %arg5: memref<36x4xf32, #tpu.memory_space<vmem>>, %arg6: memref<2x4xf32, #tpu.memory_space<vmem>>, %arg7: memref<1x16x16x4xf32, #tpu.memory_space<vmem>>, %arg8: memref<16x24x72xf32, #tpu.memory_space<vmem>>, %arg9: memref<16x24x36xf32, #tpu.memory_space<vmem>>) attributes {dimension_semantics = [#tpu.dimension_semantics<parallel>], iteration_bounds = array<i64: 2>, scalar_prefetch = 0 : i64, scratch_operands = 2 : i64, tpu.core_type = #tpu.core_type<tc>, window_params = [{transform_indices = @transform_0, window_bounds = array<i64: 1, 16, 16, 4>}, {transform_indices = @transform_1, window_bounds = array<i64: 1, 16, 16, 4>}, {pipeline_mode = #tpu.pipeline_mode<synchronous>, transform_indices = @transform_2, window_bounds = array<i64: 72, 4>}, {pipeline_mode = #tpu.pipeline_mode<synchronous>, transform_indices = @transform_3, window_bounds = array<i64: 2, 4>}, {pipeline_mode = #tpu.pipeline_mode<synchronous>, transform_indices = @transform_4, window_bounds = array<i64: 36, 4>}, {pipeline_mode = #tpu.pipeline_mode<synchronous>, transform_indices = @transform_5, window_bounds = array<i64: 2, 4>}, {transform_indices = @transform_6, window_bounds = array<i64: 1, 16, 16, 4>}]} {
    %cst = arith.constant 0.000000e+00 : f32
    %0 = vector.broadcast %cst : f32 to vector<16x24x72xf32>
    %c0 = arith.constant 0 : index
    %c0_0 = arith.constant 0 : index
    %c0_1 = arith.constant 0 : index
    %1 = vector.load %arg8[%c0, %c0_0, %c0_1] : memref<16x24x72xf32, #tpu.memory_space<vmem>>, vector<16x24x72xf32>
    tpu.vector_store %arg8[%c0, %c0_0, %c0_1], %0 {strides = array<i32>} : memref<16x24x72xf32, #tpu.memory_space<vmem>>, vector<16x24x72xf32>,
    %c0_2 = arith.constant 0 : index
    %c0_3 = arith.constant 0 : index
    %c0_4 = arith.constant 0 : index
    %c0_5 = arith.constant 0 : index
    %2 = vector.load %arg1[%c0_2, %c0_3, %c0_4, %c0_5] : memref<1x16x16x4xf32, #tpu.memory_space<vmem>>, vector<1x16x16x4xf32>
    %3 = vector.shape_cast %2 : vector<1x16x16x4xf32> to vector<16x16x4xf32>
    %4 = vector.extract_strided_slice %3 {offsets = [0, 0, 0], sizes = [15, 16, 4], strides = [1, 1, 1]} : vector<16x16x4xf32> to vector<15x16x4xf32>
    %c1 = arith.constant 1 : index
    %c1_6 = arith.constant 1 : index
    %c0_7 = arith.constant 0 : index
    %5 = vector.load %arg8[%c1, %c1_6, %c0_7] : memref<16x24x72xf32, #tpu.memory_space<vmem>>, vector<15x16x4xf32>
    tpu.vector_store %arg8[%c1, %c1_6, %c0_7], %4 {strides = array<i32>} : memref<16x24x72xf32, #tpu.memory_space<vmem>>, vector<15x16x4xf32>,
    %6 = vector.extract_strided_slice %3 {offsets = [0, 0, 0], sizes = [15, 16, 4], strides = [1, 1, 1]} : vector<16x16x4xf32> to vector<15x16x4xf32>
    %c1_8 = arith.constant 1 : index
    %c0_9 = arith.constant 0 : index
    %c8 = arith.constant 8 : index
    %7 = vector.load %arg8[%c1_8, %c0_9, %c8] : memref<16x24x72xf32, #tpu.memory_space<vmem>>, vector<15x16x4xf32>
    tpu.vector_store %arg8[%c1_8, %c0_9, %c8], %6 {strides = array<i32>} : memref<16x24x72xf32, #tpu.memory_space<vmem>>, vector<15x16x4xf32>,
    %8 = vector.extract_strided_slice %3 {offsets = [0, 1, 0], sizes = [15, 15, 4], strides = [1, 1, 1]} : vector<16x16x4xf32> to vector<15x15x4xf32>
    %c1_10 = arith.constant 1 : index
    %c0_11 = arith.constant 0 : index
    %c16 = arith.constant 16 : index
    %9 = vector.load %arg8[%c1_10, %c0_11, %c16] : memref<16x24x72xf32, #tpu.memory_space<vmem>>, vector<15x15x4xf32>
    tpu.vector_store %arg8[%c1_10, %c0_11, %c16], %8 {strides = array<i32>} : memref<16x24x72xf32, #tpu.memory_space<vmem>>, vector<15x15x4xf32>,
    %c0_12 = arith.constant 0 : index
    %c1_13 = arith.constant 1 : index
    %c24 = arith.constant 24 : index
    %10 = vector.load %arg8[%c0_12, %c1_13, %c24] : memref<16x24x72xf32, #tpu.memory_space<vmem>>, vector<16x16x4xf32>
    tpu.vector_store %arg8[%c0_12, %c1_13, %c24], %3 {strides = array<i32>} : memref<16x24x72xf32, #tpu.memory_space<vmem>>, vector<16x16x4xf32>,
    %c0_14 = arith.constant 0 : index
    %c0_15 = arith.constant 0 : index
    %c32 = arith.constant 32 : index
    %11 = vector.load %arg8[%c0_14, %c0_15, %c32] : memref<16x24x72xf32, #tpu.memory_space<vmem>>, vector<16x16x4xf32>
    tpu.vector_store %arg8[%c0_14, %c0_15, %c32], %3 {strides = array<i32>} : memref<16x24x72xf32, #tpu.memory_space<vmem>>, vector<16x16x4xf32>,
    %12 = vector.extract_strided_slice %3 {offsets = [0, 1, 0], sizes = [16, 15, 4], strides = [1, 1, 1]} : vector<16x16x4xf32> to vector<16x15x4xf32>
    %c0_16 = arith.constant 0 : index
    %c0_17 = arith.constant 0 : index
    %c40 = arith.constant 40 : index
    %13 = vector.load %arg8[%c0_16, %c0_17, %c40] : memref<16x24x72xf32, #tpu.memory_space<vmem>>, vector<16x15x4xf32>
    tpu.vector_store %arg8[%c0_16, %c0_17, %c40], %12 {strides = array<i32>} : memref<16x24x72xf32, #tpu.memory_space<vmem>>, vector<16x15x4xf32>,
    %14 = vector.extract_strided_slice %3 {offsets = [1, 0, 0], sizes = [15, 16, 4], strides = [1, 1, 1]} : vector<16x16x4xf32> to vector<15x16x4xf32>
    %c0_18 = arith.constant 0 : index
    %c1_19 = arith.constant 1 : index
    %c48 = arith.constant 48 : index
    %15 = vector.load %arg8[%c0_18, %c1_19, %c48] : memref<16x24x72xf32, #tpu.memory_space<vmem>>, vector<15x16x4xf32>
    tpu.vector_store %arg8[%c0_18, %c1_19, %c48], %14 {strides = array<i32>} : memref<16x24x72xf32, #tpu.memory_space<vmem>>, vector<15x16x4xf32>,
    %16 = vector.extract_strided_slice %3 {offsets = [1, 0, 0], sizes = [15, 16, 4], strides = [1, 1, 1]} : vector<16x16x4xf32> to vector<15x16x4xf32>
    %c0_20 = arith.constant 0 : index
    %c0_21 = arith.constant 0 : index
    %c56 = arith.constant 56 : index
    %17 = vector.load %arg8[%c0_20, %c0_21, %c56] : memref<16x24x72xf32, #tpu.memory_space<vmem>>, vector<15x16x4xf32>
    tpu.vector_store %arg8[%c0_20, %c0_21, %c56], %16 {strides = array<i32>} : memref<16x24x72xf32, #tpu.memory_space<vmem>>, vector<15x16x4xf32>,
    %18 = vector.extract_strided_slice %3 {offsets = [1, 1, 0], sizes = [15, 15, 4], strides = [1, 1, 1]} : vector<16x16x4xf32> to vector<15x15x4xf32>
    %c0_22 = arith.constant 0 : index
    %c0_23 = arith.constant 0 : index
    %c64 = arith.constant 64 : index
    %19 = vector.load %arg8[%c0_22, %c0_23, %c64] : memref<16x24x72xf32, #tpu.memory_space<vmem>>, vector<15x15x4xf32>
    tpu.vector_store %arg8[%c0_22, %c0_23, %c64], %18 {strides = array<i32>} : memref<16x24x72xf32, #tpu.memory_space<vmem>>, vector<15x15x4xf32>,
    %c0_24 = arith.constant 0 : index
    %c0_25 = arith.constant 0 : index
    %c0_26 = arith.constant 0 : index
    %c0_27 = arith.constant 0 : index
    %20 = vector.load %arg2[%c0_24, %c0_25, %c0_26, %c0_27] : memref<1x16x16x4xf32, #tpu.memory_space<vmem>>, vector<1x16x16x4xf32>
    %21 = vector.shape_cast %20 : vector<1x16x16x4xf32> to vector<16x16x4xf32>
    %22 = vector.extract_strided_slice %21 {offsets = [0, 0, 0], sizes = [15, 16, 4], strides = [1, 1, 1]} : vector<16x16x4xf32> to vector<15x16x4xf32>
    %c1_28 = arith.constant 1 : index
    %c1_29 = arith.constant 1 : index
    %c4 = arith.constant 4 : index
    %23 = vector.load %arg8[%c1_28, %c1_29, %c4] : memref<16x24x72xf32, #tpu.memory_space<vmem>>, vector<15x16x4xf32>
    tpu.vector_store %arg8[%c1_28, %c1_29, %c4], %22 {strides = array<i32>} : memref<16x24x72xf32, #tpu.memory_space<vmem>>, vector<15x16x4xf32>,
    %24 = vector.extract_strided_slice %21 {offsets = [0, 0, 0], sizes = [15, 16, 4], strides = [1, 1, 1]} : vector<16x16x4xf32> to vector<15x16x4xf32>
    %c1_30 = arith.constant 1 : index
    %c0_31 = arith.constant 0 : index
    %c12 = arith.constant 12 : index
    %25 = vector.load %arg8[%c1_30, %c0_31, %c12] : memref<16x24x72xf32, #tpu.memory_space<vmem>>, vector<15x16x4xf32>
    tpu.vector_store %arg8[%c1_30, %c0_31, %c12], %24 {strides = array<i32>} : memref<16x24x72xf32, #tpu.memory_space<vmem>>, vector<15x16x4xf32>,
    %26 = vector.extract_strided_slice %21 {offsets = [0, 1, 0], sizes = [15, 15, 4], strides = [1, 1, 1]} : vector<16x16x4xf32> to vector<15x15x4xf32>
    %c1_32 = arith.constant 1 : index
    %c0_33 = arith.constant 0 : index
    %c20 = arith.constant 20 : index
    %27 = vector.load %arg8[%c1_32, %c0_33, %c20] : memref<16x24x72xf32, #tpu.memory_space<vmem>>, vector<15x15x4xf32>
    tpu.vector_store %arg8[%c1_32, %c0_33, %c20], %26 {strides = array<i32>} : memref<16x24x72xf32, #tpu.memory_space<vmem>>, vector<15x15x4xf32>,
    %c0_34 = arith.constant 0 : index
    %c1_35 = arith.constant 1 : index
    %c28 = arith.constant 28 : index
    %28 = vector.load %arg8[%c0_34, %c1_35, %c28] : memref<16x24x72xf32, #tpu.memory_space<vmem>>, vector<16x16x4xf32>
    tpu.vector_store %arg8[%c0_34, %c1_35, %c28], %21 {strides = array<i32>} : memref<16x24x72xf32, #tpu.memory_space<vmem>>, vector<16x16x4xf32>,
    %c0_36 = arith.constant 0 : index
    %c0_37 = arith.constant 0 : index
    %c36 = arith.constant 36 : index
    %29 = vector.load %arg8[%c0_36, %c0_37, %c36] : memref<16x24x72xf32, #tpu.memory_space<vmem>>, vector<16x16x4xf32>
    tpu.vector_store %arg8[%c0_36, %c0_37, %c36], %21 {strides = array<i32>} : memref<16x24x72xf32, #tpu.memory_space<vmem>>, vector<16x16x4xf32>,
    %30 = vector.extract_strided_slice %21 {offsets = [0, 1, 0], sizes = [16, 15, 4], strides = [1, 1, 1]} : vector<16x16x4xf32> to vector<16x15x4xf32>
    %c0_38 = arith.constant 0 : index
    %c0_39 = arith.constant 0 : index
    %c44 = arith.constant 44 : index
    %31 = vector.load %arg8[%c0_38, %c0_39, %c44] : memref<16x24x72xf32, #tpu.memory_space<vmem>>, vector<16x15x4xf32>
    tpu.vector_store %arg8[%c0_38, %c0_39, %c44], %30 {strides = array<i32>} : memref<16x24x72xf32, #tpu.memory_space<vmem>>, vector<16x15x4xf32>,
    %32 = vector.extract_strided_slice %21 {offsets = [1, 0, 0], sizes = [15, 16, 4], strides = [1, 1, 1]} : vector<16x16x4xf32> to vector<15x16x4xf32>
    %c0_40 = arith.constant 0 : index
    %c1_41 = arith.constant 1 : index
    %c52 = arith.constant 52 : index
    %33 = vector.load %arg8[%c0_40, %c1_41, %c52] : memref<16x24x72xf32, #tpu.memory_space<vmem>>, vector<15x16x4xf32>
    tpu.vector_store %arg8[%c0_40, %c1_41, %c52], %32 {strides = array<i32>} : memref<16x24x72xf32, #tpu.memory_space<vmem>>, vector<15x16x4xf32>,
    %34 = vector.extract_strided_slice %21 {offsets = [1, 0, 0], sizes = [15, 16, 4], strides = [1, 1, 1]} : vector<16x16x4xf32> to vector<15x16x4xf32>
    %c0_42 = arith.constant 0 : index
    %c0_43 = arith.constant 0 : index
    %c60 = arith.constant 60 : index
    %35 = vector.load %arg8[%c0_42, %c0_43, %c60] : memref<16x24x72xf32, #tpu.memory_space<vmem>>, vector<15x16x4xf32>
    tpu.vector_store %arg8[%c0_42, %c0_43, %c60], %34 {strides = array<i32>} : memref<16x24x72xf32, #tpu.memory_space<vmem>>, vector<15x16x4xf32>,
    %36 = vector.extract_strided_slice %21 {offsets = [1, 1, 0], sizes = [15, 15, 4], strides = [1, 1, 1]} : vector<16x16x4xf32> to vector<15x15x4xf32>
    %c0_44 = arith.constant 0 : index
    %c0_45 = arith.constant 0 : index
    %c68 = arith.constant 68 : index
    %37 = vector.load %arg8[%c0_44, %c0_45, %c68] : memref<16x24x72xf32, #tpu.memory_space<vmem>>, vector<15x15x4xf32>
    tpu.vector_store %arg8[%c0_44, %c0_45, %c68], %36 {strides = array<i32>} : memref<16x24x72xf32, #tpu.memory_space<vmem>>, vector<15x15x4xf32>,
    %c0_46 = arith.constant 0 : index
    %c0_47 = arith.constant 0 : index
    %c0_48 = arith.constant 0 : index
    %38 = vector.load %arg8[%c0_46, %c0_47, %c0_48] : memref<16x24x72xf32, #tpu.memory_space<vmem>>, vector<16x24x72xf32>
    %39 = vector.shape_cast %38 : vector<16x24x72xf32> to vector<384x72xf32>
    %c0_49 = arith.constant 0 : index
    %c0_50 = arith.constant 0 : index
    %40 = vector.load %arg3[%c0_49, %c0_50] : memref<72x4xf32, #tpu.memory_space<vmem>>, vector<72x4xf32>
    %cst_51 = arith.constant dense<0.000000e+00> : vector<384x4xf32>
    %41 = tpu.matmul %39, %40, %cst_51 {dimension_numbers = #tpu.dot_dimension_numbers<[1], [0], [0], [1], [0, 0, 1, 1], [], []>} : vector<384x72xf32>, vector<72x4xf32>, vector<384x4xf32> -> vector<384x4xf32>
    %c0_52 = arith.constant 0 : index
    %c0_53 = arith.constant 0 : index
    %42 = vector.load %arg4[%c0_52, %c0_53] : memref<2x4xf32, #tpu.memory_space<vmem>>, vector<1x4xf32>
    %43 = vector.shape_cast %42 : vector<1x4xf32> to vector<4xf32>
    %44 = vector.shape_cast %43 : vector<4xf32> to vector<1x4xf32>
    %45 = vector.broadcast %44 : vector<1x4xf32> to vector<384x4xf32>
    %46 = arith.mulf %41, %45 : vector<384x4xf32>
    %c1_54 = arith.constant 1 : index
    %c0_55 = arith.constant 0 : index
    %47 = vector.load %arg4[%c1_54, %c0_55] : memref<2x4xf32, #tpu.memory_space<vmem>>, vector<1x4xf32>
    %48 = vector.shape_cast %47 : vector<1x4xf32> to vector<4xf32>
    %49 = vector.shape_cast %48 : vector<4xf32> to vector<1x4xf32>
    %50 = vector.broadcast %49 : vector<1x4xf32> to vector<384x4xf32>
    %51 = arith.addf %46, %50 : vector<384x4xf32>
    %cst_56 = arith.constant 0.000000e+00 : f32
    %52 = vector.broadcast %cst_56 : f32 to vector<384x4xf32>
    %53 = arith.maximumf %51, %52 : vector<384x4xf32>
    %54 = vector.shape_cast %53 : vector<384x4xf32> to vector<16x24x4xf32>
    %55 = vector.extract_strided_slice %54 {offsets = [0, 0, 0], sizes = [16, 16, 4], strides = [1, 1, 1]} : vector<16x24x4xf32> to vector<16x16x4xf32>
    %cst_57 = arith.constant 0.000000e+00 : f32
    %56 = vector.broadcast %cst_57 : f32 to vector<16x24x36xf32>
    %c0_58 = arith.constant 0 : index
    %c0_59 = arith.constant 0 : index
    %c0_60 = arith.constant 0 : index
    %57 = vector.load %arg9[%c0_58, %c0_59, %c0_60] : memref<16x24x36xf32, #tpu.memory_space<vmem>>, vector<16x24x36xf32>
    tpu.vector_store %arg9[%c0_58, %c0_59, %c0_60], %56 {strides = array<i32>} : memref<16x24x36xf32, #tpu.memory_space<vmem>>, vector<16x24x36xf32>,
    %58 = vector.extract_strided_slice %55 {offsets = [0, 0, 0], sizes = [15, 16, 4], strides = [1, 1, 1]} : vector<16x16x4xf32> to vector<15x16x4xf32>
    %c1_61 = arith.constant 1 : index
    %c1_62 = arith.constant 1 : index
    %c0_63 = arith.constant 0 : index
    %59 = vector.load %arg9[%c1_61, %c1_62, %c0_63] : memref<16x24x36xf32, #tpu.memory_space<vmem>>, vector<15x16x4xf32>
    tpu.vector_store %arg9[%c1_61, %c1_62, %c0_63], %58 {strides = array<i32>} : memref<16x24x36xf32, #tpu.memory_space<vmem>>, vector<15x16x4xf32>,
    %60 = vector.extract_strided_slice %55 {offsets = [0, 0, 0], sizes = [15, 16, 4], strides = [1, 1, 1]} : vector<16x16x4xf32> to vector<15x16x4xf32>
    %c1_64 = arith.constant 1 : index
    %c0_65 = arith.constant 0 : index
    %c4_66 = arith.constant 4 : index
    %61 = vector.load %arg9[%c1_64, %c0_65, %c4_66] : memref<16x24x36xf32, #tpu.memory_space<vmem>>, vector<15x16x4xf32>
    tpu.vector_store %arg9[%c1_64, %c0_65, %c4_66], %60 {strides = array<i32>} : memref<16x24x36xf32, #tpu.memory_space<vmem>>, vector<15x16x4xf32>,
    %62 = vector.extract_strided_slice %55 {offsets = [0, 1, 0], sizes = [15, 15, 4], strides = [1, 1, 1]} : vector<16x16x4xf32> to vector<15x15x4xf32>
    %c1_67 = arith.constant 1 : index
    %c0_68 = arith.constant 0 : index
    %c8_69 = arith.constant 8 : index
    %63 = vector.load %arg9[%c1_67, %c0_68, %c8_69] : memref<16x24x36xf32, #tpu.memory_space<vmem>>, vector<15x15x4xf32>
    tpu.vector_store %arg9[%c1_67, %c0_68, %c8_69], %62 {strides = array<i32>} : memref<16x24x36xf32, #tpu.memory_space<vmem>>, vector<15x15x4xf32>,
    %c0_70 = arith.constant 0 : index
    %c1_71 = arith.constant 1 : index
    %c12_72 = arith.constant 12 : index
    %64 = vector.load %arg9[%c0_70, %c1_71, %c12_72] : memref<16x24x36xf32, #tpu.memory_space<vmem>>, vector<16x16x4xf32>
    tpu.vector_store %arg9[%c0_70, %c1_71, %c12_72], %55 {strides = array<i32>} : memref<16x24x36xf32, #tpu.memory_space<vmem>>, vector<16x16x4xf32>,
    %c0_73 = arith.constant 0 : index
    %c0_74 = arith.constant 0 : index
    %c16_75 = arith.constant 16 : index
    %65 = vector.load %arg9[%c0_73, %c0_74, %c16_75] : memref<16x24x36xf32, #tpu.memory_space<vmem>>, vector<16x16x4xf32>
    tpu.vector_store %arg9[%c0_73, %c0_74, %c16_75], %55 {strides = array<i32>} : memref<16x24x36xf32, #tpu.memory_space<vmem>>, vector<16x16x4xf32>,
    %66 = vector.extract_strided_slice %55 {offsets = [0, 1, 0], sizes = [16, 15, 4], strides = [1, 1, 1]} : vector<16x16x4xf32> to vector<16x15x4xf32>
    %c0_76 = arith.constant 0 : index
    %c0_77 = arith.constant 0 : index
    %c20_78 = arith.constant 20 : index
    %67 = vector.load %arg9[%c0_76, %c0_77, %c20_78] : memref<16x24x36xf32, #tpu.memory_space<vmem>>, vector<16x15x4xf32>
    tpu.vector_store %arg9[%c0_76, %c0_77, %c20_78], %66 {strides = array<i32>} : memref<16x24x36xf32, #tpu.memory_space<vmem>>, vector<16x15x4xf32>,
    %68 = vector.extract_strided_slice %55 {offsets = [1, 0, 0], sizes = [15, 16, 4], strides = [1, 1, 1]} : vector<16x16x4xf32> to vector<15x16x4xf32>
    %c0_79 = arith.constant 0 : index
    %c1_80 = arith.constant 1 : index
    %c24_81 = arith.constant 24 : index
    %69 = vector.load %arg9[%c0_79, %c1_80, %c24_81] : memref<16x24x36xf32, #tpu.memory_space<vmem>>, vector<15x16x4xf32>
    tpu.vector_store %arg9[%c0_79, %c1_80, %c24_81], %68 {strides = array<i32>} : memref<16x24x36xf32, #tpu.memory_space<vmem>>, vector<15x16x4xf32>,
    %70 = vector.extract_strided_slice %55 {offsets = [1, 0, 0], sizes = [15, 16, 4], strides = [1, 1, 1]} : vector<16x16x4xf32> to vector<15x16x4xf32>
    %c0_82 = arith.constant 0 : index
    %c0_83 = arith.constant 0 : index
    %c28_84 = arith.constant 28 : index
    %71 = vector.load %arg9[%c0_82, %c0_83, %c28_84] : memref<16x24x36xf32, #tpu.memory_space<vmem>>, vector<15x16x4xf32>
    tpu.vector_store %arg9[%c0_82, %c0_83, %c28_84], %70 {strides = array<i32>} : memref<16x24x36xf32, #tpu.memory_space<vmem>>, vector<15x16x4xf32>,
    %72 = vector.extract_strided_slice %55 {offsets = [1, 1, 0], sizes = [15, 15, 4], strides = [1, 1, 1]} : vector<16x16x4xf32> to vector<15x15x4xf32>
    %c0_85 = arith.constant 0 : index
    %c0_86 = arith.constant 0 : index
    %c32_87 = arith.constant 32 : index
    %73 = vector.load %arg9[%c0_85, %c0_86, %c32_87] : memref<16x24x36xf32, #tpu.memory_space<vmem>>, vector<15x15x4xf32>
    tpu.vector_store %arg9[%c0_85, %c0_86, %c32_87], %72 {strides = array<i32>} : memref<16x24x36xf32, #tpu.memory_space<vmem>>, vector<15x15x4xf32>,
    %c0_88 = arith.constant 0 : index
    %c0_89 = arith.constant 0 : index
    %c0_90 = arith.constant 0 : index
    %74 = vector.load %arg9[%c0_88, %c0_89, %c0_90] : memref<16x24x36xf32, #tpu.memory_space<vmem>>, vector<16x24x36xf32>
    %75 = vector.shape_cast %74 : vector<16x24x36xf32> to vector<384x36xf32>
    %c0_91 = arith.constant 0 : index
    %c0_92 = arith.constant 0 : index
    %76 = vector.load %arg5[%c0_91, %c0_92] : memref<36x4xf32, #tpu.memory_space<vmem>>, vector<36x4xf32>
    %cst_93 = arith.constant dense<0.000000e+00> : vector<384x4xf32>
    %77 = tpu.matmul %75, %76, %cst_93 {dimension_numbers = #tpu.dot_dimension_numbers<[1], [0], [0], [1], [0, 0, 1, 1], [], []>} : vector<384x36xf32>, vector<36x4xf32>, vector<384x4xf32> -> vector<384x4xf32>
    %c0_94 = arith.constant 0 : index
    %c0_95 = arith.constant 0 : index
    %78 = vector.load %arg6[%c0_94, %c0_95] : memref<2x4xf32, #tpu.memory_space<vmem>>, vector<1x4xf32>
    %79 = vector.shape_cast %78 : vector<1x4xf32> to vector<4xf32>
    %80 = vector.shape_cast %79 : vector<4xf32> to vector<1x4xf32>
    %81 = vector.broadcast %80 : vector<1x4xf32> to vector<384x4xf32>
    %82 = arith.mulf %77, %81 : vector<384x4xf32>
    %c1_96 = arith.constant 1 : index
    %c0_97 = arith.constant 0 : index
    %83 = vector.load %arg6[%c1_96, %c0_97] : memref<2x4xf32, #tpu.memory_space<vmem>>, vector<1x4xf32>
    %84 = vector.shape_cast %83 : vector<1x4xf32> to vector<4xf32>
    %85 = vector.shape_cast %84 : vector<4xf32> to vector<1x4xf32>
    %86 = vector.broadcast %85 : vector<1x4xf32> to vector<384x4xf32>
    %87 = arith.addf %82, %86 : vector<384x4xf32>
    %cst_98 = arith.constant 0.000000e+00 : f32
    %88 = vector.broadcast %cst_98 : f32 to vector<384x4xf32>
    %89 = arith.maximumf %87, %88 : vector<384x4xf32>
    %90 = vector.shape_cast %89 : vector<384x4xf32> to vector<16x24x4xf32>
    %91 = vector.extract_strided_slice %90 {offsets = [0, 0, 0], sizes = [16, 16, 4], strides = [1, 1, 1]} : vector<16x24x4xf32> to vector<16x16x4xf32>
    %c0_99 = arith.constant 0 : index
    %c0_100 = arith.constant 0 : index
    %c0_101 = arith.constant 0 : index
    %c0_102 = arith.constant 0 : index
    %92 = vector.load %arg7[%c0_99, %c0_100, %c0_101, %c0_102] : memref<1x16x16x4xf32, #tpu.memory_space<vmem>>, vector<1x16x16x4xf32>
    %93 = vector.shape_cast %92 : vector<1x16x16x4xf32> to vector<16x16x4xf32>
    %94 = vector.shape_cast %91 : vector<16x16x4xf32> to vector<1x16x16x4xf32>
    tpu.vector_store %arg7[%c0_99, %c0_100, %c0_101, %c0_102], %94 {strides = array<i32>} : memref<1x16x16x4xf32, #tpu.memory_space<vmem>>, vector<1x16x16x4xf32>,
    return
  }
  func.func @transform_0(%arg0: i32) -> (i32, i32, i32, i32) {
    %c0_i32 = arith.constant 0 : i32
    %c0_i32_0 = arith.constant 0 : i32
    %c0_i32_1 = arith.constant 0 : i32
    %c0_i32_2 = arith.constant 0 : i32
    return %arg0, %c0_i32, %c0_i32_0, %c0_i32_1 : i32, i32, i32, i32
  }
  func.func @transform_1(%arg0: i32) -> (i32, i32, i32, i32) {
    %c0_i32 = arith.constant 0 : i32
    %c0_i32_0 = arith.constant 0 : i32
    %c0_i32_1 = arith.constant 0 : i32
    %c0_i32_2 = arith.constant 0 : i32
    return %arg0, %c0_i32, %c0_i32_0, %c0_i32_1 : i32, i32, i32, i32
  }
  func.func @transform_2(%arg0: i32) -> (i32, i32) {
    %c0_i32 = arith.constant 0 : i32
    %c0_i32_0 = arith.constant 0 : i32
    %c0_i32_1 = arith.constant 0 : i32
    return %c0_i32, %c0_i32_0 : i32, i32
  }
  func.func @transform_3(%arg0: i32) -> (i32, i32) {
    %c0_i32 = arith.constant 0 : i32
    %c0_i32_0 = arith.constant 0 : i32
    %c0_i32_1 = arith.constant 0 : i32
    return %c0_i32, %c0_i32_0 : i32, i32
  }
  func.func @transform_4(%arg0: i32) -> (i32, i32) {
    %c0_i32 = arith.constant 0 : i32
    %c0_i32_0 = arith.constant 0 : i32
    %c0_i32_1 = arith.constant 0 : i32
    return %c0_i32, %c0_i32_0 : i32, i32
  }
  func.func @transform_5(%arg0: i32) -> (i32, i32) {
    %c0_i32 = arith.constant 0 : i32
    %c0_i32_0 = arith.constant 0 : i32
    %c0_i32_1 = arith.constant 0 : i32
    return %c0_i32, %c0_i32_0 : i32, i32
  }
  func.func @transform_6(%arg0: i32) -> (i32, i32, i32, i32) {
    %c0_i32 = arith.constant 0 : i32
    %c0_i32_0 = arith.constant 0 : i32
    %c0_i32_1 = arith.constant 0 : i32
    %c0_i32_2 = arith.constant 0 : i32
    return %arg0, %c0_i32, %c0_i32_0, %c0_i32_1 : i32, i32, i32, i32
  }
}

</mosaic_0001>

<bundles_post_ra>
// kernel: tile.6
= control target key start
LH: loop header
LB: loop body
LE: loop exit
PB: predicated region body
PF: predicated region fallthrough
CT: control target
= control target key end

     0   :  { %s22_s0 = inlined_call_operand.vmem [shape: f32[4], index: 0, kind: input, shape index: {}]   ;;  %s23_s1 = inlined_call_operand.vmem [shape: f32[4,4], index: 1, kind: output, shape index: {}]  }
   0x1   :  { %v4_v0 = vld [vmem:[%s22_s0] ss:$0 sm:$0xff] }
   0x2   :  { %5 = vst [vmem:[%s23_s1] sm:$0xf] %v4_v0 }

// kernel: tile.7
= control target key start
LH: loop header
LB: loop body
LE: loop exit
PB: predicated region body
PF: predicated region fallthrough
CT: control target
= control target key end

     0   :  { %vm7_vm0 = vcmask 31744   ;;  %s37_s8 = smov 4   ;;  %s38_s9 = smov 8   ;;  %vm13_vm1 = vcmask 130144   ;;  %vm19_vm2 = vcmask 97344   ;;  %vm25_vm3 = vcmask 64544   ;;  %s55_s0 = inlined_call_operand.vmem [shape: f32[4,4], index: 0, kind: input, shape index: {}]   ;;  %s56_s1 = inlined_call_operand.vmem [shape: f32[1,16], index: 1, kind: output, shape index: {}]  }
   0x1   :  { %v4_v0 = vld [vmem:[%s55_s0] sm:$0xf]  ;;  %s36_s0 = smov 12  }
   0x2   :  { %5 = vst [vmem:[#allocation1] sm:$0xf] %v4_v0 }
   0x9   :  { %v10_v1 = vld [vmem:[#allocation1 + $0x3] sm:$0x1]   ;;  %v22_v2 = vld [vmem:[#allocation1 + $0x1] sm:$0x1]   ;;  %v6_v3 = vld [vmem:[#allocation1] sm:$0x1]  }
   0xa   :  { %11 = vrot.lane.b32.xlu0 %v10_v1, %s36_s0  ;;  %23 = vrot.lane.b32.xlu1 %v22_v2, %s37_s8  ;;  %v16_v4 = vld [vmem:[#allocation1 + $0x2] sm:$0x1]   ;;  %8 = vst.msk [vmem:[#allocation0] sm:$0x1] %vm7_vm0, %v6_v3  }
   0xe   :  { %17 = vrot.lane.b32.xlu0 %v16_v4, %s38_s9 }
  0x7c   :  { %v12_v5 = vpop.permute.xlu0 %11   ;;  %v24_v6 = vpop.permute.xlu1 %23  }
  0x7d   :  { %14 = vst.msk [vmem:[#allocation0] sm:$0x1] %vm13_vm1, %v12_v5  }
  0x80   :  { %v18_v7 = vpop.permute.xlu0 %17  }
  0x81   :  { %20 = vst.msk [vmem:[#allocation0] sm:$0x1] %vm19_vm2, %v18_v7  }
  0x82   :  { %26 = vst.msk [vmem:[#allocation0] sm:$0x1] %vm25_vm3, %v24_v6  }
  0x89   :  { %v30_v8 = vld [vmem:[#allocation0] sm:$0x1] }
  0x8a   :  { %32 = vst [vmem:[%s56_s1] sm:$0x1] %v30_v8 }

// kernel: _lambda_.2
= control target key start
LH: loop header
LB: loop body
LE: loop exit
PB: predicated region body
PF: predicated region fallthrough
CT: control target
= control target key end

     0   :  { %s469_s12 = smov 0   ;;  %s508_s0 = inlined_call_operand.vmem [shape: f32[2,8,8,4], index: 0, kind: input, shape index: {}]   ;;  %s509_s1 = inlined_call_operand.vmem [shape: f32[4,16], index: 1, kind: input, shape index: {}]   ;;  %s510_s2 = inlined_call_operand.vmem [shape: f32[1,16], index: 2, kind: input, shape index: {}]   ;;  %s511_s3 = inlined_call_operand.vmem [shape: f32[2,64,16], index: 3, kind: output, shape index: {}]  }
   0x1 LB: > { %s385_s13 = sadd.s32 4294967295, %s447_s12   ;;  %p389_p0 = scmp.ge.s32.totalorder %s447_s12, 1  ;;  %s447_s12 = sphi %s469_s12, %s13_s12  }
   0x2   : > { %p137_p1 = scmp.lt.s32.totalorder %s447_s12, 3 }
   0x4   : > { %p138_p2 = pnand %p389_p0, %p137_p1 }
   0x5   : > { %v179_v0 = vld [vmem:[%s509_s1] sm:$0xf] (!%p138_p2)  ;;  %vm212_vm0 = vcmask (!%p138_p2), 1043456   ;;  %p161_p3 = scmp.lt.s32.totalorder (!%p138_p2), %s385_s13, 1  ;;  %vm187_vm1 = vcmask (!%p138_p2), 31744   ;;  %vm321_vm2 = vcmask (!%p138_p2), 130048  }
   0x6   : > { %141 = sbr.rel (%p138_p2) target bundleno = 239 (0xef), region = 32  ;;  %417 = vmatprep.subr.msk.mxu0 (!%p138_p2), %vm212_vm0, %v179_v0  ;;  %431 = vmatprep.subr.msk.mxu1 (!%p138_p2), %vm212_vm0, %v179_v0  ;;  %v394_v9 = vld [vmem:[%s510_s2] ss:$0 sm:$0xff] (!%p138_p2) }
   0x7   : > { %418 = vmatpush3.msk.msra.mxu0 (!%p138_p2), %vm212_vm0, %v179_v0  ;;  %432 = vmatpush3.msk.msra.mxu1 (!%p138_p2), %vm212_vm0, %v179_v0 }
   0xd   : > { %s513_s13 = smov (!%p161_p3, %s385_s13), 1 }
   0xe   : > { %s406_s16 = sshll.u32 %s513_s13, 6 }
   0xf   : > { %s165_s19 = scalar_lea.vmem %s508_s0, %s406_s16  ;;  %s170_s24 = scalar_lea.vmem %s511_s3, %s406_s16 }
  0x10   : > { %v171_v1 = vld [vmem:[%s165_s19] sm:$0xff]  ;;  %v172_v3 = vld [vmem:[%s165_s19 + $0x8] sm:$0xff]  ;;  %v173_v5 = vld [vmem:[%s165_s19 + $0x10] sm:$0xff] }
  0x11   : > { %v175_v2 = vld [vmem:[%s165_s19 + $0x20] sm:$0xff]  ;;  %419 = vmatprep.mubr.msk.f32.mxu0 %vm187_vm1, %v171_v1  ;;  %v176_v4 = vld [vmem:[%s165_s19 + $0x28] sm:$0xff]  ;;  %v177_v6 = vld [vmem:[%s165_s19 + $0x30] sm:$0xff] }
  0x12   : > { %425 = vmatprep.mubr.msk.f32.mxu1 %vm187_vm1, %v175_v2  ;;  %420 = vmatmul.mubr.msk.f32.vlgmr.msra.gmra.mrb[0].mxu0 %vm187_vm1, %v172_v3  ;;  %v174_v7 = vld [vmem:[%s165_s19 + $0x18] sm:$0xff] }
  0x13   : > { %426 = vmatmul.mubr.msk.f32.vlgmr.msra.gmra.mrb[0].mxu1 %vm187_vm1, %v176_v4  ;;  %422 = vmatprep.mubr.msk.f32.mxu0 %vm187_vm1, %v173_v5  ;;  %v178_v8 = vld [vmem:[%s165_s19 + $0x38] sm:$0xff] }
  0x14   : > { %428 = vmatprep.mubr.msk.f32.mxu1 %vm187_vm1, %v177_v6 }
  0x16   : > { %423 = vmatmul.mubr.msk.f32.gmra.mrb[2].mxu0 %vm187_vm1, %v174_v7 }
  0x17   : > { %429 = vmatmul.mubr.msk.f32.gmra.mrb[2].mxu1 %vm187_vm1, %v178_v8 }
  0xe5   : > { %v421_v10 = vpop.f32.mrb[0].mxu0 }
  0xe6   : > { %v427_v11 = vpop.f32.mrb[0].mxu1  ;;  %v288_v12 = vadd.f32 %v421_v10, %v394_v9  ;;  %v282_v14 = vpop.f32.mrb[1].mxu0 }
  0xe7   : > { %v308_v13 = vadd.f32 %v427_v11, %v394_v9  ;;  %v302_v15 = vpop.f32.mrb[1].mxu1  ;;  %v283_v16 = vadd.f32 %v394_v9, %v282_v14 }
  0xe8   : > { %v303_v17 = vadd.f32 %v394_v9, %v302_v15  ;;  %323 = vst.msk [vmem:[%s170_s24 + $0x8] sm:$0xff] %vm321_vm2, %v288_v12 }
  0xe9   : > { %327 = vst.msk [vmem:[%s170_s24 + $0x28] sm:$0xff] %vm321_vm2, %v308_v13  ;;  %322 = vst.msk [vmem:[%s170_s24] sm:$0xff] %vm321_vm2, %v283_v16  ;;  %v424_v18 = vpop.f32.mrb[2].mxu0 }
  0xea   : > { %326 = vst.msk [vmem:[%s170_s24 + $0x20] sm:$0xff] %vm321_vm2, %v303_v17  ;;  %v430_v19 = vpop.f32.mrb[2].mxu1  ;;  %v298_v20 = vadd.f32 %v424_v18, %v394_v9  ;;  %v292_v22 = vpop.f32.mrb[3].mxu0 }
  0xeb   : > { %v318_v21 = vadd.f32 %v430_v19, %v394_v9  ;;  %v312_v23 = vpop.f32.mrb[3].mxu1  ;;  %v293_v24 = vadd.f32 %v394_v9, %v292_v22 }
  0xec   : > { %v313_v25 = vadd.f32 %v394_v9, %v312_v23  ;;  %325 = vst.msk [vmem:[%s170_s24 + $0x18] sm:$0xff] %vm321_vm2, %v298_v20 }
  0xed   : > { %329 = vst.msk [vmem:[%s170_s24 + $0x38] sm:$0xff] %vm321_vm2, %v318_v21  ;;  %324 = vst.msk [vmem:[%s170_s24 + $0x10] sm:$0xff] %vm321_vm2, %v293_v24 }
  0xee   : > { %328 = vst.msk [vmem:[%s170_s24 + $0x30] sm:$0xff] %vm321_vm2, %v313_v25 }
  0xef PF: > { %s13_s12 = sadd.s32 1, %s447_s12  }
  0xf0   : > { %p10_p4 = scmp.ge.s32.totalorder %s13_s12, 4  }
  0xf2   :  { %12 = sbr.rel (!%p10_p4) target bundleno = 1 (0x1), region = 62 }

// kernel: _lambda_.3
= control target key start
LH: loop header
LB: loop body
LE: loop exit
PB: predicated region body
PF: predicated region fallthrough
CT: control target
= control target key end

     0   :  { %s5523_s21 = smov 0   ;;  %s8718_s0 = inlined_call_operand.vmem [shape: f32[2,16,16,4], index: 0, kind: input, shape index: {}]   ;;  %s8719_s1 = inlined_call_operand.vmem [shape: f32[2,16,16,4], index: 1, kind: input, shape index: {}]   ;;  %s8720_s2 = inlined_call_operand.vmem [shape: f32[72,4], index: 2, kind: input, shape index: {}]   ;;  %s8721_s3 = inlined_call_operand.vmem [shape: f32[2,4], index: 3, kind: input, shape index: {}]   ;;  %s8722_s4 = inlined_call_operand.vmem [shape: f32[36,4], index: 4, kind: input, shape index: {}]   ;;  %s8723_s5 = inlined_call_operand.vmem [shape: f32[2,4], index: 5, kind: input, shape index: {}]   ;;  %s8724_s6 = inlined_call_operand.vmem [shape: f32[2,16,16,4], index: 6, kind: output, shape index: {}]  }
   0x1 LB: > { %s4981_s22 = sadd.s32 4294967295, %s5468_s21   ;;  %p4985_p0 = scmp.ge.s32.totalorder %s5468_s21, 1  ;;  %s5468_s21 = sphi %s5523_s21, %s16_s21  }
   0x2   : > { %p222_p1 = scmp.lt.s32.totalorder %s5468_s21, 3 }
   0x4   : > { %p223_p2 = pnand %p4985_p0, %p222_p1 }
   0x5   : > { %p5533_p3 = scmp.lt.s32.totalorder (!%p223_p2), %s4981_s22, 1  ;;  %vm272_vm0 = vcmask (!%p223_p2), 588800   ;;  %v5470_v0 = vmov (!%p223_p2), 0.0   ;;  %vm354_vm1 = vcmask (!%p223_p2), 31744   ;;  %s5471_s28 = smov (!%p223_p2), 8   ;;  %vm505_vm2 = vcmask (!%p223_p2), 97344  }
   0x6   : > { %226 = sbr.rel (%p223_p2) target bundleno = 2176 (0x880), region = 44  ;;  %279 = vst.msk [vmem:[#allocation2 + $0x30] sm:$0xff] (!%p223_p2), %vm272_vm0, %v5470_v0  ;;  %280 = vst.msk [vmem:[#allocation2 + $0x38] sm:$0xff] (!%p223_p2), %vm272_vm0, %v5470_v0  ;;  %s5472_s29 = smov (!%p223_p2), 16   ;;  %vm628_vm3 = vcmask (!%p223_p2), 162944   ;;  %vm626_vm4 = vcmask (!%p223_p2), 162945  }
   0x7   : > { %273 = vst.msk [vmem:[#allocation2] sm:$0xff] (!%p223_p2), %vm272_vm0, %v5470_v0  ;;  %274 = vst.msk [vmem:[#allocation2 + $0x8] sm:$0xff] (!%p223_p2), %vm272_vm0, %v5470_v0  ;;  %s5473_s30 = smov (!%p223_p2), 24   ;;  %s5474_s7 = smov (!%p223_p2), 32   ;;  %vm756_vm5 = vcmask (!%p223_p2), 228544   ;;  %vm8725_vm6 = vcmask (!%p223_p2), 294144  }
   0x8   : > { %275 = vst.msk [vmem:[#allocation2 + $0x10] sm:$0xff] (!%p223_p2), %vm272_vm0, %v5470_v0  ;;  %276 = vst.msk [vmem:[#allocation2 + $0x18] sm:$0xff] (!%p223_p2), %vm272_vm0, %v5470_v0  ;;  %s5475_s8 = smov (!%p223_p2), 40   ;;  %s5476_s9 = smov (!%p223_p2), 48   ;;  %vm1016_vm7 = vcmask (!%p223_p2), 359744   ;;  %vm1014_vm8 = vcmask (!%p223_p2), 359745  }
   0x9   : > { %277 = vst.msk [vmem:[#allocation2 + $0x20] sm:$0xff] (!%p223_p2), %vm272_vm0, %v5470_v0  ;;  %278 = vst.msk [vmem:[#allocation2 + $0x28] sm:$0xff] (!%p223_p2), %vm272_vm0, %v5470_v0  ;;  %s5477_s10 = smov (!%p223_p2), 56   ;;  %vm1138_vm9 = vcmask (!%p223_p2), 425344   ;;  %s5478_s11 = smov (!%p223_p2), 64   ;;  %vm1259_vm10 = vcmask (!%p223_p2), 490944  }
   0xa   : > { %281 = vst.msk [vmem:[#allocation2 + $0x40] sm:$0xff] (!%p223_p2), %vm272_vm0, %v5470_v0  ;;  %282 = vst.msk [vmem:[#allocation2 + $0x48] sm:$0xff] (!%p223_p2), %vm272_vm0, %v5470_v0  ;;  %s5479_s15 = smov (!%p223_p2), 4   ;;  %vm1382_vm11 = vcmask (!%p223_p2), 556544   ;;  %vm1380_vm12 = vcmask (!%p223_p2), 556545   ;;  %s5480_s16 = smov (!%p223_p2), 12  }
   0xb   : > { %283 = vst.msk [vmem:[#allocation2 + $0x50] sm:$0xff] (!%p223_p2), %vm272_vm0, %v5470_v0  ;;  %284 = vst.msk [vmem:[#allocation2 + $0x58] sm:$0xff] (!%p223_p2), %vm272_vm0, %v5470_v0  ;;  %vm1564_vm13 = vcmask (!%p223_p2), 64544   ;;  %s5481_s17 = smov (!%p223_p2), 20   ;;  %vm1685_vm14 = vcmask (!%p223_p2), 130144   ;;  %s5482_s18 = smov (!%p223_p2), 28  }
   0xc   : > { %285 = vst.msk [vmem:[#allocation2 + $0x60] sm:$0xff] (!%p223_p2), %vm272_vm0, %v5470_v0  ;;  %286 = vst.msk [vmem:[#allocation2 + $0x68] sm:$0xff] (!%p223_p2), %vm272_vm0, %v5470_v0  ;;  %vm1808_vm15 = vcmask (!%p223_p2), 195744   ;;  %s5483_s19 = smov (!%p223_p2), 36   ;;  %s5484_s20 = smov (!%p223_p2), 44  }
   0xd   : > { %287 = vst.msk [vmem:[#allocation2 + $0x70] sm:$0xff] %vm272_vm0, %v5470_v0  ;;  %288 = vst.msk [vmem:[#allocation2 + $0x78] sm:$0xff] %vm272_vm0, %v5470_v0  ;;  %s8762_s22 = smov (!%p5533_p3, %s4981_s22), 1 }
   0xe   : > { %289 = vst.msk [vmem:[#allocation2 + $0x80] sm:$0xff] %vm272_vm0, %v5470_v0  ;;  %290 = vst.msk [vmem:[#allocation2 + $0x88] sm:$0xff] %vm272_vm0, %v5470_v0  ;;  %s5637_s24 = sshll.u32 %s8762_s22, 8 }
   0xf   : > { %291 = vst.msk [vmem:[#allocation2 + $0x90] sm:$0xff] %vm272_vm0, %v5470_v0  ;;  %292 = vst.msk [vmem:[#allocation2 + $0x98] sm:$0xff] %vm272_vm0, %v5470_v0  ;;  %s5643_s27 = scalar_lea.vmem %s8718_s0, %s5637_s24  ;;  %s6479_s14 = scalar_lea.vmem %s8719_s1, %s5637_s24 }
  0x10   : > { %293 = vst.msk [vmem:[#allocation2 + $0xa0] sm:$0xff] %vm272_vm0, %v5470_v0  ;;  %294 = vst.msk [vmem:[#allocation2 + $0xa8] sm:$0xff] %vm272_vm0, %v5470_v0  ;;  %v5646_v1 = vld [vmem:[%s5643_s27 + $0x10] sm:$0xff]  ;;  %v5649_v2 = vld [vmem:[%s5643_s27] sm:$0xff]  ;;  %s8493_s23 = scalar_lea.vmem %s8724_s6, %s5637_s24 }
  0x11   : > { %295 = vst.msk [vmem:[#allocation2 + $0xb0] sm:$0xff] %vm272_vm0, %v5470_v0  ;;  %296 = vst.msk [vmem:[#allocation2 + $0xb8] sm:$0xff] %vm272_vm0, %v5470_v0  ;;  %v5652_v3 = vld [vmem:[%s5643_s27 + $0x18] sm:$0xff]  ;;  %419 = vrot.lane.b32.xlu1 %v5646_v1, %s5471_s28  ;;  %415 = vrot.lane.b32.xlu0 %v5649_v2, %s5471_s28  ;;  %v5659_v4 = vld [vmem:[%s5643_s27 + $0x8] sm:$0xff] }
  0x12   : > { %297 = vst.msk [vmem:[#allocation2 + $0xc0] sm:$0xff] %vm272_vm0, %v5470_v0  ;;  %298 = vst.msk [vmem:[#allocation2 + $0xc8] sm:$0xff] %vm272_vm0, %v5470_v0  ;;  %v5662_v5 = vld [vmem:[%s5643_s27 + $0x28] sm:$0xff]  ;;  %v5671_v6 = vld [vmem:[%s5643_s27 + $0x20] sm:$0xff] }
  0x13   : > { %299 = vst.msk [vmem:[#allocation2 + $0xd0] sm:$0xff] %vm272_vm0, %v5470_v0  ;;  %300 = vst.msk [vmem:[#allocation2 + $0xd8] sm:$0xff] %vm272_vm0, %v5470_v0  ;;  %v5674_v7 = vld [vmem:[%s5643_s27 + $0x38] sm:$0xff]  ;;  %v5677_v8 = vld [vmem:[%s5643_s27 + $0x30] sm:$0xff] }
  0x14   : > { %301 = vst.msk [vmem:[#allocation2 + $0xe0] sm:$0xff] %vm272_vm0, %v5470_v0  ;;  %302 = vst.msk [vmem:[#allocation2 + $0xe8] sm:$0xff] %vm272_vm0, %v5470_v0  ;;  %v5684_v9 = vld [vmem:[%s5643_s27 + $0x48] sm:$0xff]  ;;  %v5687_v10 = vld [vmem:[%s5643_s27 + $0x40] sm:$0xff] }
  0x15   : > { %303 = vst.msk [vmem:[#allocation2 + $0xf0] sm:$0xff] %vm272_vm0, %v5470_v0  ;;  %304 = vst.msk [vmem:[#allocation2 + $0xf8] sm:$0xff] %vm272_vm0, %v5470_v0  ;;  %v5690_v11 = vld [vmem:[%s5643_s27 + $0x58] sm:$0xff]  ;;  %v5699_v12 = vld [vmem:[%s5643_s27 + $0x50] sm:$0xff]  ;;  %421 = vrot.lane.b32.xlu1 %v5652_v3, %s5471_s28  ;;  %417 = vrot.lane.b32.xlu0 %v5659_v4, %s5471_s28 }
  0x16   : > { %305 = vst.msk [vmem:[#allocation2 + $0x100] sm:$0xff] %vm272_vm0, %v5470_v0  ;;  %306 = vst.msk [vmem:[#allocation2 + $0x108] sm:$0xff] %vm272_vm0, %v5470_v0  ;;  %v5702_v13 = vld [vmem:[%s5643_s27 + $0x68] sm:$0xff]  ;;  %v5705_v14 = vld [vmem:[%s5643_s27 + $0x60] sm:$0xff] }
  0x17   : > { %307 = vst.msk [vmem:[#allocation2 + $0x110] sm:$0xff] %vm272_vm0, %v5470_v0  ;;  %308 = vst.msk [vmem:[#allocation2 + $0x118] sm:$0xff] %vm272_vm0, %v5470_v0  ;;  %v5718_v15 = vld [vmem:[%s5643_s27 + $0x78] sm:$0xff]  ;;  %v5721_v16 = vld [vmem:[%s5643_s27 + $0x70] sm:$0xff] }
  0x18   : > { %309 = vst.msk [vmem:[#allocation2 + $0x120] sm:$0xff] %vm272_vm0, %v5470_v0  ;;  %310 = vst.msk [vmem:[#allocation2 + $0x128] sm:$0xff] %vm272_vm0, %v5470_v0  ;;  %v5730_v17 = vld [vmem:[%s5643_s27 + $0x88] sm:$0xff]  ;;  %v5733_v18 = vld [vmem:[%s5643_s27 + $0x80] sm:$0xff] }
  0x19   : > { %311 = vst.msk [vmem:[#allocation2 + $0x130] sm:$0xff] %vm272_vm0, %v5470_v0  ;;  %312 = vst.msk [vmem:[#allocation2 + $0x138] sm:$0xff] %vm272_vm0, %v5470_v0  ;;  %v5736_v19 = vld [vmem:[%s5643_s27 + $0x98] sm:$0xff]  ;;  %v5743_v20 = vld [vmem:[%s5643_s27 + $0x90] sm:$0xff]  ;;  %425 = vrot.lane.b32.xlu1 %v5662_v5, %s5471_s28  ;;  %423 = vrot.lane.b32.xlu0 %v5671_v6, %s5471_s28 }
  0x1a   : > { %313 = vst.msk [vmem:[#allocation2 + $0x140] sm:$0xff] %vm272_vm0, %v5470_v0  ;;  %314 = vst.msk [vmem:[#allocation2 + $0x148] sm:$0xff] %vm272_vm0, %v5470_v0  ;;  %v5746_v21 = vld [vmem:[%s5643_s27 + $0xa8] sm:$0xff]  ;;  %v5749_v22 = vld [vmem:[%s5643_s27 + $0xa0] sm:$0xff] }
  0x1b   : > { %315 = vst.msk [vmem:[#allocation2 + $0x150] sm:$0xff] %vm272_vm0, %v5470_v0  ;;  %316 = vst.msk [vmem:[#allocation2 + $0x158] sm:$0xff] %vm272_vm0, %v5470_v0  ;;  %v5758_v23 = vld [vmem:[%s5643_s27 + $0xb8] sm:$0xff]  ;;  %v5761_v24 = vld [vmem:[%s5643_s27 + $0xb0] sm:$0xff] }
  0x1c   : > { %317 = vst.msk [vmem:[#allocation2 + $0x160] sm:$0xff] %vm272_vm0, %v5470_v0  ;;  %318 = vst.msk [vmem:[#allocation2 + $0x168] sm:$0xff] %vm272_vm0, %v5470_v0  ;;  %v5764_v25 = vld [vmem:[%s5643_s27 + $0xc8] sm:$0xff]  ;;  %v5777_v26 = vld [vmem:[%s5643_s27 + $0xc0] sm:$0xff] }
  0x1d   : > { %319 = vst.msk [vmem:[#allocation2 + $0x170] sm:$0xff] %vm272_vm0, %v5470_v0  ;;  %320 = vst.msk [vmem:[#allocation2 + $0x178] sm:$0xff] %vm272_vm0, %v5470_v0  ;;  %v5780_v27 = vld [vmem:[%s5643_s27 + $0xd8] sm:$0xff]  ;;  %v5789_v28 = vld [vmem:[%s5643_s27 + $0xd0] sm:$0xff]  ;;  %429 = vrot.lane.b32.xlu1 %v5674_v7, %s5471_s28  ;;  %427 = vrot.lane.b32.xlu0 %v5677_v8, %s5471_s28 }
  0x1e   : > { %357 = vst.msk [vmem:[#allocation2 + $0x31] sm:$0xff] %vm354_vm1, %v5646_v1  ;;  %355 = vst.msk [vmem:[#allocation2 + $0x19] sm:$0xff] %vm354_vm1, %v5649_v2  ;;  %v5792_v29 = vld [vmem:[%s5643_s27 + $0xe8] sm:$0xff]  ;;  %v5795_v30 = vld [vmem:[%s5643_s27 + $0xe0] sm:$0xff] }
  0x1f   : > { %358 = vst.msk [vmem:[#allocation2 + $0x39] sm:$0xff] %vm354_vm1, %v5652_v3  ;;  %356 = vst.msk [vmem:[#allocation2 + $0x21] sm:$0xff] %vm354_vm1, %v5659_v4  ;;  %v6008_v63 = vld [vmem:[%s5643_s27 + $0xf8] sm:$0xff] }
  0x20   : > { %360 = vst.msk [vmem:[#allocation2 + $0x51] sm:$0xff] %vm354_vm1, %v5662_v5  ;;  %359 = vst.msk [vmem:[#allocation2 + $0x49] sm:$0xff] %vm354_vm1, %v5671_v6 }
  0x21   : > { %361 = vst.msk [vmem:[#allocation2 + $0x61] sm:$0xff] %vm354_vm1, %v5677_v8  ;;  %362 = vst.msk [vmem:[#allocation2 + $0x69] sm:$0xff] %vm354_vm1, %v5674_v7  ;;  %433 = vrot.lane.b32.xlu1 %v5684_v9, %s5471_s28  ;;  %431 = vrot.lane.b32.xlu0 %v5687_v10, %s5471_s28 }
  0x22   : > { %363 = vst.msk [vmem:[#allocation2 + $0x79] sm:$0xff] %vm354_vm1, %v5687_v10  ;;  %364 = vst.msk [vmem:[#allocation2 + $0x81] sm:$0xff] %vm354_vm1, %v5684_v9 }
  0x23   : > { %366 = vst.msk [vmem:[#allocation2 + $0x99] sm:$0xff] %vm354_vm1, %v5690_v11  ;;  %365 = vst.msk [vmem:[#allocation2 + $0x91] sm:$0xff] %vm354_vm1, %v5699_v12 }
  0x24   : > { %367 = vst.msk [vmem:[#allocation2 + $0xa9] sm:$0xff] %vm354_vm1, %v5705_v14  ;;  %368 = vst.msk [vmem:[#allocation2 + $0xb1] sm:$0xff] %vm354_vm1, %v5702_v13 }
  0x25   : > { %369 = vst.msk [vmem:[#allocation2 + $0xc1] sm:$0xff] %vm354_vm1, %v5721_v16  ;;  %370 = vst.msk [vmem:[#allocation2 + $0xc9] sm:$0xff] %vm354_vm1, %v5718_v15  ;;  %437 = vrot.lane.b32.xlu1 %v5690_v11, %s5471_s28  ;;  %435 = vrot.lane.b32.xlu0 %v5699_v12, %s5471_s28 }
  0x26   : > { %371 = vst.msk [vmem:[#allocation2 + $0xd9] sm:$0xff] %vm354_vm1, %v5733_v18  ;;  %372 = vst.msk [vmem:[#allocation2 + $0xe1] sm:$0xff] %vm354_vm1, %v5730_v17 }
  0x27   : > { %374 = vst.msk [vmem:[#allocation2 + $0xf9] sm:$0xff] %vm354_vm1, %v5736_v19  ;;  %373 = vst.msk [vmem:[#allocation2 + $0xf1] sm:$0xff] %vm354_vm1, %v5743_v20 }
  0x28   : > { %375 = vst.msk [vmem:[#allocation2 + $0x109] sm:$0xff] %vm354_vm1, %v5749_v22  ;;  %376 = vst.msk [vmem:[#allocation2 + $0x111] sm:$0xff] %vm354_vm1, %v5746_v21 }
  0x29   : > { %377 = vst.msk [vmem:[#allocation2 + $0x121] sm:$0xff] %vm354_vm1, %v5761_v24  ;;  %378 = vst.msk [vmem:[#allocation2 + $0x129] sm:$0xff] %vm354_vm1, %v5758_v23  ;;  %441 = vrot.lane.b32.xlu1 %v5702_v13, %s5471_s28  ;;  %439 = vrot.lane.b32.xlu0 %v5705_v14, %s5471_s28 }
  0x2a   : > { %380 = vst.msk [vmem:[#allocation2 + $0x141] sm:$0xff] %vm354_vm1, %v5764_v25  ;;  %379 = vst.msk [vmem:[#allocation2 + $0x139] sm:$0xff] %vm354_vm1, %v5777_v26 }
  0x2b   : > { %382 = vst.msk [vmem:[#allocation2 + $0x159] sm:$0xff] %vm354_vm1, %v5780_v27  ;;  %381 = vst.msk [vmem:[#allocation2 + $0x151] sm:$0xff] %vm354_vm1, %v5789_v28 }
  0x2c   : > { %383 = vst.msk [vmem:[#allocation2 + $0x169] sm:$0xff] %vm354_vm1, %v5795_v30  ;;  %384 = vst.msk [vmem:[#allocation2 + $0x171] sm:$0xff] %vm354_vm1, %v5792_v29 }
  0x2d   : > { %445 = vrot.lane.b32.xlu1 %v5718_v15, %s5471_s28  ;;  %443 = vrot.lane.b32.xlu0 %v5721_v16, %s5471_s28 }
  0x31   : > { %449 = vrot.lane.b32.xlu1 %v5730_v17, %s5471_s28  ;;  %447 = vrot.lane.b32.xlu0 %v5733_v18, %s5471_s28 }
  0x35   : > { %453 = vrot.lane.b32.xlu1 %v5736_v19, %s5471_s28  ;;  %451 = vrot.lane.b32.xlu0 %v5743_v20, %s5471_s28 }
  0x39   : > { %457 = vrot.lane.b32.xlu1 %v5746_v21, %s5471_s28  ;;  %455 = vrot.lane.b32.xlu0 %v5749_v22, %s5471_s28 }
  0x3d   : > { %461 = vrot.lane.b32.xlu1 %v5758_v23, %s5471_s28  ;;  %459 = vrot.lane.b32.xlu0 %v5761_v24, %s5471_s28 }
  0x41   : > { %465 = vrot.lane.b32.xlu1 %v5764_v25, %s5471_s28  ;;  %463 = vrot.lane.b32.xlu0 %v5777_v26, %s5471_s28 }
  0x45   : > { %469 = vrot.lane.b32.xlu1 %v5780_v27, %s5471_s28  ;;  %467 = vrot.lane.b32.xlu0 %v5789_v28, %s5471_s28 }
  0x49   : > { %473 = vrot.lane.b32.xlu1 %v5792_v29, %s5471_s28  ;;  %471 = vrot.lane.b32.xlu0 %v5795_v30, %s5471_s28 }
  0x4d   : > { %538 = vrot.lane.b32.xlu1 %v5659_v4, %s5472_s29  ;;  %536 = vrot.lane.b32.xlu0 %v5649_v2, %s5472_s29 }
  0x51   : > { %542 = vrot.lane.b32.xlu1 %v5652_v3, %s5472_s29  ;;  %540 = vrot.lane.b32.xlu0 %v5646_v1, %s5472_s29 }
  0x55   : > { %546 = vrot.lane.b32.xlu1 %v5662_v5, %s5472_s29  ;;  %544 = vrot.lane.b32.xlu0 %v5671_v6, %s5472_s29 }
  0x59   : > { %550 = vrot.lane.b32.xlu1 %v5674_v7, %s5472_s29  ;;  %548 = vrot.lane.b32.xlu0 %v5677_v8, %s5472_s29 }
  0x5d   : > { %554 = vrot.lane.b32.xlu1 %v5684_v9, %s5472_s29  ;;  %552 = vrot.lane.b32.xlu0 %v5687_v10, %s5472_s29 }
  0x61   : > { %558 = vrot.lane.b32.xlu1 %v5690_v11, %s5472_s29  ;;  %556 = vrot.lane.b32.xlu0 %v5699_v12, %s5472_s29 }
  0x65   : > { %562 = vrot.lane.b32.xlu1 %v5702_v13, %s5472_s29  ;;  %560 = vrot.lane.b32.xlu0 %v5705_v14, %s5472_s29 }
  0x69   : > { %566 = vrot.lane.b32.xlu1 %v5718_v15, %s5472_s29  ;;  %564 = vrot.lane.b32.xlu0 %v5721_v16, %s5472_s29 }
  0x6d   : > { %570 = vrot.lane.b32.xlu1 %v5730_v17, %s5472_s29  ;;  %568 = vrot.lane.b32.xlu0 %v5733_v18, %s5472_s29 }
  0x71   : > { %574 = vrot.lane.b32.xlu1 %v5736_v19, %s5472_s29  ;;  %572 = vrot.lane.b32.xlu0 %v5743_v20, %s5472_s29 }
  0x75   : > { %578 = vrot.lane.b32.xlu1 %v5746_v21, %s5472_s29  ;;  %576 = vrot.lane.b32.xlu0 %v5749_v22, %s5472_s29 }
  0x79   : > { %582 = vrot.lane.b32.xlu1 %v5758_v23, %s5472_s29  ;;  %580 = vrot.lane.b32.xlu0 %v5761_v24, %s5472_s29 }
  0x7d   : > { %586 = vrot.lane.b32.xlu1 %v5764_v25, %s5472_s29  ;;  %584 = vrot.lane.b32.xlu0 %v5777_v26, %s5472_s29 }
  0x81   : > { %590 = vrot.lane.b32.xlu1 %v5780_v27, %s5472_s29  ;;  %588 = vrot.lane.b32.xlu0 %v5789_v28, %s5472_s29 }
  0x83   : > { %v420_v31 = vpop.permute.xlu1 %419  ;;  %v416_v32 = vpop.permute.xlu0 %415 }
  0x84   : > { %508 = vst.msk [vmem:[#allocation2 + $0x30] sm:$0xff] %vm505_vm2, %v420_v31  ;;  %506 = vst.msk [vmem:[#allocation2 + $0x18] sm:$0xff] %vm505_vm2, %v416_v32  ;;  %v6011_v31 = vld [vmem:[%s5643_s27 + $0xf0] sm:$0xff]  ;;  %s5485_s27 = smov 52  }
  0x85   : > { %594 = vrot.lane.b32.xlu1 %v5792_v29, %s5472_s29  ;;  %592 = vrot.lane.b32.xlu0 %v5795_v30, %s5472_s29 }
  0x87   : > { %v422_v33 = vpop.permute.xlu1 %421  ;;  %v418_v34 = vpop.permute.xlu0 %417 }
  0x88   : > { %509 = vst.msk [vmem:[#allocation2 + $0x38] sm:$0xff] %vm505_vm2, %v422_v33  ;;  %507 = vst.msk [vmem:[#allocation2 + $0x20] sm:$0xff] %vm505_vm2, %v418_v34 }
  0x89   : > { %662 = vrot.lane.b32.xlu1 %v5659_v4, %s5473_s30  ;;  %660 = vrot.lane.b32.xlu0 %v5649_v2, %s5473_s30 }
  0x8b   : > { %v426_v35 = vpop.permute.xlu1 %425  ;;  %v424_v36 = vpop.permute.xlu0 %423 }
  0x8c   : > { %511 = vst.msk [vmem:[#allocation2 + $0x50] sm:$0xff] %vm505_vm2, %v426_v35  ;;  %510 = vst.msk [vmem:[#allocation2 + $0x48] sm:$0xff] %vm505_vm2, %v424_v36 }
  0x8d   : > { %666 = vrot.lane.b32.xlu1 %v5652_v3, %s5473_s30  ;;  %664 = vrot.lane.b32.xlu0 %v5646_v1, %s5473_s30 }
  0x8f   : > { %v430_v37 = vpop.permute.xlu1 %429  ;;  %v428_v38 = vpop.permute.xlu0 %427 }
  0x90   : > { %513 = vst.msk [vmem:[#allocation2 + $0x68] sm:$0xff] %vm505_vm2, %v430_v37  ;;  %512 = vst.msk [vmem:[#allocation2 + $0x60] sm:$0xff] %vm505_vm2, %v428_v38 }
  0x91   : > { %670 = vrot.lane.b32.xlu1 %v5662_v5, %s5473_s30  ;;  %668 = vrot.lane.b32.xlu0 %v5671_v6, %s5473_s30 }
  0x93   : > { %v434_v39 = vpop.permute.xlu1 %433  ;;  %v432_v40 = vpop.permute.xlu0 %431 }
  0x94   : > { %515 = vst.msk [vmem:[#allocation2 + $0x80] sm:$0xff] %vm505_vm2, %v434_v39  ;;  %514 = vst.msk [vmem:[#allocation2 + $0x78] sm:$0xff] %vm505_vm2, %v432_v40 }
  0x95   : > { %674 = vrot.lane.b32.xlu1 %v5674_v7, %s5473_s30  ;;  %672 = vrot.lane.b32.xlu0 %v5677_v8, %s5473_s30 }
  0x97   : > { %v438_v41 = vpop.permute.xlu1 %437  ;;  %v436_v42 = vpop.permute.xlu0 %435 }
  0x98   : > { %517 = vst.msk [vmem:[#allocation2 + $0x98] sm:$0xff] %vm505_vm2, %v438_v41  ;;  %516 = vst.msk [vmem:[#allocation2 + $0x90] sm:$0xff] %vm505_vm2, %v436_v42 }
  0x99   : > { %678 = vrot.lane.b32.xlu1 %v5684_v9, %s5473_s30  ;;  %676 = vrot.lane.b32.xlu0 %v5687_v10, %s5473_s30 }
  0x9b   : > { %v442_v43 = vpop.permute.xlu1 %441  ;;  %v440_v44 = vpop.permute.xlu0 %439 }
  0x9c   : > { %519 = vst.msk [vmem:[#allocation2 + $0xb0] sm:$0xff] %vm505_vm2, %v442_v43  ;;  %518 = vst.msk [vmem:[#allocation2 + $0xa8] sm:$0xff] %vm505_vm2, %v440_v44 }
  0x9d   : > { %682 = vrot.lane.b32.xlu1 %v5690_v11, %s5473_s30  ;;  %680 = vrot.lane.b32.xlu0 %v5699_v12, %s5473_s30 }
  0x9f   : > { %v446_v45 = vpop.permute.xlu1 %445  ;;  %v444_v46 = vpop.permute.xlu0 %443 }
  0xa0   : > { %521 = vst.msk [vmem:[#allocation2 + $0xc8] sm:$0xff] %vm505_vm2, %v446_v45  ;;  %520 = vst.msk [vmem:[#allocation2 + $0xc0] sm:$0xff] %vm505_vm2, %v444_v46 }
  0xa1   : > { %686 = vrot.lane.b32.xlu1 %v5702_v13, %s5473_s30  ;;  %684 = vrot.lane.b32.xlu0 %v5705_v14, %s5473_s30 }
  0xa3   : > { %v450_v47 = vpop.permute.xlu1 %449  ;;  %v448_v48 = vpop.permute.xlu0 %447 }
  0xa4   : > { %523 = vst.msk [vmem:[#allocation2 + $0xe0] sm:$0xff] %vm505_vm2, %v450_v47  ;;  %522 = vst.msk [vmem:[#allocation2 + $0xd8] sm:$0xff] %vm505_vm2, %v448_v48 }
  0xa5   : > { %690 = vrot.lane.b32.xlu1 %v5718_v15, %s5473_s30  ;;  %688 = vrot.lane.b32.xlu0 %v5721_v16, %s5473_s30 }
  0xa7   : > { %v454_v49 = vpop.permute.xlu1 %453  ;;  %v452_v50 = vpop.permute.xlu0 %451 }
  0xa8   : > { %525 = vst.msk [vmem:[#allocation2 + $0xf8] sm:$0xff] %vm505_vm2, %v454_v49  ;;  %524 = vst.msk [vmem:[#allocation2 + $0xf0] sm:$0xff] %vm505_vm2, %v452_v50 }
  0xa9   : > { %694 = vrot.lane.b32.xlu1 %v5730_v17, %s5473_s30  ;;  %692 = vrot.lane.b32.xlu0 %v5733_v18, %s5473_s30 }
  0xab   : > { %v458_v51 = vpop.permute.xlu1 %457  ;;  %v456_v52 = vpop.permute.xlu0 %455 }
  0xac   : > { %527 = vst.msk [vmem:[#allocation2 + $0x110] sm:$0xff] %vm505_vm2, %v458_v51  ;;  %526 = vst.msk [vmem:[#allocation2 + $0x108] sm:$0xff] %vm505_vm2, %v456_v52 }
  0xad   : > { %698 = vrot.lane.b32.xlu1 %v5736_v19, %s5473_s30  ;;  %696 = vrot.lane.b32.xlu0 %v5743_v20, %s5473_s30 }
  0xaf   : > { %v462_v53 = vpop.permute.xlu1 %461  ;;  %v460_v54 = vpop.permute.xlu0 %459 }
  0xb0   : > { %529 = vst.msk [vmem:[#allocation2 + $0x128] sm:$0xff] %vm505_vm2, %v462_v53  ;;  %528 = vst.msk [vmem:[#allocation2 + $0x120] sm:$0xff] %vm505_vm2, %v460_v54 }
  0xb1   : > { %702 = vrot.lane.b32.xlu1 %v5746_v21, %s5473_s30  ;;  %700 = vrot.lane.b32.xlu0 %v5749_v22, %s5473_s30 }
  0xb3   : > { %v466_v55 = vpop.permute.xlu1 %465  ;;  %v464_v56 = vpop.permute.xlu0 %463 }
  0xb4   : > { %531 = vst.msk [vmem:[#allocation2 + $0x140] sm:$0xff] %vm505_vm2, %v466_v55  ;;  %530 = vst.msk [vmem:[#allocation2 + $0x138] sm:$0xff] %vm505_vm2, %v464_v56 }
  0xb5   : > { %706 = vrot.lane.b32.xlu1 %v5758_v23, %s5473_s30  ;;  %704 = vrot.lane.b32.xlu0 %v5761_v24, %s5473_s30 }
  0xb7   : > { %v470_v57 = vpop.permute.xlu1 %469  ;;  %v468_v58 = vpop.permute.xlu0 %467 }
  0xb8   : > { %533 = vst.msk [vmem:[#allocation2 + $0x158] sm:$0xff] %vm505_vm2, %v470_v57  ;;  %532 = vst.msk [vmem:[#allocation2 + $0x150] sm:$0xff] %vm505_vm2, %v468_v58 }
  0xb9   : > { %710 = vrot.lane.b32.xlu1 %v5764_v25, %s5473_s30  ;;  %708 = vrot.lane.b32.xlu0 %v5777_v26, %s5473_s30 }
  0xbb   : > { %v474_v59 = vpop.permute.xlu1 %473  ;;  %v472_v60 = vpop.permute.xlu0 %471 }
  0xbc   : > { %535 = vst.msk [vmem:[#allocation2 + $0x170] sm:$0xff] %vm505_vm2, %v474_v59  ;;  %534 = vst.msk [vmem:[#allocation2 + $0x168] sm:$0xff] %vm505_vm2, %v472_v60 }
  0xbd   : > { %714 = vrot.lane.b32.xlu1 %v5780_v27, %s5473_s30  ;;  %712 = vrot.lane.b32.xlu0 %v5789_v28, %s5473_s30 }
  0xbf   : > { %v539_v61 = vpop.permute.xlu1 %538  ;;  %v537_v62 = vpop.permute.xlu0 %536 }
  0xc0   : > { %629 = vst.msk [vmem:[#allocation2 + $0x1f] sm:$0xff] %vm628_vm3, %v539_v61 }
  0xc1   : > { %627 = vst.msk [vmem:[#allocation2 + $0x17] sm:$0xfe] %vm626_vm4, %v537_v62  ;;  %718 = vrot.lane.b32.xlu1 %v5792_v29, %s5473_s30  ;;  %716 = vrot.lane.b32.xlu0 %v5795_v30, %s5473_s30 }
  0xc3   : > { %v543_v32 = vpop.permute.xlu1 %542  ;;  %v541_v33 = vpop.permute.xlu0 %540 }
  0xc4   : > { %631 = vst.msk [vmem:[#allocation2 + $0x37] sm:$0xff] %vm628_vm3, %v543_v32 }
  0xc5   : > { %630 = vst.msk [vmem:[#allocation2 + $0x2f] sm:$0xfe] %vm626_vm4, %v541_v33  ;;  %722 = vrot.lane.b32.xlu1 %v6008_v63, %s5473_s30  ;;  %720 = vrot.lane.b32.xlu0 %v6011_v31, %s5473_s30 }
  0xc7   : > { %v547_v34 = vpop.permute.xlu1 %546  ;;  %v545_v35 = vpop.permute.xlu0 %544 }
  0xc8   : > { %633 = vst.msk [vmem:[#allocation2 + $0x4f] sm:$0xff] %vm628_vm3, %v547_v34 }
  0xc9   : > { %632 = vst.msk [vmem:[#allocation2 + $0x47] sm:$0xfe] %vm626_vm4, %v545_v35  ;;  %791 = vrot.lane.b32.xlu1 %v5659_v4, %s5474_s7  ;;  %789 = vrot.lane.b32.xlu0 %v5649_v2, %s5474_s7 }
  0xcb   : > { %v551_v36 = vpop.permute.xlu1 %550  ;;  %v549_v37 = vpop.permute.xlu0 %548 }
  0xcc   : > { %635 = vst.msk [vmem:[#allocation2 + $0x67] sm:$0xff] %vm628_vm3, %v551_v36 }
  0xcd   : > { %634 = vst.msk [vmem:[#allocation2 + $0x5f] sm:$0xfe] %vm626_vm4, %v549_v37  ;;  %795 = vrot.lane.b32.xlu1 %v5652_v3, %s5474_s7  ;;  %793 = vrot.lane.b32.xlu0 %v5646_v1, %s5474_s7 }
  0xcf   : > { %v555_v38 = vpop.permute.xlu1 %554  ;;  %v553_v39 = vpop.permute.xlu0 %552 }
  0xd0   : > { %637 = vst.msk [vmem:[#allocation2 + $0x7f] sm:$0xff] %vm628_vm3, %v555_v38 }
  0xd1   : > { %636 = vst.msk [vmem:[#allocation2 + $0x77] sm:$0xfe] %vm626_vm4, %v553_v39  ;;  %799 = vrot.lane.b32.xlu1 %v5662_v5, %s5474_s7  ;;  %797 = vrot.lane.b32.xlu0 %v5671_v6, %s5474_s7 }
  0xd3   : > { %v559_v40 = vpop.permute.xlu1 %558  ;;  %v557_v41 = vpop.permute.xlu0 %556 }
  0xd4   : > { %639 = vst.msk [vmem:[#allocation2 + $0x97] sm:$0xff] %vm628_vm3, %v559_v40 }
  0xd5   : > { %638 = vst.msk [vmem:[#allocation2 + $0x8f] sm:$0xfe] %vm626_vm4, %v557_v41  ;;  %803 = vrot.lane.b32.xlu1 %v5674_v7, %s5474_s7  ;;  %801 = vrot.lane.b32.xlu0 %v5677_v8, %s5474_s7 }
  0xd7   : > { %v563_v42 = vpop.permute.xlu1 %562  ;;  %v561_v43 = vpop.permute.xlu0 %560 }
  0xd8   : > { %641 = vst.msk [vmem:[#allocation2 + $0xaf] sm:$0xff] %vm628_vm3, %v563_v42 }
  0xd9   : > { %640 = vst.msk [vmem:[#allocation2 + $0xa7] sm:$0xfe] %vm626_vm4, %v561_v43  ;;  %807 = vrot.lane.b32.xlu1 %v5684_v9, %s5474_s7  ;;  %805 = vrot.lane.b32.xlu0 %v5687_v10, %s5474_s7 }
  0xdb   : > { %v567_v44 = vpop.permute.xlu1 %566  ;;  %v565_v45 = vpop.permute.xlu0 %564 }
  0xdc   : > { %643 = vst.msk [vmem:[#allocation2 + $0xc7] sm:$0xff] %vm628_vm3, %v567_v44 }
  0xdd   : > { %642 = vst.msk [vmem:[#allocation2 + $0xbf] sm:$0xfe] %vm626_vm4, %v565_v45  ;;  %811 = vrot.lane.b32.xlu1 %v5690_v11, %s5474_s7  ;;  %809 = vrot.lane.b32.xlu0 %v5699_v12, %s5474_s7 }
  0xdf   : > { %v571_v46 = vpop.permute.xlu1 %570  ;;  %v569_v47 = vpop.permute.xlu0 %568 }
  0xe0   : > { %645 = vst.msk [vmem:[#allocation2 + $0xdf] sm:$0xff] %vm628_vm3, %v571_v46 }
  0xe1   : > { %644 = vst.msk [vmem:[#allocation2 + $0xd7] sm:$0xfe] %vm626_vm4, %v569_v47  ;;  %815 = vrot.lane.b32.xlu1 %v5702_v13, %s5474_s7  ;;  %813 = vrot.lane.b32.xlu0 %v5705_v14, %s5474_s7 }
  0xe3   : > { %v575_v48 = vpop.permute.xlu1 %574  ;;  %v573_v49 = vpop.permute.xlu0 %572 }
  0xe4   : > { %647 = vst.msk [vmem:[#allocation2 + $0xf7] sm:$0xff] %vm628_vm3, %v575_v48 }
  0xe5   : > { %646 = vst.msk [vmem:[#allocation2 + $0xef] sm:$0xfe] %vm626_vm4, %v573_v49  ;;  %819 = vrot.lane.b32.xlu1 %v5718_v15, %s5474_s7  ;;  %817 = vrot.lane.b32.xlu0 %v5721_v16, %s5474_s7 }
  0xe7   : > { %v579_v50 = vpop.permute.xlu1 %578  ;;  %v577_v51 = vpop.permute.xlu0 %576 }
  0xe8   : > { %649 = vst.msk [vmem:[#allocation2 + $0x10f] sm:$0xff] %vm628_vm3, %v579_v50 }
  0xe9   : > { %648 = vst.msk [vmem:[#allocation2 + $0x107] sm:$0xfe] %vm626_vm4, %v577_v51  ;;  %823 = vrot.lane.b32.xlu1 %v5730_v17, %s5474_s7  ;;  %821 = vrot.lane.b32.xlu0 %v5733_v18, %s5474_s7 }
  0xeb   : > { %v583_v52 = vpop.permute.xlu1 %582  ;;  %v581_v53 = vpop.permute.xlu0 %580 }
  0xec   : > { %651 = vst.msk [vmem:[#allocation2 + $0x127] sm:$0xff] %vm628_vm3, %v583_v52 }
  0xed   : > { %650 = vst.msk [vmem:[#allocation2 + $0x11f] sm:$0xfe] %vm626_vm4, %v581_v53  ;;  %827 = vrot.lane.b32.xlu1 %v5736_v19, %s5474_s7  ;;  %825 = vrot.lane.b32.xlu0 %v5743_v20, %s5474_s7 }
  0xef   : > { %v587_v54 = vpop.permute.xlu1 %586  ;;  %v585_v55 = vpop.permute.xlu0 %584 }
  0xf0   : > { %653 = vst.msk [vmem:[#allocation2 + $0x13f] sm:$0xff] %vm628_vm3, %v587_v54 }
  0xf1   : > { %652 = vst.msk [vmem:[#allocation2 + $0x137] sm:$0xfe] %vm626_vm4, %v585_v55  ;;  %831 = vrot.lane.b32.xlu1 %v5746_v21, %s5474_s7  ;;  %829 = vrot.lane.b32.xlu0 %v5749_v22, %s5474_s7 }
  0xf3   : > { %v591_v56 = vpop.permute.xlu1 %590  ;;  %v589_v57 = vpop.permute.xlu0 %588 }
  0xf4   : > { %655 = vst.msk [vmem:[#allocation2 + $0x157] sm:$0xff] %vm628_vm3, %v591_v56 }
  0xf5   : > { %654 = vst.msk [vmem:[#allocation2 + $0x14f] sm:$0xfe] %vm626_vm4, %v589_v57  ;;  %835 = vrot.lane.b32.xlu1 %v5758_v23, %s5474_s7  ;;  %833 = vrot.lane.b32.xlu0 %v5761_v24, %s5474_s7 }
  0xf7   : > { %v595_v58 = vpop.permute.xlu1 %594  ;;  %v593_v59 = vpop.permute.xlu0 %592 }
  0xf8   : > { %657 = vst.msk [vmem:[#allocation2 + $0x16f] sm:$0xff] %vm628_vm3, %v595_v58 }
  0xf9   : > { %656 = vst.msk [vmem:[#allocation2 + $0x167] sm:$0xfe] %vm626_vm4, %v593_v59  ;;  %839 = vrot.lane.b32.xlu1 %v5764_v25, %s5474_s7  ;;  %837 = vrot.lane.b32.xlu0 %v5777_v26, %s5474_s7  ;;  %vm1806_vm4 = vcmask 195745  }
  0xfb   : > { %v663_v60 = vpop.permute.xlu1 %662  ;;  %v661_v61 = vpop.permute.xlu0 %660 }
  0xfc   : > { %758 = vst.msk [vmem:[#allocation2 + $0x9] sm:$0xff] %vm756_vm5, %v663_v60  ;;  %757 = vst.msk [vmem:[#allocation2 + $0x1] sm:$0xff] %vm756_vm5, %v661_v61 }
  0xfd   : > { %843 = vrot.lane.b32.xlu1 %v5780_v27, %s5474_s7  ;;  %841 = vrot.lane.b32.xlu0 %v5789_v28, %s5474_s7 }
  0xff   : > { %v667_v62 = vpop.permute.xlu1 %666  ;;  %v665_v32 = vpop.permute.xlu0 %664 }
 0x100   : > { %760 = vst.msk [vmem:[#allocation2 + $0x21] sm:$0xff] %vm756_vm5, %v667_v62  ;;  %759 = vst.msk [vmem:[#allocation2 + $0x19] sm:$0xff] %vm756_vm5, %v665_v32 }
 0x101   : > { %847 = vrot.lane.b32.xlu1 %v5792_v29, %s5474_s7  ;;  %845 = vrot.lane.b32.xlu0 %v5795_v30, %s5474_s7 }
 0x103   : > { %v671_v33 = vpop.permute.xlu1 %670  ;;  %v669_v34 = vpop.permute.xlu0 %668 }
 0x104   : > { %762 = vst.msk [vmem:[#allocation2 + $0x39] sm:$0xff] %vm756_vm5, %v671_v33  ;;  %761 = vst.msk [vmem:[#allocation2 + $0x31] sm:$0xff] %vm756_vm5, %v669_v34 }
 0x105   : > { %851 = vrot.lane.b32.xlu1 %v6008_v63, %s5474_s7  ;;  %849 = vrot.lane.b32.xlu0 %v6011_v31, %s5474_s7 }
 0x107   : > { %v675_v35 = vpop.permute.xlu1 %674  ;;  %v673_v36 = vpop.permute.xlu0 %672 }
 0x108   : > { %764 = vst.msk [vmem:[#allocation2 + $0x51] sm:$0xff] %vm756_vm5, %v675_v35  ;;  %763 = vst.msk [vmem:[#allocation2 + $0x49] sm:$0xff] %vm756_vm5, %v673_v36 }
 0x109   : > { %920 = vrot.lane.b32.xlu1 %v5659_v4, %s5475_s8  ;;  %918 = vrot.lane.b32.xlu0 %v5649_v2, %s5475_s8 }
 0x10b   : > { %v679_v37 = vpop.permute.xlu1 %678  ;;  %v677_v38 = vpop.permute.xlu0 %676 }
 0x10c   : > { %766 = vst.msk [vmem:[#allocation2 + $0x69] sm:$0xff] %vm756_vm5, %v679_v37  ;;  %765 = vst.msk [vmem:[#allocation2 + $0x61] sm:$0xff] %vm756_vm5, %v677_v38 }
 0x10d   : > { %924 = vrot.lane.b32.xlu1 %v5652_v3, %s5475_s8  ;;  %922 = vrot.lane.b32.xlu0 %v5646_v1, %s5475_s8 }
 0x10f   : > { %v683_v39 = vpop.permute.xlu1 %682  ;;  %v681_v40 = vpop.permute.xlu0 %680 }
 0x110   : > { %768 = vst.msk [vmem:[#allocation2 + $0x81] sm:$0xff] %vm756_vm5, %v683_v39  ;;  %767 = vst.msk [vmem:[#allocation2 + $0x79] sm:$0xff] %vm756_vm5, %v681_v40 }
 0x111   : > { %928 = vrot.lane.b32.xlu1 %v5662_v5, %s5475_s8  ;;  %926 = vrot.lane.b32.xlu0 %v5671_v6, %s5475_s8 }
 0x113   : > { %v687_v2 = vpop.permute.xlu1 %686  ;;  %v685_v4 = vpop.permute.xlu0 %684 }
 0x114   : > { %770 = vst.msk [vmem:[#allocation2 + $0x99] sm:$0xff] %vm756_vm5, %v687_v2  ;;  %769 = vst.msk [vmem:[#allocation2 + $0x91] sm:$0xff] %vm756_vm5, %v685_v4 }
 0x115   : > { %932 = vrot.lane.b32.xlu1 %v5674_v7, %s5475_s8  ;;  %930 = vrot.lane.b32.xlu0 %v5677_v8, %s5475_s8 }
 0x117   : > { %v691_v41 = vpop.permute.xlu1 %690  ;;  %v689_v42 = vpop.permute.xlu0 %688 }
 0x118   : > { %772 = vst.msk [vmem:[#allocation2 + $0xb1] sm:$0xff] %vm756_vm5, %v691_v41  ;;  %771 = vst.msk [vmem:[#allocation2 + $0xa9] sm:$0xff] %vm756_vm5, %v689_v42 }
 0x119   : > { %936 = vrot.lane.b32.xlu1 %v5684_v9, %s5475_s8  ;;  %934 = vrot.lane.b32.xlu0 %v5687_v10, %s5475_s8 }
 0x11b   : > { %v695_v43 = vpop.permute.xlu1 %694  ;;  %v693_v44 = vpop.permute.xlu0 %692 }
 0x11c   : > { %774 = vst.msk [vmem:[#allocation2 + $0xc9] sm:$0xff] %vm756_vm5, %v695_v43  ;;  %773 = vst.msk [vmem:[#allocation2 + $0xc1] sm:$0xff] %vm756_vm5, %v693_v44 }
 0x11d   : > { %940 = vrot.lane.b32.xlu1 %v5690_v11, %s5475_s8  ;;  %938 = vrot.lane.b32.xlu0 %v5699_v12, %s5475_s8 }
 0x11f   : > { %v699_v45 = vpop.permute.xlu1 %698  ;;  %v697_v46 = vpop.permute.xlu0 %696 }
 0x120   : > { %776 = vst.msk [vmem:[#allocation2 + $0xe1] sm:$0xff] %vm756_vm5, %v699_v45  ;;  %775 = vst.msk [vmem:[#allocation2 + $0xd9] sm:$0xff] %vm756_vm5, %v697_v46 }
 0x121   : > { %944 = vrot.lane.b32.xlu1 %v5702_v13, %s5475_s8  ;;  %942 = vrot.lane.b32.xlu0 %v5705_v14, %s5475_s8 }
 0x123   : > { %v703_v47 = vpop.permute.xlu1 %702  ;;  %v701_v48 = vpop.permute.xlu0 %700 }
 0x124   : > { %778 = vst.msk [vmem:[#allocation2 + $0xf9] sm:$0xff] %vm756_vm5, %v703_v47  ;;  %777 = vst.msk [vmem:[#allocation2 + $0xf1] sm:$0xff] %vm756_vm5, %v701_v48 }
 0x125   : > { %948 = vrot.lane.b32.xlu1 %v5718_v15, %s5475_s8  ;;  %946 = vrot.lane.b32.xlu0 %v5721_v16, %s5475_s8 }
 0x127   : > { %v707_v49 = vpop.permute.xlu1 %706  ;;  %v705_v50 = vpop.permute.xlu0 %704 }
 0x128   : > { %780 = vst.msk [vmem:[#allocation2 + $0x111] sm:$0xff] %vm756_vm5, %v707_v49  ;;  %779 = vst.msk [vmem:[#allocation2 + $0x109] sm:$0xff] %vm756_vm5, %v705_v50 }
 0x129   : > { %952 = vrot.lane.b32.xlu1 %v5730_v17, %s5475_s8  ;;  %950 = vrot.lane.b32.xlu0 %v5733_v18, %s5475_s8 }
 0x12b   : > { %v711_v51 = vpop.permute.xlu1 %710  ;;  %v709_v52 = vpop.permute.xlu0 %708 }
 0x12c   : > { %782 = vst.msk [vmem:[#allocation2 + $0x129] sm:$0xff] %vm756_vm5, %v711_v51  ;;  %781 = vst.msk [vmem:[#allocation2 + $0x121] sm:$0xff] %vm756_vm5, %v709_v52 }
 0x12d   : > { %956 = vrot.lane.b32.xlu1 %v5736_v19, %s5475_s8  ;;  %954 = vrot.lane.b32.xlu0 %v5743_v20, %s5475_s8 }
 0x12f   : > { %v715_v53 = vpop.permute.xlu1 %714  ;;  %v713_v54 = vpop.permute.xlu0 %712 }
 0x130   : > { %784 = vst.msk [vmem:[#allocation2 + $0x141] sm:$0xff] %vm756_vm5, %v715_v53  ;;  %783 = vst.msk [vmem:[#allocation2 + $0x139] sm:$0xff] %vm756_vm5, %v713_v54 }
 0x131   : > { %960 = vrot.lane.b32.xlu1 %v5746_v21, %s5475_s8  ;;  %958 = vrot.lane.b32.xlu0 %v5749_v22, %s5475_s8 }
 0x133   : > { %v719_v55 = vpop.permute.xlu1 %718  ;;  %v717_v56 = vpop.permute.xlu0 %716 }
 0x134   : > { %786 = vst.msk [vmem:[#allocation2 + $0x159] sm:$0xff] %vm756_vm5, %v719_v55  ;;  %785 = vst.msk [vmem:[#allocation2 + $0x151] sm:$0xff] %vm756_vm5, %v717_v56 }
 0x135   : > { %964 = vrot.lane.b32.xlu1 %v5758_v23, %s5475_s8  ;;  %962 = vrot.lane.b32.xlu0 %v5761_v24, %s5475_s8 }
 0x137   : > { %v723_v57 = vpop.permute.xlu1 %722  ;;  %v721_v58 = vpop.permute.xlu0 %720 }
 0x138   : > { %788 = vst.msk [vmem:[#allocation2 + $0x171] sm:$0xff] %vm756_vm5, %v723_v57  ;;  %787 = vst.msk [vmem:[#allocation2 + $0x169] sm:$0xff] %vm756_vm5, %v721_v58 }
 0x139   : > { %968 = vrot.lane.b32.xlu1 %v5764_v25, %s5475_s8  ;;  %966 = vrot.lane.b32.xlu0 %v5777_v26, %s5475_s8 }
 0x13b   : > { %v792_v59 = vpop.permute.xlu1 %791  ;;  %v790_v60 = vpop.permute.xlu0 %789 }
 0x13c   : > { %887 = vst.msk [vmem:[#allocation2 + $0x8] sm:$0xff] %vm8725_vm6, %v792_v59  ;;  %886 = vst.msk [vmem:[#allocation2] sm:$0xff] %vm8725_vm6, %v790_v60 }
 0x13d   : > { %972 = vrot.lane.b32.xlu1 %v5780_v27, %s5475_s8  ;;  %970 = vrot.lane.b32.xlu0 %v5789_v28, %s5475_s8 }
 0x13f   : > { %v796_v61 = vpop.permute.xlu1 %795  ;;  %v794_v62 = vpop.permute.xlu0 %793 }
 0x140   : > { %889 = vst.msk [vmem:[#allocation2 + $0x20] sm:$0xff] %vm8725_vm6, %v796_v61  ;;  %888 = vst.msk [vmem:[#allocation2 + $0x18] sm:$0xff] %vm8725_vm6, %v794_v62 }
 0x141   : > { %976 = vrot.lane.b32.xlu1 %v5792_v29, %s5475_s8  ;;  %974 = vrot.lane.b32.xlu0 %v5795_v30, %s5475_s8 }
 0x143   : > { %v800_v32 = vpop.permute.xlu1 %799  ;;  %v798_v33 = vpop.permute.xlu0 %797 }
 0x144   : > { %891 = vst.msk [vmem:[#allocation2 + $0x38] sm:$0xff] %vm8725_vm6, %v800_v32  ;;  %890 = vst.msk [vmem:[#allocation2 + $0x30] sm:$0xff] %vm8725_vm6, %v798_v33 }
 0x145   : > { %980 = vrot.lane.b32.xlu1 %v6008_v63, %s5475_s8  ;;  %978 = vrot.lane.b32.xlu0 %v6011_v31, %s5475_s8 }
 0x147   : > { %v804_v34 = vpop.permute.xlu1 %803  ;;  %v802_v35 = vpop.permute.xlu0 %801 }
 0x148   : > { %893 = vst.msk [vmem:[#allocation2 + $0x50] sm:$0xff] %vm8725_vm6, %v804_v34  ;;  %892 = vst.msk [vmem:[#allocation2 + $0x48] sm:$0xff] %vm8725_vm6, %v802_v35 }
 0x149   : > { %1050 = vrot.lane.b32.xlu1 %v5652_v3, %s5476_s9  ;;  %1048 = vrot.lane.b32.xlu0 %v5646_v1, %s5476_s9 }
 0x14b   : > { %v808_v36 = vpop.permute.xlu1 %807  ;;  %v806_v37 = vpop.permute.xlu0 %805 }
 0x14c   : > { %895 = vst.msk [vmem:[#allocation2 + $0x68] sm:$0xff] %vm8725_vm6, %v808_v36  ;;  %894 = vst.msk [vmem:[#allocation2 + $0x60] sm:$0xff] %vm8725_vm6, %v806_v37 }
 0x14d   : > { %1054 = vrot.lane.b32.xlu1 %v5662_v5, %s5476_s9  ;;  %1052 = vrot.lane.b32.xlu0 %v5671_v6, %s5476_s9 }
 0x14f   : > { %v812_v38 = vpop.permute.xlu1 %811  ;;  %v810_v39 = vpop.permute.xlu0 %809 }
 0x150   : > { %897 = vst.msk [vmem:[#allocation2 + $0x80] sm:$0xff] %vm8725_vm6, %v812_v38  ;;  %896 = vst.msk [vmem:[#allocation2 + $0x78] sm:$0xff] %vm8725_vm6, %v810_v39 }
 0x151   : > { %1058 = vrot.lane.b32.xlu1 %v5674_v7, %s5476_s9  ;;  %1056 = vrot.lane.b32.xlu0 %v5677_v8, %s5476_s9 }
 0x153   : > { %v816_v40 = vpop.permute.xlu1 %815  ;;  %v814_v2 = vpop.permute.xlu0 %813 }
 0x154   : > { %899 = vst.msk [vmem:[#allocation2 + $0x98] sm:$0xff] %vm8725_vm6, %v816_v40  ;;  %898 = vst.msk [vmem:[#allocation2 + $0x90] sm:$0xff] %vm8725_vm6, %v814_v2 }
 0x155   : > { %1062 = vrot.lane.b32.xlu1 %v5684_v9, %s5476_s9  ;;  %1060 = vrot.lane.b32.xlu0 %v5687_v10, %s5476_s9 }
 0x157   : > { %v820_v4 = vpop.permute.xlu1 %819  ;;  %v818_v41 = vpop.permute.xlu0 %817 }
 0x158   : > { %901 = vst.msk [vmem:[#allocation2 + $0xb0] sm:$0xff] %vm8725_vm6, %v820_v4  ;;  %900 = vst.msk [vmem:[#allocation2 + $0xa8] sm:$0xff] %vm8725_vm6, %v818_v41 }
 0x159   : > { %1066 = vrot.lane.b32.xlu1 %v5690_v11, %s5476_s9  ;;  %1064 = vrot.lane.b32.xlu0 %v5699_v12, %s5476_s9 }
 0x15b   : > { %v824_v42 = vpop.permute.xlu1 %823  ;;  %v822_v43 = vpop.permute.xlu0 %821 }
 0x15c   : > { %903 = vst.msk [vmem:[#allocation2 + $0xc8] sm:$0xff] %vm8725_vm6, %v824_v42  ;;  %902 = vst.msk [vmem:[#allocation2 + $0xc0] sm:$0xff] %vm8725_vm6, %v822_v43 }
 0x15d   : > { %1070 = vrot.lane.b32.xlu1 %v5702_v13, %s5476_s9  ;;  %1068 = vrot.lane.b32.xlu0 %v5705_v14, %s5476_s9 }
 0x15f   : > { %v828_v44 = vpop.permute.xlu1 %827  ;;  %v826_v45 = vpop.permute.xlu0 %825 }
 0x160   : > { %905 = vst.msk [vmem:[#allocation2 + $0xe0] sm:$0xff] %vm8725_vm6, %v828_v44  ;;  %904 = vst.msk [vmem:[#allocation2 + $0xd8] sm:$0xff] %vm8725_vm6, %v826_v45 }
 0x161   : > { %1074 = vrot.lane.b32.xlu1 %v5718_v15, %s5476_s9  ;;  %1072 = vrot.lane.b32.xlu0 %v5721_v16, %s5476_s9 }
 0x163   : > { %v832_v46 = vpop.permute.xlu1 %831  ;;  %v830_v47 = vpop.permute.xlu0 %829 }
 0x164   : > { %907 = vst.msk [vmem:[#allocation2 + $0xf8] sm:$0xff] %vm8725_vm6, %v832_v46  ;;  %906 = vst.msk [vmem:[#allocation2 + $0xf0] sm:$0xff] %vm8725_vm6, %v830_v47 }
 0x165   : > { %1078 = vrot.lane.b32.xlu1 %v5730_v17, %s5476_s9  ;;  %1076 = vrot.lane.b32.xlu0 %v5733_v18, %s5476_s9 }
 0x167   : > { %v836_v48 = vpop.permute.xlu1 %835  ;;  %v834_v49 = vpop.permute.xlu0 %833 }
 0x168   : > { %909 = vst.msk [vmem:[#allocation2 + $0x110] sm:$0xff] %vm8725_vm6, %v836_v48  ;;  %908 = vst.msk [vmem:[#allocation2 + $0x108] sm:$0xff] %vm8725_vm6, %v834_v49 }
 0x169   : > { %1082 = vrot.lane.b32.xlu1 %v5736_v19, %s5476_s9  ;;  %1080 = vrot.lane.b32.xlu0 %v5743_v20, %s5476_s9 }
 0x16b   : > { %v840_v50 = vpop.permute.xlu1 %839  ;;  %v838_v51 = vpop.permute.xlu0 %837 }
 0x16c   : > { %911 = vst.msk [vmem:[#allocation2 + $0x128] sm:$0xff] %vm8725_vm6, %v840_v50  ;;  %910 = vst.msk [vmem:[#allocation2 + $0x120] sm:$0xff] %vm8725_vm6, %v838_v51 }
 0x16d   : > { %1086 = vrot.lane.b32.xlu1 %v5746_v21, %s5476_s9  ;;  %1084 = vrot.lane.b32.xlu0 %v5749_v22, %s5476_s9 }
 0x16f   : > { %v844_v52 = vpop.permute.xlu1 %843  ;;  %v842_v53 = vpop.permute.xlu0 %841 }
 0x170   : > { %913 = vst.msk [vmem:[#allocation2 + $0x140] sm:$0xff] %vm8725_vm6, %v844_v52  ;;  %912 = vst.msk [vmem:[#allocation2 + $0x138] sm:$0xff] %vm8725_vm6, %v842_v53 }
 0x171   : > { %1090 = vrot.lane.b32.xlu1 %v5758_v23, %s5476_s9  ;;  %1088 = vrot.lane.b32.xlu0 %v5761_v24, %s5476_s9 }
 0x173   : > { %v848_v54 = vpop.permute.xlu1 %847  ;;  %v846_v55 = vpop.permute.xlu0 %845 }
 0x174   : > { %915 = vst.msk [vmem:[#allocation2 + $0x158] sm:$0xff] %vm8725_vm6, %v848_v54  ;;  %914 = vst.msk [vmem:[#allocation2 + $0x150] sm:$0xff] %vm8725_vm6, %v846_v55 }
 0x175   : > { %1094 = vrot.lane.b32.xlu1 %v5764_v25, %s5476_s9  ;;  %1092 = vrot.lane.b32.xlu0 %v5777_v26, %s5476_s9 }
 0x177   : > { %v852_v56 = vpop.permute.xlu1 %851  ;;  %v850_v57 = vpop.permute.xlu0 %849 }
 0x178   : > { %917 = vst.msk [vmem:[#allocation2 + $0x170] sm:$0xff] %vm8725_vm6, %v852_v56  ;;  %916 = vst.msk [vmem:[#allocation2 + $0x168] sm:$0xff] %vm8725_vm6, %v850_v57  ;;  %vm2560_vm6 = vcmask 589345  }
 0x179   : > { %1098 = vrot.lane.b32.xlu1 %v5780_v27, %s5476_s9  ;;  %1096 = vrot.lane.b32.xlu0 %v5789_v28, %s5476_s9 }
 0x17b   : > { %v921_v58 = vpop.permute.xlu1 %920  ;;  %v919_v59 = vpop.permute.xlu0 %918 }
 0x17c   : > { %1017 = vst.msk [vmem:[#allocation2 + $0x7] sm:$0xff] %vm1016_vm7, %v921_v58 }
 0x17d   : > { %1015 = vst.msk [vmem:[#allocation2 - $0x1] sm:$0xfe] %vm1014_vm8, %v919_v59  ;;  %1102 = vrot.lane.b32.xlu1 %v5792_v29, %s5476_s9  ;;  %1100 = vrot.lane.b32.xlu0 %v5795_v30, %s5476_s9 }
 0x17f   : > { %v925_v60 = vpop.permute.xlu1 %924  ;;  %v923_v61 = vpop.permute.xlu0 %922 }
 0x180   : > { %1019 = vst.msk [vmem:[#allocation2 + $0x1f] sm:$0xff] %vm1016_vm7, %v925_v60 }
 0x181   : > { %1018 = vst.msk [vmem:[#allocation2 + $0x17] sm:$0xfe] %vm1014_vm8, %v923_v61  ;;  %1106 = vrot.lane.b32.xlu1 %v6008_v63, %s5476_s9  ;;  %1104 = vrot.lane.b32.xlu0 %v6011_v31, %s5476_s9 }
 0x183   : > { %v929_v62 = vpop.permute.xlu1 %928  ;;  %v927_v32 = vpop.permute.xlu0 %926 }
 0x184   : > { %1021 = vst.msk [vmem:[#allocation2 + $0x37] sm:$0xff] %vm1016_vm7, %v929_v62 }
 0x185   : > { %1020 = vst.msk [vmem:[#allocation2 + $0x2f] sm:$0xfe] %vm1014_vm8, %v927_v32  ;;  %1171 = vrot.lane.b32.xlu1 %v5652_v3, %s5477_s10  ;;  %1169 = vrot.lane.b32.xlu0 %v5646_v1, %s5477_s10 }
 0x187   : > { %v933_v33 = vpop.permute.xlu1 %932  ;;  %v931_v34 = vpop.permute.xlu0 %930 }
 0x188   : > { %1023 = vst.msk [vmem:[#allocation2 + $0x4f] sm:$0xff] %vm1016_vm7, %v933_v33 }
 0x189   : > { %1022 = vst.msk [vmem:[#allocation2 + $0x47] sm:$0xfe] %vm1014_vm8, %v931_v34  ;;  %1175 = vrot.lane.b32.xlu1 %v5662_v5, %s5477_s10  ;;  %1173 = vrot.lane.b32.xlu0 %v5671_v6, %s5477_s10 }
 0x18b   : > { %v937_v35 = vpop.permute.xlu1 %936  ;;  %v935_v36 = vpop.permute.xlu0 %934 }
 0x18c   : > { %1025 = vst.msk [vmem:[#allocation2 + $0x67] sm:$0xff] %vm1016_vm7, %v937_v35 }
 0x18d   : > { %1024 = vst.msk [vmem:[#allocation2 + $0x5f] sm:$0xfe] %vm1014_vm8, %v935_v36  ;;  %1179 = vrot.lane.b32.xlu1 %v5674_v7, %s5477_s10  ;;  %1177 = vrot.lane.b32.xlu0 %v5677_v8, %s5477_s10  ;;  %v6512_v36 = vld [vmem:[%s6479_s14 + $0x28] sm:$0xff] }
 0x18f   : > { %v941_v37 = vpop.permute.xlu1 %940  ;;  %v939_v38 = vpop.permute.xlu0 %938 }
 0x190   : > { %1027 = vst.msk [vmem:[#allocation2 + $0x7f] sm:$0xff] %vm1016_vm7, %v941_v37  ;;  %v6515_v37 = vld [vmem:[%s6479_s14 + $0x20] sm:$0xff] }
 0x191   : > { %1026 = vst.msk [vmem:[#allocation2 + $0x77] sm:$0xfe] %vm1014_vm8, %v939_v38  ;;  %1183 = vrot.lane.b32.xlu1 %v5684_v9, %s5477_s10  ;;  %1181 = vrot.lane.b32.xlu0 %v5687_v10, %s5477_s10 }
 0x193   : > { %v945_v39 = vpop.permute.xlu1 %944  ;;  %v943_v40 = vpop.permute.xlu0 %942 }
 0x194   : > { %1029 = vst.msk [vmem:[#allocation2 + $0x97] sm:$0xff] %vm1016_vm7, %v945_v39 }
 0x195   : > { %1028 = vst.msk [vmem:[#allocation2 + $0x8f] sm:$0xfe] %vm1014_vm8, %v943_v40  ;;  %1187 = vrot.lane.b32.xlu1 %v5690_v11, %s5477_s10  ;;  %1185 = vrot.lane.b32.xlu0 %v5699_v12, %s5477_s10  ;;  %v6524_v40 = vld [vmem:[%s6479_s14 + $0x38] sm:$0xff] }
 0x197   : > { %v949_v2 = vpop.permute.xlu1 %948  ;;  %v947_v4 = vpop.permute.xlu0 %946 }
 0x198   : > { %1031 = vst.msk [vmem:[#allocation2 + $0xaf] sm:$0xff] %vm1016_vm7, %v949_v2  ;;  %v6527_v2 = vld [vmem:[%s6479_s14 + $0x30] sm:$0xff] }
 0x199   : > { %1030 = vst.msk [vmem:[#allocation2 + $0xa7] sm:$0xfe] %vm1014_vm8, %v947_v4  ;;  %1191 = vrot.lane.b32.xlu1 %v5702_v13, %s5477_s10  ;;  %1189 = vrot.lane.b32.xlu0 %v5705_v14, %s5477_s10 }
 0x19b   : > { %v953_v41 = vpop.permute.xlu1 %952  ;;  %v951_v42 = vpop.permute.xlu0 %950 }
 0x19c   : > { %1033 = vst.msk [vmem:[#allocation2 + $0xc7] sm:$0xff] %vm1016_vm7, %v953_v41 }
 0x19d   : > { %1032 = vst.msk [vmem:[#allocation2 + $0xbf] sm:$0xfe] %vm1014_vm8, %v951_v42  ;;  %1195 = vrot.lane.b32.xlu1 %v5718_v15, %s5477_s10  ;;  %1193 = vrot.lane.b32.xlu0 %v5721_v16, %s5477_s10  ;;  %v6536_v42 = vld [vmem:[%s6479_s14 + $0x48] sm:$0xff] }
 0x19f   : > { %v957_v43 = vpop.permute.xlu1 %956  ;;  %v955_v44 = vpop.permute.xlu0 %954 }
 0x1a0   : > { %1035 = vst.msk [vmem:[#allocation2 + $0xdf] sm:$0xff] %vm1016_vm7, %v957_v43  ;;  %v6539_v43 = vld [vmem:[%s6479_s14 + $0x40] sm:$0xff] }
 0x1a1   : > { %1034 = vst.msk [vmem:[#allocation2 + $0xd7] sm:$0xfe] %vm1014_vm8, %v955_v44  ;;  %1199 = vrot.lane.b32.xlu1 %v5730_v17, %s5477_s10  ;;  %1197 = vrot.lane.b32.xlu0 %v5733_v18, %s5477_s10 }
 0x1a3   : > { %v961_v45 = vpop.permute.xlu1 %960  ;;  %v959_v46 = vpop.permute.xlu0 %958 }
 0x1a4   : > { %1037 = vst.msk [vmem:[#allocation2 + $0xf7] sm:$0xff] %vm1016_vm7, %v961_v45 }
 0x1a5   : > { %1036 = vst.msk [vmem:[#allocation2 + $0xef] sm:$0xfe] %vm1014_vm8, %v959_v46  ;;  %1203 = vrot.lane.b32.xlu1 %v5736_v19, %s5477_s10  ;;  %1201 = vrot.lane.b32.xlu0 %v5743_v20, %s5477_s10  ;;  %v6548_v46 = vld [vmem:[%s6479_s14 + $0x58] sm:$0xff] }
 0x1a7   : > { %v965_v47 = vpop.permute.xlu1 %964  ;;  %v963_v48 = vpop.permute.xlu0 %962 }
 0x1a8   : > { %1039 = vst.msk [vmem:[#allocation2 + $0x10f] sm:$0xff] %vm1016_vm7, %v965_v47  ;;  %v6551_v47 = vld [vmem:[%s6479_s14 + $0x50] sm:$0xff] }
 0x1a9   : > { %1038 = vst.msk [vmem:[#allocation2 + $0x107] sm:$0xfe] %vm1014_vm8, %v963_v48  ;;  %1207 = vrot.lane.b32.xlu1 %v5746_v21, %s5477_s10  ;;  %1205 = vrot.lane.b32.xlu0 %v5749_v22, %s5477_s10 }
 0x1ab   : > { %v969_v49 = vpop.permute.xlu1 %968  ;;  %v967_v50 = vpop.permute.xlu0 %966 }
 0x1ac   : > { %1041 = vst.msk [vmem:[#allocation2 + $0x127] sm:$0xff] %vm1016_vm7, %v969_v49 }
 0x1ad   : > { %1040 = vst.msk [vmem:[#allocation2 + $0x11f] sm:$0xfe] %vm1014_vm8, %v967_v50  ;;  %1211 = vrot.lane.b32.xlu1 %v5758_v23, %s5477_s10  ;;  %1209 = vrot.lane.b32.xlu0 %v5761_v24, %s5477_s10  ;;  %v6560_v50 = vld [vmem:[%s6479_s14 + $0x68] sm:$0xff] }
 0x1af   : > { %v973_v51 = vpop.permute.xlu1 %972  ;;  %v971_v52 = vpop.permute.xlu0 %970 }
 0x1b0   : > { %1043 = vst.msk [vmem:[#allocation2 + $0x13f] sm:$0xff] %vm1016_vm7, %v973_v51  ;;  %v6563_v51 = vld [vmem:[%s6479_s14 + $0x60] sm:$0xff] }
 0x1b1   : > { %1042 = vst.msk [vmem:[#allocation2 + $0x137] sm:$0xfe] %vm1014_vm8, %v971_v52  ;;  %1215 = vrot.lane.b32.xlu1 %v5764_v25, %s5477_s10  ;;  %1213 = vrot.lane.b32.xlu0 %v5777_v26, %s5477_s10 }
 0x1b3   : > { %v977_v53 = vpop.permute.xlu1 %976  ;;  %v975_v54 = vpop.permute.xlu0 %974 }
 0x1b4   : > { %1045 = vst.msk [vmem:[#allocation2 + $0x157] sm:$0xff] %vm1016_vm7, %v977_v53 }
 0x1b5   : > { %1044 = vst.msk [vmem:[#allocation2 + $0x14f] sm:$0xfe] %vm1014_vm8, %v975_v54  ;;  %1219 = vrot.lane.b32.xlu1 %v5780_v27, %s5477_s10  ;;  %1217 = vrot.lane.b32.xlu0 %v5789_v28, %s5477_s10  ;;  %v6572_v54 = vld [vmem:[%s6479_s14 + $0x78] sm:$0xff] }
 0x1b7   : > { %v981_v55 = vpop.permute.xlu1 %980  ;;  %v979_v56 = vpop.permute.xlu0 %978 }
 0x1b8   : > { %1047 = vst.msk [vmem:[#allocation2 + $0x16f] sm:$0xff] %vm1016_vm7, %v981_v55  ;;  %v6575_v55 = vld [vmem:[%s6479_s14 + $0x70] sm:$0xff]  ;;  %vm8726_vm7 = vcmask 261344  }
 0x1b9   : > { %1046 = vst.msk [vmem:[#allocation2 + $0x167] sm:$0xfe] %vm1014_vm8, %v979_v56  ;;  %1223 = vrot.lane.b32.xlu1 %v5792_v29, %s5477_s10  ;;  %1221 = vrot.lane.b32.xlu0 %v5795_v30, %s5477_s10  ;;  %vm2065_vm8 = vcmask 326944  }
 0x1bb   : > { %v1051_v57 = vpop.permute.xlu1 %1050  ;;  %v1049_v58 = vpop.permute.xlu0 %1048 }
 0x1bc   : > { %1140 = vst.msk [vmem:[#allocation2 + $0x9] sm:$0xff] %vm1138_vm9, %v1051_v57  ;;  %1139 = vst.msk [vmem:[#allocation2 + $0x1] sm:$0xff] %vm1138_vm9, %v1049_v58  ;;  %v6584_v58 = vld [vmem:[%s6479_s14 + $0x88] sm:$0xff] }
 0x1bd   : > { %1227 = vrot.lane.b32.xlu1 %v6008_v63, %s5477_s10  ;;  %1225 = vrot.lane.b32.xlu0 %v6011_v31, %s5477_s10  ;;  %s5486_s10 = smov 60  }
 0x1bf   : > { %v1055_v59 = vpop.permute.xlu1 %1054  ;;  %v1053_v60 = vpop.permute.xlu0 %1052 }
 0x1c0   : > { %1142 = vst.msk [vmem:[#allocation2 + $0x21] sm:$0xff] %vm1138_vm9, %v1055_v59  ;;  %1141 = vst.msk [vmem:[#allocation2 + $0x19] sm:$0xff] %vm1138_vm9, %v1053_v60  ;;  %v6587_v59 = vld [vmem:[%s6479_s14 + $0x80] sm:$0xff] }
 0x1c1   : > { %1292 = vrot.lane.b32.xlu1 %v5652_v3, %s5478_s11  ;;  %1290 = vrot.lane.b32.xlu0 %v5646_v1, %s5478_s11 }
 0x1c3   : > { %v1059_v61 = vpop.permute.xlu1 %1058  ;;  %v1057_v62 = vpop.permute.xlu0 %1056 }
 0x1c4   : > { %1144 = vst.msk [vmem:[#allocation2 + $0x39] sm:$0xff] %vm1138_vm9, %v1059_v61  ;;  %1143 = vst.msk [vmem:[#allocation2 + $0x31] sm:$0xff] %vm1138_vm9, %v1057_v62  ;;  %v6596_v62 = vld [vmem:[%s6479_s14 + $0x98] sm:$0xff] }
 0x1c5   : > { %1296 = vrot.lane.b32.xlu1 %v5662_v5, %s5478_s11  ;;  %1294 = vrot.lane.b32.xlu0 %v5671_v6, %s5478_s11 }
 0x1c7   : > { %v1063_v32 = vpop.permute.xlu1 %1062  ;;  %v1061_v33 = vpop.permute.xlu0 %1060 }
 0x1c8   : > { %1146 = vst.msk [vmem:[#allocation2 + $0x51] sm:$0xff] %vm1138_vm9, %v1063_v32  ;;  %1145 = vst.msk [vmem:[#allocation2 + $0x49] sm:$0xff] %vm1138_vm9, %v1061_v33  ;;  %v6599_v32 = vld [vmem:[%s6479_s14 + $0x90] sm:$0xff] }
 0x1c9   : > { %1300 = vrot.lane.b32.xlu1 %v5674_v7, %s5478_s11  ;;  %1298 = vrot.lane.b32.xlu0 %v5677_v8, %s5478_s11 }
 0x1cb   : > { %v1067_v1 = vpop.permute.xlu1 %1066  ;;  %v1065_v3 = vpop.permute.xlu0 %1064 }
 0x1cc   : > { %1148 = vst.msk [vmem:[#allocation2 + $0x69] sm:$0xff] %vm1138_vm9, %v1067_v1  ;;  %1147 = vst.msk [vmem:[#allocation2 + $0x61] sm:$0xff] %vm1138_vm9, %v1065_v3  ;;  %v6608_v3 = vld [vmem:[%s6479_s14 + $0xa8] sm:$0xff] }
 0x1cd   : > { %1304 = vrot.lane.b32.xlu1 %v5684_v9, %s5478_s11  ;;  %1302 = vrot.lane.b32.xlu0 %v5687_v10, %s5478_s11 }
 0x1cf   : > { %v1071_v5 = vpop.permute.xlu1 %1070  ;;  %v1069_v6 = vpop.permute.xlu0 %1068 }
 0x1d0   : > { %1150 = vst.msk [vmem:[#allocation2 + $0x81] sm:$0xff] %vm1138_vm9, %v1071_v5  ;;  %1149 = vst.msk [vmem:[#allocation2 + $0x79] sm:$0xff] %vm1138_vm9, %v1069_v6  ;;  %v6611_v5 = vld [vmem:[%s6479_s14 + $0xa0] sm:$0xff] }
 0x1d1   : > { %1308 = vrot.lane.b32.xlu1 %v5690_v11, %s5478_s11  ;;  %1306 = vrot.lane.b32.xlu0 %v5699_v12, %s5478_s11 }
 0x1d3   : > { %v1075_v7 = vpop.permute.xlu1 %1074  ;;  %v1073_v8 = vpop.permute.xlu0 %1072 }
 0x1d4   : > { %1152 = vst.msk [vmem:[#allocation2 + $0x99] sm:$0xff] %vm1138_vm9, %v1075_v7  ;;  %1151 = vst.msk [vmem:[#allocation2 + $0x91] sm:$0xff] %vm1138_vm9, %v1073_v8  ;;  %v6620_v8 = vld [vmem:[%s6479_s14 + $0xb8] sm:$0xff] }
 0x1d5   : > { %1312 = vrot.lane.b32.xlu1 %v5702_v13, %s5478_s11  ;;  %1310 = vrot.lane.b32.xlu0 %v5705_v14, %s5478_s11 }
 0x1d7   : > { %v1079_v9 = vpop.permute.xlu1 %1078  ;;  %v1077_v10 = vpop.permute.xlu0 %1076 }
 0x1d8   : > { %1154 = vst.msk [vmem:[#allocation2 + $0xb1] sm:$0xff] %vm1138_vm9, %v1079_v9  ;;  %1153 = vst.msk [vmem:[#allocation2 + $0xa9] sm:$0xff] %vm1138_vm9, %v1077_v10  ;;  %v6623_v9 = vld [vmem:[%s6479_s14 + $0xb0] sm:$0xff] }
 0x1d9   : > { %1316 = vrot.lane.b32.xlu1 %v5718_v15, %s5478_s11  ;;  %1314 = vrot.lane.b32.xlu0 %v5721_v16, %s5478_s11 }
 0x1db   : > { %v1083_v11 = vpop.permute.xlu1 %1082  ;;  %v1081_v12 = vpop.permute.xlu0 %1080 }
 0x1dc   : > { %1156 = vst.msk [vmem:[#allocation2 + $0xc9] sm:$0xff] %vm1138_vm9, %v1083_v11  ;;  %1155 = vst.msk [vmem:[#allocation2 + $0xc1] sm:$0xff] %vm1138_vm9, %v1081_v12  ;;  %v6632_v12 = vld [vmem:[%s6479_s14 + $0xc8] sm:$0xff] }
 0x1dd   : > { %1320 = vrot.lane.b32.xlu1 %v5730_v17, %s5478_s11  ;;  %1318 = vrot.lane.b32.xlu0 %v5733_v18, %s5478_s11 }
 0x1df   : > { %v1087_v13 = vpop.permute.xlu1 %1086  ;;  %v1085_v14 = vpop.permute.xlu0 %1084 }
 0x1e0   : > { %1158 = vst.msk [vmem:[#allocation2 + $0xe1] sm:$0xff] %vm1138_vm9, %v1087_v13  ;;  %1157 = vst.msk [vmem:[#allocation2 + $0xd9] sm:$0xff] %vm1138_vm9, %v1085_v14  ;;  %v6635_v13 = vld [vmem:[%s6479_s14 + $0xc0] sm:$0xff] }
 0x1e1   : > { %1324 = vrot.lane.b32.xlu1 %v5736_v19, %s5478_s11  ;;  %1322 = vrot.lane.b32.xlu0 %v5743_v20, %s5478_s11 }
 0x1e3   : > { %v1091_v15 = vpop.permute.xlu1 %1090  ;;  %v1089_v16 = vpop.permute.xlu0 %1088 }
 0x1e4   : > { %1160 = vst.msk [vmem:[#allocation2 + $0xf9] sm:$0xff] %vm1138_vm9, %v1091_v15  ;;  %1159 = vst.msk [vmem:[#allocation2 + $0xf1] sm:$0xff] %vm1138_vm9, %v1089_v16  ;;  %v6644_v16 = vld [vmem:[%s6479_s14 + $0xd8] sm:$0xff] }
 0x1e5   : > { %1328 = vrot.lane.b32.xlu1 %v5746_v21, %s5478_s11  ;;  %1326 = vrot.lane.b32.xlu0 %v5749_v22, %s5478_s11 }
 0x1e7   : > { %v1095_v17 = vpop.permute.xlu1 %1094  ;;  %v1093_v18 = vpop.permute.xlu0 %1092 }
 0x1e8   : > { %1162 = vst.msk [vmem:[#allocation2 + $0x111] sm:$0xff] %vm1138_vm9, %v1095_v17  ;;  %1161 = vst.msk [vmem:[#allocation2 + $0x109] sm:$0xff] %vm1138_vm9, %v1093_v18  ;;  %v6647_v17 = vld [vmem:[%s6479_s14 + $0xd0] sm:$0xff] }
 0x1e9   : > { %1332 = vrot.lane.b32.xlu1 %v5758_v23, %s5478_s11  ;;  %1330 = vrot.lane.b32.xlu0 %v5761_v24, %s5478_s11 }
 0x1eb   : > { %v1099_v19 = vpop.permute.xlu1 %1098  ;;  %v1097_v20 = vpop.permute.xlu0 %1096 }
 0x1ec   : > { %1164 = vst.msk [vmem:[#allocation2 + $0x129] sm:$0xff] %vm1138_vm9, %v1099_v19  ;;  %1163 = vst.msk [vmem:[#allocation2 + $0x121] sm:$0xff] %vm1138_vm9, %v1097_v20  ;;  %v6656_v20 = vld [vmem:[%s6479_s14 + $0xe8] sm:$0xff] }
 0x1ed   : > { %1336 = vrot.lane.b32.xlu1 %v5764_v25, %s5478_s11  ;;  %1334 = vrot.lane.b32.xlu0 %v5777_v26, %s5478_s11 }
 0x1ef   : > { %v1103_v21 = vpop.permute.xlu1 %1102  ;;  %v1101_v22 = vpop.permute.xlu0 %1100 }
 0x1f0   : > { %1166 = vst.msk [vmem:[#allocation2 + $0x141] sm:$0xff] %vm1138_vm9, %v1103_v21  ;;  %1165 = vst.msk [vmem:[#allocation2 + $0x139] sm:$0xff] %vm1138_vm9, %v1101_v22  ;;  %v6659_v21 = vld [vmem:[%s6479_s14 + $0xe0] sm:$0xff] }
 0x1f1   : > { %1340 = vrot.lane.b32.xlu1 %v5780_v27, %s5478_s11  ;;  %1338 = vrot.lane.b32.xlu0 %v5789_v28, %s5478_s11  ;;  %v6488_v27 = vld [vmem:[%s6479_s14 + $0x8] sm:$0xff]  ;;  %v6491_v28 = vld [vmem:[%s6479_s14] sm:$0xff] }
 0x1f3   : > { %v1107_v23 = vpop.permute.xlu1 %1106  ;;  %v1105_v24 = vpop.permute.xlu0 %1104 }
 0x1f4   : > { %1168 = vst.msk [vmem:[#allocation2 + $0x159] sm:$0xff] %vm1138_vm9, %v1107_v23  ;;  %1167 = vst.msk [vmem:[#allocation2 + $0x151] sm:$0xff] %vm1138_vm9, %v1105_v24  ;;  %vm2196_vm9 = vcmask 392544  }
 0x1f5   : > { %1344 = vrot.lane.b32.xlu1 %v5792_v29, %s5478_s11  ;;  %1342 = vrot.lane.b32.xlu0 %v5795_v30, %s5478_s11 }
 0x1f7   : > { %v1172_v25 = vpop.permute.xlu1 %1171  ;;  %v1170_v26 = vpop.permute.xlu0 %1169 }
 0x1f8   : > { %1261 = vst.msk [vmem:[#allocation2 + $0x8] sm:$0xff] %vm1259_vm10, %v1172_v25  ;;  %1260 = vst.msk [vmem:[#allocation2] sm:$0xff] %vm1259_vm10, %v1170_v26 }
 0x1f9   : > { %1348 = vrot.lane.b32.xlu1 %v6008_v63, %s5478_s11  ;;  %1346 = vrot.lane.b32.xlu0 %v6011_v31, %s5478_s11  ;;  %v6500_v63 = vld [vmem:[%s6479_s14 + $0x18] sm:$0xff]  ;;  %v6503_v31 = vld [vmem:[%s6479_s14 + $0x10] sm:$0xff]  ;;  %s5487_s11 = smov 68  }
 0x1fb   : > { %v1176_v29 = vpop.permute.xlu1 %1175  ;;  %v1174_v30 = vpop.permute.xlu0 %1173 }
 0x1fc   : > { %1263 = vst.msk [vmem:[#allocation2 + $0x20] sm:$0xff] %vm1259_vm10, %v1176_v29  ;;  %1262 = vst.msk [vmem:[#allocation2 + $0x18] sm:$0xff] %vm1259_vm10, %v1174_v30 }
 0x1fd   : > { %1476 = vrot.lane.b32.xlu1 %v6488_v27, %s5479_s15  ;;  %1474 = vrot.lane.b32.xlu0 %v6491_v28, %s5479_s15 }
 0x1ff   : > { %v1180_v34 = vpop.permute.xlu1 %1179  ;;  %v1178_v35 = vpop.permute.xlu0 %1177 }
 0x200   : > { %1265 = vst.msk [vmem:[#allocation2 + $0x38] sm:$0xff] %vm1259_vm10, %v1180_v34  ;;  %1264 = vst.msk [vmem:[#allocation2 + $0x30] sm:$0xff] %vm1259_vm10, %v1178_v35 }
 0x201   : > { %1480 = vrot.lane.b32.xlu1 %v6500_v63, %s5479_s15  ;;  %1478 = vrot.lane.b32.xlu0 %v6503_v31, %s5479_s15 }
 0x203   : > { %v1184_v38 = vpop.permute.xlu1 %1183  ;;  %v1182_v39 = vpop.permute.xlu0 %1181 }
 0x204   : > { %1267 = vst.msk [vmem:[#allocation2 + $0x50] sm:$0xff] %vm1259_vm10, %v1184_v38  ;;  %1266 = vst.msk [vmem:[#allocation2 + $0x48] sm:$0xff] %vm1259_vm10, %v1182_v39 }
 0x205   : > { %1484 = vrot.lane.b32.xlu1 %v6512_v36, %s5479_s15  ;;  %1482 = vrot.lane.b32.xlu0 %v6515_v37, %s5479_s15 }
 0x207   : > { %v1188_v4 = vpop.permute.xlu1 %1187  ;;  %v1186_v41 = vpop.permute.xlu0 %1185 }
 0x208   : > { %1269 = vst.msk [vmem:[#allocation2 + $0x68] sm:$0xff] %vm1259_vm10, %v1188_v4  ;;  %1268 = vst.msk [vmem:[#allocation2 + $0x60] sm:$0xff] %vm1259_vm10, %v1186_v41 }
 0x209   : > { %1488 = vrot.lane.b32.xlu1 %v6524_v40, %s5479_s15  ;;  %1486 = vrot.lane.b32.xlu0 %v6527_v2, %s5479_s15 }
 0x20b   : > { %v1192_v44 = vpop.permute.xlu1 %1191  ;;  %v1190_v45 = vpop.permute.xlu0 %1189 }
 0x20c   : > { %1271 = vst.msk [vmem:[#allocation2 + $0x80] sm:$0xff] %vm1259_vm10, %v1192_v44  ;;  %1270 = vst.msk [vmem:[#allocation2 + $0x78] sm:$0xff] %vm1259_vm10, %v1190_v45 }
 0x20d   : > { %1492 = vrot.lane.b32.xlu1 %v6536_v42, %s5479_s15  ;;  %1490 = vrot.lane.b32.xlu0 %v6539_v43, %s5479_s15 }
 0x20f   : > { %v1196_v48 = vpop.permute.xlu1 %1195  ;;  %v1194_v49 = vpop.permute.xlu0 %1193 }
 0x210   : > { %1273 = vst.msk [vmem:[#allocation2 + $0x98] sm:$0xff] %vm1259_vm10, %v1196_v48  ;;  %1272 = vst.msk [vmem:[#allocation2 + $0x90] sm:$0xff] %vm1259_vm10, %v1194_v49 }
 0x211   : > { %1496 = vrot.lane.b32.xlu1 %v6548_v46, %s5479_s15  ;;  %1494 = vrot.lane.b32.xlu0 %v6551_v47, %s5479_s15 }
 0x213   : > { %v1200_v52 = vpop.permute.xlu1 %1199  ;;  %v1198_v53 = vpop.permute.xlu0 %1197 }
 0x214   : > { %1275 = vst.msk [vmem:[#allocation2 + $0xb0] sm:$0xff] %vm1259_vm10, %v1200_v52  ;;  %1274 = vst.msk [vmem:[#allocation2 + $0xa8] sm:$0xff] %vm1259_vm10, %v1198_v53 }
 0x215   : > { %1500 = vrot.lane.b32.xlu1 %v6560_v50, %s5479_s15  ;;  %1498 = vrot.lane.b32.xlu0 %v6563_v51, %s5479_s15 }
 0x217   : > { %v1204_v56 = vpop.permute.xlu1 %1203  ;;  %v1202_v57 = vpop.permute.xlu0 %1201 }
 0x218   : > { %1277 = vst.msk [vmem:[#allocation2 + $0xc8] sm:$0xff] %vm1259_vm10, %v1204_v56  ;;  %1276 = vst.msk [vmem:[#allocation2 + $0xc0] sm:$0xff] %vm1259_vm10, %v1202_v57 }
 0x219   : > { %1504 = vrot.lane.b32.xlu1 %v6572_v54, %s5479_s15  ;;  %1502 = vrot.lane.b32.xlu0 %v6575_v55, %s5479_s15 }
 0x21b   : > { %v1208_v60 = vpop.permute.xlu1 %1207  ;;  %v1206_v61 = vpop.permute.xlu0 %1205 }
 0x21c   : > { %1279 = vst.msk [vmem:[#allocation2 + $0xe0] sm:$0xff] %vm1259_vm10, %v1208_v60  ;;  %1278 = vst.msk [vmem:[#allocation2 + $0xd8] sm:$0xff] %vm1259_vm10, %v1206_v61 }
 0x21d   : > { %1508 = vrot.lane.b32.xlu1 %v6584_v58, %s5479_s15  ;;  %1506 = vrot.lane.b32.xlu0 %v6587_v59, %s5479_s15 }
 0x21f   : > { %v1212_v33 = vpop.permute.xlu1 %1211  ;;  %v1210_v1 = vpop.permute.xlu0 %1209 }
 0x220   : > { %1281 = vst.msk [vmem:[#allocation2 + $0xf8] sm:$0xff] %vm1259_vm10, %v1212_v33  ;;  %1280 = vst.msk [vmem:[#allocation2 + $0xf0] sm:$0xff] %vm1259_vm10, %v1210_v1 }
 0x221   : > { %1512 = vrot.lane.b32.xlu1 %v6596_v62, %s5479_s15  ;;  %1510 = vrot.lane.b32.xlu0 %v6599_v32, %s5479_s15 }
 0x223   : > { %v1216_v6 = vpop.permute.xlu1 %1215  ;;  %v1214_v7 = vpop.permute.xlu0 %1213 }
 0x224   : > { %1283 = vst.msk [vmem:[#allocation2 + $0x110] sm:$0xff] %vm1259_vm10, %v1216_v6  ;;  %1282 = vst.msk [vmem:[#allocation2 + $0x108] sm:$0xff] %vm1259_vm10, %v1214_v7 }
 0x225   : > { %1516 = vrot.lane.b32.xlu1 %v6608_v3, %s5479_s15  ;;  %1514 = vrot.lane.b32.xlu0 %v6611_v5, %s5479_s15 }
 0x227   : > { %v1220_v10 = vpop.permute.xlu1 %1219  ;;  %v1218_v11 = vpop.permute.xlu0 %1217 }
 0x228   : > { %1285 = vst.msk [vmem:[#allocation2 + $0x128] sm:$0xff] %vm1259_vm10, %v1220_v10  ;;  %1284 = vst.msk [vmem:[#allocation2 + $0x120] sm:$0xff] %vm1259_vm10, %v1218_v11 }
 0x229   : > { %1520 = vrot.lane.b32.xlu1 %v6620_v8, %s5479_s15  ;;  %1518 = vrot.lane.b32.xlu0 %v6623_v9, %s5479_s15 }
 0x22b   : > { %v1224_v14 = vpop.permute.xlu1 %1223  ;;  %v1222_v15 = vpop.permute.xlu0 %1221 }
 0x22c   : > { %1287 = vst.msk [vmem:[#allocation2 + $0x140] sm:$0xff] %vm1259_vm10, %v1224_v14  ;;  %1286 = vst.msk [vmem:[#allocation2 + $0x138] sm:$0xff] %vm1259_vm10, %v1222_v15 }
 0x22d   : > { %1524 = vrot.lane.b32.xlu1 %v6632_v12, %s5479_s15  ;;  %1522 = vrot.lane.b32.xlu0 %v6635_v13, %s5479_s15 }
 0x22f   : > { %v1228_v18 = vpop.permute.xlu1 %1227  ;;  %v1226_v19 = vpop.permute.xlu0 %1225 }
 0x230   : > { %1289 = vst.msk [vmem:[#allocation2 + $0x158] sm:$0xff] %vm1259_vm10, %v1228_v18  ;;  %1288 = vst.msk [vmem:[#allocation2 + $0x150] sm:$0xff] %vm1259_vm10, %v1226_v19  ;;  %vm2194_vm10 = vcmask 392545  }
 0x231   : > { %1528 = vrot.lane.b32.xlu1 %v6644_v16, %s5479_s15  ;;  %1526 = vrot.lane.b32.xlu0 %v6647_v17, %s5479_s15 }
 0x233   : > { %v1293_v22 = vpop.permute.xlu1 %1292  ;;  %v1291_v23 = vpop.permute.xlu0 %1290 }
 0x234   : > { %1383 = vst.msk [vmem:[#allocation2 + $0x7] sm:$0xff] %vm1382_vm11, %v1293_v22 }
 0x235   : > { %1381 = vst.msk [vmem:[#allocation2 - $0x1] sm:$0xfe] %vm1380_vm12, %v1291_v23  ;;  %1532 = vrot.lane.b32.xlu1 %v6656_v20, %s5479_s15  ;;  %1530 = vrot.lane.b32.xlu0 %v6659_v21, %s5479_s15 }
 0x237   : > { %v1297_v24 = vpop.permute.xlu1 %1296  ;;  %v1295_v25 = vpop.permute.xlu0 %1294 }
 0x238   : > { %1385 = vst.msk [vmem:[#allocation2 + $0x1f] sm:$0xff] %vm1382_vm11, %v1297_v24 }
 0x239   : > { %1384 = vst.msk [vmem:[#allocation2 + $0x17] sm:$0xfe] %vm1380_vm12, %v1295_v25  ;;  %1597 = vrot.lane.b32.xlu1 %v6488_v27, %s5480_s16  ;;  %1595 = vrot.lane.b32.xlu0 %v6491_v28, %s5480_s16 }
 0x23b   : > { %v1301_v26 = vpop.permute.xlu1 %1300  ;;  %v1299_v29 = vpop.permute.xlu0 %1298 }
 0x23c   : > { %1387 = vst.msk [vmem:[#allocation2 + $0x37] sm:$0xff] %vm1382_vm11, %v1301_v26 }
 0x23d   : > { %1386 = vst.msk [vmem:[#allocation2 + $0x2f] sm:$0xfe] %vm1380_vm12, %v1299_v29  ;;  %1601 = vrot.lane.b32.xlu1 %v6500_v63, %s5480_s16  ;;  %1599 = vrot.lane.b32.xlu0 %v6503_v31, %s5480_s16 }
 0x23f   : > { %v1305_v30 = vpop.permute.xlu1 %1304  ;;  %v1303_v34 = vpop.permute.xlu0 %1302 }
 0x240   : > { %1389 = vst.msk [vmem:[#allocation2 + $0x4f] sm:$0xff] %vm1382_vm11, %v1305_v30 }
 0x241   : > { %1388 = vst.msk [vmem:[#allocation2 + $0x47] sm:$0xfe] %vm1380_vm12, %v1303_v34  ;;  %1605 = vrot.lane.b32.xlu1 %v6512_v36, %s5480_s16  ;;  %1603 = vrot.lane.b32.xlu0 %v6515_v37, %s5480_s16 }
 0x243   : > { %v1309_v35 = vpop.permute.xlu1 %1308  ;;  %v1307_v38 = vpop.permute.xlu0 %1306 }
 0x244   : > { %1391 = vst.msk [vmem:[#allocation2 + $0x67] sm:$0xff] %vm1382_vm11, %v1309_v35 }
 0x245   : > { %1390 = vst.msk [vmem:[#allocation2 + $0x5f] sm:$0xfe] %vm1380_vm12, %v1307_v38  ;;  %1609 = vrot.lane.b32.xlu1 %v6524_v40, %s5480_s16  ;;  %1607 = vrot.lane.b32.xlu0 %v6527_v2, %s5480_s16 }
 0x247   : > { %v1313_v39 = vpop.permute.xlu1 %1312  ;;  %v1311_v4 = vpop.permute.xlu0 %1310 }
 0x248   : > { %1393 = vst.msk [vmem:[#allocation2 + $0x7f] sm:$0xff] %vm1382_vm11, %v1313_v39 }
 0x249   : > { %1392 = vst.msk [vmem:[#allocation2 + $0x77] sm:$0xfe] %vm1380_vm12, %v1311_v4  ;;  %1613 = vrot.lane.b32.xlu1 %v6536_v42, %s5480_s16  ;;  %1611 = vrot.lane.b32.xlu0 %v6539_v43, %s5480_s16 }
 0x24b   : > { %v1317_v41 = vpop.permute.xlu1 %1316  ;;  %v1315_v44 = vpop.permute.xlu0 %1314 }
 0x24c   : > { %1395 = vst.msk [vmem:[#allocation2 + $0x97] sm:$0xff] %vm1382_vm11, %v1317_v41 }
 0x24d   : > { %1394 = vst.msk [vmem:[#allocation2 + $0x8f] sm:$0xfe] %vm1380_vm12, %v1315_v44  ;;  %1617 = vrot.lane.b32.xlu1 %v6548_v46, %s5480_s16  ;;  %1615 = vrot.lane.b32.xlu0 %v6551_v47, %s5480_s16 }
 0x24f   : > { %v1321_v45 = vpop.permute.xlu1 %1320  ;;  %v1319_v48 = vpop.permute.xlu0 %1318 }
 0x250   : > { %1397 = vst.msk [vmem:[#allocation2 + $0xaf] sm:$0xff] %vm1382_vm11, %v1321_v45 }
 0x251   : > { %1396 = vst.msk [vmem:[#allocation2 + $0xa7] sm:$0xfe] %vm1380_vm12, %v1319_v48  ;;  %1621 = vrot.lane.b32.xlu1 %v6560_v50, %s5480_s16  ;;  %1619 = vrot.lane.b32.xlu0 %v6563_v51, %s5480_s16 }
 0x253   : > { %v1325_v49 = vpop.permute.xlu1 %1324  ;;  %v1323_v52 = vpop.permute.xlu0 %1322 }
 0x254   : > { %1399 = vst.msk [vmem:[#allocation2 + $0xc7] sm:$0xff] %vm1382_vm11, %v1325_v49 }
 0x255   : > { %1398 = vst.msk [vmem:[#allocation2 + $0xbf] sm:$0xfe] %vm1380_vm12, %v1323_v52  ;;  %1625 = vrot.lane.b32.xlu1 %v6572_v54, %s5480_s16  ;;  %1623 = vrot.lane.b32.xlu0 %v6575_v55, %s5480_s16 }
 0x257   : > { %v1329_v53 = vpop.permute.xlu1 %1328  ;;  %v1327_v56 = vpop.permute.xlu0 %1326 }
 0x258   : > { %1401 = vst.msk [vmem:[#allocation2 + $0xdf] sm:$0xff] %vm1382_vm11, %v1329_v53 }
 0x259   : > { %1400 = vst.msk [vmem:[#allocation2 + $0xd7] sm:$0xfe] %vm1380_vm12, %v1327_v56  ;;  %1629 = vrot.lane.b32.xlu1 %v6584_v58, %s5480_s16  ;;  %1627 = vrot.lane.b32.xlu0 %v6587_v59, %s5480_s16 }
 0x25b   : > { %v1333_v57 = vpop.permute.xlu1 %1332  ;;  %v1331_v60 = vpop.permute.xlu0 %1330 }
 0x25c   : > { %1403 = vst.msk [vmem:[#allocation2 + $0xf7] sm:$0xff] %vm1382_vm11, %v1333_v57 }
 0x25d   : > { %1402 = vst.msk [vmem:[#allocation2 + $0xef] sm:$0xfe] %vm1380_vm12, %v1331_v60  ;;  %1633 = vrot.lane.b32.xlu1 %v6596_v62, %s5480_s16  ;;  %1631 = vrot.lane.b32.xlu0 %v6599_v32, %s5480_s16 }
 0x25f   : > { %v1337_v61 = vpop.permute.xlu1 %1336  ;;  %v1335_v33 = vpop.permute.xlu0 %1334 }
 0x260   : > { %1405 = vst.msk [vmem:[#allocation2 + $0x10f] sm:$0xff] %vm1382_vm11, %v1337_v61 }
 0x261   : > { %1404 = vst.msk [vmem:[#allocation2 + $0x107] sm:$0xfe] %vm1380_vm12, %v1335_v33  ;;  %1637 = vrot.lane.b32.xlu1 %v6608_v3, %s5480_s16  ;;  %1635 = vrot.lane.b32.xlu0 %v6611_v5, %s5480_s16 }
 0x263   : > { %v1341_v1 = vpop.permute.xlu1 %1340  ;;  %v1339_v6 = vpop.permute.xlu0 %1338 }
 0x264   : > { %1407 = vst.msk [vmem:[#allocation2 + $0x127] sm:$0xff] %vm1382_vm11, %v1341_v1 }
 0x265   : > { %1406 = vst.msk [vmem:[#allocation2 + $0x11f] sm:$0xfe] %vm1380_vm12, %v1339_v6  ;;  %1641 = vrot.lane.b32.xlu1 %v6620_v8, %s5480_s16  ;;  %1639 = vrot.lane.b32.xlu0 %v6623_v9, %s5480_s16 }
 0x267   : > { %v1345_v7 = vpop.permute.xlu1 %1344  ;;  %v1343_v10 = vpop.permute.xlu0 %1342 }
 0x268   : > { %1409 = vst.msk [vmem:[#allocation2 + $0x13f] sm:$0xff] %vm1382_vm11, %v1345_v7 }
 0x269   : > { %1408 = vst.msk [vmem:[#allocation2 + $0x137] sm:$0xfe] %vm1380_vm12, %v1343_v10  ;;  %1645 = vrot.lane.b32.xlu1 %v6632_v12, %s5480_s16  ;;  %1643 = vrot.lane.b32.xlu0 %v6635_v13, %s5480_s16 }
 0x26b   : > { %v1349_v11 = vpop.permute.xlu1 %1348  ;;  %v1347_v14 = vpop.permute.xlu0 %1346 }
 0x26c   : > { %1411 = vst.msk [vmem:[#allocation2 + $0x157] sm:$0xff] %vm1382_vm11, %v1349_v11  ;;  %vm2318_vm11 = vcmask 458144  }
 0x26d   : > { %1410 = vst.msk [vmem:[#allocation2 + $0x14f] sm:$0xfe] %vm1380_vm12, %v1347_v14  ;;  %1649 = vrot.lane.b32.xlu1 %v6644_v16, %s5480_s16  ;;  %1647 = vrot.lane.b32.xlu0 %v6647_v17, %s5480_s16  ;;  %vm2439_vm12 = vcmask 523744  }
 0x26f   : > { %v1477_v15 = vpop.permute.xlu1 %1476  ;;  %v1475_v18 = vpop.permute.xlu0 %1474 }
 0x270   : > { %1566 = vst.msk [vmem:[#allocation2 + $0x21] sm:$0xff] %vm1564_vm13, %v1477_v15  ;;  %1565 = vst.msk [vmem:[#allocation2 + $0x19] sm:$0xff] %vm1564_vm13, %v1475_v18 }
 0x271   : > { %1653 = vrot.lane.b32.xlu1 %v6656_v20, %s5480_s16  ;;  %1651 = vrot.lane.b32.xlu0 %v6659_v21, %s5480_s16 }
 0x273   : > { %v1481_v19 = vpop.permute.xlu1 %1480  ;;  %v1479_v22 = vpop.permute.xlu0 %1478 }
 0x274   : > { %1568 = vst.msk [vmem:[#allocation2 + $0x39] sm:$0xff] %vm1564_vm13, %v1481_v19  ;;  %1567 = vst.msk [vmem:[#allocation2 + $0x31] sm:$0xff] %vm1564_vm13, %v1479_v22 }
 0x275   : > { %1718 = vrot.lane.b32.xlu1 %v6488_v27, %s5481_s17  ;;  %1716 = vrot.lane.b32.xlu0 %v6491_v28, %s5481_s17 }
 0x277   : > { %v1485_v23 = vpop.permute.xlu1 %1484  ;;  %v1483_v24 = vpop.permute.xlu0 %1482 }
 0x278   : > { %1570 = vst.msk [vmem:[#allocation2 + $0x51] sm:$0xff] %vm1564_vm13, %v1485_v23  ;;  %1569 = vst.msk [vmem:[#allocation2 + $0x49] sm:$0xff] %vm1564_vm13, %v1483_v24 }
 0x279   : > { %1722 = vrot.lane.b32.xlu1 %v6500_v63, %s5481_s17  ;;  %1720 = vrot.lane.b32.xlu0 %v6503_v31, %s5481_s17 }
 0x27b   : > { %v1489_v25 = vpop.permute.xlu1 %1488  ;;  %v1487_v26 = vpop.permute.xlu0 %1486 }
 0x27c   : > { %1572 = vst.msk [vmem:[#allocation2 + $0x69] sm:$0xff] %vm1564_vm13, %v1489_v25  ;;  %1571 = vst.msk [vmem:[#allocation2 + $0x61] sm:$0xff] %vm1564_vm13, %v1487_v26 }
 0x27d   : > { %1726 = vrot.lane.b32.xlu1 %v6512_v36, %s5481_s17  ;;  %1724 = vrot.lane.b32.xlu0 %v6515_v37, %s5481_s17 }
 0x27f   : > { %v1493_v29 = vpop.permute.xlu1 %1492  ;;  %v1491_v30 = vpop.permute.xlu0 %1490 }
 0x280   : > { %1574 = vst.msk [vmem:[#allocation2 + $0x81] sm:$0xff] %vm1564_vm13, %v1493_v29  ;;  %1573 = vst.msk [vmem:[#allocation2 + $0x79] sm:$0xff] %vm1564_vm13, %v1491_v30 }
 0x281   : > { %1730 = vrot.lane.b32.xlu1 %v6524_v40, %s5481_s17  ;;  %1728 = vrot.lane.b32.xlu0 %v6527_v2, %s5481_s17 }
 0x283   : > { %v1497_v34 = vpop.permute.xlu1 %1496  ;;  %v1495_v35 = vpop.permute.xlu0 %1494 }
 0x284   : > { %1576 = vst.msk [vmem:[#allocation2 + $0x99] sm:$0xff] %vm1564_vm13, %v1497_v34  ;;  %1575 = vst.msk [vmem:[#allocation2 + $0x91] sm:$0xff] %vm1564_vm13, %v1495_v35 }
 0x285   : > { %1734 = vrot.lane.b32.xlu1 %v6536_v42, %s5481_s17  ;;  %1732 = vrot.lane.b32.xlu0 %v6539_v43, %s5481_s17 }
 0x287   : > { %v1501_v38 = vpop.permute.xlu1 %1500  ;;  %v1499_v39 = vpop.permute.xlu0 %1498 }
 0x288   : > { %1578 = vst.msk [vmem:[#allocation2 + $0xb1] sm:$0xff] %vm1564_vm13, %v1501_v38  ;;  %1577 = vst.msk [vmem:[#allocation2 + $0xa9] sm:$0xff] %vm1564_vm13, %v1499_v39 }
 0x289   : > { %1738 = vrot.lane.b32.xlu1 %v6548_v46, %s5481_s17  ;;  %1736 = vrot.lane.b32.xlu0 %v6551_v47, %s5481_s17 }
 0x28b   : > { %v1505_v4 = vpop.permute.xlu1 %1504  ;;  %v1503_v41 = vpop.permute.xlu0 %1502 }
 0x28c   : > { %1580 = vst.msk [vmem:[#allocation2 + $0xc9] sm:$0xff] %vm1564_vm13, %v1505_v4  ;;  %1579 = vst.msk [vmem:[#allocation2 + $0xc1] sm:$0xff] %vm1564_vm13, %v1503_v41 }
 0x28d   : > { %1742 = vrot.lane.b32.xlu1 %v6560_v50, %s5481_s17  ;;  %1740 = vrot.lane.b32.xlu0 %v6563_v51, %s5481_s17 }
 0x28f   : > { %v1509_v44 = vpop.permute.xlu1 %1508  ;;  %v1507_v45 = vpop.permute.xlu0 %1506 }
 0x290   : > { %1582 = vst.msk [vmem:[#allocation2 + $0xe1] sm:$0xff] %vm1564_vm13, %v1509_v44  ;;  %1581 = vst.msk [vmem:[#allocation2 + $0xd9] sm:$0xff] %vm1564_vm13, %v1507_v45 }
 0x291   : > { %1746 = vrot.lane.b32.xlu1 %v6572_v54, %s5481_s17  ;;  %1744 = vrot.lane.b32.xlu0 %v6575_v55, %s5481_s17 }
 0x293   : > { %v1513_v48 = vpop.permute.xlu1 %1512  ;;  %v1511_v49 = vpop.permute.xlu0 %1510 }
 0x294   : > { %1584 = vst.msk [vmem:[#allocation2 + $0xf9] sm:$0xff] %vm1564_vm13, %v1513_v48  ;;  %1583 = vst.msk [vmem:[#allocation2 + $0xf1] sm:$0xff] %vm1564_vm13, %v1511_v49 }
 0x295   : > { %1750 = vrot.lane.b32.xlu1 %v6584_v58, %s5481_s17  ;;  %1748 = vrot.lane.b32.xlu0 %v6587_v59, %s5481_s17 }
 0x297   : > { %v1517_v52 = vpop.permute.xlu1 %1516  ;;  %v1515_v53 = vpop.permute.xlu0 %1514 }
 0x298   : > { %1586 = vst.msk [vmem:[#allocation2 + $0x111] sm:$0xff] %vm1564_vm13, %v1517_v52  ;;  %1585 = vst.msk [vmem:[#allocation2 + $0x109] sm:$0xff] %vm1564_vm13, %v1515_v53 }
 0x299   : > { %1754 = vrot.lane.b32.xlu1 %v6596_v62, %s5481_s17  ;;  %1752 = vrot.lane.b32.xlu0 %v6599_v32, %s5481_s17 }
 0x29b   : > { %v1521_v56 = vpop.permute.xlu1 %1520  ;;  %v1519_v57 = vpop.permute.xlu0 %1518 }
 0x29c   : > { %1588 = vst.msk [vmem:[#allocation2 + $0x129] sm:$0xff] %vm1564_vm13, %v1521_v56  ;;  %1587 = vst.msk [vmem:[#allocation2 + $0x121] sm:$0xff] %vm1564_vm13, %v1519_v57 }
 0x29d   : > { %1758 = vrot.lane.b32.xlu1 %v6608_v3, %s5481_s17  ;;  %1756 = vrot.lane.b32.xlu0 %v6611_v5, %s5481_s17 }
 0x29f   : > { %v1525_v60 = vpop.permute.xlu1 %1524  ;;  %v1523_v61 = vpop.permute.xlu0 %1522 }
 0x2a0   : > { %1590 = vst.msk [vmem:[#allocation2 + $0x141] sm:$0xff] %vm1564_vm13, %v1525_v60  ;;  %1589 = vst.msk [vmem:[#allocation2 + $0x139] sm:$0xff] %vm1564_vm13, %v1523_v61 }
 0x2a1   : > { %1762 = vrot.lane.b32.xlu1 %v6620_v8, %s5481_s17  ;;  %1760 = vrot.lane.b32.xlu0 %v6623_v9, %s5481_s17 }
 0x2a3   : > { %v1529_v33 = vpop.permute.xlu1 %1528  ;;  %v1527_v1 = vpop.permute.xlu0 %1526 }
 0x2a4   : > { %1592 = vst.msk [vmem:[#allocation2 + $0x159] sm:$0xff] %vm1564_vm13, %v1529_v33  ;;  %1591 = vst.msk [vmem:[#allocation2 + $0x151] sm:$0xff] %vm1564_vm13, %v1527_v1 }
 0x2a5   : > { %1766 = vrot.lane.b32.xlu1 %v6632_v12, %s5481_s17  ;;  %1764 = vrot.lane.b32.xlu0 %v6635_v13, %s5481_s17 }
 0x2a7   : > { %v1533_v6 = vpop.permute.xlu1 %1532  ;;  %v1531_v7 = vpop.permute.xlu0 %1530 }
 0x2a8   : > { %1594 = vst.msk [vmem:[#allocation2 + $0x171] sm:$0xff] %vm1564_vm13, %v1533_v6  ;;  %1593 = vst.msk [vmem:[#allocation2 + $0x169] sm:$0xff] %vm1564_vm13, %v1531_v7  ;;  %v6938_v7 = vld [vmem:[%s6479_s14 + $0xf8] sm:$0xff] }
 0x2a9   : > { %1770 = vrot.lane.b32.xlu1 %v6644_v16, %s5481_s17  ;;  %1768 = vrot.lane.b32.xlu0 %v6647_v17, %s5481_s17 }
 0x2ab   : > { %v1598_v10 = vpop.permute.xlu1 %1597  ;;  %v1596_v11 = vpop.permute.xlu0 %1595 }
 0x2ac   : > { %1687 = vst.msk [vmem:[#allocation2 + $0x20] sm:$0xff] %vm1685_vm14, %v1598_v10  ;;  %1686 = vst.msk [vmem:[#allocation2 + $0x18] sm:$0xff] %vm1685_vm14, %v1596_v11  ;;  %v6941_v10 = vld [vmem:[%s6479_s14 + $0xf0] sm:$0xff] }
 0x2ad   : > { %1774 = vrot.lane.b32.xlu1 %v6656_v20, %s5481_s17  ;;  %1772 = vrot.lane.b32.xlu0 %v6659_v21, %s5481_s17 }
 0x2af   : > { %v1602_v14 = vpop.permute.xlu1 %1601  ;;  %v1600_v15 = vpop.permute.xlu0 %1599 }
 0x2b0   : > { %1689 = vst.msk [vmem:[#allocation2 + $0x38] sm:$0xff] %vm1685_vm14, %v1602_v14  ;;  %1688 = vst.msk [vmem:[#allocation2 + $0x30] sm:$0xff] %vm1685_vm14, %v1600_v15 }
 0x2b1   : > { %1842 = vrot.lane.b32.xlu1 %v6488_v27, %s5482_s18  ;;  %1840 = vrot.lane.b32.xlu0 %v6491_v28, %s5482_s18 }
 0x2b3   : > { %v1606_v18 = vpop.permute.xlu1 %1605  ;;  %v1604_v19 = vpop.permute.xlu0 %1603 }
 0x2b4   : > { %1691 = vst.msk [vmem:[#allocation2 + $0x50] sm:$0xff] %vm1685_vm14, %v1606_v18  ;;  %1690 = vst.msk [vmem:[#allocation2 + $0x48] sm:$0xff] %vm1685_vm14, %v1604_v19 }
 0x2b5   : > { %1846 = vrot.lane.b32.xlu1 %v6500_v63, %s5482_s18  ;;  %1844 = vrot.lane.b32.xlu0 %v6503_v31, %s5482_s18 }
 0x2b7   : > { %v1610_v22 = vpop.permute.xlu1 %1609  ;;  %v1608_v23 = vpop.permute.xlu0 %1607 }
 0x2b8   : > { %1693 = vst.msk [vmem:[#allocation2 + $0x68] sm:$0xff] %vm1685_vm14, %v1610_v22  ;;  %1692 = vst.msk [vmem:[#allocation2 + $0x60] sm:$0xff] %vm1685_vm14, %v1608_v23 }
 0x2b9   : > { %1850 = vrot.lane.b32.xlu1 %v6512_v36, %s5482_s18  ;;  %1848 = vrot.lane.b32.xlu0 %v6515_v37, %s5482_s18 }
 0x2bb   : > { %v1614_v24 = vpop.permute.xlu1 %1613  ;;  %v1612_v25 = vpop.permute.xlu0 %1611 }
 0x2bc   : > { %1695 = vst.msk [vmem:[#allocation2 + $0x80] sm:$0xff] %vm1685_vm14, %v1614_v24  ;;  %1694 = vst.msk [vmem:[#allocation2 + $0x78] sm:$0xff] %vm1685_vm14, %v1612_v25 }
 0x2bd   : > { %1854 = vrot.lane.b32.xlu1 %v6524_v40, %s5482_s18  ;;  %1852 = vrot.lane.b32.xlu0 %v6527_v2, %s5482_s18 }
 0x2bf   : > { %v1618_v26 = vpop.permute.xlu1 %1617  ;;  %v1616_v29 = vpop.permute.xlu0 %1615 }
 0x2c0   : > { %1697 = vst.msk [vmem:[#allocation2 + $0x98] sm:$0xff] %vm1685_vm14, %v1618_v26  ;;  %1696 = vst.msk [vmem:[#allocation2 + $0x90] sm:$0xff] %vm1685_vm14, %v1616_v29 }
 0x2c1   : > { %1858 = vrot.lane.b32.xlu1 %v6536_v42, %s5482_s18  ;;  %1856 = vrot.lane.b32.xlu0 %v6539_v43, %s5482_s18 }
 0x2c3   : > { %v1622_v30 = vpop.permute.xlu1 %1621  ;;  %v1620_v34 = vpop.permute.xlu0 %1619 }
 0x2c4   : > { %1699 = vst.msk [vmem:[#allocation2 + $0xb0] sm:$0xff] %vm1685_vm14, %v1622_v30  ;;  %1698 = vst.msk [vmem:[#allocation2 + $0xa8] sm:$0xff] %vm1685_vm14, %v1620_v34 }
 0x2c5   : > { %1862 = vrot.lane.b32.xlu1 %v6548_v46, %s5482_s18  ;;  %1860 = vrot.lane.b32.xlu0 %v6551_v47, %s5482_s18 }
 0x2c7   : > { %v1626_v35 = vpop.permute.xlu1 %1625  ;;  %v1624_v38 = vpop.permute.xlu0 %1623 }
 0x2c8   : > { %1701 = vst.msk [vmem:[#allocation2 + $0xc8] sm:$0xff] %vm1685_vm14, %v1626_v35  ;;  %1700 = vst.msk [vmem:[#allocation2 + $0xc0] sm:$0xff] %vm1685_vm14, %v1624_v38 }
 0x2c9   : > { %1866 = vrot.lane.b32.xlu1 %v6560_v50, %s5482_s18  ;;  %1864 = vrot.lane.b32.xlu0 %v6563_v51, %s5482_s18 }
 0x2cb   : > { %v1630_v39 = vpop.permute.xlu1 %1629  ;;  %v1628_v4 = vpop.permute.xlu0 %1627 }
 0x2cc   : > { %1703 = vst.msk [vmem:[#allocation2 + $0xe0] sm:$0xff] %vm1685_vm14, %v1630_v39  ;;  %1702 = vst.msk [vmem:[#allocation2 + $0xd8] sm:$0xff] %vm1685_vm14, %v1628_v4 }
 0x2cd   : > { %1870 = vrot.lane.b32.xlu1 %v6572_v54, %s5482_s18  ;;  %1868 = vrot.lane.b32.xlu0 %v6575_v55, %s5482_s18 }
 0x2cf   : > { %v1634_v41 = vpop.permute.xlu1 %1633  ;;  %v1632_v44 = vpop.permute.xlu0 %1631 }
 0x2d0   : > { %1705 = vst.msk [vmem:[#allocation2 + $0xf8] sm:$0xff] %vm1685_vm14, %v1634_v41  ;;  %1704 = vst.msk [vmem:[#allocation2 + $0xf0] sm:$0xff] %vm1685_vm14, %v1632_v44 }
 0x2d1   : > { %1874 = vrot.lane.b32.xlu1 %v6584_v58, %s5482_s18  ;;  %1872 = vrot.lane.b32.xlu0 %v6587_v59, %s5482_s18 }
 0x2d3   : > { %v1638_v45 = vpop.permute.xlu1 %1637  ;;  %v1636_v48 = vpop.permute.xlu0 %1635 }
 0x2d4   : > { %1707 = vst.msk [vmem:[#allocation2 + $0x110] sm:$0xff] %vm1685_vm14, %v1638_v45  ;;  %1706 = vst.msk [vmem:[#allocation2 + $0x108] sm:$0xff] %vm1685_vm14, %v1636_v48 }
 0x2d5   : > { %1878 = vrot.lane.b32.xlu1 %v6596_v62, %s5482_s18  ;;  %1876 = vrot.lane.b32.xlu0 %v6599_v32, %s5482_s18 }
 0x2d7   : > { %v1642_v49 = vpop.permute.xlu1 %1641  ;;  %v1640_v52 = vpop.permute.xlu0 %1639 }
 0x2d8   : > { %1709 = vst.msk [vmem:[#allocation2 + $0x128] sm:$0xff] %vm1685_vm14, %v1642_v49  ;;  %1708 = vst.msk [vmem:[#allocation2 + $0x120] sm:$0xff] %vm1685_vm14, %v1640_v52 }
 0x2d9   : > { %1882 = vrot.lane.b32.xlu1 %v6608_v3, %s5482_s18  ;;  %1880 = vrot.lane.b32.xlu0 %v6611_v5, %s5482_s18 }
 0x2db   : > { %v1646_v53 = vpop.permute.xlu1 %1645  ;;  %v1644_v56 = vpop.permute.xlu0 %1643 }
 0x2dc   : > { %1711 = vst.msk [vmem:[#allocation2 + $0x140] sm:$0xff] %vm1685_vm14, %v1646_v53  ;;  %1710 = vst.msk [vmem:[#allocation2 + $0x138] sm:$0xff] %vm1685_vm14, %v1644_v56 }
 0x2dd   : > { %1886 = vrot.lane.b32.xlu1 %v6620_v8, %s5482_s18  ;;  %1884 = vrot.lane.b32.xlu0 %v6623_v9, %s5482_s18 }
 0x2df   : > { %v1650_v57 = vpop.permute.xlu1 %1649  ;;  %v1648_v60 = vpop.permute.xlu0 %1647 }
 0x2e0   : > { %1713 = vst.msk [vmem:[#allocation2 + $0x158] sm:$0xff] %vm1685_vm14, %v1650_v57  ;;  %1712 = vst.msk [vmem:[#allocation2 + $0x150] sm:$0xff] %vm1685_vm14, %v1648_v60 }
 0x2e1   : > { %1890 = vrot.lane.b32.xlu1 %v6632_v12, %s5482_s18  ;;  %1888 = vrot.lane.b32.xlu0 %v6635_v13, %s5482_s18 }
 0x2e3   : > { %v1654_v61 = vpop.permute.xlu1 %1653  ;;  %v1652_v33 = vpop.permute.xlu0 %1651 }
 0x2e4   : > { %1715 = vst.msk [vmem:[#allocation2 + $0x170] sm:$0xff] %vm1685_vm14, %v1654_v61  ;;  %1714 = vst.msk [vmem:[#allocation2 + $0x168] sm:$0xff] %vm1685_vm14, %v1652_v33 }
 0x2e5   : > { %1894 = vrot.lane.b32.xlu1 %v6644_v16, %s5482_s18  ;;  %1892 = vrot.lane.b32.xlu0 %v6647_v17, %s5482_s18 }
 0x2e7   : > { %v1719_v1 = vpop.permute.xlu1 %1718  ;;  %v1717_v6 = vpop.permute.xlu0 %1716 }
 0x2e8   : > { %1809 = vst.msk [vmem:[#allocation2 + $0x1f] sm:$0xff] %vm1808_vm15, %v1719_v1 }
 0x2e9   : > { %1807 = vst.msk [vmem:[#allocation2 + $0x17] sm:$0xfe] %vm1806_vm4, %v1717_v6  ;;  %1898 = vrot.lane.b32.xlu1 %v6656_v20, %s5482_s18  ;;  %1896 = vrot.lane.b32.xlu0 %v6659_v21, %s5482_s18 }
 0x2eb   : > { %v1723_v11 = vpop.permute.xlu1 %1722  ;;  %v1721_v14 = vpop.permute.xlu0 %1720 }
 0x2ec   : > { %1811 = vst.msk [vmem:[#allocation2 + $0x37] sm:$0xff] %vm1808_vm15, %v1723_v11 }
 0x2ed   : > { %1810 = vst.msk [vmem:[#allocation2 + $0x2f] sm:$0xfe] %vm1806_vm4, %v1721_v14  ;;  %1902 = vrot.lane.b32.xlu1 %v6938_v7, %s5482_s18  ;;  %1900 = vrot.lane.b32.xlu0 %v6941_v10, %s5482_s18 }
 0x2ef   : > { %v1727_v15 = vpop.permute.xlu1 %1726  ;;  %v1725_v18 = vpop.permute.xlu0 %1724 }
 0x2f0   : > { %1813 = vst.msk [vmem:[#allocation2 + $0x4f] sm:$0xff] %vm1808_vm15, %v1727_v15 }
 0x2f1   : > { %1812 = vst.msk [vmem:[#allocation2 + $0x47] sm:$0xfe] %vm1806_vm4, %v1725_v18  ;;  %1971 = vrot.lane.b32.xlu1 %v6488_v27, %s5483_s19  ;;  %1969 = vrot.lane.b32.xlu0 %v6491_v28, %s5483_s19 }
 0x2f3   : > { %v1731_v19 = vpop.permute.xlu1 %1730  ;;  %v1729_v22 = vpop.permute.xlu0 %1728 }
 0x2f4   : > { %1815 = vst.msk [vmem:[#allocation2 + $0x67] sm:$0xff] %vm1808_vm15, %v1731_v19 }
 0x2f5   : > { %1814 = vst.msk [vmem:[#allocation2 + $0x5f] sm:$0xfe] %vm1806_vm4, %v1729_v22  ;;  %1975 = vrot.lane.b32.xlu1 %v6500_v63, %s5483_s19  ;;  %1973 = vrot.lane.b32.xlu0 %v6503_v31, %s5483_s19 }
 0x2f7   : > { %v1735_v23 = vpop.permute.xlu1 %1734  ;;  %v1733_v24 = vpop.permute.xlu0 %1732 }
 0x2f8   : > { %1817 = vst.msk [vmem:[#allocation2 + $0x7f] sm:$0xff] %vm1808_vm15, %v1735_v23 }
 0x2f9   : > { %1816 = vst.msk [vmem:[#allocation2 + $0x77] sm:$0xfe] %vm1806_vm4, %v1733_v24  ;;  %1979 = vrot.lane.b32.xlu1 %v6512_v36, %s5483_s19  ;;  %1977 = vrot.lane.b32.xlu0 %v6515_v37, %s5483_s19 }
 0x2fb   : > { %v1739_v25 = vpop.permute.xlu1 %1738  ;;  %v1737_v26 = vpop.permute.xlu0 %1736 }
 0x2fc   : > { %1819 = vst.msk [vmem:[#allocation2 + $0x97] sm:$0xff] %vm1808_vm15, %v1739_v25 }
 0x2fd   : > { %1818 = vst.msk [vmem:[#allocation2 + $0x8f] sm:$0xfe] %vm1806_vm4, %v1737_v26  ;;  %1983 = vrot.lane.b32.xlu1 %v6524_v40, %s5483_s19  ;;  %1981 = vrot.lane.b32.xlu0 %v6527_v2, %s5483_s19 }
 0x2ff   : > { %v1743_v29 = vpop.permute.xlu1 %1742  ;;  %v1741_v30 = vpop.permute.xlu0 %1740 }
 0x300   : > { %1821 = vst.msk [vmem:[#allocation2 + $0xaf] sm:$0xff] %vm1808_vm15, %v1743_v29  ;;  %v2642_v29 = vld [vmem:[%s8720_s2 + $0x10] sm:$0xff] }
 0x301   : > { %1820 = vst.msk [vmem:[#allocation2 + $0xa7] sm:$0xfe] %vm1806_vm4, %v1741_v30  ;;  %1987 = vrot.lane.b32.xlu1 %v6536_v42, %s5483_s19  ;;  %1985 = vrot.lane.b32.xlu0 %v6539_v43, %s5483_s19 }
 0x303   : > { %v1747_v34 = vpop.permute.xlu1 %1746  ;;  %v1745_v35 = vpop.permute.xlu0 %1744 }
 0x304   : > { %1823 = vst.msk [vmem:[#allocation2 + $0xc7] sm:$0xff] %vm1808_vm15, %v1747_v34 }
 0x305   : > { %1822 = vst.msk [vmem:[#allocation2 + $0xbf] sm:$0xfe] %vm1806_vm4, %v1745_v35  ;;  %1991 = vrot.lane.b32.xlu1 %v6548_v46, %s5483_s19  ;;  %1989 = vrot.lane.b32.xlu0 %v6551_v47, %s5483_s19  ;;  %v2644_v35 = vld [vmem:[%s8720_s2 + $0x20] sm:$0xff] }
 0x307   : > { %v1751_v38 = vpop.permute.xlu1 %1750  ;;  %v1749_v39 = vpop.permute.xlu0 %1748 }
 0x308   : > { %1825 = vst.msk [vmem:[#allocation2 + $0xdf] sm:$0xff] %vm1808_vm15, %v1751_v38 }
 0x309   : > { %1824 = vst.msk [vmem:[#allocation2 + $0xd7] sm:$0xfe] %vm1806_vm4, %v1749_v39  ;;  %1995 = vrot.lane.b32.xlu1 %v6560_v50, %s5483_s19  ;;  %1993 = vrot.lane.b32.xlu0 %v6563_v51, %s5483_s19 }
 0x30b   : > { %v1755_v4 = vpop.permute.xlu1 %1754  ;;  %v1753_v41 = vpop.permute.xlu0 %1752 }
 0x30c   : > { %1827 = vst.msk [vmem:[#allocation2 + $0xf7] sm:$0xff] %vm1808_vm15, %v1755_v4  ;;  %v2646_v4 = vld [vmem:[%s8720_s2 + $0x30] sm:$0xff] }
 0x30d   : > { %1826 = vst.msk [vmem:[#allocation2 + $0xef] sm:$0xfe] %vm1806_vm4, %v1753_v41  ;;  %1999 = vrot.lane.b32.xlu1 %v6572_v54, %s5483_s19  ;;  %1997 = vrot.lane.b32.xlu0 %v6575_v55, %s5483_s19 }
 0x30f   : > { %v1759_v44 = vpop.permute.xlu1 %1758  ;;  %v1757_v45 = vpop.permute.xlu0 %1756 }
 0x310   : > { %1829 = vst.msk [vmem:[#allocation2 + $0x10f] sm:$0xff] %vm1808_vm15, %v1759_v44 }
 0x311   : > { %1828 = vst.msk [vmem:[#allocation2 + $0x107] sm:$0xfe] %vm1806_vm4, %v1757_v45  ;;  %2003 = vrot.lane.b32.xlu1 %v6584_v58, %s5483_s19  ;;  %2001 = vrot.lane.b32.xlu0 %v6587_v59, %s5483_s19  ;;  %v5430_v45 = vld [vmem:[%s6479_s14 + $0x18] sm:$0xff] }
 0x313   : > { %v1763_v48 = vpop.permute.xlu1 %1762  ;;  %v1761_v49 = vpop.permute.xlu0 %1760 }
 0x314   : > { %1831 = vst.msk [vmem:[#allocation2 + $0x127] sm:$0xff] %vm1808_vm15, %v1763_v48  ;;  %v5431_v48 = vld [vmem:[%s6479_s14 + $0x10] sm:$0xff] }
 0x315   : > { %1830 = vst.msk [vmem:[#allocation2 + $0x11f] sm:$0xfe] %vm1806_vm4, %v1761_v49  ;;  %2007 = vrot.lane.b32.xlu1 %v6596_v62, %s5483_s19  ;;  %2005 = vrot.lane.b32.xlu0 %v6599_v32, %s5483_s19 }
 0x317   : > { %v1767_v52 = vpop.permute.xlu1 %1766  ;;  %v1765_v53 = vpop.permute.xlu0 %1764 }
 0x318   : > { %1833 = vst.msk [vmem:[#allocation2 + $0x13f] sm:$0xff] %vm1808_vm15, %v1767_v52 }
 0x319   : > { %1832 = vst.msk [vmem:[#allocation2 + $0x137] sm:$0xfe] %vm1806_vm4, %v1765_v53  ;;  %2011 = vrot.lane.b32.xlu1 %v6608_v3, %s5483_s19  ;;  %2009 = vrot.lane.b32.xlu0 %v6611_v5, %s5483_s19 }
 0x31b   : > { %v1771_v56 = vpop.permute.xlu1 %1770  ;;  %v1769_v57 = vpop.permute.xlu0 %1768 }
 0x31c   : > { %1835 = vst.msk [vmem:[#allocation2 + $0x157] sm:$0xff] %vm1808_vm15, %v1771_v56 }
 0x31d   : > { %1834 = vst.msk [vmem:[#allocation2 + $0x14f] sm:$0xfe] %vm1806_vm4, %v1769_v57  ;;  %2015 = vrot.lane.b32.xlu1 %v6620_v8, %s5483_s19  ;;  %2013 = vrot.lane.b32.xlu0 %v6623_v9, %s5483_s19 }
 0x31f   : > { %v1775_v60 = vpop.permute.xlu1 %1774  ;;  %v1773_v61 = vpop.permute.xlu0 %1772 }
 0x320   : > { %1837 = vst.msk [vmem:[#allocation2 + $0x16f] sm:$0xff] %vm1808_vm15, %v1775_v60  ;;  %v5432_v60 = vld [vmem:[%s6479_s14 + $0x28] sm:$0xff] }
 0x321   : > { %1836 = vst.msk [vmem:[#allocation2 + $0x167] sm:$0xfe] %vm1806_vm4, %v1773_v61  ;;  %2019 = vrot.lane.b32.xlu1 %v6632_v12, %s5483_s19  ;;  %2017 = vrot.lane.b32.xlu0 %v6635_v13, %s5483_s19  ;;  %v5433_v61 = vld [vmem:[%s6479_s14 + $0x20] sm:$0xff] }
 0x323   : > { %v1843_v33 = vpop.permute.xlu1 %1842  ;;  %v1841_v1 = vpop.permute.xlu0 %1840 }
 0x324   : > { %1938 = vst.msk [vmem:[#allocation2 + $0x9] sm:$0xff] %vm8726_vm7, %v1843_v33  ;;  %1937 = vst.msk [vmem:[#allocation2 + $0x1] sm:$0xff] %vm8726_vm7, %v1841_v1 }
 0x325   : > { %2023 = vrot.lane.b32.xlu1 %v6644_v16, %s5483_s19  ;;  %2021 = vrot.lane.b32.xlu0 %v6647_v17, %s5483_s19 }
 0x327   : > { %v1847_v6 = vpop.permute.xlu1 %1846  ;;  %v1845_v11 = vpop.permute.xlu0 %1844 }
 0x328   : > { %1940 = vst.msk [vmem:[#allocation2 + $0x21] sm:$0xff] %vm8726_vm7, %v1847_v6  ;;  %1939 = vst.msk [vmem:[#allocation2 + $0x19] sm:$0xff] %vm8726_vm7, %v1845_v11 }
 0x329   : > { %2027 = vrot.lane.b32.xlu1 %v6656_v20, %s5483_s19  ;;  %2025 = vrot.lane.b32.xlu0 %v6659_v21, %s5483_s19 }
 0x32b   : > { %v1851_v14 = vpop.permute.xlu1 %1850  ;;  %v1849_v15 = vpop.permute.xlu0 %1848 }
 0x32c   : > { %1942 = vst.msk [vmem:[#allocation2 + $0x39] sm:$0xff] %vm8726_vm7, %v1851_v14  ;;  %1941 = vst.msk [vmem:[#allocation2 + $0x31] sm:$0xff] %vm8726_vm7, %v1849_v15 }
 0x32d   : > { %2031 = vrot.lane.b32.xlu1 %v6938_v7, %s5483_s19  ;;  %2029 = vrot.lane.b32.xlu0 %v6941_v10, %s5483_s19 }
 0x32f   : > { %v1855_v18 = vpop.permute.xlu1 %1854  ;;  %v1853_v19 = vpop.permute.xlu0 %1852 }
 0x330   : > { %1944 = vst.msk [vmem:[#allocation2 + $0x51] sm:$0xff] %vm8726_vm7, %v1855_v18  ;;  %1943 = vst.msk [vmem:[#allocation2 + $0x49] sm:$0xff] %vm8726_vm7, %v1853_v19  ;;  %v5434_v18 = vld [vmem:[%s6479_s14 + $0x38] sm:$0xff]  ;;  %v5435_v19 = vld [vmem:[%s6479_s14 + $0x30] sm:$0xff] }
 0x331   : > { %2100 = vrot.lane.b32.xlu1 %v6488_v27, %s5484_s20  ;;  %2098 = vrot.lane.b32.xlu0 %v6491_v28, %s5484_s20 }
 0x333   : > { %v1859_v22 = vpop.permute.xlu1 %1858  ;;  %v1857_v23 = vpop.permute.xlu0 %1856 }
 0x334   : > { %1946 = vst.msk [vmem:[#allocation2 + $0x69] sm:$0xff] %vm8726_vm7, %v1859_v22  ;;  %1945 = vst.msk [vmem:[#allocation2 + $0x61] sm:$0xff] %vm8726_vm7, %v1857_v23 }
 0x335   : > { %2104 = vrot.lane.b32.xlu1 %v6500_v63, %s5484_s20  ;;  %2102 = vrot.lane.b32.xlu0 %v6503_v31, %s5484_s20 }
 0x337   : > { %v1863_v24 = vpop.permute.xlu1 %1862  ;;  %v1861_v25 = vpop.permute.xlu0 %1860 }
 0x338   : > { %1948 = vst.msk [vmem:[#allocation2 + $0x81] sm:$0xff] %vm8726_vm7, %v1863_v24  ;;  %1947 = vst.msk [vmem:[#allocation2 + $0x79] sm:$0xff] %vm8726_vm7, %v1861_v25 }
 0x339   : > { %2108 = vrot.lane.b32.xlu1 %v6512_v36, %s5484_s20  ;;  %2106 = vrot.lane.b32.xlu0 %v6515_v37, %s5484_s20 }
 0x33b   : > { %v1867_v27 = vpop.permute.xlu1 %1866  ;;  %v1865_v28 = vpop.permute.xlu0 %1864 }
 0x33c   : > { %1950 = vst.msk [vmem:[#allocation2 + $0x99] sm:$0xff] %vm8726_vm7, %v1867_v27  ;;  %1949 = vst.msk [vmem:[#allocation2 + $0x91] sm:$0xff] %vm8726_vm7, %v1865_v28 }
 0x33d   : > { %2112 = vrot.lane.b32.xlu1 %v6524_v40, %s5484_s20  ;;  %2110 = vrot.lane.b32.xlu0 %v6527_v2, %s5484_s20 }
 0x33f   : > { %v1871_v63 = vpop.permute.xlu1 %1870  ;;  %v1869_v31 = vpop.permute.xlu0 %1868 }
 0x340   : > { %1952 = vst.msk [vmem:[#allocation2 + $0xb1] sm:$0xff] %vm8726_vm7, %v1871_v63  ;;  %1951 = vst.msk [vmem:[#allocation2 + $0xa9] sm:$0xff] %vm8726_vm7, %v1869_v31  ;;  %v5436_v63 = vld [vmem:[%s6479_s14 + $0x48] sm:$0xff]  ;;  %v5437_v31 = vld [vmem:[%s6479_s14 + $0x40] sm:$0xff] }
 0x341   : > { %2116 = vrot.lane.b32.xlu1 %v6536_v42, %s5484_s20  ;;  %2114 = vrot.lane.b32.xlu0 %v6539_v43, %s5484_s20 }
 0x343   : > { %v1875_v36 = vpop.permute.xlu1 %1874  ;;  %v1873_v37 = vpop.permute.xlu0 %1872 }
 0x344   : > { %1954 = vst.msk [vmem:[#allocation2 + $0xc9] sm:$0xff] %vm8726_vm7, %v1875_v36  ;;  %1953 = vst.msk [vmem:[#allocation2 + $0xc1] sm:$0xff] %vm8726_vm7, %v1873_v37 }
 0x345   : > { %2120 = vrot.lane.b32.xlu1 %v6548_v46, %s5484_s20  ;;  %2118 = vrot.lane.b32.xlu0 %v6551_v47, %s5484_s20 }
 0x347   : > { %v1879_v40 = vpop.permute.xlu1 %1878  ;;  %v1877_v2 = vpop.permute.xlu0 %1876 }
 0x348   : > { %1956 = vst.msk [vmem:[#allocation2 + $0xe1] sm:$0xff] %vm8726_vm7, %v1879_v40  ;;  %1955 = vst.msk [vmem:[#allocation2 + $0xd9] sm:$0xff] %vm8726_vm7, %v1877_v2 }
 0x349   : > { %2124 = vrot.lane.b32.xlu1 %v6560_v50, %s5484_s20  ;;  %2122 = vrot.lane.b32.xlu0 %v6563_v51, %s5484_s20 }
 0x34b   : > { %v1883_v42 = vpop.permute.xlu1 %1882  ;;  %v1881_v43 = vpop.permute.xlu0 %1880 }
 0x34c   : > { %1958 = vst.msk [vmem:[#allocation2 + $0xf9] sm:$0xff] %vm8726_vm7, %v1883_v42  ;;  %1957 = vst.msk [vmem:[#allocation2 + $0xf1] sm:$0xff] %vm8726_vm7, %v1881_v43 }
 0x34d   : > { %2128 = vrot.lane.b32.xlu1 %v6572_v54, %s5484_s20  ;;  %2126 = vrot.lane.b32.xlu0 %v6575_v55, %s5484_s20 }
 0x34f   : > { %v1887_v46 = vpop.permute.xlu1 %1886  ;;  %v1885_v47 = vpop.permute.xlu0 %1884 }
 0x350   : > { %1960 = vst.msk [vmem:[#allocation2 + $0x111] sm:$0xff] %vm8726_vm7, %v1887_v46  ;;  %1959 = vst.msk [vmem:[#allocation2 + $0x109] sm:$0xff] %vm8726_vm7, %v1885_v47  ;;  %v5438_v46 = vld [vmem:[%s6479_s14 + $0x58] sm:$0xff]  ;;  %v5439_v47 = vld [vmem:[%s6479_s14 + $0x50] sm:$0xff] }
 0x351   : > { %2132 = vrot.lane.b32.xlu1 %v6584_v58, %s5484_s20  ;;  %2130 = vrot.lane.b32.xlu0 %v6587_v59, %s5484_s20 }
 0x353   : > { %v1891_v50 = vpop.permute.xlu1 %1890  ;;  %v1889_v51 = vpop.permute.xlu0 %1888 }
 0x354   : > { %1962 = vst.msk [vmem:[#allocation2 + $0x129] sm:$0xff] %vm8726_vm7, %v1891_v50  ;;  %1961 = vst.msk [vmem:[#allocation2 + $0x121] sm:$0xff] %vm8726_vm7, %v1889_v51 }
 0x355   : > { %2136 = vrot.lane.b32.xlu1 %v6596_v62, %s5484_s20  ;;  %2134 = vrot.lane.b32.xlu0 %v6599_v32, %s5484_s20  ;;  %v2640_v62 = vld [vmem:[%s8720_s2] sm:$0xff]  ;;  %v2641_v32 = vld [vmem:[%s8720_s2 + $0x8] sm:$0xff] }
 0x357   : > { %v1895_v54 = vpop.permute.xlu1 %1894  ;;  %v1893_v55 = vpop.permute.xlu0 %1892 }
 0x358   : > { %1964 = vst.msk [vmem:[#allocation2 + $0x141] sm:$0xff] %vm8726_vm7, %v1895_v54  ;;  %1963 = vst.msk [vmem:[#allocation2 + $0x139] sm:$0xff] %vm8726_vm7, %v1893_v55 }
 0x359   : > { %2140 = vrot.lane.b32.xlu1 %v6608_v3, %s5484_s20  ;;  %2138 = vrot.lane.b32.xlu0 %v6611_v5, %s5484_s20  ;;  %v5380_v3 = vpack.c.bf16 %v2641_v32, %v2640_v62  ;;  %v5440_v62 = vld [vmem:[%s6479_s14 + $0x68] sm:$0xff]  ;;  %v5441_v32 = vld [vmem:[%s6479_s14 + $0x60] sm:$0xff] }
 0x35b   : > { %v1899_v58 = vpop.permute.xlu1 %1898  ;;  %v1897_v59 = vpop.permute.xlu0 %1896  ;;  %5381 = vmatprep.subr.bf16.mxu0 %v5380_v3 }
 0x35c   : > { %1966 = vst.msk [vmem:[#allocation2 + $0x159] sm:$0xff] %vm8726_vm7, %v1899_v58  ;;  %1965 = vst.msk [vmem:[#allocation2 + $0x151] sm:$0xff] %vm8726_vm7, %v1897_v59  ;;  %5383 = vmatpush3.bf16.msra.mxu0 %v5380_v3 }
 0x35d   : > { %2144 = vrot.lane.b32.xlu1 %v6620_v8, %s5484_s20  ;;  %2142 = vrot.lane.b32.xlu0 %v6623_v9, %s5484_s20  ;;  %v2643_v8 = vld [vmem:[%s8720_s2 + $0x18] sm:$0xff] }
 0x35e   : > { %v5384_v9 = vpack.c.bf16 %v2643_v8, %v2642_v29 }
 0x35f   : > { %v1903_v5 = vpop.permute.xlu1 %1902  ;;  %v1901_v26 = vpop.permute.xlu0 %1900 }
 0x360   : > { %1968 = vst.msk [vmem:[#allocation2 + $0x171] sm:$0xff] %vm8726_vm7, %v1903_v5  ;;  %1967 = vst.msk [vmem:[#allocation2 + $0x169] sm:$0xff] %vm8726_vm7, %v1901_v26  ;;  %5385 = vmatprep.subr.bf16.mxu0 %v5384_v9  ;;  %vm3188_vm7 = vcmask 293888  }
 0x361   : > { %2148 = vrot.lane.b32.xlu1 %v6632_v12, %s5484_s20  ;;  %2146 = vrot.lane.b32.xlu0 %v6635_v13, %s5484_s20  ;;  %v2645_v12 = vld [vmem:[%s8720_s2 + $0x28] sm:$0xff]  ;;  %3192 = vst.msk [vmem:[#allocation3 + $0x18] sm:$0xff] %vm3188_vm7, %v5470_v0  ;;  %3193 = vst.msk [vmem:[#allocation3 + $0x20] sm:$0xff] %vm3188_vm7, %v5470_v0 }
 0x362   : > { %5387 = vmatpush3.bf16.msra.mxu0 %v5384_v9  ;;  %v5388_v13 = vpack.c.bf16 %v2645_v12, %v2644_v35  ;;  %3194 = vst.msk [vmem:[#allocation3 + $0x28] sm:$0xff] %vm3188_vm7, %v5470_v0  ;;  %3189 = vst.msk [vmem:[#allocation3] sm:$0xff] %vm3188_vm7, %v5470_v0 }
 0x363   : > { %v1972_v30 = vpop.permute.xlu1 %1971  ;;  %v1970_v34 = vpop.permute.xlu0 %1969  ;;  %3190 = vst.msk [vmem:[#allocation3 + $0x8] sm:$0xff] %vm3188_vm7, %v5470_v0  ;;  %3191 = vst.msk [vmem:[#allocation3 + $0x10] sm:$0xff] %vm3188_vm7, %v5470_v0 }
 0x364   : > { %2067 = vst.msk [vmem:[#allocation2 + $0x8] sm:$0xff] %vm2065_vm8, %v1972_v30  ;;  %2066 = vst.msk [vmem:[#allocation2] sm:$0xff] %vm2065_vm8, %v1970_v34  ;;  %5389 = vmatprep.subr.bf16.mxu0 %v5388_v13  ;;  %v5442_v30 = vld [vmem:[%s6479_s14 + $0x78] sm:$0xff]  ;;  %v5443_v34 = vld [vmem:[%s6479_s14 + $0x70] sm:$0xff] }
 0x365   : > { %2152 = vrot.lane.b32.xlu1 %v6644_v16, %s5484_s20  ;;  %2150 = vrot.lane.b32.xlu0 %v6647_v17, %s5484_s20  ;;  %v2647_v16 = vld [vmem:[%s8720_s2 + $0x38] sm:$0xff]  ;;  %3195 = vst.msk [vmem:[#allocation3 + $0x30] sm:$0xff] %vm3188_vm7, %v5470_v0  ;;  %3196 = vst.msk [vmem:[#allocation3 + $0x38] sm:$0xff] %vm3188_vm7, %v5470_v0 }
 0x366   : > { %5391 = vmatpush3.bf16.msra.mxu0 %v5388_v13  ;;  %v5392_v17 = vpack.c.bf16 %v2647_v16, %v2646_v4  ;;  %v5444_v16 = vld [vmem:[%s6479_s14 + $0x88] sm:$0xff]  ;;  %3197 = vst.msk [vmem:[#allocation3 + $0x40] sm:$0xff] %vm3188_vm7, %v5470_v0  ;;  %3198 = vst.msk [vmem:[#allocation3 + $0x48] sm:$0xff] %vm3188_vm7, %v5470_v0 }
 0x367   : > { %v1976_v38 = vpop.permute.xlu1 %1975  ;;  %v1974_v39 = vpop.permute.xlu0 %1973  ;;  %3199 = vst.msk [vmem:[#allocation3 + $0x50] sm:$0xff] %vm3188_vm7, %v5470_v0  ;;  %3200 = vst.msk [vmem:[#allocation3 + $0x58] sm:$0xff] %vm3188_vm7, %v5470_v0 }
 0x368   : > { %2069 = vst.msk [vmem:[#allocation2 + $0x20] sm:$0xff] %vm2065_vm8, %v1976_v38  ;;  %2068 = vst.msk [vmem:[#allocation2 + $0x18] sm:$0xff] %vm2065_vm8, %v1974_v39  ;;  %5393 = vmatprep.subr.bf16.mxu0 %v5392_v17 }
 0x369   : > { %2156 = vrot.lane.b32.xlu1 %v6656_v20, %s5484_s20  ;;  %2154 = vrot.lane.b32.xlu0 %v6659_v21, %s5484_s20  ;;  %v2648_v20 = vld [vmem:[%s8720_s2 + $0x40] sm:$0xff]  ;;  %3201 = vst.msk [vmem:[#allocation3 + $0x60] sm:$0xff] %vm3188_vm7, %v5470_v0  ;;  %3202 = vst.msk [vmem:[#allocation3 + $0x68] sm:$0xff] %vm3188_vm7, %v5470_v0 }
 0x36a   : > { %5395 = vmatpush3.bf16.msra.mxu0 %v5392_v17  ;;  %v5445_v17 = vld [vmem:[%s6479_s14 + $0x80] sm:$0xff]  ;;  %3203 = vst.msk [vmem:[#allocation3 + $0x70] sm:$0xff] %vm3188_vm7, %v5470_v0  ;;  %3204 = vst.msk [vmem:[#allocation3 + $0x78] sm:$0xff] %vm3188_vm7, %v5470_v0 }
 0x36b   : > { %v1980_v41 = vpop.permute.xlu1 %1979  ;;  %v1978_v44 = vpop.permute.xlu0 %1977  ;;  %5224 = vmatprep.subr.mxu0 %v2648_v20  ;;  %3205 = vst.msk [vmem:[#allocation3 + $0x80] sm:$0xff] %vm3188_vm7, %v5470_v0  ;;  %3206 = vst.msk [vmem:[#allocation3 + $0x88] sm:$0xff] %vm3188_vm7, %v5470_v0 }
 0x36c   : > { %2071 = vst.msk [vmem:[#allocation2 + $0x38] sm:$0xff] %vm2065_vm8, %v1980_v41  ;;  %2070 = vst.msk [vmem:[#allocation2 + $0x30] sm:$0xff] %vm2065_vm8, %v1978_v44 }
 0x36d   : > { %2230 = vrot.lane.b32.xlu1 %v5430_v45, %s5485_s27  ;;  %2228 = vrot.lane.b32.xlu0 %v5431_v48, %s5485_s27  ;;  %3207 = vst.msk [vmem:[#allocation3 + $0x90] sm:$0xff] %vm3188_vm7, %v5470_v0  ;;  %3208 = vst.msk [vmem:[#allocation3 + $0x98] sm:$0xff] %vm3188_vm7, %v5470_v0 }
 0x36e   : > { %5225 = vmatpush3.msra.mxu0 %v2648_v20  ;;  %3209 = vst.msk [vmem:[#allocation3 + $0xa0] sm:$0xff] %vm3188_vm7, %v5470_v0  ;;  %3210 = vst.msk [vmem:[#allocation3 + $0xa8] sm:$0xff] %vm3188_vm7, %v5470_v0 }
 0x36f   : > { %v1984_v21 = vpop.permute.xlu1 %1983  ;;  %v1982_v49 = vpop.permute.xlu0 %1981  ;;  %3211 = vst.msk [vmem:[#allocation3 + $0xb0] sm:$0xff] %vm3188_vm7, %v5470_v0  ;;  %3212 = vst.msk [vmem:[#allocation3 + $0xb8] sm:$0xff] %vm3188_vm7, %v5470_v0 }
 0x370   : > { %2073 = vst.msk [vmem:[#allocation2 + $0x50] sm:$0xff] %vm2065_vm8, %v1984_v21  ;;  %2072 = vst.msk [vmem:[#allocation2 + $0x48] sm:$0xff] %vm2065_vm8, %v1982_v49  ;;  %v5446_v49 = vld [vmem:[%s6479_s14 + $0x98] sm:$0xff] }
 0x371   : > { %2351 = vrot.lane.b32.xlu1 %v5430_v45, %s5486_s10  ;;  %2349 = vrot.lane.b32.xlu0 %v5431_v48, %s5486_s10  ;;  %3213 = vst.msk [vmem:[#allocation3 + $0xc0] sm:$0xff] %vm3188_vm7, %v5470_v0  ;;  %3214 = vst.msk [vmem:[#allocation3 + $0xc8] sm:$0xff] %vm3188_vm7, %v5470_v0 }
 0x372   : > { %3215 = vst.msk [vmem:[#allocation3 + $0xd0] sm:$0xff] %vm3188_vm7, %v5470_v0  ;;  %3216 = vst.msk [vmem:[#allocation3 + $0xd8] sm:$0xff] %vm3188_vm7, %v5470_v0 }
 0x373   : > { %v1988_v52 = vpop.permute.xlu1 %1987  ;;  %v1986_v53 = vpop.permute.xlu0 %1985  ;;  %3217 = vst.msk [vmem:[#allocation3 + $0xe0] sm:$0xff] %vm3188_vm7, %v5470_v0  ;;  %3218 = vst.msk [vmem:[#allocation3 + $0xe8] sm:$0xff] %vm3188_vm7, %v5470_v0 }
 0x374   : > { %2075 = vst.msk [vmem:[#allocation2 + $0x68] sm:$0xff] %vm2065_vm8, %v1988_v52  ;;  %2074 = vst.msk [vmem:[#allocation2 + $0x60] sm:$0xff] %vm2065_vm8, %v1986_v53  ;;  %v5447_v52 = vld [vmem:[%s6479_s14 + $0x90] sm:$0xff] }
 0x375   : > { %2472 = vrot.lane.b32.xlu1 %v5430_v45, %s5487_s11  ;;  %2470 = vrot.lane.b32.xlu0 %v5431_v48, %s5487_s11  ;;  %3219 = vst.msk [vmem:[#allocation3 + $0xf0] sm:$0xff] %vm3188_vm7, %v5470_v0  ;;  %3220 = vst.msk [vmem:[#allocation3 + $0xf8] sm:$0xff] %vm3188_vm7, %v5470_v0 }
 0x376   : > { %3221 = vst.msk [vmem:[#allocation3 + $0x100] sm:$0xff] %vm3188_vm7, %v5470_v0  ;;  %3222 = vst.msk [vmem:[#allocation3 + $0x108] sm:$0xff] %vm3188_vm7, %v5470_v0 }
 0x377   : > { %v1992_v56 = vpop.permute.xlu1 %1991  ;;  %v1990_v57 = vpop.permute.xlu0 %1989  ;;  %3223 = vst.msk [vmem:[#allocation3 + $0x110] sm:$0xff] %vm3188_vm7, %v5470_v0  ;;  %3224 = vst.msk [vmem:[#allocation3 + $0x118] sm:$0xff] %vm3188_vm7, %v5470_v0 }
 0x378   : > { %2077 = vst.msk [vmem:[#allocation2 + $0x80] sm:$0xff] %vm2065_vm8, %v1992_v56  ;;  %2076 = vst.msk [vmem:[#allocation2 + $0x78] sm:$0xff] %vm2065_vm8, %v1990_v57 }
 0x379   : > { %2234 = vrot.lane.b32.xlu1 %v5432_v60, %s5485_s27  ;;  %2232 = vrot.lane.b32.xlu0 %v5433_v61, %s5485_s27  ;;  %3225 = vst.msk [vmem:[#allocation3 + $0x120] sm:$0xff] %vm3188_vm7, %v5470_v0  ;;  %3226 = vst.msk [vmem:[#allocation3 + $0x128] sm:$0xff] %vm3188_vm7, %v5470_v0 }
 0x37a   : > { %3227 = vst.msk [vmem:[#allocation3 + $0x130] sm:$0xff] %vm3188_vm7, %v5470_v0  ;;  %3228 = vst.msk [vmem:[#allocation3 + $0x138] sm:$0xff] %vm3188_vm7, %v5470_v0 }
 0x37b   : > { %v1996_v33 = vpop.permute.xlu1 %1995  ;;  %v1994_v1 = vpop.permute.xlu0 %1993  ;;  %3229 = vst.msk [vmem:[#allocation3 + $0x140] sm:$0xff] %vm3188_vm7, %v5470_v0  ;;  %3230 = vst.msk [vmem:[#allocation3 + $0x148] sm:$0xff] %vm3188_vm7, %v5470_v0 }
 0x37c   : > { %2079 = vst.msk [vmem:[#allocation2 + $0x98] sm:$0xff] %vm2065_vm8, %v1996_v33  ;;  %2078 = vst.msk [vmem:[#allocation2 + $0x90] sm:$0xff] %vm2065_vm8, %v1994_v1  ;;  %v5448_v1 = vld [vmem:[%s6479_s14 + $0xa8] sm:$0xff] }
 0x37d   : > { %2355 = vrot.lane.b32.xlu1 %v5432_v60, %s5486_s10  ;;  %2353 = vrot.lane.b32.xlu0 %v5433_v61, %s5486_s10  ;;  %3231 = vst.msk [vmem:[#allocation3 + $0x150] sm:$0xff] %vm3188_vm7, %v5470_v0  ;;  %3232 = vst.msk [vmem:[#allocation3 + $0x158] sm:$0xff] %vm3188_vm7, %v5470_v0 }
 0x37e   : > { %3233 = vst.msk [vmem:[#allocation3 + $0x160] sm:$0xff] %vm3188_vm7, %v5470_v0  ;;  %3234 = vst.msk [vmem:[#allocation3 + $0x168] sm:$0xff] %vm3188_vm7, %v5470_v0 }
 0x37f   : > { %v2000_v6 = vpop.permute.xlu1 %1999  ;;  %v1998_v11 = vpop.permute.xlu0 %1997  ;;  %3235 = vst.msk [vmem:[#allocation3 + $0x170] sm:$0xff] %vm3188_vm7, %v5470_v0  ;;  %3236 = vst.msk [vmem:[#allocation3 + $0x178] sm:$0xff] %vm3188_vm7, %v5470_v0 }
 0x380   : > { %2081 = vst.msk [vmem:[#allocation2 + $0xb0] sm:$0xff] %vm2065_vm8, %v2000_v6  ;;  %2080 = vst.msk [vmem:[#allocation2 + $0xa8] sm:$0xff] %vm2065_vm8, %v1998_v11  ;;  %v5449_v6 = vld [vmem:[%s6479_s14 + $0xa0] sm:$0xff] }
 0x381   : > { %2476 = vrot.lane.b32.xlu1 %v5432_v60, %s5487_s11  ;;  %2474 = vrot.lane.b32.xlu0 %v5433_v61, %s5487_s11 }
 0x383   : > { %v2004_v14 = vpop.permute.xlu1 %2003  ;;  %v2002_v15 = vpop.permute.xlu0 %2001 }
 0x384   : > { %2083 = vst.msk [vmem:[#allocation2 + $0xc8] sm:$0xff] %vm2065_vm8, %v2004_v14  ;;  %2082 = vst.msk [vmem:[#allocation2 + $0xc0] sm:$0xff] %vm2065_vm8, %v2002_v15 }
 0x385   : > { %2238 = vrot.lane.b32.xlu1 %v5434_v18, %s5485_s27  ;;  %2236 = vrot.lane.b32.xlu0 %v5435_v19, %s5485_s27 }
 0x387   : > { %v2008_v22 = vpop.permute.xlu1 %2007  ;;  %v2006_v23 = vpop.permute.xlu0 %2005 }
 0x388   : > { %2085 = vst.msk [vmem:[#allocation2 + $0xe0] sm:$0xff] %vm2065_vm8, %v2008_v22  ;;  %2084 = vst.msk [vmem:[#allocation2 + $0xd8] sm:$0xff] %vm2065_vm8, %v2006_v23  ;;  %v5450_v23 = vld [vmem:[%s6479_s14 + $0xb8] sm:$0xff] }
 0x389   : > { %2359 = vrot.lane.b32.xlu1 %v5434_v18, %s5486_s10  ;;  %2357 = vrot.lane.b32.xlu0 %v5435_v19, %s5486_s10 }
 0x38b   : > { %v2012_v24 = vpop.permute.xlu1 %2011  ;;  %v2010_v25 = vpop.permute.xlu0 %2009 }
 0x38c   : > { %2087 = vst.msk [vmem:[#allocation2 + $0xf8] sm:$0xff] %vm2065_vm8, %v2012_v24  ;;  %2086 = vst.msk [vmem:[#allocation2 + $0xf0] sm:$0xff] %vm2065_vm8, %v2010_v25  ;;  %v5451_v24 = vld [vmem:[%s6479_s14 + $0xb0] sm:$0xff] }
 0x38d   : > { %2480 = vrot.lane.b32.xlu1 %v5434_v18, %s5487_s11  ;;  %2478 = vrot.lane.b32.xlu0 %v5435_v19, %s5487_s11 }
 0x38f   : > { %v2016_v27 = vpop.permute.xlu1 %2015  ;;  %v2014_v28 = vpop.permute.xlu0 %2013 }
 0x390   : > { %2089 = vst.msk [vmem:[#allocation2 + $0x110] sm:$0xff] %vm2065_vm8, %v2016_v27  ;;  %2088 = vst.msk [vmem:[#allocation2 + $0x108] sm:$0xff] %vm2065_vm8, %v2014_v28 }
 0x391   : > { %2242 = vrot.lane.b32.xlu1 %v5436_v63, %s5485_s27  ;;  %2240 = vrot.lane.b32.xlu0 %v5437_v31, %s5485_s27 }
 0x393   : > { %v2020_v36 = vpop.permute.xlu1 %2019  ;;  %v2018_v37 = vpop.permute.xlu0 %2017 }
 0x394   : > { %2091 = vst.msk [vmem:[#allocation2 + $0x128] sm:$0xff] %vm2065_vm8, %v2020_v36  ;;  %2090 = vst.msk [vmem:[#allocation2 + $0x120] sm:$0xff] %vm2065_vm8, %v2018_v37 }
 0x395   : > { %2363 = vrot.lane.b32.xlu1 %v5436_v63, %s5486_s10  ;;  %2361 = vrot.lane.b32.xlu0 %v5437_v31, %s5486_s10 }
 0x397   : > { %v2024_v40 = vpop.permute.xlu1 %2023  ;;  %v2022_v2 = vpop.permute.xlu0 %2021 }
 0x398   : > { %2093 = vst.msk [vmem:[#allocation2 + $0x140] sm:$0xff] %vm2065_vm8, %v2024_v40  ;;  %2092 = vst.msk [vmem:[#allocation2 + $0x138] sm:$0xff] %vm2065_vm8, %v2022_v2  ;;  %v5452_v2 = vld [vmem:[%s6479_s14 + $0xc8] sm:$0xff] }
 0x399   : > { %2484 = vrot.lane.b32.xlu1 %v5436_v63, %s5487_s11  ;;  %2482 = vrot.lane.b32.xlu0 %v5437_v31, %s5487_s11 }
 0x39b   : > { %v2028_v42 = vpop.permute.xlu1 %2027  ;;  %v2026_v43 = vpop.permute.xlu0 %2025 }
 0x39c   : > { %2095 = vst.msk [vmem:[#allocation2 + $0x158] sm:$0xff] %vm2065_vm8, %v2028_v42  ;;  %2094 = vst.msk [vmem:[#allocation2 + $0x150] sm:$0xff] %vm2065_vm8, %v2026_v43  ;;  %v5453_v42 = vld [vmem:[%s6479_s14 + $0xc0] sm:$0xff] }
 0x39d   : > { %2246 = vrot.lane.b32.xlu1 %v5438_v46, %s5485_s27  ;;  %2244 = vrot.lane.b32.xlu0 %v5439_v47, %s5485_s27 }
 0x39f   : > { %v2032_v50 = vpop.permute.xlu1 %2031  ;;  %v2030_v51 = vpop.permute.xlu0 %2029 }
 0x3a0   : > { %2097 = vst.msk [vmem:[#allocation2 + $0x170] sm:$0xff] %vm2065_vm8, %v2032_v50  ;;  %2096 = vst.msk [vmem:[#allocation2 + $0x168] sm:$0xff] %vm2065_vm8, %v2030_v51  ;;  %vm2562_vm8 = vcmask 589344  }
 0x3a1   : > { %2367 = vrot.lane.b32.xlu1 %v5438_v46, %s5486_s10  ;;  %2365 = vrot.lane.b32.xlu0 %v5439_v47, %s5486_s10 }
 0x3a3   : > { %v2101_v54 = vpop.permute.xlu1 %2100  ;;  %v2099_v55 = vpop.permute.xlu0 %2098 }
 0x3a4   : > { %2197 = vst.msk [vmem:[#allocation2 + $0x7] sm:$0xff] %vm2196_vm9, %v2101_v54 }
 0x3a5   : > { %2195 = vst.msk [vmem:[#allocation2 - $0x1] sm:$0xfe] %vm2194_vm10, %v2099_v55  ;;  %2488 = vrot.lane.b32.xlu1 %v5438_v46, %s5487_s11  ;;  %2486 = vrot.lane.b32.xlu0 %v5439_v47, %s5487_s11 }
 0x3a7   : > { %v2105_v58 = vpop.permute.xlu1 %2104  ;;  %v2103_v59 = vpop.permute.xlu0 %2102 }
 0x3a8   : > { %2199 = vst.msk [vmem:[#allocation2 + $0x1f] sm:$0xff] %vm2196_vm9, %v2105_v58 }
 0x3a9   : > { %2198 = vst.msk [vmem:[#allocation2 + $0x17] sm:$0xfe] %vm2194_vm10, %v2103_v59  ;;  %2250 = vrot.lane.b32.xlu1 %v5440_v62, %s5485_s27  ;;  %2248 = vrot.lane.b32.xlu0 %v5441_v32, %s5485_s27 }
 0x3ab   : > { %v2109_v3 = vpop.permute.xlu1 %2108  ;;  %v2107_v5 = vpop.permute.xlu0 %2106 }
 0x3ac   : > { %2201 = vst.msk [vmem:[#allocation2 + $0x37] sm:$0xff] %vm2196_vm9, %v2109_v3 }
 0x3ad   : > { %2200 = vst.msk [vmem:[#allocation2 + $0x2f] sm:$0xfe] %vm2194_vm10, %v2107_v5  ;;  %2371 = vrot.lane.b32.xlu1 %v5440_v62, %s5486_s10  ;;  %2369 = vrot.lane.b32.xlu0 %v5441_v32, %s5486_s10 }
 0x3af   : > { %v2113_v26 = vpop.permute.xlu1 %2112  ;;  %v2111_v29 = vpop.permute.xlu0 %2110 }
 0x3b0   : > { %2203 = vst.msk [vmem:[#allocation2 + $0x4f] sm:$0xff] %vm2196_vm9, %v2113_v26 }
 0x3b1   : > { %2202 = vst.msk [vmem:[#allocation2 + $0x47] sm:$0xfe] %vm2194_vm10, %v2111_v29  ;;  %2492 = vrot.lane.b32.xlu1 %v5440_v62, %s5487_s11  ;;  %2490 = vrot.lane.b32.xlu0 %v5441_v32, %s5487_s11  ;;  %v5454_v62 = vld [vmem:[%s6479_s14 + $0xd8] sm:$0xff]  ;;  %v5455_v32 = vld [vmem:[%s6479_s14 + $0xd0] sm:$0xff] }
 0x3b3   : > { %v2117_v8 = vpop.permute.xlu1 %2116  ;;  %v2115_v9 = vpop.permute.xlu0 %2114 }
 0x3b4   : > { %2205 = vst.msk [vmem:[#allocation2 + $0x67] sm:$0xff] %vm2196_vm9, %v2117_v8 }
 0x3b5   : > { %2204 = vst.msk [vmem:[#allocation2 + $0x5f] sm:$0xfe] %vm2194_vm10, %v2115_v9  ;;  %2254 = vrot.lane.b32.xlu1 %v5442_v30, %s5485_s27  ;;  %2252 = vrot.lane.b32.xlu0 %v5443_v34, %s5485_s27 }
 0x3b7   : > { %v2121_v35 = vpop.permute.xlu1 %2120  ;;  %v2119_v12 = vpop.permute.xlu0 %2118 }
 0x3b8   : > { %2207 = vst.msk [vmem:[#allocation2 + $0x7f] sm:$0xff] %vm2196_vm9, %v2121_v35 }
 0x3b9   : > { %2206 = vst.msk [vmem:[#allocation2 + $0x77] sm:$0xfe] %vm2194_vm10, %v2119_v12  ;;  %2375 = vrot.lane.b32.xlu1 %v5442_v30, %s5486_s10  ;;  %2373 = vrot.lane.b32.xlu0 %v5443_v34, %s5486_s10  ;;  %v5456_v12 = vld [vmem:[%s6479_s14 + $0xe8] sm:$0xff] }
 0x3bb   : > { %v2125_v13 = vpop.permute.xlu1 %2124  ;;  %v2123_v38 = vpop.permute.xlu0 %2122 }
 0x3bc   : > { %2209 = vst.msk [vmem:[#allocation2 + $0x97] sm:$0xff] %vm2196_vm9, %v2125_v13  ;;  %v5457_v13 = vld [vmem:[%s6479_s14 + $0xe0] sm:$0xff] }
 0x3bd   : > { %2208 = vst.msk [vmem:[#allocation2 + $0x8f] sm:$0xfe] %vm2194_vm10, %v2123_v38  ;;  %2496 = vrot.lane.b32.xlu1 %v5442_v30, %s5487_s11  ;;  %2494 = vrot.lane.b32.xlu0 %v5443_v34, %s5487_s11 }
 0x3bf   : > { %v2129_v39 = vpop.permute.xlu1 %2128  ;;  %v2127_v4 = vpop.permute.xlu0 %2126 }
 0x3c0   : > { %2211 = vst.msk [vmem:[#allocation2 + $0xaf] sm:$0xff] %vm2196_vm9, %v2129_v39 }
 0x3c1   : > { %2210 = vst.msk [vmem:[#allocation2 + $0xa7] sm:$0xfe] %vm2194_vm10, %v2127_v4  ;;  %2258 = vrot.lane.b32.xlu1 %v5444_v16, %s5485_s27  ;;  %2256 = vrot.lane.b32.xlu0 %v5445_v17, %s5485_s27 }
 0x3c3   : > { %v2133_v41 = vpop.permute.xlu1 %2132  ;;  %v2131_v44 = vpop.permute.xlu0 %2130 }
 0x3c4   : > { %2213 = vst.msk [vmem:[#allocation2 + $0xc7] sm:$0xff] %vm2196_vm9, %v2133_v41 }
 0x3c5   : > { %2212 = vst.msk [vmem:[#allocation2 + $0xbf] sm:$0xfe] %vm2194_vm10, %v2131_v44  ;;  %2379 = vrot.lane.b32.xlu1 %v5444_v16, %s5486_s10  ;;  %2377 = vrot.lane.b32.xlu0 %v5445_v17, %s5486_s10 }
 0x3c7   : > { %v2137_v45 = vpop.permute.xlu1 %2136  ;;  %v2135_v48 = vpop.permute.xlu0 %2134 }
 0x3c8   : > { %2215 = vst.msk [vmem:[#allocation2 + $0xdf] sm:$0xff] %vm2196_vm9, %v2137_v45 }
 0x3c9   : > { %2214 = vst.msk [vmem:[#allocation2 + $0xd7] sm:$0xfe] %vm2194_vm10, %v2135_v48  ;;  %2500 = vrot.lane.b32.xlu1 %v5444_v16, %s5487_s11  ;;  %2498 = vrot.lane.b32.xlu0 %v5445_v17, %s5487_s11 }
 0x3cb   : > { %v2141_v20 = vpop.permute.xlu1 %2140  ;;  %v2139_v21 = vpop.permute.xlu0 %2138 }
 0x3cc   : > { %2217 = vst.msk [vmem:[#allocation2 + $0xf7] sm:$0xff] %vm2196_vm9, %v2141_v20 }
 0x3cd   : > { %2216 = vst.msk [vmem:[#allocation2 + $0xef] sm:$0xfe] %vm2194_vm10, %v2139_v21  ;;  %2262 = vrot.lane.b32.xlu1 %v5446_v49, %s5485_s27  ;;  %2260 = vrot.lane.b32.xlu0 %v5447_v52, %s5485_s27 }
 0x3cf   : > { %v2145_v53 = vpop.permute.xlu1 %2144  ;;  %v2143_v56 = vpop.permute.xlu0 %2142 }
 0x3d0   : > { %2219 = vst.msk [vmem:[#allocation2 + $0x10f] sm:$0xff] %vm2196_vm9, %v2145_v53  ;;  %v5459_v53 = vld [vmem:[%s6479_s14 + $0xf0] sm:$0xff] }
 0x3d1   : > { %2218 = vst.msk [vmem:[#allocation2 + $0x107] sm:$0xfe] %vm2194_vm10, %v2143_v56  ;;  %2383 = vrot.lane.b32.xlu1 %v5446_v49, %s5486_s10  ;;  %2381 = vrot.lane.b32.xlu0 %v5447_v52, %s5486_s10 }
 0x3d3   : > { %v2149_v57 = vpop.permute.xlu1 %2148  ;;  %v2147_v60 = vpop.permute.xlu0 %2146 }
 0x3d4   : > { %2221 = vst.msk [vmem:[#allocation2 + $0x127] sm:$0xff] %vm2196_vm9, %v2149_v57 }
 0x3d5   : > { %2220 = vst.msk [vmem:[#allocation2 + $0x11f] sm:$0xfe] %vm2194_vm10, %v2147_v60  ;;  %2504 = vrot.lane.b32.xlu1 %v5446_v49, %s5487_s11  ;;  %2502 = vrot.lane.b32.xlu0 %v5447_v52, %s5487_s11  ;;  %v5458_v52 = vld [vmem:[%s6479_s14 + $0xf8] sm:$0xff] }
 0x3d7   : > { %v2153_v61 = vpop.permute.xlu1 %2152  ;;  %v2151_v33 = vpop.permute.xlu0 %2150 }
 0x3d8   : > { %2223 = vst.msk [vmem:[#allocation2 + $0x13f] sm:$0xff] %vm2196_vm9, %v2153_v61 }
 0x3d9   : > { %2222 = vst.msk [vmem:[#allocation2 + $0x137] sm:$0xfe] %vm2194_vm10, %v2151_v33  ;;  %2266 = vrot.lane.b32.xlu1 %v5448_v1, %s5485_s27  ;;  %2264 = vrot.lane.b32.xlu0 %v5449_v6, %s5485_s27 }
 0x3db   : > { %v2157_v11 = vpop.permute.xlu1 %2156  ;;  %v2155_v14 = vpop.permute.xlu0 %2154 }
 0x3dc   : > { %2225 = vst.msk [vmem:[#allocation2 + $0x157] sm:$0xff] %vm2196_vm9, %v2157_v11 }
 0x3dd   : > { %2224 = vst.msk [vmem:[#allocation2 + $0x14f] sm:$0xfe] %vm2194_vm10, %v2155_v14  ;;  %2387 = vrot.lane.b32.xlu1 %v5448_v1, %s5486_s10  ;;  %2385 = vrot.lane.b32.xlu0 %v5449_v6, %s5486_s10 }
 0x3df   : > { %v2231_v15 = vpop.permute.xlu1 %2230  ;;  %v2229_v18 = vpop.permute.xlu0 %2228 }
 0x3e0   : > { %2320 = vst.msk [vmem:[#allocation2 + $0x9] sm:$0xff] %vm2318_vm11, %v2231_v15  ;;  %2319 = vst.msk [vmem:[#allocation2 + $0x1] sm:$0xff] %vm2318_vm11, %v2229_v18 }
 0x3e1   : > { %2508 = vrot.lane.b32.xlu1 %v5448_v1, %s5487_s11  ;;  %2506 = vrot.lane.b32.xlu0 %v5449_v6, %s5487_s11 }
 0x3e3   : > { %v2352_v19 = vpop.permute.xlu1 %2351  ;;  %v2350_v22 = vpop.permute.xlu0 %2349 }
 0x3e4   : > { %2441 = vst.msk [vmem:[#allocation2 + $0x8] sm:$0xff] %vm2439_vm12, %v2352_v19  ;;  %2440 = vst.msk [vmem:[#allocation2] sm:$0xff] %vm2439_vm12, %v2350_v22 }
 0x3e5   : > { %2270 = vrot.lane.b32.xlu1 %v5450_v23, %s5485_s27  ;;  %2268 = vrot.lane.b32.xlu0 %v5451_v24, %s5485_s27 }
 0x3e7   : > { %v2473_v25 = vpop.permute.xlu1 %2472  ;;  %v2471_v27 = vpop.permute.xlu0 %2470  ;;  %v2594_v43 = vld [vmem:[#allocation2 + $0x10] sm:$0xff] }
 0x3e8   : > { %2563 = vst.msk [vmem:[#allocation2 + $0x7] sm:$0xff] %vm2562_vm8, %v2473_v25 }
 0x3e9   : > { %2561 = vst.msk [vmem:[#allocation2 - $0x1] sm:$0xfe] %vm2560_vm6, %v2471_v27  ;;  %2391 = vrot.lane.b32.xlu1 %v5450_v23, %s5486_s10  ;;  %2389 = vrot.lane.b32.xlu0 %v5451_v24, %s5486_s10 }
 0x3eb   : > { %v2235_v28 = vpop.permute.xlu1 %2234  ;;  %v2233_v63 = vpop.permute.xlu0 %2232 }
 0x3ec   : > { %2322 = vst.msk [vmem:[#allocation2 + $0x21] sm:$0xff] %vm2318_vm11, %v2235_v28  ;;  %2321 = vst.msk [vmem:[#allocation2 + $0x19] sm:$0xff] %vm2318_vm11, %v2233_v63 }
 0x3ed   : > { %2512 = vrot.lane.b32.xlu1 %v5450_v23, %s5487_s11  ;;  %2510 = vrot.lane.b32.xlu0 %v5451_v24, %s5487_s11 }
 0x3ef   : > { %v2356_v31 = vpop.permute.xlu1 %2355  ;;  %v2354_v36 = vpop.permute.xlu0 %2353  ;;  %v2593_v40 = vld [vmem:[#allocation2 + $0x8] sm:$0xff] }
 0x3f0   : > { %v2592_v37 = vld [vmem:[#allocation2] sm:$0xff]  ;;  %2443 = vst.msk [vmem:[#allocation2 + $0x20] sm:$0xff] %vm2439_vm12, %v2356_v31  ;;  %2442 = vst.msk [vmem:[#allocation2 + $0x18] sm:$0xff] %vm2439_vm12, %v2354_v36 }
 0x3f1   : > { %5226 = vmatprep.mubr.msk.f32.mxu0 %vm272_vm0, %v2592_v37  ;;  %2274 = vrot.lane.b32.xlu1 %v5452_v2, %s5485_s27 }
 0x3f2   : > { %2272 = vrot.lane.b32.xlu0 %v5453_v42, %s5485_s27  ;;  %5227 = vmatmul.mubr.msk.f32.vlgmr.msra.gmra.mrb[0].mxu0 %vm272_vm0, %v2593_v40 }
 0x3f3   : > { %5229 = vmatprep.mubr.msk.f32.mxu0 %vm272_vm0, %v2594_v43  ;;  %v2477_v46 = vpop.permute.xlu1 %2476  ;;  %v2475_v47 = vpop.permute.xlu0 %2474  ;;  %v2597_v26 = vld [vmem:[#allocation2 + $0x28] sm:$0xff] }
 0x3f4   : > { %2565 = vst.msk [vmem:[#allocation2 + $0x1f] sm:$0xff] %vm2562_vm8, %v2477_v46 }
 0x3f5   : > { %2564 = vst.msk [vmem:[#allocation2 + $0x17] sm:$0xfe] %vm2560_vm6, %v2475_v47  ;;  %2395 = vrot.lane.b32.xlu1 %v5452_v2, %s5486_s10 }
 0x3f6   : > { %2393 = vrot.lane.b32.xlu0 %v5453_v42, %s5486_s10 }
 0x3f7   : > { %v2239_v50 = vpop.permute.xlu1 %2238  ;;  %v2237_v51 = vpop.permute.xlu0 %2236 }
 0x3f8   : > { %2324 = vst.msk [vmem:[#allocation2 + $0x39] sm:$0xff] %vm2318_vm11, %v2239_v50  ;;  %2323 = vst.msk [vmem:[#allocation2 + $0x31] sm:$0xff] %vm2318_vm11, %v2237_v51 }
 0x3f9   : > { %2516 = vrot.lane.b32.xlu1 %v5452_v2, %s5487_s11 }
 0x3fa   : > { %2514 = vrot.lane.b32.xlu0 %v5453_v42, %s5487_s11 }
 0x3fb   : > { %v2360_v54 = vpop.permute.xlu1 %2359  ;;  %v2358_v55 = vpop.permute.xlu0 %2357  ;;  %v2596_v59 = vld [vmem:[#allocation2 + $0x20] sm:$0xff] }
 0x3fc   : > { %v2595_v58 = vld [vmem:[#allocation2 + $0x18] sm:$0xff]  ;;  %2445 = vst.msk [vmem:[#allocation2 + $0x38] sm:$0xff] %vm2439_vm12, %v2360_v54  ;;  %2444 = vst.msk [vmem:[#allocation2 + $0x30] sm:$0xff] %vm2439_vm12, %v2358_v55 }
 0x3fd   : > { %5230 = vmatmul.mubr.msk.f32.gmra.mrb[2].mxu0 %vm272_vm0, %v2595_v58  ;;  %2278 = vrot.lane.b32.xlu1 %v5454_v62, %s5485_s27 }
 0x3fe   : > { %2276 = vrot.lane.b32.xlu0 %v5455_v32, %s5485_s27  ;;  %5232 = vmatprep.mubr.msk.f32.mxu0 %vm272_vm0, %v2596_v59 }
 0x3ff   : > { %v2481_v3 = vpop.permute.xlu1 %2480  ;;  %v2479_v5 = vpop.permute.xlu0 %2478  ;;  %v2600_v38 = vld [vmem:[#allocation2 + $0x40] sm:$0xff] }
 0x400   : > { %2567 = vst.msk [vmem:[#allocation2 + $0x37] sm:$0xff] %vm2562_vm8, %v2481_v3 }
 0x401   : > { %2566 = vst.msk [vmem:[#allocation2 + $0x2f] sm:$0xfe] %vm2560_vm6, %v2479_v5  ;;  %5233 = vmatmul.mubr.msk.f32.gmra.mrb[4].mxu0 %vm272_vm0, %v2597_v26  ;;  %2399 = vrot.lane.b32.xlu1 %v5454_v62, %s5486_s10 }
 0x402   : > { %2397 = vrot.lane.b32.xlu0 %v5455_v32, %s5486_s10 }
 0x403   : > { %v2243_v29 = vpop.permute.xlu1 %2242  ;;  %v2241_v8 = vpop.permute.xlu0 %2240 }
 0x404   : > { %2326 = vst.msk [vmem:[#allocation2 + $0x51] sm:$0xff] %vm2318_vm11, %v2243_v29  ;;  %2325 = vst.msk [vmem:[#allocation2 + $0x49] sm:$0xff] %vm2318_vm11, %v2241_v8 }
 0x405   : > { %2520 = vrot.lane.b32.xlu1 %v5454_v62, %s5487_s11 }
 0x406   : > { %2518 = vrot.lane.b32.xlu0 %v5455_v32, %s5487_s11 }
 0x407   : > { %v2364_v9 = vpop.permute.xlu1 %2363  ;;  %v2362_v30 = vpop.permute.xlu0 %2361  ;;  %v2599_v35 = vld [vmem:[#allocation2 + $0x38] sm:$0xff] }
 0x408   : > { %v2598_v34 = vld [vmem:[#allocation2 + $0x30] sm:$0xff]  ;;  %2447 = vst.msk [vmem:[#allocation2 + $0x50] sm:$0xff] %vm2439_vm12, %v2364_v9  ;;  %2446 = vst.msk [vmem:[#allocation2 + $0x48] sm:$0xff] %vm2439_vm12, %v2362_v30 }
 0x409   : > { %5235 = vmatprep.mubr.msk.f32.mxu0 %vm272_vm0, %v2598_v34  ;;  %2282 = vrot.lane.b32.xlu1 %v5456_v12, %s5485_s27 }
 0x40a   : > { %2280 = vrot.lane.b32.xlu0 %v5457_v13, %s5485_s27  ;;  %5236 = vmatmul.mubr.msk.f32.gmra.mrb[6].mxu0 %vm272_vm0, %v2599_v35 }
 0x40b   : > { %5238 = vmatprep.mubr.msk.f32.mxu0 %vm272_vm0, %v2600_v38  ;;  %v2485_v39 = vpop.permute.xlu1 %2484  ;;  %v2483_v4 = vpop.permute.xlu0 %2482  ;;  %v2603_v49 = vld [vmem:[#allocation2 + $0x58] sm:$0xff] }
 0x40c   : > { %2569 = vst.msk [vmem:[#allocation2 + $0x4f] sm:$0xff] %vm2562_vm8, %v2485_v39 }
 0x40d   : > { %2568 = vst.msk [vmem:[#allocation2 + $0x47] sm:$0xfe] %vm2560_vm6, %v2483_v4  ;;  %2403 = vrot.lane.b32.xlu1 %v5456_v12, %s5486_s10 }
 0x40e   : > { %2401 = vrot.lane.b32.xlu0 %v5457_v13, %s5486_s10 }
 0x40f   : > { %v2247_v16 = vpop.permute.xlu1 %2246  ;;  %v2245_v17 = vpop.permute.xlu0 %2244 }
 0x410   : > { %2328 = vst.msk [vmem:[#allocation2 + $0x69] sm:$0xff] %vm2318_vm11, %v2247_v16  ;;  %2327 = vst.msk [vmem:[#allocation2 + $0x61] sm:$0xff] %vm2318_vm11, %v2245_v17 }
 0x411   : > { %2524 = vrot.lane.b32.xlu1 %v5456_v12, %s5487_s11 }
 0x412   : > { %2522 = vrot.lane.b32.xlu0 %v5457_v13, %s5487_s11 }
 0x413   : > { %v2368_v41 = vpop.permute.xlu1 %2367  ;;  %v2366_v44 = vpop.permute.xlu0 %2365  ;;  %v2602_v48 = vld [vmem:[#allocation2 + $0x50] sm:$0xff] }
 0x414   : > { %v2601_v45 = vld [vmem:[#allocation2 + $0x48] sm:$0xff]  ;;  %2449 = vst.msk [vmem:[#allocation2 + $0x68] sm:$0xff] %vm2439_vm12, %v2368_v41  ;;  %2448 = vst.msk [vmem:[#allocation2 + $0x60] sm:$0xff] %vm2439_vm12, %v2366_v44 }
 0x415   : > { %5239 = vmatmul.mubr.msk.f32.gmra.mrb[8].mxu0 %vm272_vm0, %v2601_v45  ;;  %2286 = vrot.lane.b32.xlu1 %v6938_v7, %s5485_s27 }
 0x416   : > { %2284 = vrot.lane.b32.xlu0 %v6941_v10, %s5485_s27  ;;  %5241 = vmatprep.mubr.msk.f32.mxu0 %vm272_vm0, %v2602_v48 }
 0x417   : > { %v2489_v20 = vpop.permute.xlu1 %2488  ;;  %v2487_v21 = vpop.permute.xlu0 %2486  ;;  %v2606_v33 = vld [vmem:[#allocation2 + $0x70] sm:$0xff] }
 0x418   : > { %2571 = vst.msk [vmem:[#allocation2 + $0x67] sm:$0xff] %vm2562_vm8, %v2489_v20 }
 0x419   : > { %2570 = vst.msk [vmem:[#allocation2 + $0x5f] sm:$0xfe] %vm2560_vm6, %v2487_v21  ;;  %5242 = vmatmul.mubr.msk.f32.gmra.mrb[10].mxu0 %vm272_vm0, %v2603_v49  ;;  %2407 = vrot.lane.b32.xlu1 %v5458_v52, %s5486_s10 }
 0x41a   : > { %2405 = vrot.lane.b32.xlu0 %v5459_v53, %s5486_s10 }
 0x41b   : > { %v2251_v7 = vpop.permute.xlu1 %2250  ;;  %v2249_v56 = vpop.permute.xlu0 %2248 }
 0x41c   : > { %2330 = vst.msk [vmem:[#allocation2 + $0x81] sm:$0xff] %vm2318_vm11, %v2251_v7  ;;  %2329 = vst.msk [vmem:[#allocation2 + $0x79] sm:$0xff] %vm2318_vm11, %v2249_v56 }
 0x41d   : > { %2528 = vrot.lane.b32.xlu1 %v5458_v52, %s5487_s11 }
 0x41e   : > { %2526 = vrot.lane.b32.xlu0 %v5459_v53, %s5487_s11 }
 0x41f   : > { %v2372_v10 = vpop.permute.xlu1 %2371  ;;  %v2370_v57 = vpop.permute.xlu0 %2369  ;;  %v2605_v61 = vld [vmem:[#allocation2 + $0x68] sm:$0xff] }
 0x420   : > { %v2604_v60 = vld [vmem:[#allocation2 + $0x60] sm:$0xff]  ;;  %2451 = vst.msk [vmem:[#allocation2 + $0x80] sm:$0xff] %vm2439_vm12, %v2372_v10  ;;  %2450 = vst.msk [vmem:[#allocation2 + $0x78] sm:$0xff] %vm2439_vm12, %v2370_v57 }
 0x421   : > { %5244 = vmatprep.mubr.msk.f32.mxu0 %vm272_vm0, %v2604_v60  ;;  %2160 = vrot.lane.b32.xlu1 %v5458_v52, %s5484_s20 }
 0x422   : > { %5245 = vmatmul.mubr.msk.f32.gmra.mrb[12].mxu0 %vm272_vm0, %v2605_v61  ;;  %2158 = vrot.lane.b32.xlu0 %v5459_v53, %s5484_s20 }
 0x423   : > { %5247 = vmatprep.mubr.msk.f32.mxu0 %vm272_vm0, %v2606_v33  ;;  %v2493_v1 = vpop.permute.xlu1 %2492  ;;  %v2491_v6 = vpop.permute.xlu0 %2490  ;;  %v2609_v25 = vld [vmem:[#allocation2 + $0x88] sm:$0xff] }
 0x424   : > { %2573 = vst.msk [vmem:[#allocation2 + $0x7f] sm:$0xff] %vm2562_vm8, %v2493_v1 }
 0x425   : > { %2572 = vst.msk [vmem:[#allocation2 + $0x77] sm:$0xfe] %vm2560_vm6, %v2491_v6 }
 0x427   : > { %v2255_v11 = vpop.permute.xlu1 %2254  ;;  %v2253_v14 = vpop.permute.xlu0 %2252 }
 0x428   : > { %2332 = vst.msk [vmem:[#allocation2 + $0x99] sm:$0xff] %vm2318_vm11, %v2255_v11  ;;  %2331 = vst.msk [vmem:[#allocation2 + $0x91] sm:$0xff] %vm2318_vm11, %v2253_v14 }
 0x42b   : > { %v2376_v15 = vpop.permute.xlu1 %2375  ;;  %v2374_v18 = vpop.permute.xlu0 %2373  ;;  %v2608_v22 = vld [vmem:[#allocation2 + $0x80] sm:$0xff] }
 0x42c   : > { %v2607_v19 = vld [vmem:[#allocation2 + $0x78] sm:$0xff]  ;;  %2453 = vst.msk [vmem:[#allocation2 + $0x98] sm:$0xff] %vm2439_vm12, %v2376_v15  ;;  %2452 = vst.msk [vmem:[#allocation2 + $0x90] sm:$0xff] %vm2439_vm12, %v2374_v18 }
 0x42d   : > { %5248 = vmatmul.mubr.msk.f32.gmra.mrb[14].mxu0 %vm272_vm0, %v2607_v19 }
 0x42e   : > { %5250 = vmatprep.mubr.msk.f32.mxu0 %vm272_vm0, %v2608_v22 }
 0x42f   : > { %v2497_v23 = vpop.permute.xlu1 %2496  ;;  %v2495_v24 = vpop.permute.xlu0 %2494  ;;  %v2612_v40 = vld [vmem:[#allocation2 + $0xa0] sm:$0xff] }
 0x430   : > { %2575 = vst.msk [vmem:[#allocation2 + $0x97] sm:$0xff] %vm2562_vm8, %v2497_v23 }
 0x431   : > { %2574 = vst.msk [vmem:[#allocation2 + $0x8f] sm:$0xfe] %vm2560_vm6, %v2495_v24  ;;  %5251 = vmatmul.mubr.msk.f32.gmra.mrb[16].mxu0 %vm272_vm0, %v2609_v25 }
 0x433   : > { %v2259_v27 = vpop.permute.xlu1 %2258  ;;  %v2257_v28 = vpop.permute.xlu0 %2256 }
 0x434   : > { %2334 = vst.msk [vmem:[#allocation2 + $0xb1] sm:$0xff] %vm2318_vm11, %v2259_v27  ;;  %2333 = vst.msk [vmem:[#allocation2 + $0xa9] sm:$0xff] %vm2318_vm11, %v2257_v28 }
 0x437   : > { %v2380_v63 = vpop.permute.xlu1 %2379  ;;  %v2378_v31 = vpop.permute.xlu0 %2377  ;;  %v2611_v37 = vld [vmem:[#allocation2 + $0x98] sm:$0xff] }
 0x438   : > { %v2610_v36 = vld [vmem:[#allocation2 + $0x90] sm:$0xff]  ;;  %2455 = vst.msk [vmem:[#allocation2 + $0xb0] sm:$0xff] %vm2439_vm12, %v2380_v63  ;;  %2454 = vst.msk [vmem:[#allocation2 + $0xa8] sm:$0xff] %vm2439_vm12, %v2378_v31 }
 0x439   : > { %5253 = vmatprep.mubr.msk.f32.mxu0 %vm272_vm0, %v2610_v36 }
 0x43a   : > { %5254 = vmatmul.mubr.msk.f32.gmra.mrb[18].mxu0 %vm272_vm0, %v2611_v37 }
 0x43b   : > { %5256 = vmatprep.mubr.msk.f32.mxu0 %vm272_vm0, %v2612_v40  ;;  %v2501_v2 = vpop.permute.xlu1 %2500  ;;  %v2499_v42 = vpop.permute.xlu0 %2498  ;;  %v2615_v59 = vld [vmem:[#allocation2 + $0xb8] sm:$0xff] }
 0x43c   : > { %2577 = vst.msk [vmem:[#allocation2 + $0xaf] sm:$0xff] %vm2562_vm8, %v2501_v2 }
 0x43d   : > { %2576 = vst.msk [vmem:[#allocation2 + $0xa7] sm:$0xfe] %vm2560_vm6, %v2499_v42 }
 0x43f   : > { %v2263_v43 = vpop.permute.xlu1 %2262  ;;  %v2261_v46 = vpop.permute.xlu0 %2260 }
 0x440   : > { %2336 = vst.msk [vmem:[#allocation2 + $0xc9] sm:$0xff] %vm2318_vm11, %v2263_v43  ;;  %2335 = vst.msk [vmem:[#allocation2 + $0xc1] sm:$0xff] %vm2318_vm11, %v2261_v46 }
 0x443   : > { %v2384_v47 = vpop.permute.xlu1 %2383  ;;  %v2382_v50 = vpop.permute.xlu0 %2381  ;;  %v2614_v54 = vld [vmem:[#allocation2 + $0xb0] sm:$0xff] }
 0x444   : > { %v2613_v51 = vld [vmem:[#allocation2 + $0xa8] sm:$0xff]  ;;  %2457 = vst.msk [vmem:[#allocation2 + $0xc8] sm:$0xff] %vm2439_vm12, %v2384_v47  ;;  %2456 = vst.msk [vmem:[#allocation2 + $0xc0] sm:$0xff] %vm2439_vm12, %v2382_v50 }
 0x445   : > { %5257 = vmatmul.mubr.msk.f32.gmra.mrb[20].mxu0 %vm272_vm0, %v2613_v51 }
 0x446   : > { %5259 = vmatprep.mubr.msk.f32.mxu0 %vm272_vm0, %v2614_v54 }
 0x447   : > { %v2505_v55 = vpop.permute.xlu1 %2504  ;;  %v2503_v58 = vpop.permute.xlu0 %2502  ;;  %v2618_v8 = vld [vmem:[#allocation2 + $0xd0] sm:$0xff] }
 0x448   : > { %2579 = vst.msk [vmem:[#allocation2 + $0xc7] sm:$0xff] %vm2562_vm8, %v2505_v55  ;;  %v2639_v55 = vld [vmem:[#allocation2 + $0x178] sm:$0xff] }
 0x449   : > { %2578 = vst.msk [vmem:[#allocation2 + $0xbf] sm:$0xfe] %vm2560_vm6, %v2503_v58  ;;  %5260 = vmatmul.mubr.msk.f32.gmra.mrb[22].mxu0 %vm272_vm0, %v2615_v59  ;;  %v7583_v58 = vld [vmem:[%s8721_s3] ss:$0 sm:$0xff] }
 0x44b   : > { %v2267_v62 = vpop.permute.xlu1 %2266  ;;  %v2265_v32 = vpop.permute.xlu0 %2264 }
 0x44c   : > { %2338 = vst.msk [vmem:[#allocation2 + $0xe1] sm:$0xff] %vm2318_vm11, %v2267_v62  ;;  %2337 = vst.msk [vmem:[#allocation2 + $0xd9] sm:$0xff] %vm2318_vm11, %v2265_v32  ;;  %v7588_v62 = vld [vmem:[%s8721_s3 + $0x1] ss:$0 sm:$0xff] }
 0x44f   : > { %v2388_v3 = vpop.permute.xlu1 %2387  ;;  %v2386_v5 = vpop.permute.xlu0 %2385  ;;  %v2617_v29 = vld [vmem:[#allocation2 + $0xc8] sm:$0xff] }
 0x450   : > { %v2616_v26 = vld [vmem:[#allocation2 + $0xc0] sm:$0xff]  ;;  %2459 = vst.msk [vmem:[#allocation2 + $0xe0] sm:$0xff] %vm2439_vm12, %v2388_v3  ;;  %2458 = vst.msk [vmem:[#allocation2 + $0xd8] sm:$0xff] %vm2439_vm12, %v2386_v5 }
 0x451   : > { %5262 = vmatprep.mubr.msk.f32.mxu0 %vm272_vm0, %v2616_v26 }
 0x452   : > { %5263 = vmatmul.mubr.msk.f32.gmra.mrb[24].mxu0 %vm272_vm0, %v2617_v29 }
 0x453   : > { %5265 = vmatprep.mubr.msk.f32.mxu0 %vm272_vm0, %v2618_v8  ;;  %v2509_v0 = vpop.permute.xlu1 %2508  ;;  %v2507_v9 = vpop.permute.xlu0 %2506  ;;  %v2621_v16 = vld [vmem:[#allocation2 + $0xe8] sm:$0xff] }
 0x454   : > { %2581 = vst.msk [vmem:[#allocation2 + $0xdf] sm:$0xff] %vm2562_vm8, %v2509_v0 }
 0x455   : > { %2580 = vst.msk [vmem:[#allocation2 + $0xd7] sm:$0xfe] %vm2560_vm6, %v2507_v9 }
 0x457   : > { %v2271_v30 = vpop.permute.xlu1 %2270  ;;  %v2269_v34 = vpop.permute.xlu0 %2268 }
 0x458   : > { %2340 = vst.msk [vmem:[#allocation2 + $0xf9] sm:$0xff] %vm2318_vm11, %v2271_v30  ;;  %2339 = vst.msk [vmem:[#allocation2 + $0xf1] sm:$0xff] %vm2318_vm11, %v2269_v34 }
 0x45b   : > { %v2392_v35 = vpop.permute.xlu1 %2391  ;;  %v2390_v12 = vpop.permute.xlu0 %2389  ;;  %v2620_v38 = vld [vmem:[#allocation2 + $0xe0] sm:$0xff] }
 0x45c   : > { %v2619_v13 = vld [vmem:[#allocation2 + $0xd8] sm:$0xff]  ;;  %2461 = vst.msk [vmem:[#allocation2 + $0xf8] sm:$0xff] %vm2439_vm12, %v2392_v35  ;;  %2460 = vst.msk [vmem:[#allocation2 + $0xf0] sm:$0xff] %vm2439_vm12, %v2390_v12 }
 0x45d   : > { %5266 = vmatmul.mubr.msk.f32.gmra.mrb[26].mxu0 %vm272_vm0, %v2619_v13 }
 0x45e   : > { %5268 = vmatprep.mubr.msk.f32.mxu0 %vm272_vm0, %v2620_v38 }
 0x45f   : > { %v2513_v39 = vpop.permute.xlu1 %2512  ;;  %v2511_v4 = vpop.permute.xlu0 %2510  ;;  %v2624_v21 = vld [vmem:[#allocation2 + $0x100] sm:$0xff] }
 0x460   : > { %2583 = vst.msk [vmem:[#allocation2 + $0xf7] sm:$0xff] %vm2562_vm8, %v2513_v39 }
 0x461   : > { %2582 = vst.msk [vmem:[#allocation2 + $0xef] sm:$0xfe] %vm2560_vm6, %v2511_v4  ;;  %5269 = vmatmul.mubr.msk.f32.gmra.mrb[28].mxu0 %vm272_vm0, %v2621_v16 }
 0x463   : > { %v2275_v17 = vpop.permute.xlu1 %2274 }
 0x464   : > { %v2273_v41 = vpop.permute.xlu0 %2272  ;;  %2342 = vst.msk [vmem:[#allocation2 + $0x111] sm:$0xff] %vm2318_vm11, %v2275_v17 }
 0x465   : > { %2341 = vst.msk [vmem:[#allocation2 + $0x109] sm:$0xff] %vm2318_vm11, %v2273_v41 }
 0x467   : > { %v2396_v44 = vpop.permute.xlu1 %2395  ;;  %v2623_v20 = vld [vmem:[#allocation2 + $0xf8] sm:$0xff] }
 0x468   : > { %v2394_v45 = vpop.permute.xlu0 %2393  ;;  %v2622_v48 = vld [vmem:[#allocation2 + $0xf0] sm:$0xff]  ;;  %2463 = vst.msk [vmem:[#allocation2 + $0x110] sm:$0xff] %vm2439_vm12, %v2396_v44 }
 0x469   : > { %2462 = vst.msk [vmem:[#allocation2 + $0x108] sm:$0xff] %vm2439_vm12, %v2394_v45  ;;  %5271 = vmatprep.mubr.msk.f32.mxu0 %vm272_vm0, %v2622_v48 }
 0x46a   : > { %5272 = vmatmul.mubr.msk.f32.gmra.mrb[30].mxu0 %vm272_vm0, %v2623_v20 }
 0x46b   : > { %5274 = vmatprep.mubr.msk.f32.mxu0 %vm272_vm0, %v2624_v21  ;;  %v2517_v49 = vpop.permute.xlu1 %2516  ;;  %v2627_v1 = vld [vmem:[#allocation2 + $0x118] sm:$0xff] }
 0x46c   : > { %v2515_v52 = vpop.permute.xlu0 %2514  ;;  %2585 = vst.msk [vmem:[#allocation2 + $0x10f] sm:$0xff] %vm2562_vm8, %v2517_v49 }
 0x46d   : > { %2584 = vst.msk [vmem:[#allocation2 + $0x107] sm:$0xfe] %vm2560_vm6, %v2515_v52 }
 0x46f   : > { %v2279_v53 = vpop.permute.xlu1 %2278 }
 0x470   : > { %v2277_v7 = vpop.permute.xlu0 %2276  ;;  %2344 = vst.msk [vmem:[#allocation2 + $0x129] sm:$0xff] %vm2318_vm11, %v2279_v53 }
 0x471   : > { %2343 = vst.msk [vmem:[#allocation2 + $0x121] sm:$0xff] %vm2318_vm11, %v2277_v7 }
 0x473   : > { %v2400_v56 = vpop.permute.xlu1 %2399  ;;  %v2626_v60 = vld [vmem:[#allocation2 + $0x110] sm:$0xff] }
 0x474   : > { %v2398_v10 = vpop.permute.xlu0 %2397  ;;  %v2625_v57 = vld [vmem:[#allocation2 + $0x108] sm:$0xff]  ;;  %2465 = vst.msk [vmem:[#allocation2 + $0x128] sm:$0xff] %vm2439_vm12, %v2400_v56 }
 0x475   : > { %2464 = vst.msk [vmem:[#allocation2 + $0x120] sm:$0xff] %vm2439_vm12, %v2398_v10  ;;  %5275 = vmatmul.mubr.msk.f32.gmra.mrb[32].mxu0 %vm272_vm0, %v2625_v57 }
 0x476   : > { %5277 = vmatprep.mubr.msk.f32.mxu0 %vm272_vm0, %v2626_v60 }
 0x477   : > { %v2521_v61 = vpop.permute.xlu1 %2520  ;;  %v2630_v22 = vld [vmem:[#allocation2 + $0x130] sm:$0xff] }
 0x478   : > { %v2519_v33 = vpop.permute.xlu0 %2518  ;;  %2587 = vst.msk [vmem:[#allocation2 + $0x127] sm:$0xff] %vm2562_vm8, %v2521_v61 }
 0x479   : > { %2586 = vst.msk [vmem:[#allocation2 + $0x11f] sm:$0xfe] %vm2560_vm6, %v2519_v33  ;;  %5278 = vmatmul.mubr.msk.f32.gmra.mrb[34].mxu0 %vm272_vm0, %v2627_v1 }
 0x47b   : > { %v2283_v6 = vpop.permute.xlu1 %2282 }
 0x47c   : > { %v2281_v11 = vpop.permute.xlu0 %2280  ;;  %2346 = vst.msk [vmem:[#allocation2 + $0x141] sm:$0xff] %vm2318_vm11, %v2283_v6 }
 0x47d   : > { %2345 = vst.msk [vmem:[#allocation2 + $0x139] sm:$0xff] %vm2318_vm11, %v2281_v11 }
 0x47f   : > { %v2404_v14 = vpop.permute.xlu1 %2403  ;;  %v2629_v19 = vld [vmem:[#allocation2 + $0x128] sm:$0xff] }
 0x480   : > { %v2402_v15 = vpop.permute.xlu0 %2401  ;;  %v2628_v18 = vld [vmem:[#allocation2 + $0x120] sm:$0xff]  ;;  %2467 = vst.msk [vmem:[#allocation2 + $0x140] sm:$0xff] %vm2439_vm12, %v2404_v14 }
 0x481   : > { %2466 = vst.msk [vmem:[#allocation2 + $0x138] sm:$0xff] %vm2439_vm12, %v2402_v15  ;;  %5280 = vmatprep.mubr.msk.f32.mxu0 %vm272_vm0, %v2628_v18 }
 0x482   : > { %5281 = vmatmul.mubr.msk.f32.gmra.mrb[36].mxu0 %vm272_vm0, %v2629_v19 }
 0x483   : > { %5283 = vmatprep.mubr.msk.f32.mxu0 %vm272_vm0, %v2630_v22  ;;  %v2525_v23 = vpop.permute.xlu1 %2524  ;;  %v2633_v2 = vld [vmem:[#allocation2 + $0x148] sm:$0xff] }
 0x484   : > { %v2523_v24 = vpop.permute.xlu0 %2522  ;;  %2589 = vst.msk [vmem:[#allocation2 + $0x13f] sm:$0xff] %vm2562_vm8, %v2525_v23 }
 0x485   : > { %2588 = vst.msk [vmem:[#allocation2 + $0x137] sm:$0xfe] %vm2560_vm6, %v2523_v24 }
 0x487   : > { %v2287_v25 = vpop.permute.xlu1 %2286 }
 0x488   : > { %v2285_v27 = vpop.permute.xlu0 %2284  ;;  %2348 = vst.msk [vmem:[#allocation2 + $0x159] sm:$0xff] %vm2318_vm11, %v2287_v25 }
 0x489   : > { %2347 = vst.msk [vmem:[#allocation2 + $0x151] sm:$0xff] %vm2318_vm11, %v2285_v27  ;;  %vm8730_vm11 = vcmask 294144  }
 0x48b   : > { %v2408_v28 = vpop.permute.xlu1 %2407  ;;  %v2632_v36 = vld [vmem:[#allocation2 + $0x140] sm:$0xff] }
 0x48c   : > { %v2406_v63 = vpop.permute.xlu0 %2405  ;;  %v2631_v31 = vld [vmem:[#allocation2 + $0x138] sm:$0xff]  ;;  %2469 = vst.msk [vmem:[#allocation2 + $0x158] sm:$0xff] %vm2439_vm12, %v2408_v28 }
 0x48d   : > { %2468 = vst.msk [vmem:[#allocation2 + $0x150] sm:$0xff] %vm2439_vm12, %v2406_v63  ;;  %5284 = vmatmul.mubr.msk.f32.gmra.mrb[38].mxu0 %vm272_vm0, %v2631_v31 }
 0x48e   : > { %5286 = vmatprep.mubr.msk.f32.mxu0 %vm272_vm0, %v2632_v36 }
 0x48f   : > { %v2529_v37 = vpop.permute.xlu1 %2528  ;;  %v2636_v50 = vld [vmem:[#allocation2 + $0x160] sm:$0xff] }
 0x490   : > { %v2527_v40 = vpop.permute.xlu0 %2526  ;;  %2591 = vst.msk [vmem:[#allocation2 + $0x157] sm:$0xff] %vm2562_vm8, %v2529_v37 }
 0x491   : > { %2590 = vst.msk [vmem:[#allocation2 + $0x14f] sm:$0xfe] %vm2560_vm6, %v2527_v40  ;;  %5287 = vmatmul.mubr.msk.f32.gmra.mrb[40].mxu0 %vm272_vm0, %v2633_v2  ;;  %vm3508_vm6 = vcmask 97345  }
 0x493   : > { %v2161_v42 = vpop.permute.xlu1 %2160 }
 0x494   : > { %2227 = vst.msk [vmem:[#allocation2 + $0x16f] sm:$0xff] %vm2196_vm9, %v2161_v42  ;;  %v2159_v43 = vpop.permute.xlu0 %2158 }
 0x495   : > { %2226 = vst.msk [vmem:[#allocation2 + $0x167] sm:$0xfe] %vm2194_vm10, %v2159_v43  ;;  %vm4255_vm10 = vcmask 294145  }
 0x497   : > { %v2635_v47 = vld [vmem:[#allocation2 + $0x158] sm:$0xff] }
 0x498   : > { %v2634_v46 = vld [vmem:[#allocation2 + $0x150] sm:$0xff] }
 0x499   : > { %5289 = vmatprep.mubr.msk.f32.mxu0 %vm272_vm0, %v2634_v46 }
 0x49a   : > { %5290 = vmatmul.mubr.msk.f32.gmra.mrb[42].mxu0 %vm272_vm0, %v2635_v47 }
 0x49b   : > { %5292 = vmatprep.mubr.msk.f32.mxu0 %vm272_vm0, %v2636_v50  ;;  %v2638_v54 = vld [vmem:[#allocation2 + $0x170] sm:$0xff] }
 0x49c   : > { %v2637_v51 = vld [vmem:[#allocation2 + $0x168] sm:$0xff] }
 0x49e   : > { %5293 = vmatmul.mubr.msk.f32.gmra.mrb[44].mxu0 %vm272_vm0, %v2637_v51 }
 0x49f   : > { %5295 = vmatprep.mubr.msk.f32.mxu0 %vm272_vm0, %v2638_v54 }
 0x4a2   : > { %5296 = vmatmul.mubr.msk.f32.gmra.mrb[46].mxu0 %vm272_vm0, %v2639_v55  ;;  %vm4483_vm0 = vcmask 1043456  }
 0x4c5   : > { %v5228_v59 = vpop.f32.mrb[0].mxu0 }
 0x4c6   : > { %v3088_v32 = vmul.f32 %v5228_v59, %v7583_v58  ;;  %v2859_v3 = vpop.f32.mrb[1].mxu0 }
 0x4c7   : > { %v3087_v5 = vmul.f32 %v7583_v58, %v2859_v3 }
 0x4c8   : > { %v3125_v26 = vadd.f32 %v7588_v62, %v3088_v32 }
 0x4c9   : > { %v3124_v29 = vadd.f32 %v7588_v62, %v3087_v5 }
 0x4ca   : > { %v7594_v8 = vmax.f32 %v3125_v26, 0.0 }
 0x4cb   : > { %v7596_v0 = vmax.f32 %v3124_v29, 0.0 }
 0x4cc   : > { %3300 = vrot.lane.b32.xlu1 %v7594_v8, %s5479_s15  ;;  %3239 = vst.msk [vmem:[#allocation3 + $0x21] sm:$0xff] %vm354_vm1, %v7594_v8 }
 0x4cd   : > { %3298 = vrot.lane.b32.xlu0 %v7596_v0, %s5479_s15  ;;  %3238 = vst.msk [vmem:[#allocation3 + $0x19] sm:$0xff] %vm354_vm1, %v7596_v0 }
 0x4d0   : > { %v5231_v9 = vpop.f32.mrb[2].mxu0 }
 0x4d1   : > { %v3089_v30 = vmul.f32 %v5231_v9, %v7583_v58  ;;  %v2869_v34 = vpop.f32.mrb[3].mxu0 }
 0x4d3   : > { %v3126_v35 = vadd.f32 %v7588_v62, %v3089_v30 }
 0x4d4   : > { %v5234_v12 = vpop.f32.mrb[4].mxu0 }
 0x4d5   : > { %v7608_v13 = vmax.f32 %v3126_v35, 0.0  ;;  %v2878_v38 = vpop.f32.mrb[5].mxu0 }
 0x4d6   : > { %v3090_v39 = vmul.f32 %v7583_v58, %v2878_v38 }
 0x4d7   : > { %3302 = vrot.lane.b32.xlu0 %v7608_v13, %s5479_s15  ;;  %3240 = vst.msk [vmem:[#allocation3 + $0x31] sm:$0xff] %vm354_vm1, %v7608_v13 }
 0x4d8   : > { %v3127_v4 = vadd.f32 %v7588_v62, %v3090_v39 }
 0x4da   : > { %v7616_v16 = vmax.f32 %v3127_v4, 0.0 }
 0x4dc   : > { %3304 = vrot.lane.b32.xlu1 %v7616_v16, %s5479_s15  ;;  %3241 = vst.msk [vmem:[#allocation3 + $0x39] sm:$0xff] %vm354_vm1, %v7616_v16 }
 0x4dd   : > { %v5237_v17 = vpop.f32.mrb[6].mxu0 }
 0x4de   : > { %v3092_v41 = vmul.f32 %v5237_v17, %v7583_v58  ;;  %v2887_v44 = vpop.f32.mrb[7].mxu0 }
 0x4df   : > { %v3091_v45 = vmul.f32 %v7583_v58, %v2887_v44 }
 0x4e0   : > { %v3129_v48 = vadd.f32 %v7588_v62, %v3092_v41 }
 0x4e1   : > { %v3128_v20 = vadd.f32 %v7588_v62, %v3091_v45 }
 0x4e2   : > { %v7626_v21 = vmax.f32 %v3129_v48, 0.0 }
 0x4e3   : > { %v7628_v49 = vmax.f32 %v3128_v20, 0.0 }
 0x4e4   : > { %3308 = vrot.lane.b32.xlu1 %v7626_v21, %s5479_s15  ;;  %3243 = vst.msk [vmem:[#allocation3 + $0x51] sm:$0xff] %vm354_vm1, %v7626_v21 }
 0x4e5   : > { %3306 = vrot.lane.b32.xlu0 %v7628_v49, %s5479_s15  ;;  %3242 = vst.msk [vmem:[#allocation3 + $0x49] sm:$0xff] %vm354_vm1, %v7628_v49 }
 0x4e8   : > { %v5240_v52 = vpop.f32.mrb[8].mxu0 }
 0x4e9   : > { %v3093_v53 = vmul.f32 %v5240_v52, %v7583_v58  ;;  %v2897_v7 = vpop.f32.mrb[9].mxu0 }
 0x4eb   : > { %v3130_v56 = vadd.f32 %v7588_v62, %v3093_v53 }
 0x4ec   : > { %v5243_v10 = vpop.f32.mrb[10].mxu0 }
 0x4ed   : > { %v7640_v57 = vmax.f32 %v3130_v56, 0.0  ;;  %v2906_v60 = vpop.f32.mrb[11].mxu0 }
 0x4ee   : > { %v3094_v61 = vmul.f32 %v7583_v58, %v2906_v60 }
 0x4ef   : > { %3310 = vrot.lane.b32.xlu0 %v7640_v57, %s5479_s15  ;;  %3244 = vst.msk [vmem:[#allocation3 + $0x61] sm:$0xff] %vm354_vm1, %v7640_v57 }
 0x4f0   : > { %v3131_v33 = vadd.f32 %v7588_v62, %v3094_v61 }
 0x4f2   : > { %v7648_v1 = vmax.f32 %v3131_v33, 0.0 }
 0x4f4   : > { %3312 = vrot.lane.b32.xlu1 %v7648_v1, %s5479_s15  ;;  %3245 = vst.msk [vmem:[#allocation3 + $0x69] sm:$0xff] %vm354_vm1, %v7648_v1 }
 0x4f5   : > { %v5246_v6 = vpop.f32.mrb[12].mxu0 }
 0x4f6   : > { %v3096_v11 = vmul.f32 %v5246_v6, %v7583_v58  ;;  %v2915_v14 = vpop.f32.mrb[13].mxu0 }
 0x4f7   : > { %v3095_v15 = vmul.f32 %v7583_v58, %v2915_v14 }
 0x4f8   : > { %v3133_v18 = vadd.f32 %v7588_v62, %v3096_v11 }
 0x4f9   : > { %v3132_v19 = vadd.f32 %v7588_v62, %v3095_v15 }
 0x4fa   : > { %v7658_v22 = vmax.f32 %v3133_v18, 0.0 }
 0x4fb   : > { %v7660_v23 = vmax.f32 %v3132_v19, 0.0 }
 0x4fc   : > { %3316 = vrot.lane.b32.xlu1 %v7658_v22, %s5479_s15  ;;  %3247 = vst.msk [vmem:[#allocation3 + $0x81] sm:$0xff] %vm354_vm1, %v7658_v22 }
 0x4fd   : > { %3314 = vrot.lane.b32.xlu0 %v7660_v23, %s5479_s15  ;;  %3246 = vst.msk [vmem:[#allocation3 + $0x79] sm:$0xff] %vm354_vm1, %v7660_v23 }
 0x500   : > { %v5249_v24 = vpop.f32.mrb[14].mxu0 }
 0x501   : > { %v3097_v25 = vmul.f32 %v5249_v24, %v7583_v58  ;;  %v2925_v27 = vpop.f32.mrb[15].mxu0 }
 0x503   : > { %v3134_v28 = vadd.f32 %v7588_v62, %v3097_v25 }
 0x504   : > { %v5252_v63 = vpop.f32.mrb[16].mxu0 }
 0x505   : > { %v7672_v31 = vmax.f32 %v3134_v28, 0.0  ;;  %v2934_v36 = vpop.f32.mrb[17].mxu0 }
 0x506   : > { %v3098_v37 = vmul.f32 %v7583_v58, %v2934_v36 }
 0x507   : > { %3318 = vrot.lane.b32.xlu0 %v7672_v31, %s5479_s15  ;;  %3248 = vst.msk [vmem:[#allocation3 + $0x91] sm:$0xff] %vm354_vm1, %v7672_v31 }
 0x508   : > { %v3135_v40 = vadd.f32 %v7588_v62, %v3098_v37 }
 0x50a   : > { %v7680_v2 = vmax.f32 %v3135_v40, 0.0 }
 0x50c   : > { %3320 = vrot.lane.b32.xlu1 %v7680_v2, %s5479_s15  ;;  %3249 = vst.msk [vmem:[#allocation3 + $0x99] sm:$0xff] %vm354_vm1, %v7680_v2 }
 0x50d   : > { %v5255_v42 = vpop.f32.mrb[18].mxu0 }
 0x50e   : > { %v3100_v43 = vmul.f32 %v5255_v42, %v7583_v58  ;;  %v2943_v46 = vpop.f32.mrb[19].mxu0 }
 0x50f   : > { %v3099_v47 = vmul.f32 %v7583_v58, %v2943_v46 }
 0x510   : > { %v3137_v50 = vadd.f32 %v7588_v62, %v3100_v43 }
 0x511   : > { %v3136_v51 = vadd.f32 %v7588_v62, %v3099_v47 }
 0x512   : > { %v7690_v54 = vmax.f32 %v3137_v50, 0.0 }
 0x513   : > { %v7692_v55 = vmax.f32 %v3136_v51, 0.0 }
 0x514   : > { %3324 = vrot.lane.b32.xlu1 %v7690_v54, %s5479_s15  ;;  %3251 = vst.msk [vmem:[#allocation3 + $0xb1] sm:$0xff] %vm354_vm1, %v7690_v54 }
 0x515   : > { %3322 = vrot.lane.b32.xlu0 %v7692_v55, %s5479_s15  ;;  %3250 = vst.msk [vmem:[#allocation3 + $0xa9] sm:$0xff] %vm354_vm1, %v7692_v55 }
 0x518   : > { %v5258_v59 = vpop.f32.mrb[20].mxu0 }
 0x519   : > { %v3101_v32 = vmul.f32 %v5258_v59, %v7583_v58  ;;  %v2953_v3 = vpop.f32.mrb[21].mxu0 }
 0x51b   : > { %v3138_v5 = vadd.f32 %v7588_v62, %v3101_v32 }
 0x51c   : > { %v5261_v26 = vpop.f32.mrb[22].mxu0 }
 0x51d   : > { %v7704_v29 = vmax.f32 %v3138_v5, 0.0  ;;  %v2962_v9 = vpop.f32.mrb[23].mxu0 }
 0x51e   : > { %v3102_v30 = vmul.f32 %v7583_v58, %v2962_v9 }
 0x51f   : > { %3326 = vrot.lane.b32.xlu0 %v7704_v29, %s5479_s15  ;;  %3252 = vst.msk [vmem:[#allocation3 + $0xc1] sm:$0xff] %vm354_vm1, %v7704_v29 }
 0x520   : > { %v3139_v34 = vadd.f32 %v7588_v62, %v3102_v30 }
 0x522   : > { %v7712_v35 = vmax.f32 %v3139_v34, 0.0 }
 0x524   : > { %3328 = vrot.lane.b32.xlu1 %v7712_v35, %s5479_s15  ;;  %3253 = vst.msk [vmem:[#allocation3 + $0xc9] sm:$0xff] %vm354_vm1, %v7712_v35 }
 0x525   : > { %v5264_v12 = vpop.f32.mrb[24].mxu0 }
 0x526   : > { %v3104_v38 = vmul.f32 %v5264_v12, %v7583_v58  ;;  %v2971_v39 = vpop.f32.mrb[25].mxu0 }
 0x527   : > { %v3103_v4 = vmul.f32 %v7583_v58, %v2971_v39 }
 0x528   : > { %v3141_v17 = vadd.f32 %v7588_v62, %v3104_v38 }
 0x529   : > { %v3140_v41 = vadd.f32 %v7588_v62, %v3103_v4 }
 0x52a   : > { %v7722_v44 = vmax.f32 %v3141_v17, 0.0 }
 0x52b   : > { %v7724_v45 = vmax.f32 %v3140_v41, 0.0 }
 0x52c   : > { %3332 = vrot.lane.b32.xlu1 %v7722_v44, %s5479_s15  ;;  %3255 = vst.msk [vmem:[#allocation3 + $0xe1] sm:$0xff] %vm354_vm1, %v7722_v44 }
 0x52d   : > { %3330 = vrot.lane.b32.xlu0 %v7724_v45, %s5479_s15  ;;  %3254 = vst.msk [vmem:[#allocation3 + $0xd9] sm:$0xff] %vm354_vm1, %v7724_v45 }
 0x530   : > { %v5267_v48 = vpop.f32.mrb[26].mxu0 }
 0x531   : > { %v3105_v20 = vmul.f32 %v5267_v48, %v7583_v58  ;;  %v2981_v52 = vpop.f32.mrb[27].mxu0 }
 0x533   : > { %v3142_v53 = vadd.f32 %v7588_v62, %v3105_v20 }
 0x534   : > { %v5270_v7 = vpop.f32.mrb[28].mxu0 }
 0x535   : > { %v7736_v56 = vmax.f32 %v3142_v53, 0.0  ;;  %v2990_v10 = vpop.f32.mrb[29].mxu0 }
 0x536   : > { %v3106_v60 = vmul.f32 %v7583_v58, %v2990_v10 }
 0x537   : > { %3334 = vrot.lane.b32.xlu0 %v7736_v56, %s5479_s15  ;;  %3256 = vst.msk [vmem:[#allocation3 + $0xf1] sm:$0xff] %vm354_vm1, %v7736_v56 }
 0x538   : > { %v3143_v61 = vadd.f32 %v7588_v62, %v3106_v60 }
 0x53a   : > { %v7744_v33 = vmax.f32 %v3143_v61, 0.0 }
 0x53c   : > { %3336 = vrot.lane.b32.xlu1 %v7744_v33, %s5479_s15  ;;  %3257 = vst.msk [vmem:[#allocation3 + $0xf9] sm:$0xff] %vm354_vm1, %v7744_v33 }
 0x53d   : > { %v5273_v6 = vpop.f32.mrb[30].mxu0 }
 0x53e   : > { %v3108_v11 = vmul.f32 %v5273_v6, %v7583_v58  ;;  %v2999_v14 = vpop.f32.mrb[31].mxu0  ;;  %v3301_v15 = vpop.permute.xlu1 %3300 }
 0x53f   : > { %v3107_v18 = vmul.f32 %v7583_v58, %v2999_v14  ;;  %3389 = vst.msk [vmem:[#allocation3 + $0x20] sm:$0xff] %vm1564_vm13, %v3301_v15  ;;  %v3299_v24 = vpop.permute.xlu0 %3298 }
 0x540   : > { %v3145_v19 = vadd.f32 %v7588_v62, %v3108_v11  ;;  %3388 = vst.msk [vmem:[#allocation3 + $0x18] sm:$0xff] %vm1564_vm13, %v3299_v24 }
 0x541   : > { %v3144_v25 = vadd.f32 %v7588_v62, %v3107_v18 }
 0x542   : > { %v7756_v27 = vmax.f32 %v3145_v19, 0.0 }
 0x543   : > { %v7758_v28 = vmax.f32 %v3144_v25, 0.0 }
 0x544   : > { %3259 = vst.msk [vmem:[#allocation3 + $0x111] sm:$0xff] %vm354_vm1, %v7756_v27  ;;  %3340 = vrot.lane.b32.xlu1 %v7756_v27, %s5479_s15 }
 0x545   : > { %3258 = vst.msk [vmem:[#allocation3 + $0x109] sm:$0xff] %vm354_vm1, %v7758_v28  ;;  %3338 = vrot.lane.b32.xlu0 %v7758_v28, %s5479_s15 }
 0x548   : > { %v5276_v63 = vpop.f32.mrb[32].mxu0 }
 0x549   : > { %v3109_v36 = vmul.f32 %v5276_v63, %v7583_v58  ;;  %v3303_v37 = vpop.permute.xlu0 %3302  ;;  %v3009_v40 = vpop.f32.mrb[33].mxu0 }
 0x54a   : > { %3390 = vst.msk [vmem:[#allocation3 + $0x30] sm:$0xff] %vm1564_vm13, %v3303_v37 }
 0x54b   : > { %v3146_v42 = vadd.f32 %v7588_v62, %v3109_v36 }
 0x54c   : > { %v5279_v43 = vpop.f32.mrb[34].mxu0 }
 0x54d   : > { %v7771_v46 = vmax.f32 %v3146_v42, 0.0  ;;  %v3018_v47 = vpop.f32.mrb[35].mxu0 }
 0x54e   : > { %v3110_v50 = vmul.f32 %v7583_v58, %v3018_v47  ;;  %v3305_v51 = vpop.permute.xlu1 %3304 }
 0x54f   : > { %3260 = vst.msk [vmem:[#allocation3 + $0x121] sm:$0xff] %vm354_vm1, %v7771_v46  ;;  %3342 = vrot.lane.b32.xlu0 %v7771_v46, %s5479_s15 }
 0x550   : > { %3391 = vst.msk [vmem:[#allocation3 + $0x38] sm:$0xff] %vm1564_vm13, %v3305_v51  ;;  %v3147_v59 = vadd.f32 %v7588_v62, %v3110_v50 }
 0x552   : > { %v7780_v32 = vmax.f32 %v3147_v59, 0.0 }
 0x554   : > { %3261 = vst.msk [vmem:[#allocation3 + $0x129] sm:$0xff] %vm354_vm1, %v7780_v32  ;;  %3344 = vrot.lane.b32.xlu1 %v7780_v32, %s5479_s15 }
 0x555   : > { %v5282_v3 = vpop.f32.mrb[36].mxu0 }
 0x556   : > { %v3112_v5 = vmul.f32 %v5282_v3, %v7583_v58  ;;  %v3027_v26 = vpop.f32.mrb[37].mxu0  ;;  %v3309_v9 = vpop.permute.xlu1 %3308 }
 0x557   : > { %v3111_v30 = vmul.f32 %v7583_v58, %v3027_v26  ;;  %3393 = vst.msk [vmem:[#allocation3 + $0x50] sm:$0xff] %vm1564_vm13, %v3309_v9  ;;  %v3307_v12 = vpop.permute.xlu0 %3306 }
 0x558   : > { %v3149_v34 = vadd.f32 %v7588_v62, %v3112_v5  ;;  %3392 = vst.msk [vmem:[#allocation3 + $0x48] sm:$0xff] %vm1564_vm13, %v3307_v12  ;;  %v4334_v12 = vld [vmem:[%s8722_s4] sm:$0xff] }
 0x559   : > { %v3148_v38 = vadd.f32 %v7588_v62, %v3111_v30 }
 0x55a   : > { %v7792_v39 = vmax.f32 %v3149_v34, 0.0 }
 0x55b   : > { %v7794_v4 = vmax.f32 %v3148_v38, 0.0  ;;  %v4335_v38 = vld [vmem:[%s8722_s4 + $0x8] sm:$0xff] }
 0x55c   : > { %3263 = vst.msk [vmem:[#allocation3 + $0x141] sm:$0xff] %vm354_vm1, %v7792_v39  ;;  %3348 = vrot.lane.b32.xlu1 %v7792_v39, %s5479_s15 }
 0x55d   : > { %3262 = vst.msk [vmem:[#allocation3 + $0x139] sm:$0xff] %vm354_vm1, %v7794_v4  ;;  %3346 = vrot.lane.b32.xlu0 %v7794_v4, %s5479_s15 }
 0x560   : > { %v5285_v17 = vpop.f32.mrb[38].mxu0 }
 0x561   : > { %v3113_v41 = vmul.f32 %v5285_v17, %v7583_v58  ;;  %v3311_v48 = vpop.permute.xlu0 %3310  ;;  %v3037_v20 = vpop.f32.mrb[39].mxu0 }
 0x562   : > { %3394 = vst.msk [vmem:[#allocation3 + $0x60] sm:$0xff] %vm1564_vm13, %v3311_v48  ;;  %v4337_v48 = vld [vmem:[%s8722_s4 + $0x18] sm:$0xff] }
 0x563   : > { %v3150_v52 = vadd.f32 %v7588_v62, %v3113_v41  ;;  %v5396_v41 = vpack.c.bf16 %v4335_v38, %v4334_v12 }
 0x564   : > { %v5288_v53 = vpop.f32.mrb[40].mxu0 }
 0x565   : > { %v7807_v7 = vmax.f32 %v3150_v52, 0.0  ;;  %v3046_v10 = vpop.f32.mrb[41].mxu0  ;;  %5397 = vmatprep.subr.bf16.mxu1 %v5396_v41  ;;  %v4338_v52 = vld [vmem:[%s8722_s4 + $0x20] sm:$0xf] }
 0x566   : > { %v3114_v60 = vmul.f32 %v7583_v58, %v3046_v10  ;;  %v3313_v61 = vpop.permute.xlu1 %3312  ;;  %5399 = vmatpush3.bf16.msra.mxu1 %v5396_v41 }
 0x567   : > { %3264 = vst.msk [vmem:[#allocation3 + $0x151] sm:$0xff] %vm354_vm1, %v7807_v7  ;;  %3350 = vrot.lane.b32.xlu0 %v7807_v7, %s5479_s15 }
 0x568   : > { %3395 = vst.msk [vmem:[#allocation3 + $0x68] sm:$0xff] %vm1564_vm13, %v3313_v61  ;;  %v3151_v6 = vadd.f32 %v7588_v62, %v3114_v60 }
 0x56a   : > { %v7816_v11 = vmax.f32 %v3151_v6, 0.0 }
 0x56c   : > { %3265 = vst.msk [vmem:[#allocation3 + $0x159] sm:$0xff] %vm354_vm1, %v7816_v11  ;;  %3352 = vrot.lane.b32.xlu1 %v7816_v11, %s5479_s15 }
 0x56d   : > { %v5291_v14 = vpop.f32.mrb[42].mxu0 }
 0x56e   : > { %v3116_v15 = vmul.f32 %v5291_v14, %v7583_v58  ;;  %v3317_v18 = vpop.permute.xlu1 %3316  ;;  %v3055_v19 = vpop.f32.mrb[43].mxu0 }
 0x56f   : > { %3397 = vst.msk [vmem:[#allocation3 + $0x80] sm:$0xff] %vm1564_vm13, %v3317_v18  ;;  %v3115_v24 = vmul.f32 %v7583_v58, %v3055_v19  ;;  %v3315_v25 = vpop.permute.xlu0 %3314 }
 0x570   : > { %v3153_v63 = vadd.f32 %v7588_v62, %v3116_v15  ;;  %3396 = vst.msk [vmem:[#allocation3 + $0x78] sm:$0xff] %vm1564_vm13, %v3315_v25 }
 0x571   : > { %v3152_v36 = vadd.f32 %v7588_v62, %v3115_v24  ;;  %v7828_v37 = vpop.f32.mrb[44].mxu0 }
 0x572   : > { %v7830_v40 = vmax.f32 %v3153_v63, 0.0  ;;  %v3065_v42 = vpop.f32.mrb[45].mxu0 }
 0x573   : > { %v7832_v43 = vmax.f32 %v3152_v36, 0.0 }
 0x574   : > { %3267 = vst.msk [vmem:[#allocation3 + $0x171] sm:$0xff] %vm354_vm1, %v7830_v40  ;;  %3356 = vrot.lane.b32.xlu1 %v7830_v40, %s5479_s15 }
 0x575   : > { %3266 = vst.msk [vmem:[#allocation3 + $0x169] sm:$0xff] %vm354_vm1, %v7832_v43  ;;  %3354 = vrot.lane.b32.xlu0 %v7832_v43, %s5479_s15  ;;  %v5297_v58 = vpop.f32.mrb[46].mxu0 }
 0x576   : > { %v7842_v62 = vpop.f32.mrb[47].mxu0 }
 0x578   : > { %3420 = vrot.lane.b32.xlu1 %v7594_v8, %s5471_s28 }
 0x579   : > { %v3319_v47 = vpop.permute.xlu0 %3318  ;;  %3418 = vrot.lane.b32.xlu0 %v7596_v0, %s5471_s28 }
 0x57a   : > { %3398 = vst.msk [vmem:[#allocation3 + $0x90] sm:$0xff] %vm1564_vm13, %v3319_v47 }
 0x57c   : > { %3424 = vrot.lane.b32.xlu1 %v7616_v16, %s5471_s28 }
 0x57d   : > { %3422 = vrot.lane.b32.xlu0 %v7608_v13, %s5471_s28 }
 0x57e   : > { %v3321_v50 = vpop.permute.xlu1 %3320 }
 0x57f   : > { %3399 = vst.msk [vmem:[#allocation3 + $0x98] sm:$0xff] %vm1564_vm13, %v3321_v50 }
 0x580   : > { %3428 = vrot.lane.b32.xlu1 %v7626_v21, %s5471_s28 }
 0x581   : > { %3426 = vrot.lane.b32.xlu0 %v7628_v49, %s5471_s28 }
 0x584   : > { %3432 = vrot.lane.b32.xlu1 %v7648_v1, %s5471_s28 }
 0x585   : > { %3430 = vrot.lane.b32.xlu0 %v7640_v57, %s5471_s28 }
 0x586   : > { %v3325_v51 = vpop.permute.xlu1 %3324 }
 0x587   : > { %3401 = vst.msk [vmem:[#allocation3 + $0xb0] sm:$0xff] %vm1564_vm13, %v3325_v51  ;;  %v3323_v59 = vpop.permute.xlu0 %3322 }
 0x588   : > { %3400 = vst.msk [vmem:[#allocation3 + $0xa8] sm:$0xff] %vm1564_vm13, %v3323_v59  ;;  %3436 = vrot.lane.b32.xlu1 %v7658_v22, %s5471_s28 }
 0x589   : > { %3434 = vrot.lane.b32.xlu0 %v7660_v23, %s5471_s28 }
 0x58c   : > { %3440 = vrot.lane.b32.xlu1 %v7680_v2, %s5471_s28 }
 0x58d   : > { %3438 = vrot.lane.b32.xlu0 %v7672_v31, %s5471_s28 }
 0x590   : > { %3444 = vrot.lane.b32.xlu1 %v7690_v54, %s5471_s28 }
 0x591   : > { %v3327_v3 = vpop.permute.xlu0 %3326  ;;  %3442 = vrot.lane.b32.xlu0 %v7692_v55, %s5471_s28 }
 0x592   : > { %3402 = vst.msk [vmem:[#allocation3 + $0xc0] sm:$0xff] %vm1564_vm13, %v3327_v3 }
 0x594   : > { %3448 = vrot.lane.b32.xlu1 %v7712_v35, %s5471_s28 }
 0x595   : > { %3446 = vrot.lane.b32.xlu0 %v7704_v29, %s5471_s28 }
 0x596   : > { %v3329_v5 = vpop.permute.xlu1 %3328 }
 0x597   : > { %3403 = vst.msk [vmem:[#allocation3 + $0xc8] sm:$0xff] %vm1564_vm13, %v3329_v5 }
 0x598   : > { %3452 = vrot.lane.b32.xlu1 %v7722_v44, %s5471_s28 }
 0x599   : > { %3450 = vrot.lane.b32.xlu0 %v7724_v45, %s5471_s28 }
 0x59c   : > { %3456 = vrot.lane.b32.xlu1 %v7744_v33, %s5471_s28 }
 0x59d   : > { %3454 = vrot.lane.b32.xlu0 %v7736_v56, %s5471_s28 }
 0x59e   : > { %v3333_v26 = vpop.permute.xlu1 %3332 }
 0x59f   : > { %3405 = vst.msk [vmem:[#allocation3 + $0xe0] sm:$0xff] %vm1564_vm13, %v3333_v26  ;;  %v3331_v9 = vpop.permute.xlu0 %3330 }
 0x5a0   : > { %3404 = vst.msk [vmem:[#allocation3 + $0xd8] sm:$0xff] %vm1564_vm13, %v3331_v9  ;;  %3460 = vrot.lane.b32.xlu1 %v7756_v27, %s5471_s28 }
 0x5a1   : > { %3458 = vrot.lane.b32.xlu0 %v7758_v28, %s5471_s28 }
 0x5a4   : > { %3464 = vrot.lane.b32.xlu1 %v7780_v32, %s5471_s28 }
 0x5a5   : > { %3462 = vrot.lane.b32.xlu0 %v7771_v46, %s5471_s28 }
 0x5a8   : > { %3541 = vrot.lane.b32.xlu1 %v7596_v0, %s5480_s16 }
 0x5a9   : > { %v3335_v30 = vpop.permute.xlu0 %3334  ;;  %3466 = vrot.lane.b32.xlu0 %v7794_v4, %s5471_s28 }
 0x5aa   : > { %3406 = vst.msk [vmem:[#allocation3 + $0xf0] sm:$0xff] %vm1564_vm13, %v3335_v30 }
 0x5ac   : > { %3669 = vrot.lane.b32.xlu1 %v7596_v0, %s5472_s29 }
 0x5ad   : > { %3543 = vrot.lane.b32.xlu0 %v7594_v8, %s5480_s16 }
 0x5ae   : > { %v3337_v34 = vpop.permute.xlu1 %3336 }
 0x5af   : > { %3407 = vst.msk [vmem:[#allocation3 + $0xf8] sm:$0xff] %vm1564_vm13, %v3337_v34 }
 0x5b0   : > { %3797 = vrot.lane.b32.xlu1 %v7596_v0, %s5481_s17 }
 0x5b1   : > { %3671 = vrot.lane.b32.xlu0 %v7594_v8, %s5472_s29 }
 0x5b4   : > { %3925 = vrot.lane.b32.xlu1 %v7608_v13, %s5473_s30 }
 0x5b5   : > { %3799 = vrot.lane.b32.xlu0 %v7594_v8, %s5481_s17  ;;  %v4336_v8 = vld [vmem:[%s8722_s4 + $0x10] sm:$0xff] }
 0x5b6   : > { %v3341_v17 = vpop.permute.xlu1 %3340  ;;  %v5400_v20 = vpack.c.bf16 %v4337_v48, %v4336_v8 }
 0x5b7   : > { %3409 = vst.msk [vmem:[#allocation3 + $0x110] sm:$0xff] %vm1564_vm13, %v3341_v17  ;;  %v3339_v0 = vpop.permute.xlu0 %3338 }
 0x5b8   : > { %3408 = vst.msk [vmem:[#allocation3 + $0x108] sm:$0xff] %vm1564_vm13, %v3339_v0  ;;  %4045 = vrot.lane.b32.xlu1 %v7608_v13, %s5482_s18  ;;  %5401 = vmatprep.subr.bf16.mxu1 %v5400_v20 }
 0x5b9   : > { %3927 = vrot.lane.b32.xlu0 %v7616_v16, %s5473_s30  ;;  %5403 = vmatpush3.bf16.msra.mxu1 %v5400_v20 }
 0x5ba   : > { %5306 = vmatprep.subr.msk.mxu1 %vm4483_vm0, %v4338_v52 }
 0x5bc   : > { %3545 = vrot.lane.b32.xlu1 %v7608_v13, %s5480_s16 }
 0x5bd   : > { %4047 = vrot.lane.b32.xlu0 %v7616_v16, %s5482_s18  ;;  %5307 = vmatpush3.msk.msra.mxu1 %vm4483_vm0, %v4338_v52  ;;  %vm8733_vm0 = vmmov %vm8730_vm11 }
 0x5c0   : > { %4165 = vrot.lane.b32.xlu1 %v7608_v13, %s5474_s7 }
 0x5c1   : > { %v3343_v53 = vpop.permute.xlu0 %3342  ;;  %3547 = vrot.lane.b32.xlu0 %v7616_v16, %s5480_s16 }
 0x5c2   : > { %3410 = vst.msk [vmem:[#allocation3 + $0x120] sm:$0xff] %vm1564_vm13, %v3343_v53 }
 0x5c4   : > { %3673 = vrot.lane.b32.xlu1 %v7608_v13, %s5472_s29 }
 0x5c5   : > { %4167 = vrot.lane.b32.xlu0 %v7616_v16, %s5474_s7 }
 0x5c6   : > { %v3345_v10 = vpop.permute.xlu1 %3344 }
 0x5c7   : > { %3411 = vst.msk [vmem:[#allocation3 + $0x128] sm:$0xff] %vm1564_vm13, %v3345_v10 }
 0x5c8   : > { %3801 = vrot.lane.b32.xlu1 %v7608_v13, %s5481_s17 }
 0x5c9   : > { %3675 = vrot.lane.b32.xlu0 %v7616_v16, %s5472_s29 }
 0x5cc   : > { %3929 = vrot.lane.b32.xlu1 %v7628_v49, %s5473_s30 }
 0x5cd   : > { %3803 = vrot.lane.b32.xlu0 %v7616_v16, %s5481_s17 }
 0x5ce   : > { %v3349_v60 = vpop.permute.xlu1 %3348 }
 0x5cf   : > { %3413 = vst.msk [vmem:[#allocation3 + $0x140] sm:$0xff] %vm1564_vm13, %v3349_v60  ;;  %v3347_v61 = vpop.permute.xlu0 %3346 }
 0x5d0   : > { %3412 = vst.msk [vmem:[#allocation3 + $0x138] sm:$0xff] %vm1564_vm13, %v3347_v61  ;;  %4049 = vrot.lane.b32.xlu1 %v7628_v49, %s5482_s18 }
 0x5d1   : > { %3931 = vrot.lane.b32.xlu0 %v7626_v21, %s5473_s30 }
 0x5d4   : > { %4169 = vrot.lane.b32.xlu1 %v7628_v49, %s5474_s7 }
 0x5d5   : > { %4051 = vrot.lane.b32.xlu0 %v7626_v21, %s5482_s18 }
 0x5d8   : > { %3549 = vrot.lane.b32.xlu1 %v7628_v49, %s5480_s16 }
 0x5d9   : > { %v3351_v13 = vpop.permute.xlu0 %3350  ;;  %4171 = vrot.lane.b32.xlu0 %v7626_v21, %s5474_s7 }
 0x5da   : > { %3414 = vst.msk [vmem:[#allocation3 + $0x150] sm:$0xff] %vm1564_vm13, %v3351_v13 }
 0x5dc   : > { %3677 = vrot.lane.b32.xlu1 %v7628_v49, %s5472_s29 }
 0x5dd   : > { %3551 = vrot.lane.b32.xlu0 %v7626_v21, %s5480_s16 }
 0x5de   : > { %v3353_v16 = vpop.permute.xlu1 %3352 }
 0x5df   : > { %3415 = vst.msk [vmem:[#allocation3 + $0x158] sm:$0xff] %vm1564_vm13, %v3353_v16 }
 0x5e0   : > { %3805 = vrot.lane.b32.xlu1 %v7628_v49, %s5481_s17 }
 0x5e1   : > { %3679 = vrot.lane.b32.xlu0 %v7626_v21, %s5472_s29 }
 0x5e4   : > { %3933 = vrot.lane.b32.xlu1 %v7640_v57, %s5473_s30 }
 0x5e5   : > { %3807 = vrot.lane.b32.xlu0 %v7626_v21, %s5481_s17 }
 0x5e6   : > { %v3357_v6 = vpop.permute.xlu1 %3356 }
 0x5e7   : > { %3417 = vst.msk [vmem:[#allocation3 + $0x170] sm:$0xff] %vm1564_vm13, %v3357_v6  ;;  %v3355_v14 = vpop.permute.xlu0 %3354 }
 0x5e8   : > { %3416 = vst.msk [vmem:[#allocation3 + $0x168] sm:$0xff] %vm1564_vm13, %v3355_v14  ;;  %4053 = vrot.lane.b32.xlu1 %v7640_v57, %s5482_s18  ;;  %vm8728_vm13 = vcmask 261344  }
 0x5e9   : > { %3935 = vrot.lane.b32.xlu0 %v7648_v1, %s5473_s30  ;;  %vm8729_vm9 = vmmov %vm8728_vm13 }
 0x5ea   : > { %v3421_v49 = vpop.permute.xlu1 %3420  ;;  %vm8731_vm12 = vmmov %vm8729_vm9 }
 0x5eb   : > { %3510 = vst.msk [vmem:[#allocation3 + $0x1f] sm:$0xff] %vm505_vm2, %v3421_v49  ;;  %v3419_v15 = vpop.permute.xlu0 %3418  ;;  %vm8732_vm8 = vmmov %vm8729_vm9 }
 0x5ec   : > { %3509 = vst.msk [vmem:[#allocation3 + $0x17] sm:$0xfe] %vm3508_vm6, %v3419_v15  ;;  %3553 = vrot.lane.b32.xlu1 %v7640_v57, %s5480_s16 }
 0x5ed   : > { %4055 = vrot.lane.b32.xlu0 %v7648_v1, %s5482_s18 }
 0x5ee   : > { %v3425_v21 = vpop.permute.xlu1 %3424 }
 0x5ef   : > { %3512 = vst.msk [vmem:[#allocation3 + $0x37] sm:$0xff] %vm505_vm2, %v3425_v21  ;;  %v3423_v18 = vpop.permute.xlu0 %3422 }
 0x5f0   : > { %3511 = vst.msk [vmem:[#allocation3 + $0x2f] sm:$0xfe] %vm3508_vm6, %v3423_v18  ;;  %4173 = vrot.lane.b32.xlu1 %v7640_v57, %s5474_s7 }
 0x5f1   : > { %3555 = vrot.lane.b32.xlu0 %v7648_v1, %s5480_s16 }
 0x5f2   : > { %v3429_v19 = vpop.permute.xlu1 %3428 }
 0x5f3   : > { %3514 = vst.msk [vmem:[#allocation3 + $0x4f] sm:$0xff] %vm505_vm2, %v3429_v19  ;;  %v3427_v24 = vpop.permute.xlu0 %3426 }
 0x5f4   : > { %3513 = vst.msk [vmem:[#allocation3 + $0x47] sm:$0xfe] %vm3508_vm6, %v3427_v24  ;;  %3681 = vrot.lane.b32.xlu1 %v7640_v57, %s5472_s29 }
 0x5f5   : > { %4175 = vrot.lane.b32.xlu0 %v7648_v1, %s5474_s7 }
 0x5f6   : > { %v3433_v25 = vpop.permute.xlu1 %3432 }
 0x5f7   : > { %3516 = vst.msk [vmem:[#allocation3 + $0x67] sm:$0xff] %vm505_vm2, %v3433_v25  ;;  %v3431_v63 = vpop.permute.xlu0 %3430 }
 0x5f8   : > { %3515 = vst.msk [vmem:[#allocation3 + $0x5f] sm:$0xfe] %vm3508_vm6, %v3431_v63  ;;  %3809 = vrot.lane.b32.xlu1 %v7640_v57, %s5481_s17 }
 0x5f9   : > { %3683 = vrot.lane.b32.xlu0 %v7648_v1, %s5472_s29 }
 0x5fa   : > { %v3437_v36 = vpop.permute.xlu1 %3436 }
 0x5fb   : > { %3518 = vst.msk [vmem:[#allocation3 + $0x7f] sm:$0xff] %vm505_vm2, %v3437_v36  ;;  %v3435_v42 = vpop.permute.xlu0 %3434 }
 0x5fc   : > { %3517 = vst.msk [vmem:[#allocation3 + $0x77] sm:$0xfe] %vm3508_vm6, %v3435_v42  ;;  %3937 = vrot.lane.b32.xlu1 %v7660_v23, %s5473_s30 }
 0x5fd   : > { %3811 = vrot.lane.b32.xlu0 %v7648_v1, %s5481_s17 }
 0x5fe   : > { %v3441_v58 = vpop.permute.xlu1 %3440 }
 0x5ff   : > { %3520 = vst.msk [vmem:[#allocation3 + $0x97] sm:$0xff] %vm505_vm2, %v3441_v58  ;;  %v3439_v47 = vpop.permute.xlu0 %3438 }
 0x600   : > { %3519 = vst.msk [vmem:[#allocation3 + $0x8f] sm:$0xfe] %vm3508_vm6, %v3439_v47  ;;  %4057 = vrot.lane.b32.xlu1 %v7660_v23, %s5482_s18 }
 0x601   : > { %3939 = vrot.lane.b32.xlu0 %v7658_v22, %s5473_s30 }
 0x602   : > { %v3445_v57 = vpop.permute.xlu1 %3444 }
 0x603   : > { %3522 = vst.msk [vmem:[#allocation3 + $0xaf] sm:$0xff] %vm505_vm2, %v3445_v57  ;;  %v3443_v50 = vpop.permute.xlu0 %3442 }
 0x604   : > { %3521 = vst.msk [vmem:[#allocation3 + $0xa7] sm:$0xfe] %vm3508_vm6, %v3443_v50  ;;  %4177 = vrot.lane.b32.xlu1 %v7660_v23, %s5474_s7 }
 0x605   : > { %4059 = vrot.lane.b32.xlu0 %v7658_v22, %s5482_s18 }
 0x606   : > { %v3449_v1 = vpop.permute.xlu1 %3448 }
 0x607   : > { %3524 = vst.msk [vmem:[#allocation3 + $0xc7] sm:$0xff] %vm505_vm2, %v3449_v1  ;;  %v3447_v51 = vpop.permute.xlu0 %3446 }
 0x608   : > { %3523 = vst.msk [vmem:[#allocation3 + $0xbf] sm:$0xfe] %vm3508_vm6, %v3447_v51  ;;  %3557 = vrot.lane.b32.xlu1 %v7660_v23, %s5480_s16 }
 0x609   : > { %4179 = vrot.lane.b32.xlu0 %v7658_v22, %s5474_s7 }
 0x60a   : > { %v3453_v59 = vpop.permute.xlu1 %3452 }
 0x60b   : > { %3526 = vst.msk [vmem:[#allocation3 + $0xdf] sm:$0xff] %vm505_vm2, %v3453_v59  ;;  %v3451_v3 = vpop.permute.xlu0 %3450 }
 0x60c   : > { %3525 = vst.msk [vmem:[#allocation3 + $0xd7] sm:$0xfe] %vm3508_vm6, %v3451_v3  ;;  %3685 = vrot.lane.b32.xlu1 %v7660_v23, %s5472_s29 }
 0x60d   : > { %3559 = vrot.lane.b32.xlu0 %v7658_v22, %s5480_s16 }
 0x60e   : > { %v3457_v5 = vpop.permute.xlu1 %3456 }
 0x60f   : > { %3528 = vst.msk [vmem:[#allocation3 + $0xf7] sm:$0xff] %vm505_vm2, %v3457_v5  ;;  %v3455_v26 = vpop.permute.xlu0 %3454 }
 0x610   : > { %3527 = vst.msk [vmem:[#allocation3 + $0xef] sm:$0xfe] %vm3508_vm6, %v3455_v26  ;;  %3813 = vrot.lane.b32.xlu1 %v7660_v23, %s5481_s17 }
 0x611   : > { %3687 = vrot.lane.b32.xlu0 %v7658_v22, %s5472_s29 }
 0x612   : > { %v3461_v9 = vpop.permute.xlu1 %3460 }
 0x613   : > { %3530 = vst.msk [vmem:[#allocation3 + $0x10f] sm:$0xff] %vm505_vm2, %v3461_v9  ;;  %v3459_v30 = vpop.permute.xlu0 %3458 }
 0x614   : > { %3529 = vst.msk [vmem:[#allocation3 + $0x107] sm:$0xfe] %vm3508_vm6, %v3459_v30  ;;  %3941 = vrot.lane.b32.xlu1 %v7672_v31, %s5473_s30 }
 0x615   : > { %3815 = vrot.lane.b32.xlu0 %v7658_v22, %s5481_s17 }
 0x616   : > { %v3465_v34 = vpop.permute.xlu1 %3464 }
 0x617   : > { %3532 = vst.msk [vmem:[#allocation3 + $0x127] sm:$0xff] %vm505_vm2, %v3465_v34  ;;  %v3463_v12 = vpop.permute.xlu0 %3462 }
 0x618   : > { %3531 = vst.msk [vmem:[#allocation3 + $0x11f] sm:$0xfe] %vm3508_vm6, %v3463_v12  ;;  %4061 = vrot.lane.b32.xlu1 %v7672_v31, %s5482_s18 }
 0x619   : > { %3943 = vrot.lane.b32.xlu0 %v7680_v2, %s5473_s30 }
 0x61a   : > { %v3542_v23 = vpop.permute.xlu1 %3541 }
 0x61b   : > { %3637 = vst.msk [vmem:[#allocation3 + $0x1] sm:$0xff] %vm1685_vm14, %v3542_v23  ;;  %v3467_v38 = vpop.permute.xlu0 %3466 }
 0x61c   : > { %3533 = vst.msk [vmem:[#allocation3 + $0x137] sm:$0xfe] %vm3508_vm6, %v3467_v38  ;;  %3561 = vrot.lane.b32.xlu1 %v7672_v31, %s5480_s16 }
 0x61d   : > { %4063 = vrot.lane.b32.xlu0 %v7680_v2, %s5482_s18 }
 0x61e   : > { %v3670_v22 = vpop.permute.xlu1 %3669 }
 0x61f   : > { %3765 = vst.msk [vmem:[#allocation3] sm:$0xff] %vm628_vm3, %v3670_v22  ;;  %v3544_v17 = vpop.permute.xlu0 %3543 }
 0x620   : > { %3638 = vst.msk [vmem:[#allocation3 + $0x9] sm:$0xff] %vm1685_vm14, %v3544_v17  ;;  %4181 = vrot.lane.b32.xlu1 %v7672_v31, %s5474_s7 }
 0x621   : > { %3563 = vrot.lane.b32.xlu0 %v7680_v2, %s5480_s16 }
 0x622   : > { %v3798_v41 = vpop.permute.xlu1 %3797 }
 0x623   : > { %3893 = vst.msk [vmem:[#allocation3 - $0x1] sm:$0xfe] %vm1806_vm4, %v3798_v41  ;;  %v3672_v0 = vpop.permute.xlu0 %3671 }
 0x624   : > { %3766 = vst.msk [vmem:[#allocation3 + $0x8] sm:$0xff] %vm628_vm3, %v3672_v0  ;;  %3689 = vrot.lane.b32.xlu1 %v7672_v31, %s5472_s29 }
 0x625   : > { %4183 = vrot.lane.b32.xlu0 %v7680_v2, %s5474_s7 }
 0x626   : > { %v3926_v8 = vpop.permute.xlu1 %3925 }
 0x627   : > { %v3800_v48 = vpop.permute.xlu0 %3799 }
 0x628   : > { %3894 = vst.msk [vmem:[#allocation3 + $0x7] sm:$0xff] %vm1808_vm15, %v3800_v48  ;;  %3817 = vrot.lane.b32.xlu1 %v7672_v31, %s5481_s17 }
 0x629   : > { %4015 = vst.msk [vmem:[#allocation3 + $0x1] sm:$0xff] %vm756_vm5, %v3926_v8  ;;  %3691 = vrot.lane.b32.xlu0 %v7680_v2, %s5472_s29 }
 0x62a   : > { %v4046_v20 = vpop.permute.xlu1 %4045 }
 0x62b   : > { %4135 = vst.msk [vmem:[#allocation3] sm:$0xff] %vm8728_vm13, %v4046_v20  ;;  %v3928_v52 = vpop.permute.xlu0 %3927  ;;  %vm8734_vm13 = vmmov %vm8732_vm8 }
 0x62c   : > { %4016 = vst.msk [vmem:[#allocation3 + $0x9] sm:$0xff] %vm756_vm5, %v3928_v52  ;;  %3945 = vrot.lane.b32.xlu1 %v7692_v55, %s5473_s30 }
 0x62d   : > { %3819 = vrot.lane.b32.xlu0 %v7680_v2, %s5481_s17 }
 0x62e   : > { %v3546_v53 = vpop.permute.xlu1 %3545 }
 0x62f   : > { %3639 = vst.msk [vmem:[#allocation3 + $0x19] sm:$0xff] %vm1685_vm14, %v3546_v53  ;;  %v4048_v31 = vpop.permute.xlu0 %4047 }
 0x630   : > { %4136 = vst.msk [vmem:[#allocation3 + $0x8] sm:$0xff] %vm8729_vm9, %v4048_v31  ;;  %4065 = vrot.lane.b32.xlu1 %v7692_v55, %s5482_s18  ;;  %vm8735_vm9 = vmmov %vm8732_vm8 }
 0x631   : > { %3947 = vrot.lane.b32.xlu0 %v7690_v54, %s5473_s30 }
 0x632   : > { %v4166_v10 = vpop.permute.xlu1 %4165 }
 0x633   : > { %4256 = vst.msk [vmem:[#allocation3 - $0x1] sm:$0xfe] %vm4255_vm10, %v4166_v10  ;;  %v3548_v60 = vpop.permute.xlu0 %3547  ;;  %v4288_v21 = vld [vmem:[#allocation3 + $0x10] sm:$0xff] }
 0x634   : > { %3640 = vst.msk [vmem:[#allocation3 + $0x21] sm:$0xff] %vm1685_vm14, %v3548_v60  ;;  %4185 = vrot.lane.b32.xlu1 %v7692_v55, %s5474_s7 }
 0x635   : > { %4067 = vrot.lane.b32.xlu0 %v7690_v54, %s5482_s18 }
 0x636   : > { %v3674_v2 = vpop.permute.xlu1 %3673 }
 0x637   : > { %3767 = vst.msk [vmem:[#allocation3 + $0x18] sm:$0xff] %vm628_vm3, %v3674_v2  ;;  %v4168_v61 = vpop.permute.xlu0 %4167 }
 0x638   : > { %4257 = vst.msk [vmem:[#allocation3 + $0x7] sm:$0xff] %vm8730_vm11, %v4168_v61  ;;  %3565 = vrot.lane.b32.xlu1 %v7692_v55, %s5480_s16  ;;  %vm8736_vm11 = vmmov %vm8733_vm0 }
 0x639   : > { %4187 = vrot.lane.b32.xlu0 %v7690_v54, %s5474_s7 }
 0x63a   : > { %v3802_v13 = vpop.permute.xlu1 %3801 }
 0x63b   : > { %3895 = vst.msk [vmem:[#allocation3 + $0x17] sm:$0xfe] %vm1806_vm4, %v3802_v13  ;;  %v3676_v16 = vpop.permute.xlu0 %3675 }
 0x63c   : > { %3768 = vst.msk [vmem:[#allocation3 + $0x20] sm:$0xff] %vm628_vm3, %v3676_v16  ;;  %3693 = vrot.lane.b32.xlu1 %v7692_v55, %s5472_s29 }
 0x63d   : > { %3567 = vrot.lane.b32.xlu0 %v7690_v54, %s5480_s16 }
 0x63e   : > { %v3930_v6 = vpop.permute.xlu1 %3929 }
 0x63f   : > { %v3804_v14 = vpop.permute.xlu0 %3803  ;;  %v4286_v49 = vld [vmem:[#allocation3] sm:$0xff]  ;;  %v4287_v15 = vld [vmem:[#allocation3 + $0x8] sm:$0xff] }
 0x640   : > { %3896 = vst.msk [vmem:[#allocation3 + $0x1f] sm:$0xff] %vm1808_vm15, %v3804_v14  ;;  %3821 = vrot.lane.b32.xlu1 %v7692_v55, %s5481_s17  ;;  %5308 = vmatprep.mubr.msk.f32.mxu1 %vm3188_vm7, %v4286_v49 }
 0x641   : > { %4017 = vst.msk [vmem:[#allocation3 + $0x19] sm:$0xff] %vm756_vm5, %v3930_v6  ;;  %3695 = vrot.lane.b32.xlu0 %v7690_v54, %s5472_s29  ;;  %5309 = vmatmul.mubr.msk.f32.vlgmr.msra.gmra.mrb[0].mxu1 %vm3188_vm7, %v4287_v15 }
 0x642   : > { %v4050_v18 = vpop.permute.xlu1 %4049  ;;  %5311 = vmatprep.mubr.msk.f32.mxu1 %vm3188_vm7, %v4288_v21 }
 0x643   : > { %4137 = vst.msk [vmem:[#allocation3 + $0x18] sm:$0xff] %vm8731_vm12, %v4050_v18  ;;  %v3932_v19 = vpop.permute.xlu0 %3931  ;;  %vm8737_vm12 = vmmov %vm8732_vm8 }
 0x644   : > { %4018 = vst.msk [vmem:[#allocation3 + $0x21] sm:$0xff] %vm756_vm5, %v3932_v19  ;;  %3949 = vrot.lane.b32.xlu1 %v7704_v29, %s5473_s30 }
 0x645   : > { %3823 = vrot.lane.b32.xlu0 %v7690_v54, %s5481_s17 }
 0x646   : > { %v4170_v55 = vpop.permute.xlu1 %4169 }
 0x647   : > { %4258 = vst.msk [vmem:[#allocation3 + $0x17] sm:$0xfe] %vm4255_vm10, %v4170_v55  ;;  %v4052_v24 = vpop.permute.xlu0 %4051 }
 0x648   : > { %4138 = vst.msk [vmem:[#allocation3 + $0x20] sm:$0xff] %vm8732_vm8, %v4052_v24  ;;  %4069 = vrot.lane.b32.xlu1 %v7704_v29, %s5482_s18 }
 0x649   : > { %3951 = vrot.lane.b32.xlu0 %v7712_v35, %s5473_s30 }
 0x64a   : > { %v3550_v25 = vpop.permute.xlu1 %3549 }
 0x64b   : > { %3641 = vst.msk [vmem:[#allocation3 + $0x31] sm:$0xff] %vm1685_vm14, %v3550_v25  ;;  %v4172_v63 = vpop.permute.xlu0 %4171  ;;  %v4291_v51 = vld [vmem:[#allocation3 + $0x28] sm:$0xff] }
 0x64c   : > { %4259 = vst.msk [vmem:[#allocation3 + $0x1f] sm:$0xff] %vm8733_vm0, %v4172_v63  ;;  %3569 = vrot.lane.b32.xlu1 %v7704_v29, %s5480_s16 }
 0x64d   : > { %4071 = vrot.lane.b32.xlu0 %v7712_v35, %s5482_s18 }
 0x64e   : > { %v3678_v54 = vpop.permute.xlu1 %3677 }
 0x64f   : > { %3769 = vst.msk [vmem:[#allocation3 + $0x30] sm:$0xff] %vm628_vm3, %v3678_v54  ;;  %v3552_v36 = vpop.permute.xlu0 %3551 }
 0x650   : > { %3642 = vst.msk [vmem:[#allocation3 + $0x39] sm:$0xff] %vm1685_vm14, %v3552_v36  ;;  %4189 = vrot.lane.b32.xlu1 %v7704_v29, %s5474_s7 }
 0x651   : > { %3571 = vrot.lane.b32.xlu0 %v7712_v35, %s5480_s16 }
 0x652   : > { %v3806_v42 = vpop.permute.xlu1 %3805 }
 0x653   : > { %3897 = vst.msk [vmem:[#allocation3 + $0x2f] sm:$0xfe] %vm1806_vm4, %v3806_v42  ;;  %v3680_v58 = vpop.permute.xlu0 %3679  ;;  %v4289_v47 = vld [vmem:[#allocation3 + $0x18] sm:$0xff]  ;;  %v4290_v57 = vld [vmem:[#allocation3 + $0x20] sm:$0xff] }
 0x654   : > { %3770 = vst.msk [vmem:[#allocation3 + $0x38] sm:$0xff] %vm628_vm3, %v3680_v58  ;;  %3697 = vrot.lane.b32.xlu1 %v7704_v29, %s5472_s29  ;;  %5312 = vmatmul.mubr.msk.f32.gmra.mrb[2].mxu1 %vm3188_vm7, %v4289_v47 }
 0x655   : > { %4191 = vrot.lane.b32.xlu0 %v7712_v35, %s5474_s7  ;;  %5314 = vmatprep.mubr.msk.f32.mxu1 %vm3188_vm7, %v4290_v57 }
 0x656   : > { %v3934_v50 = vpop.permute.xlu1 %3933 }
 0x657   : > { %v3808_v1 = vpop.permute.xlu0 %3807 }
 0x658   : > { %3898 = vst.msk [vmem:[#allocation3 + $0x37] sm:$0xff] %vm1808_vm15, %v3808_v1  ;;  %3825 = vrot.lane.b32.xlu1 %v7704_v29, %s5481_s17  ;;  %5315 = vmatmul.mubr.msk.f32.gmra.mrb[4].mxu1 %vm3188_vm7, %v4291_v51 }
 0x659   : > { %4019 = vst.msk [vmem:[#allocation3 + $0x31] sm:$0xff] %vm756_vm5, %v3934_v50  ;;  %3699 = vrot.lane.b32.xlu0 %v7712_v35, %s5472_s29 }
 0x65a   : > { %v4054_v59 = vpop.permute.xlu1 %4053 }
 0x65b   : > { %4139 = vst.msk [vmem:[#allocation3 + $0x30] sm:$0xff] %vm8734_vm13, %v4054_v59  ;;  %v3936_v3 = vpop.permute.xlu0 %3935  ;;  %vm8738_vm13 = vmmov %vm8732_vm8 }
 0x65c   : > { %4020 = vst.msk [vmem:[#allocation3 + $0x39] sm:$0xff] %vm756_vm5, %v3936_v3  ;;  %3953 = vrot.lane.b32.xlu1 %v7724_v45, %s5473_s30 }
 0x65d   : > { %3827 = vrot.lane.b32.xlu0 %v7712_v35, %s5481_s17 }
 0x65e   : > { %v3554_v29 = vpop.permute.xlu1 %3553 }
 0x65f   : > { %3643 = vst.msk [vmem:[#allocation3 + $0x49] sm:$0xff] %vm1685_vm14, %v3554_v29  ;;  %v4056_v5 = vpop.permute.xlu0 %4055 }
 0x660   : > { %4140 = vst.msk [vmem:[#allocation3 + $0x38] sm:$0xff] %vm8735_vm9, %v4056_v5  ;;  %4073 = vrot.lane.b32.xlu1 %v7724_v45, %s5482_s18  ;;  %vm8739_vm9 = vmmov %vm8732_vm8 }
 0x661   : > { %3955 = vrot.lane.b32.xlu0 %v7722_v44, %s5473_s30 }
 0x662   : > { %v4174_v26 = vpop.permute.xlu1 %4173 }
 0x663   : > { %4260 = vst.msk [vmem:[#allocation3 + $0x2f] sm:$0xfe] %vm4255_vm10, %v4174_v26  ;;  %v3556_v9 = vpop.permute.xlu0 %3555  ;;  %v4294_v41 = vld [vmem:[#allocation3 + $0x40] sm:$0xff] }
 0x664   : > { %3644 = vst.msk [vmem:[#allocation3 + $0x51] sm:$0xff] %vm1685_vm14, %v3556_v9  ;;  %4193 = vrot.lane.b32.xlu1 %v7724_v45, %s5474_s7 }
 0x665   : > { %4075 = vrot.lane.b32.xlu0 %v7722_v44, %s5482_s18 }
 0x666   : > { %v3682_v35 = vpop.permute.xlu1 %3681 }
 0x667   : > { %3771 = vst.msk [vmem:[#allocation3 + $0x48] sm:$0xff] %vm628_vm3, %v3682_v35  ;;  %v4176_v30 = vpop.permute.xlu0 %4175 }
 0x668   : > { %4261 = vst.msk [vmem:[#allocation3 + $0x37] sm:$0xff] %vm8736_vm11, %v4176_v30  ;;  %3573 = vrot.lane.b32.xlu1 %v7724_v45, %s5480_s16  ;;  %vm8740_vm11 = vmmov %vm8733_vm0 }
 0x669   : > { %4195 = vrot.lane.b32.xlu0 %v7722_v44, %s5474_s7 }
 0x66a   : > { %v3810_v34 = vpop.permute.xlu1 %3809 }
 0x66b   : > { %3899 = vst.msk [vmem:[#allocation3 + $0x47] sm:$0xfe] %vm1806_vm4, %v3810_v34  ;;  %v3684_v12 = vpop.permute.xlu0 %3683 }
 0x66c   : > { %3772 = vst.msk [vmem:[#allocation3 + $0x50] sm:$0xff] %vm628_vm3, %v3684_v12  ;;  %3701 = vrot.lane.b32.xlu1 %v7724_v45, %s5472_s29 }
 0x66d   : > { %3575 = vrot.lane.b32.xlu0 %v7722_v44, %s5480_s16 }
 0x66e   : > { %v3938_v23 = vpop.permute.xlu1 %3937 }
 0x66f   : > { %v3812_v38 = vpop.permute.xlu0 %3811  ;;  %v4292_v22 = vld [vmem:[#allocation3 + $0x30] sm:$0xff]  ;;  %v4293_v17 = vld [vmem:[#allocation3 + $0x38] sm:$0xff] }
 0x670   : > { %3900 = vst.msk [vmem:[#allocation3 + $0x4f] sm:$0xff] %vm1808_vm15, %v3812_v38  ;;  %3829 = vrot.lane.b32.xlu1 %v7724_v45, %s5481_s17  ;;  %5317 = vmatprep.mubr.msk.f32.mxu1 %vm3188_vm7, %v4292_v22 }
 0x671   : > { %4021 = vst.msk [vmem:[#allocation3 + $0x49] sm:$0xff] %vm756_vm5, %v3938_v23  ;;  %3703 = vrot.lane.b32.xlu0 %v7722_v44, %s5472_s29  ;;  %5318 = vmatmul.mubr.msk.f32.gmra.mrb[6].mxu1 %vm3188_vm7, %v4293_v17 }
 0x672   : > { %v4058_v0 = vpop.permute.xlu1 %4057  ;;  %5320 = vmatprep.mubr.msk.f32.mxu1 %vm3188_vm7, %v4294_v41 }
 0x673   : > { %4141 = vst.msk [vmem:[#allocation3 + $0x48] sm:$0xff] %vm8737_vm12, %v4058_v0  ;;  %v3940_v8 = vpop.permute.xlu0 %3939  ;;  %vm8741_vm12 = vmmov %vm8732_vm8 }
 0x674   : > { %4022 = vst.msk [vmem:[#allocation3 + $0x51] sm:$0xff] %vm756_vm5, %v3940_v8  ;;  %3957 = vrot.lane.b32.xlu1 %v7736_v56, %s5473_s30 }
 0x675   : > { %3831 = vrot.lane.b32.xlu0 %v7722_v44, %s5481_s17 }
 0x676   : > { %v4178_v45 = vpop.permute.xlu1 %4177 }
 0x677   : > { %4262 = vst.msk [vmem:[#allocation3 + $0x47] sm:$0xfe] %vm4255_vm10, %v4178_v45  ;;  %v4060_v48 = vpop.permute.xlu0 %4059 }
 0x678   : > { %4142 = vst.msk [vmem:[#allocation3 + $0x50] sm:$0xff] %vm8732_vm8, %v4060_v48  ;;  %4077 = vrot.lane.b32.xlu1 %v7736_v56, %s5482_s18 }
 0x679   : > { %3959 = vrot.lane.b32.xlu0 %v7744_v33, %s5473_s30 }
 0x67a   : > { %v3558_v20 = vpop.permute.xlu1 %3557 }
 0x67b   : > { %3645 = vst.msk [vmem:[#allocation3 + $0x61] sm:$0xff] %vm1685_vm14, %v3558_v20  ;;  %v4180_v52 = vpop.permute.xlu0 %4179  ;;  %v4297_v16 = vld [vmem:[#allocation3 + $0x58] sm:$0xff] }
 0x67c   : > { %4263 = vst.msk [vmem:[#allocation3 + $0x4f] sm:$0xff] %vm8733_vm0, %v4180_v52  ;;  %3577 = vrot.lane.b32.xlu1 %v7736_v56, %s5480_s16 }
 0x67d   : > { %4079 = vrot.lane.b32.xlu0 %v7744_v33, %s5482_s18 }
 0x67e   : > { %v3686_v44 = vpop.permute.xlu1 %3685 }
 0x67f   : > { %3773 = vst.msk [vmem:[#allocation3 + $0x60] sm:$0xff] %vm628_vm3, %v3686_v44  ;;  %v3560_v53 = vpop.permute.xlu0 %3559 }
 0x680   : > { %3646 = vst.msk [vmem:[#allocation3 + $0x69] sm:$0xff] %vm1685_vm14, %v3560_v53  ;;  %4197 = vrot.lane.b32.xlu1 %v7736_v56, %s5474_s7 }
 0x681   : > { %3579 = vrot.lane.b32.xlu0 %v7744_v33, %s5480_s16 }
 0x682   : > { %v3814_v31 = vpop.permute.xlu1 %3813 }
 0x683   : > { %3901 = vst.msk [vmem:[#allocation3 + $0x5f] sm:$0xfe] %vm1806_vm4, %v3814_v31  ;;  %v3688_v10 = vpop.permute.xlu0 %3687  ;;  %v4295_v60 = vld [vmem:[#allocation3 + $0x48] sm:$0xff]  ;;  %v4296_v2 = vld [vmem:[#allocation3 + $0x50] sm:$0xff] }
 0x684   : > { %3774 = vst.msk [vmem:[#allocation3 + $0x68] sm:$0xff] %vm628_vm3, %v3688_v10  ;;  %3705 = vrot.lane.b32.xlu1 %v7736_v56, %s5472_s29  ;;  %5321 = vmatmul.mubr.msk.f32.gmra.mrb[8].mxu1 %vm3188_vm7, %v4295_v60 }
 0x685   : > { %4199 = vrot.lane.b32.xlu0 %v7744_v33, %s5474_s7  ;;  %5323 = vmatprep.mubr.msk.f32.mxu1 %vm3188_vm7, %v4296_v2 }
 0x686   : > { %v3942_v61 = vpop.permute.xlu1 %3941 }
 0x687   : > { %v3816_v13 = vpop.permute.xlu0 %3815 }
 0x688   : > { %3902 = vst.msk [vmem:[#allocation3 + $0x67] sm:$0xff] %vm1808_vm15, %v3816_v13  ;;  %3833 = vrot.lane.b32.xlu1 %v7736_v56, %s5481_s17  ;;  %5324 = vmatmul.mubr.msk.f32.gmra.mrb[10].mxu1 %vm3188_vm7, %v4297_v16 }
 0x689   : > { %4023 = vst.msk [vmem:[#allocation3 + $0x61] sm:$0xff] %vm756_vm5, %v3942_v61  ;;  %3707 = vrot.lane.b32.xlu0 %v7744_v33, %s5472_s29 }
 0x68a   : > { %v4062_v6 = vpop.permute.xlu1 %4061 }
 0x68b   : > { %4143 = vst.msk [vmem:[#allocation3 + $0x60] sm:$0xff] %vm8738_vm13, %v4062_v6  ;;  %v3944_v14 = vpop.permute.xlu0 %3943  ;;  %vm8742_vm13 = vmmov %vm8732_vm8 }
 0x68c   : > { %4024 = vst.msk [vmem:[#allocation3 + $0x69] sm:$0xff] %vm756_vm5, %v3944_v14  ;;  %3961 = vrot.lane.b32.xlu1 %v7758_v28, %s5473_s30 }
 0x68d   : > { %3835 = vrot.lane.b32.xlu0 %v7744_v33, %s5481_s17 }
 0x68e   : > { %v3562_v56 = vpop.permute.xlu1 %3561 }
 0x68f   : > { %3647 = vst.msk [vmem:[#allocation3 + $0x79] sm:$0xff] %vm1685_vm14, %v3562_v56  ;;  %v4064_v49 = vpop.permute.xlu0 %4063 }
 0x690   : > { %4144 = vst.msk [vmem:[#allocation3 + $0x68] sm:$0xff] %vm8739_vm9, %v4064_v49  ;;  %4081 = vrot.lane.b32.xlu1 %v7758_v28, %s5482_s18  ;;  %vm8743_vm9 = vmmov %vm8732_vm8 }
 0x691   : > { %3963 = vrot.lane.b32.xlu0 %v7756_v27, %s5473_s30 }
 0x692   : > { %v4182_v15 = vpop.permute.xlu1 %4181 }
 0x693   : > { %4264 = vst.msk [vmem:[#allocation3 + $0x5f] sm:$0xfe] %vm4255_vm10, %v4182_v15  ;;  %v3564_v21 = vpop.permute.xlu0 %3563  ;;  %v4300_v36 = vld [vmem:[#allocation3 + $0x70] sm:$0xff] }
 0x694   : > { %3648 = vst.msk [vmem:[#allocation3 + $0x81] sm:$0xff] %vm1685_vm14, %v3564_v21  ;;  %4201 = vrot.lane.b32.xlu1 %v7758_v28, %s5474_s7 }
 0x695   : > { %4083 = vrot.lane.b32.xlu0 %v7756_v27, %s5482_s18 }
 0x696   : > { %v3690_v33 = vpop.permute.xlu1 %3689 }
 0x697   : > { %3775 = vst.msk [vmem:[#allocation3 + $0x78] sm:$0xff] %vm628_vm3, %v3690_v33  ;;  %v4184_v18 = vpop.permute.xlu0 %4183 }
 0x698   : > { %4265 = vst.msk [vmem:[#allocation3 + $0x67] sm:$0xff] %vm8740_vm11, %v4184_v18  ;;  %3581 = vrot.lane.b32.xlu1 %v7758_v28, %s5480_s16  ;;  %vm8744_vm11 = vmmov %vm8733_vm0 }
 0x699   : > { %4203 = vrot.lane.b32.xlu0 %v7756_v27, %s5474_s7 }
 0x69a   : > { %v3818_v19 = vpop.permute.xlu1 %3817 }
 0x69b   : > { %3903 = vst.msk [vmem:[#allocation3 + $0x77] sm:$0xfe] %vm1806_vm4, %v3818_v19  ;;  %v3692_v55 = vpop.permute.xlu0 %3691 }
 0x69c   : > { %3776 = vst.msk [vmem:[#allocation3 + $0x80] sm:$0xff] %vm628_vm3, %v3692_v55  ;;  %3709 = vrot.lane.b32.xlu1 %v7758_v28, %s5472_s29 }
 0x69d   : > { %3583 = vrot.lane.b32.xlu0 %v7756_v27, %s5480_s16 }
 0x69e   : > { %v3946_v24 = vpop.permute.xlu1 %3945 }
 0x69f   : > { %v3820_v25 = vpop.permute.xlu0 %3819  ;;  %v4298_v63 = vld [vmem:[#allocation3 + $0x60] sm:$0xff]  ;;  %v4299_v54 = vld [vmem:[#allocation3 + $0x68] sm:$0xff] }
 0x6a0   : > { %3904 = vst.msk [vmem:[#allocation3 + $0x7f] sm:$0xff] %vm1808_vm15, %v3820_v25  ;;  %3837 = vrot.lane.b32.xlu1 %v7758_v28, %s5481_s17  ;;  %5326 = vmatprep.mubr.msk.f32.mxu1 %vm3188_vm7, %v4298_v63 }
 0x6a1   : > { %4025 = vst.msk [vmem:[#allocation3 + $0x79] sm:$0xff] %vm756_vm5, %v3946_v24  ;;  %3711 = vrot.lane.b32.xlu0 %v7756_v27, %s5472_s29  ;;  %5327 = vmatmul.mubr.msk.f32.gmra.mrb[12].mxu1 %vm3188_vm7, %v4299_v54 }
 0x6a2   : > { %v4066_v42 = vpop.permute.xlu1 %4065  ;;  %5329 = vmatprep.mubr.msk.f32.mxu1 %vm3188_vm7, %v4300_v36 }
 0x6a3   : > { %4145 = vst.msk [vmem:[#allocation3 + $0x78] sm:$0xff] %vm8741_vm12, %v4066_v42  ;;  %v3948_v58 = vpop.permute.xlu0 %3947  ;;  %vm8745_vm12 = vmmov %vm8732_vm8 }
 0x6a4   : > { %4026 = vst.msk [vmem:[#allocation3 + $0x81] sm:$0xff] %vm756_vm5, %v3948_v58  ;;  %3965 = vrot.lane.b32.xlu1 %v7771_v46, %s5473_s30 }
 0x6a5   : > { %3839 = vrot.lane.b32.xlu0 %v7756_v27, %s5481_s17 }
 0x6a6   : > { %v4186_v28 = vpop.permute.xlu1 %4185 }
 0x6a7   : > { %4266 = vst.msk [vmem:[#allocation3 + $0x77] sm:$0xfe] %vm4255_vm10, %v4186_v28  ;;  %v4068_v47 = vpop.permute.xlu0 %4067 }
 0x6a8   : > { %4146 = vst.msk [vmem:[#allocation3 + $0x80] sm:$0xff] %vm8732_vm8, %v4068_v47  ;;  %4085 = vrot.lane.b32.xlu1 %v7771_v46, %s5482_s18 }
 0x6a9   : > { %3967 = vrot.lane.b32.xlu0 %v7780_v32, %s5473_s30 }
 0x6aa   : > { %v3566_v57 = vpop.permute.xlu1 %3565 }
 0x6ab   : > { %3649 = vst.msk [vmem:[#allocation3 + $0x91] sm:$0xff] %vm1685_vm14, %v3566_v57  ;;  %v4188_v50 = vpop.permute.xlu0 %4187  ;;  %v4303_v9 = vld [vmem:[#allocation3 + $0x88] sm:$0xff] }
 0x6ac   : > { %4267 = vst.msk [vmem:[#allocation3 + $0x7f] sm:$0xff] %vm8733_vm0, %v4188_v50  ;;  %3585 = vrot.lane.b32.xlu1 %v7771_v46, %s5480_s16 }
 0x6ad   : > { %4087 = vrot.lane.b32.xlu0 %v7780_v32, %s5482_s18 }
 0x6ae   : > { %v3694_v27 = vpop.permute.xlu1 %3693 }
 0x6af   : > { %3777 = vst.msk [vmem:[#allocation3 + $0x90] sm:$0xff] %vm628_vm3, %v3694_v27  ;;  %v3568_v1 = vpop.permute.xlu0 %3567 }
 0x6b0   : > { %3650 = vst.msk [vmem:[#allocation3 + $0x99] sm:$0xff] %vm1685_vm14, %v3568_v1  ;;  %4205 = vrot.lane.b32.xlu1 %v7771_v46, %s5474_s7 }
 0x6b1   : > { %3587 = vrot.lane.b32.xlu0 %v7780_v32, %s5480_s16 }
 0x6b2   : > { %v3822_v51 = vpop.permute.xlu1 %3821 }
 0x6b3   : > { %3905 = vst.msk [vmem:[#allocation3 + $0x8f] sm:$0xfe] %vm1806_vm4, %v3822_v51  ;;  %v3696_v59 = vpop.permute.xlu0 %3695  ;;  %v4301_v3 = vld [vmem:[#allocation3 + $0x78] sm:$0xff]  ;;  %v4302_v29 = vld [vmem:[#allocation3 + $0x80] sm:$0xff] }
 0x6b4   : > { %3778 = vst.msk [vmem:[#allocation3 + $0x98] sm:$0xff] %vm628_vm3, %v3696_v59  ;;  %3713 = vrot.lane.b32.xlu1 %v7771_v46, %s5472_s29  ;;  %5330 = vmatmul.mubr.msk.f32.gmra.mrb[14].mxu1 %vm3188_vm7, %v4301_v3 }
 0x6b5   : > { %4207 = vrot.lane.b32.xlu0 %v7780_v32, %s5474_s7  ;;  %5332 = vmatprep.mubr.msk.f32.mxu1 %vm3188_vm7, %v4302_v29 }
 0x6b6   : > { %v3950_v5 = vpop.permute.xlu1 %3949 }
 0x6b7   : > { %v3824_v26 = vpop.permute.xlu0 %3823 }
 0x6b8   : > { %3906 = vst.msk [vmem:[#allocation3 + $0x97] sm:$0xff] %vm1808_vm15, %v3824_v26  ;;  %3841 = vrot.lane.b32.xlu1 %v7771_v46, %s5481_s17  ;;  %5333 = vmatmul.mubr.msk.f32.gmra.mrb[16].mxu1 %vm3188_vm7, %v4303_v9 }
 0x6b9   : > { %4027 = vst.msk [vmem:[#allocation3 + $0x91] sm:$0xff] %vm756_vm5, %v3950_v5  ;;  %3715 = vrot.lane.b32.xlu0 %v7780_v32, %s5472_s29 }
 0x6ba   : > { %v4070_v35 = vpop.permute.xlu1 %4069 }
 0x6bb   : > { %4147 = vst.msk [vmem:[#allocation3 + $0x90] sm:$0xff] %vm8742_vm13, %v4070_v35  ;;  %v3952_v30 = vpop.permute.xlu0 %3951  ;;  %vm8746_vm13 = vmmov %vm8732_vm8  ;;  %v8473_v35 = vld [vmem:[%s8723_s5] ss:$0 sm:$0xff] }
 0x6bc   : > { %4028 = vst.msk [vmem:[#allocation3 + $0x99] sm:$0xff] %vm756_vm5, %v3952_v30  ;;  %3969 = vrot.lane.b32.xlu1 %v7794_v4, %s5473_s30 }
 0x6bd   : > { %3843 = vrot.lane.b32.xlu0 %v7780_v32, %s5481_s17 }
 0x6be   : > { %v3570_v46 = vpop.permute.xlu1 %3569 }
 0x6bf   : > { %3651 = vst.msk [vmem:[#allocation3 + $0xa9] sm:$0xff] %vm1685_vm14, %v3570_v46  ;;  %v4072_v34 = vpop.permute.xlu0 %4071 }
 0x6c0   : > { %4148 = vst.msk [vmem:[#allocation3 + $0x98] sm:$0xff] %vm8743_vm9, %v4072_v34  ;;  %4089 = vrot.lane.b32.xlu1 %v7794_v4, %s5482_s18  ;;  %vm8747_vm9 = vmmov %vm8732_vm8 }
 0x6c1   : > { %3971 = vrot.lane.b32.xlu0 %v7792_v39, %s5473_s30 }
 0x6c2   : > { %v4190_v12 = vpop.permute.xlu1 %4189 }
 0x6c3   : > { %4268 = vst.msk [vmem:[#allocation3 + $0x8f] sm:$0xfe] %vm4255_vm10, %v4190_v12  ;;  %v3572_v23 = vpop.permute.xlu0 %3571  ;;  %v4306_v48 = vld [vmem:[#allocation3 + $0xa0] sm:$0xff] }
 0x6c4   : > { %3652 = vst.msk [vmem:[#allocation3 + $0xb1] sm:$0xff] %vm1685_vm14, %v3572_v23  ;;  %4209 = vrot.lane.b32.xlu1 %v7794_v4, %s5474_s7  ;;  %v8480_v23 = vld [vmem:[%s8723_s5 + $0x1] ss:$0 sm:$0xff] }
 0x6c5   : > { %4091 = vrot.lane.b32.xlu0 %v7792_v39, %s5482_s18 }
 0x6c6   : > { %v3698_v32 = vpop.permute.xlu1 %3697 }
 0x6c7   : > { %3779 = vst.msk [vmem:[#allocation3 + $0xa8] sm:$0xff] %vm628_vm3, %v3698_v32  ;;  %v4192_v38 = vpop.permute.xlu0 %4191 }
 0x6c8   : > { %4269 = vst.msk [vmem:[#allocation3 + $0x97] sm:$0xff] %vm8744_vm11, %v4192_v38  ;;  %3589 = vrot.lane.b32.xlu1 %v7794_v4, %s5480_s16  ;;  %vm8748_vm11 = vmmov %vm8733_vm0 }
 0x6c9   : > { %4211 = vrot.lane.b32.xlu0 %v7792_v39, %s5474_s7 }
 0x6ca   : > { %v3826_v22 = vpop.permute.xlu1 %3825 }
 0x6cb   : > { %3907 = vst.msk [vmem:[#allocation3 + $0xa7] sm:$0xfe] %vm1806_vm4, %v3826_v22  ;;  %v3700_v17 = vpop.permute.xlu0 %3699 }
 0x6cc   : > { %3780 = vst.msk [vmem:[#allocation3 + $0xb0] sm:$0xff] %vm628_vm3, %v3700_v17  ;;  %3717 = vrot.lane.b32.xlu1 %v7794_v4, %s5472_s29 }
 0x6cd   : > { %3591 = vrot.lane.b32.xlu0 %v7792_v39, %s5480_s16 }
 0x6ce   : > { %v3954_v41 = vpop.permute.xlu1 %3953 }
 0x6cf   : > { %v3828_v0 = vpop.permute.xlu0 %3827  ;;  %v4304_v8 = vld [vmem:[#allocation3 + $0x90] sm:$0xff]  ;;  %v4305_v45 = vld [vmem:[#allocation3 + $0x98] sm:$0xff] }
 0x6d0   : > { %3908 = vst.msk [vmem:[#allocation3 + $0xaf] sm:$0xff] %vm1808_vm15, %v3828_v0  ;;  %3845 = vrot.lane.b32.xlu1 %v7794_v4, %s5481_s17  ;;  %5335 = vmatprep.mubr.msk.f32.mxu1 %vm3188_vm7, %v4304_v8 }
 0x6d1   : > { %4029 = vst.msk [vmem:[#allocation3 + $0xa9] sm:$0xff] %vm756_vm5, %v3954_v41  ;;  %3719 = vrot.lane.b32.xlu0 %v7792_v39, %s5472_s29  ;;  %5336 = vmatmul.mubr.msk.f32.gmra.mrb[18].mxu1 %vm3188_vm7, %v4305_v45 }
 0x6d2   : > { %v4074_v20 = vpop.permute.xlu1 %4073  ;;  %5338 = vmatprep.mubr.msk.f32.mxu1 %vm3188_vm7, %v4306_v48 }
 0x6d3   : > { %4149 = vst.msk [vmem:[#allocation3 + $0xa8] sm:$0xff] %vm8745_vm12, %v4074_v20  ;;  %v3956_v52 = vpop.permute.xlu0 %3955  ;;  %vm8749_vm12 = vmmov %vm8732_vm8 }
 0x6d4   : > { %4030 = vst.msk [vmem:[#allocation3 + $0xb1] sm:$0xff] %vm756_vm5, %v3956_v52  ;;  %3973 = vrot.lane.b32.xlu1 %v7807_v7, %s5473_s30 }
 0x6d5   : > { %3847 = vrot.lane.b32.xlu0 %v7792_v39, %s5481_s17 }
 0x6d6   : > { %v4194_v4 = vpop.permute.xlu1 %4193 }
 0x6d7   : > { %4270 = vst.msk [vmem:[#allocation3 + $0xa7] sm:$0xfe] %vm4255_vm10, %v4194_v4  ;;  %v4076_v44 = vpop.permute.xlu0 %4075 }
 0x6d8   : > { %4150 = vst.msk [vmem:[#allocation3 + $0xb0] sm:$0xff] %vm8732_vm8, %v4076_v44  ;;  %3468 = vrot.lane.b32.xlu1 %v7792_v39, %s5471_s28 }
 0x6d9   : > { %3975 = vrot.lane.b32.xlu0 %v7816_v11, %s5473_s30 }
 0x6da   : > { %v3574_v53 = vpop.permute.xlu1 %3573 }
 0x6db   : > { %3653 = vst.msk [vmem:[#allocation3 + $0xc1] sm:$0xff] %vm1685_vm14, %v3574_v53  ;;  %v4196_v31 = vpop.permute.xlu0 %4195  ;;  %v4309_v14 = vld [vmem:[#allocation3 + $0xb8] sm:$0xff] }
 0x6dc   : > { %4271 = vst.msk [vmem:[#allocation3 + $0xaf] sm:$0xff] %vm8733_vm0, %v4196_v31  ;;  %4095 = vrot.lane.b32.xlu1 %v7816_v11, %s5482_s18 }
 0x6dd   : > { %4093 = vrot.lane.b32.xlu0 %v7807_v7, %s5482_s18 }
 0x6de   : > { %v3702_v10 = vpop.permute.xlu1 %3701 }
 0x6df   : > { %3781 = vst.msk [vmem:[#allocation3 + $0xc0] sm:$0xff] %vm628_vm3, %v3702_v10  ;;  %v3576_v60 = vpop.permute.xlu0 %3575 }
 0x6e0   : > { %3654 = vst.msk [vmem:[#allocation3 + $0xc9] sm:$0xff] %vm1685_vm14, %v3576_v60  ;;  %3595 = vrot.lane.b32.xlu1 %v7816_v11, %s5480_s16 }
 0x6e1   : > { %3593 = vrot.lane.b32.xlu0 %v7807_v7, %s5480_s16 }
 0x6e2   : > { %v3830_v39 = vpop.permute.xlu1 %3829 }
 0x6e3   : > { %3909 = vst.msk [vmem:[#allocation3 + $0xbf] sm:$0xfe] %vm1806_vm4, %v3830_v39  ;;  %v3704_v2 = vpop.permute.xlu0 %3703  ;;  %v4307_v61 = vld [vmem:[#allocation3 + $0xa8] sm:$0xff]  ;;  %v4308_v13 = vld [vmem:[#allocation3 + $0xb0] sm:$0xff] }
 0x6e4   : > { %3782 = vst.msk [vmem:[#allocation3 + $0xc8] sm:$0xff] %vm628_vm3, %v3704_v2  ;;  %4215 = vrot.lane.b32.xlu1 %v7816_v11, %s5474_s7  ;;  %5339 = vmatmul.mubr.msk.f32.gmra.mrb[20].mxu1 %vm3188_vm7, %v4307_v61 }
 0x6e5   : > { %4213 = vrot.lane.b32.xlu0 %v7807_v7, %s5474_s7  ;;  %5341 = vmatprep.mubr.msk.f32.mxu1 %vm3188_vm7, %v4308_v13 }
 0x6e6   : > { %v3958_v16 = vpop.permute.xlu1 %3957 }
 0x6e7   : > { %v3832_v6 = vpop.permute.xlu0 %3831 }
 0x6e8   : > { %3910 = vst.msk [vmem:[#allocation3 + $0xc7] sm:$0xff] %vm1808_vm15, %v3832_v6  ;;  %3723 = vrot.lane.b32.xlu1 %v7816_v11, %s5472_s29  ;;  %5342 = vmatmul.mubr.msk.f32.gmra.mrb[22].mxu1 %vm3188_vm7, %v4309_v14 }
 0x6e9   : > { %4031 = vst.msk [vmem:[#allocation3 + $0xc1] sm:$0xff] %vm756_vm5, %v3958_v16  ;;  %3721 = vrot.lane.b32.xlu0 %v7807_v7, %s5472_s29 }
 0x6ea   : > { %v4078_v56 = vpop.permute.xlu1 %4077 }
 0x6eb   : > { %4151 = vst.msk [vmem:[#allocation3 + $0xc0] sm:$0xff] %vm8746_vm13, %v4078_v56  ;;  %v3960_v49 = vpop.permute.xlu0 %3959  ;;  %vm8750_vm13 = vmmov %vm8732_vm8 }
 0x6ec   : > { %4032 = vst.msk [vmem:[#allocation3 + $0xc9] sm:$0xff] %vm756_vm5, %v3960_v49  ;;  %3851 = vrot.lane.b32.xlu1 %v7816_v11, %s5481_s17 }
 0x6ed   : > { %3849 = vrot.lane.b32.xlu0 %v7807_v7, %s5481_s17 }
 0x6ee   : > { %v3578_v15 = vpop.permute.xlu1 %3577 }
 0x6ef   : > { %3655 = vst.msk [vmem:[#allocation3 + $0xd9] sm:$0xff] %vm1685_vm14, %v3578_v15  ;;  %v4080_v21 = vpop.permute.xlu0 %4079 }
 0x6f0   : > { %4152 = vst.msk [vmem:[#allocation3 + $0xc8] sm:$0xff] %vm8747_vm9, %v4080_v21  ;;  %3979 = vrot.lane.b32.xlu1 %v7830_v40, %s5473_s30  ;;  %vm8751_vm9 = vmmov %vm8732_vm8 }
 0x6f1   : > { %3977 = vrot.lane.b32.xlu0 %v7832_v43, %s5473_s30 }
 0x6f2   : > { %v4198_v33 = vpop.permute.xlu1 %4197 }
 0x6f3   : > { %4272 = vst.msk [vmem:[#allocation3 + $0xbf] sm:$0xfe] %vm4255_vm10, %v4198_v33  ;;  %v3580_v18 = vpop.permute.xlu0 %3579 }
 0x6f4   : > { %3656 = vst.msk [vmem:[#allocation3 + $0xe1] sm:$0xff] %vm1685_vm14, %v3580_v18  ;;  %4099 = vrot.lane.b32.xlu1 %v7830_v40, %s5482_s18 }
 0x6f5   : > { %4097 = vrot.lane.b32.xlu0 %v7832_v43, %s5482_s18 }
 0x6f6   : > { %v3706_v19 = vpop.permute.xlu1 %3705 }
 0x6f7   : > { %3783 = vst.msk [vmem:[#allocation3 + $0xd8] sm:$0xff] %vm628_vm3, %v3706_v19  ;;  %v4200_v55 = vpop.permute.xlu0 %4199 }
 0x6f8   : > { %4273 = vst.msk [vmem:[#allocation3 + $0xc7] sm:$0xff] %vm8748_vm11, %v4200_v55  ;;  %4219 = vrot.lane.b32.xlu1 %v7830_v40, %s5474_s7  ;;  %vm8752_vm11 = vmmov %vm8733_vm0 }
 0x6f9   : > { %4217 = vrot.lane.b32.xlu0 %v7832_v43, %s5474_s7 }
 0x6fa   : > { %v3834_v24 = vpop.permute.xlu1 %3833 }
 0x6fb   : > { %3911 = vst.msk [vmem:[#allocation3 + $0xd7] sm:$0xfe] %vm1806_vm4, %v3834_v24  ;;  %v3708_v25 = vpop.permute.xlu0 %3707 }
 0x6fc   : > { %3784 = vst.msk [vmem:[#allocation3 + $0xe0] sm:$0xff] %vm628_vm3, %v3708_v25  ;;  %3472 = vrot.lane.b32.xlu1 %v7816_v11, %s5471_s28  ;;  %v4312_v11 = vld [vmem:[#allocation3 + $0xd0] sm:$0xff] }
 0x6fd   : > { %3470 = vrot.lane.b32.xlu0 %v7807_v7, %s5471_s28  ;;  %v5460_v7 = vld [vmem:[%s8721_s3] ss:$0 sm:$0xff] }
 0x6fe   : > { %v3962_v63 = vpop.permute.xlu1 %3961  ;;  %v3118_v58 = vmul.f32 %v5460_v7, %v7842_v62  ;;  %v3117_v47 = vmul.f32 %v5460_v7, %v7828_v37  ;;  %v5461_v62 = vld [vmem:[%s8721_s3 + $0x1] ss:$0 sm:$0xff] }
 0x6ff   : > { %v3836_v54 = vpop.permute.xlu0 %3835  ;;  %v4310_v36 = vld [vmem:[#allocation3 + $0xc0] sm:$0xff]  ;;  %v4311_v42 = vld [vmem:[#allocation3 + $0xc8] sm:$0xff] }
 0x700   : > { %3912 = vst.msk [vmem:[#allocation3 + $0xdf] sm:$0xff] %vm1808_vm15, %v3836_v54  ;;  %3599 = vrot.lane.b32.xlu1 %v7830_v40, %s5480_s16  ;;  %5344 = vmatprep.mubr.msk.f32.mxu1 %vm3188_vm7, %v4310_v36  ;;  %v3155_v50 = vadd.f32 %v5461_v62, %v3118_v58  ;;  %v3154_v1 = vadd.f32 %v5461_v62, %v3117_v47 }
 0x701   : > { %4033 = vst.msk [vmem:[#allocation3 + $0xd9] sm:$0xff] %vm756_vm5, %v3962_v63  ;;  %3597 = vrot.lane.b32.xlu0 %v7832_v43, %s5480_s16  ;;  %5345 = vmatmul.mubr.msk.f32.gmra.mrb[24].mxu1 %vm3188_vm7, %v4311_v42 }
 0x702   : > { %v4082_v28 = vpop.permute.xlu1 %4081  ;;  %5347 = vmatprep.mubr.msk.f32.mxu1 %vm3188_vm7, %v4312_v11  ;;  %v3187_v51 = vmax.f32 %v3155_v50, 0.0  ;;  %v3186_v3 = vmax.f32 %v3154_v1, 0.0 }
 0x703   : > { %4153 = vst.msk [vmem:[#allocation3 + $0xd8] sm:$0xff] %vm8749_vm12, %v4082_v28  ;;  %v3964_v57 = vpop.permute.xlu0 %3963  ;;  %vm8753_vm12 = vmmov %vm8732_vm8 }
 0x704   : > { %4034 = vst.msk [vmem:[#allocation3 + $0xe1] sm:$0xff] %vm756_vm5, %v3964_v57  ;;  %3727 = vrot.lane.b32.xlu1 %v7830_v40, %s5472_s29 }
 0x705   : > { %3725 = vrot.lane.b32.xlu0 %v7832_v43, %s5472_s29 }
 0x706   : > { %v4202_v27 = vpop.permute.xlu1 %4201 }
 0x707   : > { %4274 = vst.msk [vmem:[#allocation3 + $0xd7] sm:$0xfe] %vm4255_vm10, %v4202_v27  ;;  %v4084_v37 = vpop.permute.xlu0 %4083 }
 0x708   : > { %4154 = vst.msk [vmem:[#allocation3 + $0xe0] sm:$0xff] %vm8732_vm8, %v4084_v37  ;;  %3855 = vrot.lane.b32.xlu1 %v7830_v40, %s5481_s17 }
 0x709   : > { %3853 = vrot.lane.b32.xlu0 %v7832_v43, %s5481_s17 }
 0x70a   : > { %v3582_v59 = vpop.permute.xlu1 %3581 }
 0x70b   : > { %3657 = vst.msk [vmem:[#allocation3 + $0xf1] sm:$0xff] %vm1685_vm14, %v3582_v59  ;;  %v4204_v29 = vpop.permute.xlu0 %4203  ;;  %v4315_v8 = vld [vmem:[#allocation3 + $0xe8] sm:$0xff] }
 0x70c   : > { %4275 = vst.msk [vmem:[#allocation3 + $0xdf] sm:$0xff] %vm8733_vm0, %v4204_v29  ;;  %3983 = vrot.lane.b32.xlu1 %v3187_v51, %s5473_s30 }
 0x70d   : > { %3981 = vrot.lane.b32.xlu0 %v3186_v3, %s5473_s30 }
 0x70e   : > { %v3710_v5 = vpop.permute.xlu1 %3709 }
 0x70f   : > { %3785 = vst.msk [vmem:[#allocation3 + $0xf0] sm:$0xff] %vm628_vm3, %v3710_v5  ;;  %v3584_v26 = vpop.permute.xlu0 %3583 }
 0x710   : > { %3658 = vst.msk [vmem:[#allocation3 + $0xf9] sm:$0xff] %vm1685_vm14, %v3584_v26  ;;  %4103 = vrot.lane.b32.xlu1 %v3187_v51, %s5482_s18 }
 0x711   : > { %4101 = vrot.lane.b32.xlu0 %v3186_v3, %s5482_s18 }
 0x712   : > { %v3838_v9 = vpop.permute.xlu1 %3837 }
 0x713   : > { %3913 = vst.msk [vmem:[#allocation3 + $0xef] sm:$0xfe] %vm1806_vm4, %v3838_v9  ;;  %v3712_v30 = vpop.permute.xlu0 %3711  ;;  %v4313_v46 = vld [vmem:[#allocation3 + $0xd8] sm:$0xff]  ;;  %v4314_v34 = vld [vmem:[#allocation3 + $0xe0] sm:$0xff] }
 0x714   : > { %3786 = vst.msk [vmem:[#allocation3 + $0xf8] sm:$0xff] %vm628_vm3, %v3712_v30  ;;  %v5310_v12 = vpop.f32.mrb[0].mxu1  ;;  %5348 = vmatmul.mubr.msk.f32.gmra.mrb[26].mxu1 %vm3188_vm7, %v4313_v46  ;;  %4223 = vrot.lane.b32.xlu1 %v3187_v51, %s5474_s7 }
 0x715   : > { %v4782_v32 = vmul.f32 %v5310_v12, %v8473_v35  ;;  %v4553_v38 = vpop.f32.mrb[1].mxu1  ;;  %5350 = vmatprep.mubr.msk.f32.mxu1 %vm3188_vm7, %v4314_v34  ;;  %4221 = vrot.lane.b32.xlu0 %v3186_v3, %s5474_s7 }
 0x716   : > { %v4781_v22 = vmul.f32 %v8473_v35, %v4553_v38  ;;  %v3966_v17 = vpop.permute.xlu1 %3965 }
 0x717   : > { %v4819_v41 = vadd.f32 %v8480_v23, %v4782_v32  ;;  %v3840_v0 = vpop.permute.xlu0 %3839 }
 0x718   : > { %v4818_v45 = vadd.f32 %v8480_v23, %v4781_v22  ;;  %3914 = vst.msk [vmem:[#allocation3 + $0xf7] sm:$0xff] %vm1808_vm15, %v3840_v0  ;;  %5351 = vmatmul.mubr.msk.f32.gmra.mrb[28].mxu1 %vm3188_vm7, %v4315_v8  ;;  %3476 = vrot.lane.b32.xlu1 %v7830_v40, %s5471_s28 }
 0x719   : > { %v4851_v48 = vmax.f32 %v4819_v41, 0.0  ;;  %4035 = vst.msk [vmem:[#allocation3 + $0xf1] sm:$0xff] %vm756_vm5, %v3966_v17  ;;  %3474 = vrot.lane.b32.xlu0 %v7832_v43, %s5471_s28 }
 0x71a   : > { %v4850_v20 = vmax.f32 %v4818_v45, 0.0  ;;  %v4086_v52 = vpop.permute.xlu1 %4085 }
 0x71b   : > { %4883 = vst.msk [vmem:[%s8493_s23 + $0x8] sm:$0xff] %vm354_vm1, %v4851_v48  ;;  %v3968_v4 = vpop.permute.xlu0 %3967 }
 0x71c   : > { %4155 = vst.msk [vmem:[#allocation3 + $0xf0] sm:$0xff] %vm8750_vm13, %v4086_v52  ;;  %3603 = vrot.lane.b32.xlu1 %v3187_v51, %s5480_s16  ;;  %vm8754_vm13 = vmmov %vm8732_vm8 }
 0x71d   : > { %4882 = vst.msk [vmem:[%s8493_s23] sm:$0xff] %vm354_vm1, %v4850_v20  ;;  %3601 = vrot.lane.b32.xlu0 %v3186_v3, %s5480_s16 }
 0x71e   : > { %4036 = vst.msk [vmem:[#allocation3 + $0xf9] sm:$0xff] %vm756_vm5, %v3968_v4  ;;  %v3586_v40 = vpop.permute.xlu1 %3585 }
 0x71f   : > { %3659 = vst.msk [vmem:[#allocation3 + $0x109] sm:$0xff] %vm1685_vm14, %v3586_v40  ;;  %v4088_v44 = vpop.permute.xlu0 %4087 }
 0x720   : > { %4156 = vst.msk [vmem:[#allocation3 + $0xf8] sm:$0xff] %vm8751_vm9, %v4088_v44  ;;  %3731 = vrot.lane.b32.xlu1 %v3187_v51, %s5472_s29  ;;  %vm8755_vm9 = vmmov %vm8732_vm8 }
 0x721   : > { %3729 = vrot.lane.b32.xlu0 %v3186_v3, %s5472_s29 }
 0x722   : > { %v4206_v43 = vpop.permute.xlu1 %4205 }
 0x723   : > { %4276 = vst.msk [vmem:[#allocation3 + $0xef] sm:$0xfe] %vm4255_vm10, %v4206_v43  ;;  %v3588_v53 = vpop.permute.xlu0 %3587 }
 0x724   : > { %3660 = vst.msk [vmem:[#allocation3 + $0x111] sm:$0xff] %vm1685_vm14, %v3588_v53  ;;  %3859 = vrot.lane.b32.xlu1 %v3187_v51, %s5481_s17 }
 0x725   : > { %3857 = vrot.lane.b32.xlu0 %v3186_v3, %s5481_s17  ;;  %v4318_v24 = vld [vmem:[#allocation3 + $0x100] sm:$0xff] }
 0x726   : > { %v3714_v31 = vpop.permute.xlu1 %3713 }
 0x727   : > { %3787 = vst.msk [vmem:[#allocation3 + $0x108] sm:$0xff] %vm628_vm3, %v3714_v31  ;;  %v5313_v10 = vpop.f32.mrb[2].mxu1  ;;  %v4208_v60 = vpop.permute.xlu0 %4207 }
 0x728   : > { %v4783_v39 = vmul.f32 %v5313_v10, %v8473_v35  ;;  %4277 = vst.msk [vmem:[#allocation3 + $0xf7] sm:$0xff] %vm8752_vm11, %v4208_v60  ;;  %v4563_v2 = vpop.f32.mrb[3].mxu1  ;;  %vm8756_vm11 = vmmov %vm8733_vm0 }
 0x72a   : > { %v4820_v61 = vadd.f32 %v8480_v23, %v4783_v39  ;;  %v3842_v13 = vpop.permute.xlu1 %3841 }
 0x72b   : > { %3915 = vst.msk [vmem:[#allocation3 + $0x107] sm:$0xfe] %vm1806_vm4, %v3842_v13  ;;  %v5316_v16 = vpop.f32.mrb[4].mxu1  ;;  %v3716_v6 = vpop.permute.xlu0 %3715 }
 0x72c   : > { %v4852_v14 = vmax.f32 %v4820_v61, 0.0  ;;  %3788 = vst.msk [vmem:[#allocation3 + $0x110] sm:$0xff] %vm628_vm3, %v3716_v6  ;;  %v4572_v56 = vpop.f32.mrb[5].mxu1 }
 0x72d   : > { %v4784_v49 = vmul.f32 %v8473_v35, %v4572_v56 }
 0x72e   : > { %4884 = vst.msk [vmem:[%s8493_s23 + $0x10] sm:$0xff] %vm354_vm1, %v4852_v14  ;;  %v3970_v15 = vpop.permute.xlu1 %3969 }
 0x72f   : > { %v4821_v21 = vadd.f32 %v8480_v23, %v4784_v49  ;;  %v3844_v33 = vpop.permute.xlu0 %3843  ;;  %v4316_v18 = vld [vmem:[#allocation3 + $0xf0] sm:$0xff]  ;;  %v4317_v19 = vld [vmem:[#allocation3 + $0xf8] sm:$0xff] }
 0x730   : > { %3916 = vst.msk [vmem:[#allocation3 + $0x10f] sm:$0xff] %vm1808_vm15, %v3844_v33  ;;  %5353 = vmatprep.mubr.msk.f32.mxu1 %vm3188_vm7, %v4316_v18 }
 0x731   : > { %v4853_v55 = vmax.f32 %v4821_v21, 0.0  ;;  %4037 = vst.msk [vmem:[#allocation3 + $0x109] sm:$0xff] %vm756_vm5, %v3970_v15  ;;  %5354 = vmatmul.mubr.msk.f32.gmra.mrb[30].mxu1 %vm3188_vm7, %v4317_v19 }
 0x732   : > { %v4090_v25 = vpop.permute.xlu1 %4089  ;;  %5356 = vmatprep.mubr.msk.f32.mxu1 %vm3188_vm7, %v4318_v24 }
 0x733   : > { %4885 = vst.msk [vmem:[%s8493_s23 + $0x18] sm:$0xff] %vm354_vm1, %v4853_v55  ;;  %v3972_v63 = vpop.permute.xlu0 %3971 }
 0x734   : > { %4157 = vst.msk [vmem:[#allocation3 + $0x108] sm:$0xff] %vm8753_vm12, %v4090_v25  ;;  %vm8757_vm12 = vmmov %vm8732_vm8 }
 0x735   : > { %4038 = vst.msk [vmem:[#allocation3 + $0x111] sm:$0xff] %vm756_vm5, %v3972_v63 }
 0x736   : > { %v4210_v54 = vpop.permute.xlu1 %4209 }
 0x737   : > { %4278 = vst.msk [vmem:[#allocation3 + $0x107] sm:$0xfe] %vm4255_vm10, %v4210_v54  ;;  %v4092_v36 = vpop.permute.xlu0 %4091 }
 0x738   : > { %4158 = vst.msk [vmem:[#allocation3 + $0x110] sm:$0xff] %vm8732_vm8, %v4092_v36 }
 0x73a   : > { %v3590_v42 = vpop.permute.xlu1 %3589 }
 0x73b   : > { %3661 = vst.msk [vmem:[#allocation3 + $0x121] sm:$0xff] %vm1685_vm14, %v3590_v42  ;;  %v4212_v11 = vpop.permute.xlu0 %4211 }
 0x73c   : > { %4279 = vst.msk [vmem:[#allocation3 + $0x10f] sm:$0xff] %vm8733_vm0, %v4212_v11  ;;  %v4321_v29 = vld [vmem:[#allocation3 + $0x118] sm:$0xff] }
 0x73e   : > { %v3718_v7 = vpop.permute.xlu1 %3717 }
 0x73f   : > { %3789 = vst.msk [vmem:[#allocation3 + $0x120] sm:$0xff] %vm628_vm3, %v3718_v7  ;;  %v3592_v58 = vpop.permute.xlu0 %3591 }
 0x740   : > { %3662 = vst.msk [vmem:[#allocation3 + $0x129] sm:$0xff] %vm1685_vm14, %v3592_v58 }
 0x742   : > { %v3846_v28 = vpop.permute.xlu1 %3845 }
 0x743   : > { %3917 = vst.msk [vmem:[#allocation3 + $0x11f] sm:$0xfe] %vm1806_vm4, %v3846_v28  ;;  %v3720_v47 = vpop.permute.xlu0 %3719  ;;  %v4319_v57 = vld [vmem:[#allocation3 + $0x108] sm:$0xff]  ;;  %v4320_v62 = vld [vmem:[#allocation3 + $0x110] sm:$0xff] }
 0x744   : > { %3790 = vst.msk [vmem:[#allocation3 + $0x128] sm:$0xff] %vm628_vm3, %v3720_v47  ;;  %v5319_v50 = vpop.f32.mrb[6].mxu1  ;;  %5357 = vmatmul.mubr.msk.f32.gmra.mrb[32].mxu1 %vm3188_vm7, %v4319_v57 }
 0x745   : > { %v4786_v27 = vmul.f32 %v5319_v50, %v8473_v35  ;;  %v4581_v1 = vpop.f32.mrb[7].mxu1  ;;  %5359 = vmatprep.mubr.msk.f32.mxu1 %vm3188_vm7, %v4320_v62 }
 0x746   : > { %v4785_v37 = vmul.f32 %v8473_v35, %v4581_v1  ;;  %v3974_v51 = vpop.permute.xlu1 %3973 }
 0x747   : > { %v4823_v59 = vadd.f32 %v8480_v23, %v4786_v27  ;;  %v3848_v3 = vpop.permute.xlu0 %3847 }
 0x748   : > { %v4822_v5 = vadd.f32 %v8480_v23, %v4785_v37  ;;  %3918 = vst.msk [vmem:[#allocation3 + $0x127] sm:$0xff] %vm1808_vm15, %v3848_v3  ;;  %5360 = vmatmul.mubr.msk.f32.gmra.mrb[34].mxu1 %vm3188_vm7, %v4321_v29 }
 0x749   : > { %v4855_v26 = vmax.f32 %v4823_v59, 0.0  ;;  %4039 = vst.msk [vmem:[#allocation3 + $0x121] sm:$0xff] %vm756_vm5, %v3974_v51 }
 0x74a   : > { %v4854_v9 = vmax.f32 %v4822_v5, 0.0  ;;  %v3469_v30 = vpop.permute.xlu1 %3468 }
 0x74b   : > { %4887 = vst.msk [vmem:[%s8493_s23 + $0x28] sm:$0xff] %vm354_vm1, %v4855_v26  ;;  %v3976_v46 = vpop.permute.xlu0 %3975 }
 0x74c   : > { %3534 = vst.msk [vmem:[#allocation3 + $0x13f] sm:$0xff] %vm505_vm2, %v3469_v30 }
 0x74d   : > { %4886 = vst.msk [vmem:[%s8493_s23 + $0x20] sm:$0xff] %vm354_vm1, %v4854_v9 }
 0x74e   : > { %4040 = vst.msk [vmem:[#allocation3 + $0x129] sm:$0xff] %vm756_vm5, %v3976_v46  ;;  %v4096_v34 = vpop.permute.xlu1 %4095 }
 0x74f   : > { %4160 = vst.msk [vmem:[#allocation3 + $0x128] sm:$0xff] %vm8754_vm13, %v4096_v34  ;;  %v4094_v12 = vpop.permute.xlu0 %4093  ;;  %vm8758_vm13 = vmmov %vm8732_vm8 }
 0x750   : > { %4159 = vst.msk [vmem:[#allocation3 + $0x120] sm:$0xff] %vm8755_vm9, %v4094_v12  ;;  %vm8759_vm9 = vmmov %vm8732_vm8 }
 0x752   : > { %v3596_v32 = vpop.permute.xlu1 %3595 }
 0x753   : > { %3664 = vst.msk [vmem:[#allocation3 + $0x141] sm:$0xff] %vm1685_vm14, %v3596_v32  ;;  %v3594_v38 = vpop.permute.xlu0 %3593 }
 0x754   : > { %3663 = vst.msk [vmem:[#allocation3 + $0x139] sm:$0xff] %vm1685_vm14, %v3594_v38 }
 0x755   : > { %v4324_v2 = vld [vmem:[#allocation3 + $0x130] sm:$0xff] }
 0x756   : > { %v4216_v22 = vpop.permute.xlu1 %4215 }
 0x757   : > { %4281 = vst.msk [vmem:[#allocation3 + $0x127] sm:$0xff] %vm8756_vm11, %v4216_v22  ;;  %v5322_v17 = vpop.f32.mrb[8].mxu1  ;;  %v4214_v41 = vpop.permute.xlu0 %4213  ;;  %vm8760_vm11 = vmmov %vm8733_vm0 }
 0x758   : > { %v4787_v0 = vmul.f32 %v5322_v17, %v8473_v35  ;;  %4280 = vst.msk [vmem:[#allocation3 + $0x11f] sm:$0xfe] %vm4255_vm10, %v4214_v41  ;;  %v4591_v8 = vpop.f32.mrb[9].mxu1 }
 0x75a   : > { %v4824_v45 = vadd.f32 %v8480_v23, %v4787_v0  ;;  %v3724_v48 = vpop.permute.xlu1 %3723 }
 0x75b   : > { %3792 = vst.msk [vmem:[#allocation3 + $0x140] sm:$0xff] %vm628_vm3, %v3724_v48  ;;  %v5325_v20 = vpop.f32.mrb[10].mxu1  ;;  %v3722_v52 = vpop.permute.xlu0 %3721 }
 0x75c   : > { %v4856_v4 = vmax.f32 %v4824_v45, 0.0  ;;  %3791 = vst.msk [vmem:[#allocation3 + $0x138] sm:$0xff] %vm628_vm3, %v3722_v52  ;;  %v4600_v40 = vpop.f32.mrb[11].mxu1 }
 0x75d   : > { %v4788_v44 = vmul.f32 %v8473_v35, %v4600_v40 }
 0x75e   : > { %4888 = vst.msk [vmem:[%s8493_s23 + $0x30] sm:$0xff] %vm354_vm1, %v4856_v4  ;;  %v3852_v43 = vpop.permute.xlu1 %3851  ;;  %v4323_v60 = vld [vmem:[#allocation3 + $0x128] sm:$0xff] }
 0x75f   : > { %v4825_v53 = vadd.f32 %v8480_v23, %v4788_v44  ;;  %3920 = vst.msk [vmem:[#allocation3 + $0x13f] sm:$0xff] %vm1808_vm15, %v3852_v43  ;;  %v3850_v31 = vpop.permute.xlu0 %3849  ;;  %v4322_v10 = vld [vmem:[#allocation3 + $0x120] sm:$0xff] }
 0x760   : > { %3919 = vst.msk [vmem:[#allocation3 + $0x137] sm:$0xfe] %vm1806_vm4, %v3850_v31  ;;  %5362 = vmatprep.mubr.msk.f32.mxu1 %vm3188_vm7, %v4322_v10 }
 0x761   : > { %v4857_v39 = vmax.f32 %v4825_v53, 0.0  ;;  %5363 = vmatmul.mubr.msk.f32.gmra.mrb[36].mxu1 %vm3188_vm7, %v4323_v60 }
 0x762   : > { %v3980_v61 = vpop.permute.xlu1 %3979  ;;  %5365 = vmatprep.mubr.msk.f32.mxu1 %vm3188_vm7, %v4324_v2 }
 0x763   : > { %4889 = vst.msk [vmem:[%s8493_s23 + $0x38] sm:$0xff] %vm354_vm1, %v4857_v39  ;;  %v3978_v13 = vpop.permute.xlu0 %3977 }
 0x764   : > { %4042 = vst.msk [vmem:[#allocation3 + $0x141] sm:$0xff] %vm756_vm5, %v3980_v61  ;;  %4041 = vst.msk [vmem:[#allocation3 + $0x139] sm:$0xff] %vm756_vm5, %v3978_v13 }
 0x766   : > { %v4100_v16 = vpop.permute.xlu1 %4099 }
 0x767   : > { %4162 = vst.msk [vmem:[#allocation3 + $0x140] sm:$0xff] %vm8757_vm12, %v4100_v16  ;;  %v4098_v6 = vpop.permute.xlu0 %4097 }
 0x768   : > { %4161 = vst.msk [vmem:[#allocation3 + $0x138] sm:$0xff] %vm8732_vm8, %v4098_v6 }
 0x76a   : > { %v4220_v14 = vpop.permute.xlu1 %4219 }
 0x76b   : > { %4283 = vst.msk [vmem:[#allocation3 + $0x13f] sm:$0xff] %vm8733_vm0, %v4220_v14  ;;  %v4218_v56 = vpop.permute.xlu0 %4217  ;;  %v4327_v11 = vld [vmem:[#allocation3 + $0x148] sm:$0xff] }
 0x76c   : > { %4282 = vst.msk [vmem:[#allocation3 + $0x137] sm:$0xfe] %vm4255_vm10, %v4218_v56 }
 0x76e   : > { %v3473_v49 = vpop.permute.xlu1 %3472 }
 0x76f   : > { %3536 = vst.msk [vmem:[#allocation3 + $0x157] sm:$0xff] %vm505_vm2, %v3473_v49  ;;  %v3471_v15 = vpop.permute.xlu0 %3470 }
 0x770   : > { %3535 = vst.msk [vmem:[#allocation3 + $0x14f] sm:$0xfe] %vm3508_vm6, %v3471_v15 }
 0x772   : > { %v3600_v21 = vpop.permute.xlu1 %3599  ;;  %v4326_v55 = vld [vmem:[#allocation3 + $0x140] sm:$0xff] }
 0x773   : > { %3666 = vst.msk [vmem:[#allocation3 + $0x159] sm:$0xff] %vm1685_vm14, %v3600_v21  ;;  %v3598_v33 = vpop.permute.xlu0 %3597  ;;  %v4325_v18 = vld [vmem:[#allocation3 + $0x138] sm:$0xff] }
 0x774   : > { %3665 = vst.msk [vmem:[#allocation3 + $0x151] sm:$0xff] %vm1685_vm14, %v3598_v33  ;;  %v5328_v19 = vpop.f32.mrb[12].mxu1  ;;  %5366 = vmatmul.mubr.msk.f32.gmra.mrb[38].mxu1 %vm3188_vm7, %v4325_v18 }
 0x775   : > { %v4790_v24 = vmul.f32 %v5328_v19, %v8473_v35  ;;  %v4609_v25 = vpop.f32.mrb[13].mxu1  ;;  %5368 = vmatprep.mubr.msk.f32.mxu1 %vm3188_vm7, %v4326_v55 }
 0x776   : > { %v4789_v63 = vmul.f32 %v8473_v35, %v4609_v25  ;;  %v3728_v54 = vpop.permute.xlu1 %3727 }
 0x777   : > { %v4827_v36 = vadd.f32 %v8480_v23, %v4790_v24  ;;  %3794 = vst.msk [vmem:[#allocation3 + $0x158] sm:$0xff] %vm628_vm3, %v3728_v54  ;;  %v3726_v42 = vpop.permute.xlu0 %3725 }
 0x778   : > { %v4826_v7 = vadd.f32 %v8480_v23, %v4789_v63  ;;  %3793 = vst.msk [vmem:[#allocation3 + $0x150] sm:$0xff] %vm628_vm3, %v3726_v42  ;;  %5369 = vmatmul.mubr.msk.f32.gmra.mrb[40].mxu1 %vm3188_vm7, %v4327_v11 }
 0x779   : > { %v4859_v58 = vmax.f32 %v4827_v36, 0.0 }
 0x77a   : > { %v4858_v28 = vmax.f32 %v4826_v7, 0.0  ;;  %v3856_v47 = vpop.permute.xlu1 %3855 }
 0x77b   : > { %4891 = vst.msk [vmem:[%s8493_s23 + $0x48] sm:$0xff] %vm354_vm1, %v4859_v58  ;;  %v3854_v57 = vpop.permute.xlu0 %3853 }
 0x77c   : > { %3922 = vst.msk [vmem:[#allocation3 + $0x157] sm:$0xff] %vm1808_vm15, %v3856_v47 }
 0x77d   : > { %4890 = vst.msk [vmem:[%s8493_s23 + $0x40] sm:$0xff] %vm354_vm1, %v4858_v28 }
 0x77e   : > { %3921 = vst.msk [vmem:[#allocation3 + $0x14f] sm:$0xfe] %vm1806_vm4, %v3854_v57  ;;  %v3984_v62 = vpop.permute.xlu1 %3983 }
 0x77f   : > { %4044 = vst.msk [vmem:[#allocation3 + $0x159] sm:$0xff] %vm756_vm5, %v3984_v62  ;;  %v3982_v50 = vpop.permute.xlu0 %3981 }
 0x780   : > { %4043 = vst.msk [vmem:[#allocation3 + $0x151] sm:$0xff] %vm756_vm5, %v3982_v50 }
 0x782   : > { %v4104_v27 = vpop.permute.xlu1 %4103 }
 0x783   : > { %4164 = vst.msk [vmem:[#allocation3 + $0x158] sm:$0xff] %vm8758_vm13, %v4104_v27  ;;  %v4102_v1 = vpop.permute.xlu0 %4101 }
 0x784   : > { %4163 = vst.msk [vmem:[#allocation3 + $0x150] sm:$0xff] %vm8759_vm9, %v4102_v1 }
 0x786   : > { %v4224_v37 = vpop.permute.xlu1 %4223  ;;  %v4330_v8 = vld [vmem:[#allocation3 + $0x160] sm:$0xff] }
 0x787   : > { %4285 = vst.msk [vmem:[#allocation3 + $0x157] sm:$0xff] %vm8760_vm11, %v4224_v37  ;;  %v5331_v51 = vpop.f32.mrb[14].mxu1  ;;  %v4222_v59 = vpop.permute.xlu0 %4221 }
 0x788   : > { %v4791_v3 = vmul.f32 %v5331_v51, %v8473_v35  ;;  %4284 = vst.msk [vmem:[#allocation3 + $0x14f] sm:$0xfe] %vm4255_vm10, %v4222_v59  ;;  %v4619_v29 = vpop.f32.mrb[15].mxu1 }
 0x78a   : > { %v4828_v5 = vadd.f32 %v8480_v23, %v4791_v3  ;;  %v3477_v26 = vpop.permute.xlu1 %3476 }
 0x78b   : > { %3538 = vst.msk [vmem:[#allocation3 + $0x16f] sm:$0xff] %vm505_vm2, %v3477_v26  ;;  %v5334_v9 = vpop.f32.mrb[16].mxu1  ;;  %v3475_v30 = vpop.permute.xlu0 %3474 }
 0x78c   : > { %v4860_v46 = vmax.f32 %v4828_v5, 0.0  ;;  %3537 = vst.msk [vmem:[#allocation3 + $0x167] sm:$0xfe] %vm3508_vm6, %v3475_v30  ;;  %v4628_v34 = vpop.f32.mrb[17].mxu1 }
 0x78d   : > { %v4792_v12 = vmul.f32 %v8473_v35, %v4628_v34 }
 0x78e   : > { %4892 = vst.msk [vmem:[%s8493_s23 + $0x50] sm:$0xff] %vm354_vm1, %v4860_v46  ;;  %v3604_v32 = vpop.permute.xlu1 %3603  ;;  %v4329_v41 = vld [vmem:[#allocation3 + $0x158] sm:$0xff] }
 0x78f   : > { %v4829_v38 = vadd.f32 %v8480_v23, %v4792_v12  ;;  %3668 = vst.msk [vmem:[#allocation3 + $0x171] sm:$0xff] %vm1685_vm14, %v3604_v32  ;;  %v3602_v22 = vpop.permute.xlu0 %3601  ;;  %v4328_v17 = vld [vmem:[#allocation3 + $0x150] sm:$0xff] }
 0x790   : > { %3667 = vst.msk [vmem:[#allocation3 + $0x169] sm:$0xff] %vm1685_vm14, %v3602_v22  ;;  %5371 = vmatprep.mubr.msk.f32.mxu1 %vm3188_vm7, %v4328_v17 }
 0x791   : > { %v4861_v0 = vmax.f32 %v4829_v38, 0.0  ;;  %5372 = vmatmul.mubr.msk.f32.gmra.mrb[42].mxu1 %vm3188_vm7, %v4329_v41 }
 0x792   : > { %5374 = vmatprep.mubr.msk.f32.mxu1 %vm3188_vm7, %v4330_v8  ;;  %v3732_v45 = vpop.permute.xlu1 %3731 }
 0x793   : > { %4893 = vst.msk [vmem:[%s8493_s23 + $0x58] sm:$0xff] %vm354_vm1, %v4861_v0  ;;  %v3730_v48 = vpop.permute.xlu0 %3729 }
 0x794   : > { %3796 = vst.msk [vmem:[#allocation3 + $0x170] sm:$0xff] %vm628_vm3, %v3732_v45  ;;  %3795 = vst.msk [vmem:[#allocation3 + $0x168] sm:$0xff] %vm628_vm3, %v3730_v48 }
 0x796   : > { %v3860_v20 = vpop.permute.xlu1 %3859  ;;  %v4333_v44 = vld [vmem:[#allocation3 + $0x178] sm:$0xff] }
 0x797   : > { %3924 = vst.msk [vmem:[#allocation3 + $0x16f] sm:$0xff] %vm1808_vm15, %v3860_v20  ;;  %v3858_v52 = vpop.permute.xlu0 %3857 }
 0x798   : > { %3923 = vst.msk [vmem:[#allocation3 + $0x167] sm:$0xfe] %vm1806_vm4, %v3858_v52 }
 0x79e   : > { %v4332_v40 = vld [vmem:[#allocation3 + $0x170] sm:$0xff] }
 0x79f   : > { %v4331_v4 = vld [vmem:[#allocation3 + $0x168] sm:$0xff] }
 0x7a0   : > { %5375 = vmatmul.mubr.msk.f32.gmra.mrb[44].mxu1 %vm3188_vm7, %v4331_v4 }
 0x7a1   : > { %5377 = vmatprep.mubr.msk.f32.mxu1 %vm3188_vm7, %v4332_v40 }
 0x7a4   : > { %v5337_v43 = vpop.f32.mrb[18].mxu1  ;;  %5378 = vmatmul.mubr.msk.f32.gmra.mrb[46].mxu1 %vm3188_vm7, %v4333_v44 }
 0x7a5   : > { %v4794_v53 = vmul.f32 %v5337_v43, %v8473_v35  ;;  %v4637_v31 = vpop.f32.mrb[19].mxu1 }
 0x7a6   : > { %v4793_v10 = vmul.f32 %v8473_v35, %v4637_v31 }
 0x7a7   : > { %v4831_v60 = vadd.f32 %v8480_v23, %v4794_v53 }
 0x7a8   : > { %v4830_v39 = vadd.f32 %v8480_v23, %v4793_v10 }
 0x7a9   : > { %v4863_v2 = vmax.f32 %v4831_v60, 0.0 }
 0x7aa   : > { %v4862_v61 = vmax.f32 %v4830_v39, 0.0 }
 0x7ab   : > { %4895 = vst.msk [vmem:[%s8493_s23 + $0x68] sm:$0xff] %vm354_vm1, %v4863_v2 }
 0x7ac   : > { %4894 = vst.msk [vmem:[%s8493_s23 + $0x60] sm:$0xff] %vm354_vm1, %v4862_v61 }
 0x7b7   : > { %v5340_v13 = vpop.f32.mrb[20].mxu1 }
 0x7b8   : > { %v4795_v16 = vmul.f32 %v5340_v13, %v8473_v35  ;;  %v4647_v6 = vpop.f32.mrb[21].mxu1 }
 0x7ba   : > { %v4832_v14 = vadd.f32 %v8480_v23, %v4795_v16 }
 0x7bb   : > { %v5343_v56 = vpop.f32.mrb[22].mxu1 }
 0x7bc   : > { %v4864_v49 = vmax.f32 %v4832_v14, 0.0  ;;  %v4656_v15 = vpop.f32.mrb[23].mxu1 }
 0x7bd   : > { %v4796_v21 = vmul.f32 %v8473_v35, %v4656_v15 }
 0x7be   : > { %4896 = vst.msk [vmem:[%s8493_s23 + $0x70] sm:$0xff] %vm354_vm1, %v4864_v49 }
 0x7bf   : > { %v4833_v33 = vadd.f32 %v8480_v23, %v4796_v21 }
 0x7c1   : > { %v4865_v18 = vmax.f32 %v4833_v33, 0.0 }
 0x7c3   : > { %4897 = vst.msk [vmem:[%s8493_s23 + $0x78] sm:$0xff] %vm354_vm1, %v4865_v18 }
 0x7d4   : > { %v5346_v19 = vpop.f32.mrb[24].mxu1 }
 0x7d5   : > { %v4798_v55 = vmul.f32 %v5346_v19, %v8473_v35  ;;  %v4665_v24 = vpop.f32.mrb[25].mxu1 }
 0x7d6   : > { %v4797_v25 = vmul.f32 %v8473_v35, %v4665_v24 }
 0x7d7   : > { %v4835_v63 = vadd.f32 %v8480_v23, %v4798_v55 }
 0x7d8   : > { %v4834_v54 = vadd.f32 %v8480_v23, %v4797_v25 }
 0x7d9   : > { %v4867_v36 = vmax.f32 %v4835_v63, 0.0 }
 0x7da   : > { %v4866_v42 = vmax.f32 %v4834_v54, 0.0 }
 0x7db   : > { %4899 = vst.msk [vmem:[%s8493_s23 + $0x88] sm:$0xff] %vm354_vm1, %v4867_v36 }
 0x7dc   : > { %4898 = vst.msk [vmem:[%s8493_s23 + $0x80] sm:$0xff] %vm354_vm1, %v4866_v42 }
 0x7e7   : > { %v5349_v11 = vpop.f32.mrb[26].mxu1 }
 0x7e8   : > { %v4799_v7 = vmul.f32 %v5349_v11, %v8473_v35  ;;  %v4675_v58 = vpop.f32.mrb[27].mxu1 }
 0x7ea   : > { %v4836_v28 = vadd.f32 %v8480_v23, %v4799_v7 }
 0x7eb   : > { %v5352_v47 = vpop.f32.mrb[28].mxu1 }
 0x7ec   : > { %v4868_v57 = vmax.f32 %v4836_v28, 0.0  ;;  %v4684_v62 = vpop.f32.mrb[29].mxu1 }
 0x7ed   : > { %v4800_v50 = vmul.f32 %v8473_v35, %v4684_v62 }
 0x7ee   : > { %4900 = vst.msk [vmem:[%s8493_s23 + $0x90] sm:$0xff] %vm354_vm1, %v4868_v57 }
 0x7ef   : > { %v4837_v27 = vadd.f32 %v8480_v23, %v4800_v50 }
 0x7f1   : > { %v4869_v1 = vmax.f32 %v4837_v27, 0.0 }
 0x7f3   : > { %4901 = vst.msk [vmem:[%s8493_s23 + $0x98] sm:$0xff] %vm354_vm1, %v4869_v1 }
 0x804   : > { %v5355_v37 = vpop.f32.mrb[30].mxu1 }
 0x805   : > { %v4802_v51 = vmul.f32 %v5355_v37, %v8473_v35  ;;  %v4693_v59 = vpop.f32.mrb[31].mxu1 }
 0x806   : > { %v4801_v3 = vmul.f32 %v8473_v35, %v4693_v59 }
 0x807   : > { %v4839_v29 = vadd.f32 %v8480_v23, %v4802_v51 }
 0x808   : > { %v4838_v5 = vadd.f32 %v8480_v23, %v4801_v3 }
 0x809   : > { %v4871_v26 = vmax.f32 %v4839_v29, 0.0 }
 0x80a   : > { %v4870_v9 = vmax.f32 %v4838_v5, 0.0 }
 0x80b   : > { %4903 = vst.msk [vmem:[%s8493_s23 + $0xa8] sm:$0xff] %vm354_vm1, %v4871_v26 }
 0x80c   : > { %4902 = vst.msk [vmem:[%s8493_s23 + $0xa0] sm:$0xff] %vm354_vm1, %v4870_v9 }
 0x817   : > { %v5358_v30 = vpop.f32.mrb[32].mxu1 }
 0x818   : > { %v4803_v46 = vmul.f32 %v5358_v30, %v8473_v35  ;;  %v4703_v34 = vpop.f32.mrb[33].mxu1 }
 0x81a   : > { %v4840_v12 = vadd.f32 %v8480_v23, %v4803_v46 }
 0x81b   : > { %v5361_v32 = vpop.f32.mrb[34].mxu1 }
 0x81c   : > { %v4872_v38 = vmax.f32 %v4840_v12, 0.0  ;;  %v4712_v22 = vpop.f32.mrb[35].mxu1 }
 0x81d   : > { %v4804_v17 = vmul.f32 %v8473_v35, %v4712_v22 }
 0x81e   : > { %4904 = vst.msk [vmem:[%s8493_s23 + $0xb0] sm:$0xff] %vm354_vm1, %v4872_v38 }
 0x81f   : > { %v4841_v41 = vadd.f32 %v8480_v23, %v4804_v17 }
 0x821   : > { %v4873_v0 = vmax.f32 %v4841_v41, 0.0 }
 0x823   : > { %4905 = vst.msk [vmem:[%s8493_s23 + $0xb8] sm:$0xff] %vm354_vm1, %v4873_v0 }
 0x834   : > { %v5364_v8 = vpop.f32.mrb[36].mxu1 }
 0x835   : > { %v4806_v45 = vmul.f32 %v5364_v8, %v8473_v35  ;;  %v4721_v48 = vpop.f32.mrb[37].mxu1 }
 0x836   : > { %v4805_v20 = vmul.f32 %v8473_v35, %v4721_v48 }
 0x837   : > { %v4843_v52 = vadd.f32 %v8480_v23, %v4806_v45 }
 0x838   : > { %v4842_v4 = vadd.f32 %v8480_v23, %v4805_v20 }
 0x839   : > { %v4875_v40 = vmax.f32 %v4843_v52, 0.0 }
 0x83a   : > { %v4874_v44 = vmax.f32 %v4842_v4, 0.0 }
 0x83b   : > { %4907 = vst.msk [vmem:[%s8493_s23 + $0xc8] sm:$0xff] %vm354_vm1, %v4875_v40 }
 0x83c   : > { %4906 = vst.msk [vmem:[%s8493_s23 + $0xc0] sm:$0xff] %vm354_vm1, %v4874_v44 }
 0x847   : > { %v5367_v43 = vpop.f32.mrb[38].mxu1 }
 0x848   : > { %v4807_v53 = vmul.f32 %v5367_v43, %v8473_v35  ;;  %v4731_v31 = vpop.f32.mrb[39].mxu1 }
 0x84a   : > { %v4844_v10 = vadd.f32 %v8480_v23, %v4807_v53 }
 0x84b   : > { %v5370_v60 = vpop.f32.mrb[40].mxu1 }
 0x84c   : > { %v4876_v39 = vmax.f32 %v4844_v10, 0.0  ;;  %v4740_v2 = vpop.f32.mrb[41].mxu1 }
 0x84d   : > { %v4808_v61 = vmul.f32 %v8473_v35, %v4740_v2 }
 0x84e   : > { %4908 = vst.msk [vmem:[%s8493_s23 + $0xd0] sm:$0xff] %vm354_vm1, %v4876_v39 }
 0x84f   : > { %v4845_v13 = vadd.f32 %v8480_v23, %v4808_v61 }
 0x851   : > { %v4877_v16 = vmax.f32 %v4845_v13, 0.0 }
 0x853   : > { %4909 = vst.msk [vmem:[%s8493_s23 + $0xd8] sm:$0xff] %vm354_vm1, %v4877_v16 }
 0x864   : > { %v5373_v6 = vpop.f32.mrb[42].mxu1 }
 0x865   : > { %v4810_v14 = vmul.f32 %v5373_v6, %v8473_v35  ;;  %v4749_v56 = vpop.f32.mrb[43].mxu1 }
 0x866   : > { %v4809_v49 = vmul.f32 %v8473_v35, %v4749_v56 }
 0x867   : > { %v4847_v15 = vadd.f32 %v8480_v23, %v4810_v14 }
 0x868   : > { %v4846_v21 = vadd.f32 %v8480_v23, %v4809_v49 }
 0x869   : > { %v4879_v33 = vmax.f32 %v4847_v15, 0.0 }
 0x86a   : > { %v4878_v18 = vmax.f32 %v4846_v21, 0.0 }
 0x86b   : > { %4911 = vst.msk [vmem:[%s8493_s23 + $0xe8] sm:$0xff] %vm354_vm1, %v4879_v33 }
 0x86c   : > { %4910 = vst.msk [vmem:[%s8493_s23 + $0xe0] sm:$0xff] %vm354_vm1, %v4878_v18 }
 0x873   : > { %v5376_v19 = vpop.f32.mrb[44].mxu1 }
 0x874   : > { %v4811_v55 = vmul.f32 %v5376_v19, %v8473_v35  ;;  %v4759_v24 = vpop.f32.mrb[45].mxu1 }
 0x876   : > { %v4848_v25 = vadd.f32 %v8480_v23, %v4811_v55 }
 0x877   : > { %v5379_v63 = vpop.f32.mrb[46].mxu1 }
 0x878   : > { %v4880_v54 = vmax.f32 %v4848_v25, 0.0  ;;  %v4768_v36 = vpop.f32.mrb[47].mxu1 }
 0x879   : > { %v4812_v42 = vmul.f32 %v8473_v35, %v4768_v36 }
 0x87a   : > { %4912 = vst.msk [vmem:[%s8493_s23 + $0xf0] sm:$0xff] %vm354_vm1, %v4880_v54 }
 0x87b   : > { %v4849_v11 = vadd.f32 %v8480_v23, %v4812_v42 }
 0x87d   : > { %v4881_v7 = vmax.f32 %v4849_v11, 0.0 }
 0x87f   : > { %4913 = vst.msk [vmem:[%s8493_s23 + $0xf8] sm:$0xff] %vm354_vm1, %v4881_v7 }
 0x880 PF: > { %s16_s21 = sadd.s32 1, %s5468_s21  }
 0x881   : > { %p13_p4 = scmp.ge.s32.totalorder %s16_s21, 4  }
 0x883   :  { %15 = sbr.rel (!%p13_p4) target bundleno = 1 (0x1), region = 79 }

</bundles_post_ra>
